<compile_context>
chip_gen: v5e
topology: v5e:2x2
jax: 0.10.0
libtpu: 0.0.40
codegen_flags: <defaults>
</compile_context>

<pallas_src>
from functools import partial

import jax
import jax.numpy as jnp
from jax.experimental import pallas as pl
from jax.experimental.pallas import tpu as pltpu

LANE = 128


def _round_up(x, m):
    return (x + m - 1) // m * m


def _resblock_kernel(downsample, H, W, cin_p, cout_p,
                     x_ref,      # (1, H+2, W+2, cin_p)  bf16, pre-padded input
                     w1_ref,     # (9*cin_p, ncat)       bf16  (conv1 [+ fused wds])
                     w2_ref,     # (9*cout_p, cout_p)    bf16
                     s1_ref, b1_ref,   # (1, cout_p) f32 folded BN1
                     s2_ref, b2_ref,   # (1, cout_p) f32 folded BN2
                     o_ref,      # (1, H*W, cout_p)      f32, lane-dense output
                     pad_ref):   # scratch (H+2, W+2, cout_p) bf16 (halo buffer)
    HW = H * W

    # ---- conv1 (+ fused downsample conv): one im2col matmul ----
    taps1 = [x_ref[0, dy:dy + H, dx:dx + W, :].reshape(HW, cin_p)
             for dy in range(3) for dx in range(3)]
    patches1 = jnp.concatenate(taps1, axis=-1)            # (HW, 9*cin_p) bf16
    r = jnp.dot(patches1, w1_ref[...],
                preferred_element_type=jnp.float32)       # (HW, ncat) f32

    acc1 = r[:, :cout_p]
    # ---- bn1 (folded) + relu ----   (VPU work, hidden under MXU slack)
    out1 = jnp.maximum(acc1 * s1_ref[...] + b1_ref[...], 0.0)   # (HW, cout_p)

    # ---- write intermediate into halo scratch (border-only re-zero) ----
    zrow = jnp.zeros((1, W + 2, cout_p), dtype=pad_ref.dtype)
    zcol = jnp.zeros((H, 1, cout_p), dtype=pad_ref.dtype)
    pad_ref[0:1, :, :] = zrow
    pad_ref[H + 1:H + 2, :, :] = zrow
    pad_ref[1:H + 1, 0:1, :] = zcol
    pad_ref[1:H + 1, W + 1:W + 2, :] = zcol
    pad_ref[1:H + 1, 1:W + 1, :] = out1.reshape(H, W, cout_p).astype(pad_ref.dtype)

    # ---- conv2: one im2col matmul over ref-sliced taps ----
    taps2 = [pad_ref[dy:dy + H, dx:dx + W, :].reshape(HW, cout_p)
             for dy in range(3) for dx in range(3)]
    patches2 = jnp.concatenate(taps2, axis=-1)            # (HW, 9*cout_p) bf16
    acc2 = jnp.dot(patches2, w2_ref[...],
                   preferred_element_type=jnp.float32)    # (HW, cout_p) f32

    # ---- bn2 (folded) ----
    out2 = acc2 * s2_ref[...] + b2_ref[...]

    # ---- residual path ----
    if downsample:
        res = r[:, cout_p:]                               # downsample conv (no BN)
    else:
        res = x_ref[0, 1:H + 1, 1:W + 1, :].reshape(HW, cout_p).astype(jnp.float32)

    o_ref[0] = jnp.maximum(out2 + res, 0.0).astype(o_ref.dtype)


def _prep_weight(w, cin_p, cout_p):
    """PyTorch (Cout, Cin, 3, 3) -> (9*cin_p, cout_p), zero padded on channels."""
    cout, cin = w.shape[0], w.shape[1]
    w = jnp.transpose(w, (2, 3, 1, 0))                       # (3, 3, Cin, Cout)
    w = jnp.pad(w, ((0, 0), (0, 0), (0, cin_p - cin), (0, cout_p - cout)))
    return w.reshape(9 * cin_p, cout_p)


def _fold_bn(gamma, beta, mean, var, cout_p, eps=1e-5):
    scale = gamma / jnp.sqrt(var + eps)
    bias = beta - mean * scale
    c = scale.shape[0]
    scale = jnp.pad(scale, (0, cout_p - c)).reshape(1, cout_p).astype(jnp.float32)
    bias = jnp.pad(bias, (0, cout_p - c)).reshape(1, cout_p).astype(jnp.float32)
    return scale, bias


def resblock_forward(x_nchw, params, downsample, compute_dtype=jnp.bfloat16):
    """x_nchw: (B, Cin, H, W) float32. Returns (B, Cout, H, W) float32."""
    B, Cin, H, W = x_nchw.shape
    Cout = params["w1"].shape[0]
    cin_p = _round_up(Cin, LANE)
    cout_p = _round_up(Cout, LANE)
    if not downsample:
        assert Cin == Cout, "identity residual requires Cin == Cout"

    # NHWC, spatial pad=1, channel pad to lane width, bf16 for MXU feeds.
    x = jnp.transpose(x_nchw, (0, 2, 3, 1))
    x = jnp.pad(x, ((0, 0), (1, 1), (1, 1), (0, cin_p - Cin))).astype(compute_dtype)

    w1 = _prep_weight(params["w1"], cin_p, cout_p)
    if downsample:
        wds = _prep_weight(params["wds"], cin_p, cout_p)
        w1cat = jnp.concatenate([w1, wds], axis=-1)          # fused conv1 + wds
    else:
        w1cat = w1                                           # no dead wds DMA
    w1cat = w1cat.astype(compute_dtype)
    w2 = _prep_weight(params["w2"], cout_p, cout_p).astype(compute_dtype)

    s1, b1 = _fold_bn(*params["bn1"], cout_p)
    s2, b2 = _fold_bn(*params["bn2"], cout_p)

    ncat = w1cat.shape[-1]
    kernel = partial(_resblock_kernel, downsample, H, W, cin_p, cout_p)

    out = pl.pallas_call(
        kernel,
        out_shape=jax.ShapeDtypeStruct((B, H * W, cout_p), x_nchw.dtype),
        grid_spec=pltpu.PrefetchScalarGridSpec(
            num_scalar_prefetch=0,
            grid=(B,),
            in_specs=[
                pl.BlockSpec((1, H + 2, W + 2, cin_p), lambda b: (b, 0, 0, 0)),
                # Weights / BN vectors: index_map constant across the grid ->
                # fetched once, kept resident in VMEM.
                pl.BlockSpec((9 * cin_p, ncat), lambda b: (0, 0)),
                pl.BlockSpec((9 * cout_p, cout_p), lambda b: (0, 0)),
                pl.BlockSpec((1, cout_p), lambda b: (0, 0)),
                pl.BlockSpec((1, cout_p), lambda b: (0, 0)),
                pl.BlockSpec((1, cout_p), lambda b: (0, 0)),
                pl.BlockSpec((1, cout_p), lambda b: (0, 0)),
            ],
            out_specs=pl.BlockSpec((1, H * W, cout_p), lambda b: (b, 0, 0)),
            scratch_shapes=[pltpu.VMEM((H + 2, W + 2, cout_p), compute_dtype)],
        ),
        compiler_params=pltpu.CompilerParams(
            dimension_semantics=("parallel",)),   # batch shards across TCs on v7x
    )(x, w1cat, w2, s1, b1, s2, b2)

    out = out.reshape(B, H, W, cout_p)[:, :, :, :Cout]       # drop channel padding
    return jnp.transpose(out, (0, 3, 1, 2))                  # back to NCHW


def ref_forward(x, params, downsample):
    """Pure-JAX reference (XLA convolutions, f32) for validation."""
    def conv(inp, w):
        return jax.lax.conv_general_dilated(
            inp, w, window_strides=(1, 1), padding="SAME",
            dimension_numbers=("NCHW", "OIHW", "NCHW"),
            precision=jax.lax.Precision.HIGHEST)

    def bn(inp, p):
        gamma, beta, mean, var = p
        scale = gamma / jnp.sqrt(var + 1e-5)
        bias = beta - mean * scale
        return inp * scale[None, :, None, None] + bias[None, :, None, None]

    out = jnp.maximum(bn(conv(x, params["w1"]), params["bn1"]), 0.0)
    out = bn(conv(out, params["w2"]), params["bn2"])
    res = conv(x, params["wds"]) if downsample else x
    return jnp.maximum(out + res, 0.0)


if __name__ == "__main__":
    B, Cin, Cout, H, W = 2, 4, 8, 16, 16
    downsample = (Cin != Cout)  # stride is always 1 here

    key = jax.random.PRNGKey(0)
    kx, k1, k2, k3 = jax.random.split(key, 4)

    x = jax.random.normal(kx, (B, Cin, H, W), jnp.float32)

    params = {
        "w1": jax.random.normal(k1, (Cout, Cin, 3, 3), jnp.float32) * 0.1,
        "w2": jax.random.normal(k2, (Cout, Cout, 3, 3), jnp.float32) * 0.1,
        "wds": jax.random.normal(k3, (Cout, Cin, 3, 3), jnp.float32) * 0.1,
        # BN params: (gamma, beta, running_mean, running_var)
        "bn1": (1.0 + 0.01 * jnp.arange(Cout, dtype=jnp.float32),
                0.05 * jnp.arange(Cout, dtype=jnp.float32),
                0.02 * jnp.arange(Cout, dtype=jnp.float32),
                1.0 + 0.10 * jnp.arange(Cout, dtype=jnp.float32)),
        "bn2": (1.0 - 0.01 * jnp.arange(Cout, dtype=jnp.float32),
                -0.03 * jnp.arange(Cout, dtype=jnp.float32),
                0.01 * jnp.arange(Cout, dtype=jnp.float32),
                1.0 + 0.05 * jnp.arange(Cout, dtype=jnp.float32)),
    }

    out = resblock_forward(x, params, downsample)
    out = jax.block_until_ready(out)

    ref = jax.block_until_ready(ref_forward(x, params, downsample))
    max_err = float(jnp.max(jnp.abs(out - ref)))
    assert out.shape == (B, Cout, H, W), out.shape
    # bf16 MXU operands with f32 accumulation vs f32 HIGHEST reference.
    assert max_err < 1e-1, f"max abs error too large: {max_err}"

    print("KERNEL_OK")
</pallas_src>

<mosaic_0001>
module attributes {stable_mosaic.version = 11 : i64} {
  func.func @_resblock_kernel(%arg0: i32, %arg1: memref<1x18x18x128xbf16, #tpu.memory_space<vmem>>, %arg2: memref<1152x256xbf16, #tpu.memory_space<vmem>>, %arg3: memref<1152x128xbf16, #tpu.memory_space<vmem>>, %arg4: memref<1x128xf32, #tpu.memory_space<vmem>>, %arg5: memref<1x128xf32, #tpu.memory_space<vmem>>, %arg6: memref<1x128xf32, #tpu.memory_space<vmem>>, %arg7: memref<1x128xf32, #tpu.memory_space<vmem>>, %arg8: memref<1x256x128xf32, #tpu.memory_space<vmem>>, %arg9: memref<18x18x128xbf16, #tpu.memory_space<vmem>>) attributes {dimension_semantics = [#tpu.dimension_semantics<parallel>], iteration_bounds = array<i64: 2>, scalar_prefetch = 0 : i64, scratch_operands = 1 : i64, tpu.core_type = #tpu.core_type<tc>, window_params = [{transform_indices = @transform_0, window_bounds = array<i64: 1, 18, 18, 128>}, {pipeline_mode = #tpu.pipeline_mode<synchronous>, transform_indices = @transform_1, window_bounds = array<i64: 1152, 256>}, {pipeline_mode = #tpu.pipeline_mode<synchronous>, transform_indices = @transform_2, window_bounds = array<i64: 1152, 128>}, {pipeline_mode = #tpu.pipeline_mode<synchronous>, transform_indices = @transform_3, window_bounds = array<i64: 1, 128>}, {pipeline_mode = #tpu.pipeline_mode<synchronous>, transform_indices = @transform_4, window_bounds = array<i64: 1, 128>}, {pipeline_mode = #tpu.pipeline_mode<synchronous>, transform_indices = @transform_5, window_bounds = array<i64: 1, 128>}, {pipeline_mode = #tpu.pipeline_mode<synchronous>, transform_indices = @transform_6, window_bounds = array<i64: 1, 128>}, {transform_indices = @transform_7, window_bounds = array<i64: 1, 256, 128>}]} {
    %c0 = arith.constant 0 : index
    %c0_0 = arith.constant 0 : index
    %c0_1 = arith.constant 0 : index
    %c0_2 = arith.constant 0 : index
    %0 = vector.load %arg1[%c0, %c0_0, %c0_1, %c0_2] : memref<1x18x18x128xbf16, #tpu.memory_space<vmem>>, vector<1x16x16x128xbf16>
    %1 = vector.shape_cast %0 : vector<1x16x16x128xbf16> to vector<16x16x128xbf16>
    %2 = vector.shape_cast %1 : vector<16x16x128xbf16> to vector<256x128xbf16>
    %c0_3 = arith.constant 0 : index
    %c0_4 = arith.constant 0 : index
    %c1 = arith.constant 1 : index
    %c0_5 = arith.constant 0 : index
    %3 = vector.load %arg1[%c0_3, %c0_4, %c1, %c0_5] : memref<1x18x18x128xbf16, #tpu.memory_space<vmem>>, vector<1x16x16x128xbf16>
    %4 = vector.shape_cast %3 : vector<1x16x16x128xbf16> to vector<16x16x128xbf16>
    %5 = vector.shape_cast %4 : vector<16x16x128xbf16> to vector<256x128xbf16>
    %c0_6 = arith.constant 0 : index
    %c0_7 = arith.constant 0 : index
    %c2 = arith.constant 2 : index
    %c0_8 = arith.constant 0 : index
    %6 = vector.load %arg1[%c0_6, %c0_7, %c2, %c0_8] : memref<1x18x18x128xbf16, #tpu.memory_space<vmem>>, vector<1x16x16x128xbf16>
    %7 = vector.shape_cast %6 : vector<1x16x16x128xbf16> to vector<16x16x128xbf16>
    %8 = vector.shape_cast %7 : vector<16x16x128xbf16> to vector<256x128xbf16>
    %c0_9 = arith.constant 0 : index
    %c1_10 = arith.constant 1 : index
    %c0_11 = arith.constant 0 : index
    %c0_12 = arith.constant 0 : index
    %9 = vector.load %arg1[%c0_9, %c1_10, %c0_11, %c0_12] : memref<1x18x18x128xbf16, #tpu.memory_space<vmem>>, vector<1x16x16x128xbf16>
    %10 = vector.shape_cast %9 : vector<1x16x16x128xbf16> to vector<16x16x128xbf16>
    %11 = vector.shape_cast %10 : vector<16x16x128xbf16> to vector<256x128xbf16>
    %c0_13 = arith.constant 0 : index
    %c1_14 = arith.constant 1 : index
    %c1_15 = arith.constant 1 : index
    %c0_16 = arith.constant 0 : index
    %12 = vector.load %arg1[%c0_13, %c1_14, %c1_15, %c0_16] : memref<1x18x18x128xbf16, #tpu.memory_space<vmem>>, vector<1x16x16x128xbf16>
    %13 = vector.shape_cast %12 : vector<1x16x16x128xbf16> to vector<16x16x128xbf16>
    %14 = vector.shape_cast %13 : vector<16x16x128xbf16> to vector<256x128xbf16>
    %c0_17 = arith.constant 0 : index
    %c1_18 = arith.constant 1 : index
    %c2_19 = arith.constant 2 : index
    %c0_20 = arith.constant 0 : index
    %15 = vector.load %arg1[%c0_17, %c1_18, %c2_19, %c0_20] : memref<1x18x18x128xbf16, #tpu.memory_space<vmem>>, vector<1x16x16x128xbf16>
    %16 = vector.shape_cast %15 : vector<1x16x16x128xbf16> to vector<16x16x128xbf16>
    %17 = vector.shape_cast %16 : vector<16x16x128xbf16> to vector<256x128xbf16>
    %c0_21 = arith.constant 0 : index
    %c2_22 = arith.constant 2 : index
    %c0_23 = arith.constant 0 : index
    %c0_24 = arith.constant 0 : index
    %18 = vector.load %arg1[%c0_21, %c2_22, %c0_23, %c0_24] : memref<1x18x18x128xbf16, #tpu.memory_space<vmem>>, vector<1x16x16x128xbf16>
    %19 = vector.shape_cast %18 : vector<1x16x16x128xbf16> to vector<16x16x128xbf16>
    %20 = vector.shape_cast %19 : vector<16x16x128xbf16> to vector<256x128xbf16>
    %c0_25 = arith.constant 0 : index
    %c2_26 = arith.constant 2 : index
    %c1_27 = arith.constant 1 : index
    %c0_28 = arith.constant 0 : index
    %21 = vector.load %arg1[%c0_25, %c2_26, %c1_27, %c0_28] : memref<1x18x18x128xbf16, #tpu.memory_space<vmem>>, vector<1x16x16x128xbf16>
    %22 = vector.shape_cast %21 : vector<1x16x16x128xbf16> to vector<16x16x128xbf16>
    %23 = vector.shape_cast %22 : vector<16x16x128xbf16> to vector<256x128xbf16>
    %c0_29 = arith.constant 0 : index
    %c2_30 = arith.constant 2 : index
    %c2_31 = arith.constant 2 : index
    %c0_32 = arith.constant 0 : index
    %24 = vector.load %arg1[%c0_29, %c2_30, %c2_31, %c0_32] : memref<1x18x18x128xbf16, #tpu.memory_space<vmem>>, vector<1x16x16x128xbf16>
    %25 = vector.shape_cast %24 : vector<1x16x16x128xbf16> to vector<16x16x128xbf16>
    %26 = vector.shape_cast %25 : vector<16x16x128xbf16> to vector<256x128xbf16>
    %27 = tpu.concatenate %2, %5, %8, %11, %14, %17, %20, %23, %26 in 1 : vector<256x128xbf16>, vector<256x128xbf16>, vector<256x128xbf16>, vector<256x128xbf16>, vector<256x128xbf16>, vector<256x128xbf16>, vector<256x128xbf16>, vector<256x128xbf16>, vector<256x128xbf16> -> vector<256x1152xbf16>
    %c0_33 = arith.constant 0 : index
    %c0_34 = arith.constant 0 : index
    %28 = vector.load %arg2[%c0_33, %c0_34] : memref<1152x256xbf16, #tpu.memory_space<vmem>>, vector<1152x256xbf16>
    %cst = arith.constant dense<0.000000e+00> : vector<256x256xf32>
    %29 = tpu.matmul %27, %28, %cst {dimension_numbers = #tpu.dot_dimension_numbers<[1], [0], [0], [1], [0, 0, 1, 1], [], []>} : vector<256x1152xbf16>, vector<1152x256xbf16>, vector<256x256xf32> -> vector<256x256xf32>
    %30 = vector.extract_strided_slice %29 {offsets = [0, 0], sizes = [256, 128], strides = [1, 1]} : vector<256x256xf32> to vector<256x128xf32>
    %c0_35 = arith.constant 0 : index
    %c0_36 = arith.constant 0 : index
    %31 = vector.load %arg4[%c0_35, %c0_36] : memref<1x128xf32, #tpu.memory_space<vmem>>, vector<1x128xf32>
    %32 = vector.broadcast %31 : vector<1x128xf32> to vector<256x128xf32>
    %33 = arith.mulf %30, %32 : vector<256x128xf32>
    %c0_37 = arith.constant 0 : index
    %c0_38 = arith.constant 0 : index
    %34 = vector.load %arg5[%c0_37, %c0_38] : memref<1x128xf32, #tpu.memory_space<vmem>>, vector<1x128xf32>
    %35 = vector.broadcast %34 : vector<1x128xf32> to vector<256x128xf32>
    %36 = arith.addf %33, %35 : vector<256x128xf32>
    %cst_39 = arith.constant 0.000000e+00 : f32
    %37 = vector.broadcast %cst_39 : f32 to vector<256x128xf32>
    %38 = arith.maximumf %36, %37 : vector<256x128xf32>
    %cst_40 = arith.constant 0.000000e+00 : bf16
    %39 = vector.broadcast %cst_40 : bf16 to vector<1x18x128xbf16>
    %cst_41 = arith.constant 0.000000e+00 : bf16
    %40 = vector.broadcast %cst_41 : bf16 to vector<16x1x128xbf16>
    %c0_42 = arith.constant 0 : index
    %c0_43 = arith.constant 0 : index
    %c0_44 = arith.constant 0 : index
    %41 = vector.load %arg9[%c0_42, %c0_43, %c0_44] : memref<18x18x128xbf16, #tpu.memory_space<vmem>>, vector<1x18x128xbf16>
    tpu.vector_store %arg9[%c0_42, %c0_43, %c0_44], %39 {strides = array<i32>} : memref<18x18x128xbf16, #tpu.memory_space<vmem>>, vector<1x18x128xbf16>,
    %c17 = arith.constant 17 : index
    %c0_45 = arith.constant 0 : index
    %c0_46 = arith.constant 0 : index
    %42 = vector.load %arg9[%c17, %c0_45, %c0_46] : memref<18x18x128xbf16, #tpu.memory_space<vmem>>, vector<1x18x128xbf16>
    tpu.vector_store %arg9[%c17, %c0_45, %c0_46], %39 {strides = array<i32>} : memref<18x18x128xbf16, #tpu.memory_space<vmem>>, vector<1x18x128xbf16>,
    %c1_47 = arith.constant 1 : index
    %c0_48 = arith.constant 0 : index
    %c0_49 = arith.constant 0 : index
    %43 = vector.load %arg9[%c1_47, %c0_48, %c0_49] : memref<18x18x128xbf16, #tpu.memory_space<vmem>>, vector<16x1x128xbf16>
    tpu.vector_store %arg9[%c1_47, %c0_48, %c0_49], %40 {strides = array<i32>} : memref<18x18x128xbf16, #tpu.memory_space<vmem>>, vector<16x1x128xbf16>,
    %c1_50 = arith.constant 1 : index
    %c17_51 = arith.constant 17 : index
    %c0_52 = arith.constant 0 : index
    %44 = vector.load %arg9[%c1_50, %c17_51, %c0_52] : memref<18x18x128xbf16, #tpu.memory_space<vmem>>, vector<16x1x128xbf16>
    tpu.vector_store %arg9[%c1_50, %c17_51, %c0_52], %40 {strides = array<i32>} : memref<18x18x128xbf16, #tpu.memory_space<vmem>>, vector<16x1x128xbf16>,
    %45 = vector.shape_cast %38 : vector<256x128xf32> to vector<16x16x128xf32>
    %46 = arith.truncf %45 : vector<16x16x128xf32> to vector<16x16x128xbf16>
    %c1_53 = arith.constant 1 : index
    %c1_54 = arith.constant 1 : index
    %c0_55 = arith.constant 0 : index
    %47 = vector.load %arg9[%c1_53, %c1_54, %c0_55] : memref<18x18x128xbf16, #tpu.memory_space<vmem>>, vector<16x16x128xbf16>
    tpu.vector_store %arg9[%c1_53, %c1_54, %c0_55], %46 {strides = array<i32>} : memref<18x18x128xbf16, #tpu.memory_space<vmem>>, vector<16x16x128xbf16>,
    %c0_56 = arith.constant 0 : index
    %c0_57 = arith.constant 0 : index
    %c0_58 = arith.constant 0 : index
    %48 = vector.load %arg9[%c0_56, %c0_57, %c0_58] : memref<18x18x128xbf16, #tpu.memory_space<vmem>>, vector<16x16x128xbf16>
    %49 = vector.shape_cast %48 : vector<16x16x128xbf16> to vector<256x128xbf16>
    %c0_59 = arith.constant 0 : index
    %c1_60 = arith.constant 1 : index
    %c0_61 = arith.constant 0 : index
    %50 = vector.load %arg9[%c0_59, %c1_60, %c0_61] : memref<18x18x128xbf16, #tpu.memory_space<vmem>>, vector<16x16x128xbf16>
    %51 = vector.shape_cast %50 : vector<16x16x128xbf16> to vector<256x128xbf16>
    %c0_62 = arith.constant 0 : index
    %c2_63 = arith.constant 2 : index
    %c0_64 = arith.constant 0 : index
    %52 = vector.load %arg9[%c0_62, %c2_63, %c0_64] : memref<18x18x128xbf16, #tpu.memory_space<vmem>>, vector<16x16x128xbf16>
    %53 = vector.shape_cast %52 : vector<16x16x128xbf16> to vector<256x128xbf16>
    %c1_65 = arith.constant 1 : index
    %c0_66 = arith.constant 0 : index
    %c0_67 = arith.constant 0 : index
    %54 = vector.load %arg9[%c1_65, %c0_66, %c0_67] : memref<18x18x128xbf16, #tpu.memory_space<vmem>>, vector<16x16x128xbf16>
    %55 = vector.shape_cast %54 : vector<16x16x128xbf16> to vector<256x128xbf16>
    %c1_68 = arith.constant 1 : index
    %c1_69 = arith.constant 1 : index
    %c0_70 = arith.constant 0 : index
    %56 = vector.load %arg9[%c1_68, %c1_69, %c0_70] : memref<18x18x128xbf16, #tpu.memory_space<vmem>>, vector<16x16x128xbf16>
    %57 = vector.shape_cast %56 : vector<16x16x128xbf16> to vector<256x128xbf16>
    %c1_71 = arith.constant 1 : index
    %c2_72 = arith.constant 2 : index
    %c0_73 = arith.constant 0 : index
    %58 = vector.load %arg9[%c1_71, %c2_72, %c0_73] : memref<18x18x128xbf16, #tpu.memory_space<vmem>>, vector<16x16x128xbf16>
    %59 = vector.shape_cast %58 : vector<16x16x128xbf16> to vector<256x128xbf16>
    %c2_74 = arith.constant 2 : index
    %c0_75 = arith.constant 0 : index
    %c0_76 = arith.constant 0 : index
    %60 = vector.load %arg9[%c2_74, %c0_75, %c0_76] : memref<18x18x128xbf16, #tpu.memory_space<vmem>>, vector<16x16x128xbf16>
    %61 = vector.shape_cast %60 : vector<16x16x128xbf16> to vector<256x128xbf16>
    %c2_77 = arith.constant 2 : index
    %c1_78 = arith.constant 1 : index
    %c0_79 = arith.constant 0 : index
    %62 = vector.load %arg9[%c2_77, %c1_78, %c0_79] : memref<18x18x128xbf16, #tpu.memory_space<vmem>>, vector<16x16x128xbf16>
    %63 = vector.shape_cast %62 : vector<16x16x128xbf16> to vector<256x128xbf16>
    %c2_80 = arith.constant 2 : index
    %c2_81 = arith.constant 2 : index
    %c0_82 = arith.constant 0 : index
    %64 = vector.load %arg9[%c2_80, %c2_81, %c0_82] : memref<18x18x128xbf16, #tpu.memory_space<vmem>>, vector<16x16x128xbf16>
    %65 = vector.shape_cast %64 : vector<16x16x128xbf16> to vector<256x128xbf16>
    %66 = tpu.concatenate %49, %51, %53, %55, %57, %59, %61, %63, %65 in 1 : vector<256x128xbf16>, vector<256x128xbf16>, vector<256x128xbf16>, vector<256x128xbf16>, vector<256x128xbf16>, vector<256x128xbf16>, vector<256x128xbf16>, vector<256x128xbf16>, vector<256x128xbf16> -> vector<256x1152xbf16>
    %c0_83 = arith.constant 0 : index
    %c0_84 = arith.constant 0 : index
    %67 = vector.load %arg3[%c0_83, %c0_84] : memref<1152x128xbf16, #tpu.memory_space<vmem>>, vector<1152x128xbf16>
    %cst_85 = arith.constant dense<0.000000e+00> : vector<256x128xf32>
    %68 = tpu.matmul %66, %67, %cst_85 {dimension_numbers = #tpu.dot_dimension_numbers<[1], [0], [0], [1], [0, 0, 1, 1], [], []>} : vector<256x1152xbf16>, vector<1152x128xbf16>, vector<256x128xf32> -> vector<256x128xf32>
    %c0_86 = arith.constant 0 : index
    %c0_87 = arith.constant 0 : index
    %69 = vector.load %arg6[%c0_86, %c0_87] : memref<1x128xf32, #tpu.memory_space<vmem>>, vector<1x128xf32>
    %70 = vector.broadcast %69 : vector<1x128xf32> to vector<256x128xf32>
    %71 = arith.mulf %68, %70 : vector<256x128xf32>
    %c0_88 = arith.constant 0 : index
    %c0_89 = arith.constant 0 : index
    %72 = vector.load %arg7[%c0_88, %c0_89] : memref<1x128xf32, #tpu.memory_space<vmem>>, vector<1x128xf32>
    %73 = vector.broadcast %72 : vector<1x128xf32> to vector<256x128xf32>
    %74 = arith.addf %71, %73 : vector<256x128xf32>
    %75 = vector.extract_strided_slice %29 {offsets = [0, 128], sizes = [256, 128], strides = [1, 1]} : vector<256x256xf32> to vector<256x128xf32>
    %76 = arith.addf %74, %75 : vector<256x128xf32>
    %cst_90 = arith.constant 0.000000e+00 : f32
    %77 = vector.broadcast %cst_90 : f32 to vector<256x128xf32>
    %78 = arith.maximumf %76, %77 : vector<256x128xf32>
    %c0_91 = arith.constant 0 : index
    %c0_92 = arith.constant 0 : index
    %c0_93 = arith.constant 0 : index
    %79 = vector.load %arg8[%c0_91, %c0_92, %c0_93] : memref<1x256x128xf32, #tpu.memory_space<vmem>>, vector<1x256x128xf32>
    %80 = vector.shape_cast %79 : vector<1x256x128xf32> to vector<256x128xf32>
    %81 = vector.shape_cast %78 : vector<256x128xf32> to vector<1x256x128xf32>
    tpu.vector_store %arg8[%c0_91, %c0_92, %c0_93], %81 {strides = array<i32>} : memref<1x256x128xf32, #tpu.memory_space<vmem>>, vector<1x256x128xf32>,
    return
  }
  func.func @transform_0(%arg0: i32) -> (i32, i32, i32, i32) {
    %c0_i32 = arith.constant 0 : i32
    %c0_i32_0 = arith.constant 0 : i32
    %c0_i32_1 = arith.constant 0 : i32
    %c0_i32_2 = arith.constant 0 : i32
    return %arg0, %c0_i32, %c0_i32_0, %c0_i32_1 : i32, i32, i32, i32
  }
  func.func @transform_1(%arg0: i32) -> (i32, i32) {
    %c0_i32 = arith.constant 0 : i32
    %c0_i32_0 = arith.constant 0 : i32
    %c0_i32_1 = arith.constant 0 : i32
    return %c0_i32, %c0_i32_0 : i32, i32
  }
  func.func @transform_2(%arg0: i32) -> (i32, i32) {
    %c0_i32 = arith.constant 0 : i32
    %c0_i32_0 = arith.constant 0 : i32
    %c0_i32_1 = arith.constant 0 : i32
    return %c0_i32, %c0_i32_0 : i32, i32
  }
  func.func @transform_3(%arg0: i32) -> (i32, i32) {
    %c0_i32 = arith.constant 0 : i32
    %c0_i32_0 = arith.constant 0 : i32
    %c0_i32_1 = arith.constant 0 : i32
    return %c0_i32, %c0_i32_0 : i32, i32
  }
  func.func @transform_4(%arg0: i32) -> (i32, i32) {
    %c0_i32 = arith.constant 0 : i32
    %c0_i32_0 = arith.constant 0 : i32
    %c0_i32_1 = arith.constant 0 : i32
    return %c0_i32, %c0_i32_0 : i32, i32
  }
  func.func @transform_5(%arg0: i32) -> (i32, i32) {
    %c0_i32 = arith.constant 0 : i32
    %c0_i32_0 = arith.constant 0 : i32
    %c0_i32_1 = arith.constant 0 : i32
    return %c0_i32, %c0_i32_0 : i32, i32
  }
  func.func @transform_6(%arg0: i32) -> (i32, i32) {
    %c0_i32 = arith.constant 0 : i32
    %c0_i32_0 = arith.constant 0 : i32
    %c0_i32_1 = arith.constant 0 : i32
    return %c0_i32, %c0_i32_0 : i32, i32
  }
  func.func @transform_7(%arg0: i32) -> (i32, i32, i32) {
    %c0_i32 = arith.constant 0 : i32
    %c0_i32_0 = arith.constant 0 : i32
    %c0_i32_1 = arith.constant 0 : i32
    return %arg0, %c0_i32, %c0_i32_0 : i32, i32, i32
  }
}

</mosaic_0001>

<bundles_post_ra>
// kernel: tpu_custom_call.1
= control target key start
LH: loop header
LB: loop body
LE: loop exit
PB: predicated region body
PF: predicated region fallthrough
CT: control target
= control target key end

     0   :  { %12 = vsyncpa [#allocation4], 0  ;;  %s15788_s0 = inlined_call_operand.vmem [shape: bf16[2,18,18,128], index: 0, kind: input, shape index: {}]   ;;  %s15789_s1 = inlined_call_operand.hbm [shape: bf16[1152,256], index: 1, kind: input, shape index: {}]   ;;  %s15790_s2 = inlined_call_operand.vmem [shape: bf16[1152,128], index: 2, kind: input, shape index: {}]   ;;  %s15791_s3 = inlined_call_operand.vmem [shape: f32[1,128], index: 3, kind: input, shape index: {}]   ;;  %s15792_s4 = inlined_call_operand.vmem [shape: f32[1,128], index: 4, kind: input, shape index: {}]   ;;  %s15793_s5 = inlined_call_operand.vmem [shape: f32[1,128], index: 5, kind: input, shape index: {}]   ;;  %s15794_s6 = inlined_call_operand.vmem [shape: f32[1,128], index: 6, kind: input, shape index: {}]   ;;  %s15795_s7 = inlined_call_operand.hbm [shape: f32[2,256,128], index: 7, kind: output, shape index: {}]  }
   0x1   :  { %13 = vsyncpa [#allocation5], 0 }
   0x2   :  { %15 = vsyncpa [#allocation5 + $0x1], 0  ;;  %s12094_s24 = smov 0   ;;  %s12096_s25 = smov 0  }
   0x3   :  { %s12098_s26 = smov 0   ;;  %s12100_s27 = smov 0  }
   0x4 LB: > { %s12115_s28 = sadd.s32 4294967295, %s12046_s27   ;;  %s9982_s29 = sadd.s32 4294967294, %s12046_s27   ;;  %s12046_s27 = sphi %s12100_s27, %s16198_s27   ;;  %s12042_s26 = sphi %s12098_s26, %s16197_s26   ;;  %s12038_s25 = sphi %s12096_s25, %s16196_s25   ;;  %s12034_s24 = sphi %s12094_s24, %s16195_s24  }
   0x5   : > { %s12119_s30 = sadd.s32 1, %s12046_s27   ;;  %s180_s8 = sadd.s32 1, %s12042_s26 }
   0x6   : > { %s177_s9 = ssub.s32 %s12046_s27, %s12119_s30  ;;  %p190_p0 = scmp.ne.s32.totalorder %s12042_s26, %s12038_s25 }
   0x7   : > { %p178_p1 = scmp.eq.s32.totalorder %s177_s9, 0  ;;  %p191_p2 = scmp.eq.s32.totalorder %s12115_s28, 1 }
   0x8   : > { %p196_p3 = scmp.ne.s32.totalorder %s12038_s25, %s12034_s24  ;;  %p197_p4 = scmp.eq.s32.totalorder %s9982_s29, 1 }
   0x9   : > { %s12130_s10 = scalar_select %p178_p1, %s12042_s26, %s180_s8  }
   0xa   : > { %p12132_p5 = por %p191_p2, %p190_p0  ;;  %p12136_p6 = por %p197_p4, %p196_p3 }
   0xb   : > { %p9983_p7 = scmp.ge.s32.totalorder %s12046_s27, 1  ;;  %p204_p8 = scmp.lt.s32.totalorder %s12046_s27, 3 }
   0xc   : > { %p11819_p9 = scmp.eq.s32.totalorder %s12115_s28, 0  ;;  %s215_s15 = sshll.u32 %s15789_s1, 4  ;;  %s216_s15 = int_to_ptr.hbm [resolvable:$true] %s215_s15 }
   0xd   : > { %p205_p10 = pnand %p9983_p7, %p204_p8  ;;  %s12048_s16 = smov [#allocation3]  }
   0xe   : > { %s217_s17 = sshll.u32 %s12048_s16, 4  ;;  %s12049_s18 = smov 128   ;;  %s218_s17 = int_to_ptr.vmem [resolvable:$true] %s217_s17 }
   0xf   : > { %p11811_p11 = pneg %p205_p10  ;;  %s12050_s19 = smov 8  }
  0x10   : > { %256 = sbr.rel (%p205_p10) target bundleno = 1929 (0x789), region = 48 }
  0x11   : > { %p11812_p12 = pnand %p11819_p9, %p11811_p11 }
  0x13   : > { %11814 = dma.hbm_to_vmem [thread:$0]  (!%p11812_p12), %s216_s15, 18432, %s218_s17, [#allocation4], %s12049_s18, %s12049_s18, %s12050_s19  }
  0x15   : > { %12025 = dma.done.wait (%p11819_p9), [#allocation4], 18432  }
  0x16   : > { %12027 = vsyncadd (%p11819_p9), [#allocation4], 4294948864  ;;  %p289_p13 = scmp.lt.s32.totalorder %s12115_s28, 1  ;;  %v10416_v0 = vld [vmem:[#allocation3 + $0x70] sm:$0xf]  ;;  %vm794_vm2 = vcmask 1042432  }
  0x17   : > { %v11530_v1 = vld [vmem:[#allocation3 + $0x74] sm:$0xf0]  ;;  %v10480_v2 = vld [vmem:[#allocation3 + $0xf0] sm:$0xf]  ;;  %v10408_v9 = vld [vmem:[#allocation3 + $0x60] sm:$0xf] }
  0x18   : > { %s12154_s20 = scalar_select %p289_p13, %s12115_s28, 1  ;;  %v10417_v3 = vor.u32 %v11530_v1, %v10416_v0  ;;  %v11546_v4 = vld [vmem:[#allocation3 + $0xf4] sm:$0xf0]  ;;  %v10544_v5 = vld [vmem:[#allocation3 + $0x170] sm:$0xf]  ;;  %vm795_vm3 = vcmask 1046532  }
  0x19   : > { %v11562_v6 = vld [vmem:[#allocation3 + $0x174] sm:$0xf0]  ;;  %v12156_v7 = vor.u32 %v11546_v4, %v10480_v2  ;;  %v11528_v10 = vld [vmem:[#allocation3 + $0x64] sm:$0xf0]  ;;  %v10472_v11 = vld [vmem:[#allocation3 + $0xe0] sm:$0xf] }
  0x1a   : > { %v12158_v8 = vor.u32 %v11562_v6, %v10544_v5  ;;  %3615 = vmatpush.bf16.msra.mxu0 %v10417_v3  ;;  %11780 = vmatpush.bf16.msra.mxu3 %v10417_v3  ;;  %v10409_v12 = vor.u32 %v11528_v10, %v10408_v9  ;;  %v11544_v13 = vld [vmem:[#allocation3 + $0xe4] sm:$0xf0]  ;;  %v10536_v14 = vld [vmem:[#allocation3 + $0x160] sm:$0xf]  ;;  %v10400_v18 = vld [vmem:[#allocation3 + $0x50] sm:$0xf] }
  0x1b   : > { %v11560_v15 = vld [vmem:[#allocation3 + $0x164] sm:$0xf0]  ;;  %3704 = vmatpush.bf16.msra.mxu1 %v12156_v7  ;;  %v12162_v16 = vor.u32 %v11544_v13, %v10472_v11  ;;  %v11526_v19 = vld [vmem:[#allocation3 + $0x54] sm:$0xf0]  ;;  %v10464_v20 = vld [vmem:[#allocation3 + $0xd0] sm:$0xf] }
  0x1c   : > { %3793 = vmatpush.bf16.msra.mxu2 %v12158_v8  ;;  %v12164_v17 = vor.u32 %v11560_v15, %v10536_v14  ;;  %v11542_v21 = vld [vmem:[#allocation3 + $0xd4] sm:$0xf0]  ;;  %v10528_v22 = vld [vmem:[#allocation3 + $0x150] sm:$0xf]  ;;  %v10401_v24 = vor.u32 %v11526_v19, %v10400_v18  ;;  %s11804_s21 = smul.u32 216, %s12154_s20  ;;  %vm12202_vm4 = vmor %vm794_vm2, %vm795_vm3  ;;  %vm5329_vm6 = vcmask 1040384  }
  0x1d   : > { %v11558_v23 = vld [vmem:[#allocation3 + $0x154] sm:$0xf0]  ;;  %v12169_v25 = vor.u32 %v11542_v21, %v10464_v20  ;;  %v10392_v27 = vld [vmem:[#allocation3 + $0x40] sm:$0xf]  ;;  %v11524_v28 = vld [vmem:[#allocation3 + $0x44] sm:$0xf0] }
  0x1e   : > { %3616 = vmatpush.bf16.msra.mxu0 %v10409_v12  ;;  %11781 = vmatpush.bf16.msra.mxu3 %v10409_v12  ;;  %v12171_v26 = vor.u32 %v11558_v23, %v10528_v22  ;;  %v10456_v29 = vld [vmem:[#allocation3 + $0xc0] sm:$0xf]  ;;  %v11540_v30 = vld [vmem:[#allocation3 + $0xc4] sm:$0xf0]  ;;  %v10393_v33 = vor.u32 %v11524_v28, %v10392_v27  ;;  %v10384_v34 = vld [vmem:[#allocation3 + $0x30] sm:$0xf]  ;;  %s12182_s29 = scalar_lea.vmem %s15788_s0, %s11804_s21 }
  0x1f   : > { %3705 = vmatpush.bf16.msra.mxu1 %v12162_v16  ;;  %v10520_v31 = vld [vmem:[#allocation3 + $0x140] sm:$0xf]  ;;  %v11556_v32 = vld [vmem:[#allocation3 + $0x144] sm:$0xf0]  ;;  %vm343_vm0 = vsmask.f32 3328  ;;  %v12175_v35 = vor.u32 %v11540_v30, %v10456_v29 }
  0x20   : > { %3794 = vmatpush.bf16.msra.mxu2 %v12164_v17  ;;  %v12177_v36 = vor.u32 %v11556_v32, %v10520_v31  ;;  %v11522_v37 = vld [vmem:[#allocation3 + $0x34] sm:$0xf0]  ;;  %v10448_v38 = vld [vmem:[#allocation3 + $0xb0] sm:$0xf]  ;;  %v10376_v42 = vld [vmem:[#allocation3 + $0x20] sm:$0xf] }
  0x21   : > { %v11538_v39 = vld [vmem:[#allocation3 + $0xb4] sm:$0xf0]  ;;  %v10512_v40 = vld [vmem:[#allocation3 + $0x130] sm:$0xf]  ;;  %v11520_v43 = vld [vmem:[#allocation3 + $0x24] sm:$0xf0]  ;;  %v10385_v46 = vor.u32 %v11522_v37, %v10384_v34 }
  0x22   : > { %3617 = vmatpush.bf16.msra.mxu0 %v10401_v24  ;;  %11782 = vmatpush.bf16.msra.mxu3 %v10401_v24  ;;  %v11554_v41 = vld [vmem:[#allocation3 + $0x134] sm:$0xf0]  ;;  %v10440_v44 = vld [vmem:[#allocation3 + $0xa0] sm:$0xf]  ;;  %v11536_v45 = vld [vmem:[#allocation3 + $0xa4] sm:$0xf0]  ;;  %v12186_v47 = vor.u32 %v11538_v39, %v10448_v38  ;;  %v10377_v52 = vor.u32 %v11520_v43, %v10376_v42 }
  0x23   : > { %3706 = vmatpush.bf16.msra.mxu1 %v12169_v25  ;;  %vm344_vm1 = vsmask.f32 7440  ;;  %v12188_v48 = vor.u32 %v11554_v41, %v10512_v40  ;;  %v10504_v49 = vld [vmem:[#allocation3 + $0x120] sm:$0xf]  ;;  %v11552_v50 = vld [vmem:[#allocation3 + $0x124] sm:$0xf0]  ;;  %v12191_v53 = vor.u32 %v11536_v45, %v10440_v44 }
  0x24   : > { %3795 = vmatpush.bf16.msra.mxu2 %v12171_v26  ;;  %v295_v51 = vld [vmem:[%s12182_s29] sm:$0xf]  ;;  %v10368_v54 = vld [vmem:[#allocation3 + $0x10] sm:$0xf]  ;;  %v11518_v55 = vld [vmem:[#allocation3 + $0x14] sm:$0xf0]  ;;  %v12198_v10 = vor.u32 %v11552_v50, %v10504_v49 }
  0x25   : > { %v10432_v56 = vld [vmem:[#allocation3 + $0x90] sm:$0xf]  ;;  %v11534_v57 = vld [vmem:[#allocation3 + $0x94] sm:$0xf0]  ;;  %v296_v58 = vld [vmem:[%s12182_s29 + $0x4] sm:$0xf]  ;;  %v10369_v19 = vor.u32 %v11518_v55, %v10368_v54 }
  0x26   : > { %3618 = vmatpush.bf16.msra.mxu0 %v10393_v33  ;;  %11783 = vmatpush.bf16.msra.mxu3 %v10393_v33  ;;  %v327_v59 = vld [vmem:[%s12182_s29 + $0x8] sm:$0x1]  ;;  %v347_v60 = vshrl.u32 %v295_v51, 16  ;;  %v350_v61 = vshll.u32 %v295_v51, 16  ;;  %v356_v62 = vshll.u32 %v296_v58, 16  ;;  %v360_v63 = vshrl.u32 %v296_v58, 16  ;;  %vm12210_vm5 = vmor %vm343_vm0, %vm344_vm1 }
  0x27   : > { %3707 = vmatpush.bf16.msra.mxu1 %v12175_v35  ;;  %v366_v0 = vshll.u32 %v327_v59, 16  ;;  %v730_v1 = vld [vmem:[%s12182_s29] sm:$0xe]  ;;  %v799_v2 = vrot.slane %v296_v58, 5  ;;  %v10496_v3 = vld [vmem:[#allocation3 + $0x110] sm:$0xf]  ;;  %v12206_v20 = vor.u32 %v11534_v57, %v10432_v56 }
  0x28   : > { %3796 = vmatpush.bf16.msra.mxu2 %v12177_v36  ;;  %v349_v4 = vrot.slane %v347_v60, 4  ;;  %v352_v5 = vrot.slane %v350_v61, 5  ;;  %v9990_v6 = vrot.slane %v730_v1, 9  ;;  %v802_v9 = vrot.slane %v327_v59, 5  ;;  %v11550_v11 = vld [vmem:[#allocation3 + $0x114] sm:$0xf0] }
  0x29   : > { %v358_v12 = vrot.slane %v356_v62, 5  ;;  %v362_v13 = vrot.slane %v360_v63, 4  ;;  %v801_v15 = vrot.slane %v799_v2, 4  ;;  %v10360_v21 = vld [vmem:[#allocation3] sm:$0xf]  ;;  %v368_v27 = vrot.slane %v366_v0, 5 }
  0x2a   : > { %3619 = vmatpush.bf16.msra.mxu0 %v10385_v46  ;;  %11784 = vmatpush.bf16.msra.mxu3 %v10385_v46  ;;  %v353_v18 = vor.u32 %v352_v5, %v349_v4  ;;  %v11516_v22 = vld [vmem:[#allocation3 + $0x4] sm:$0xf0]  ;;  %v12214_v28 = vor.u32 %v11550_v11, %v10496_v3  ;;  %v10424_v29 = vld [vmem:[#allocation3 + $0x80] sm:$0xf]  ;;  %v800_v31 = vsel %vm12202_vm4, %v9990_v6, %v799_v2  ;;  %v297_v33 = vld [vmem:[%s12182_s29 + $0xc] sm:$0xf] }
  0x2b   : > { %3708 = vmatpush.bf16.msra.mxu1 %v12186_v47  ;;  %v363_v24 = vor.u32 %v362_v13, %v358_v12  ;;  %v803_v32 = vsel %vm12202_vm4, %v801_v15, %v802_v9  ;;  %v12222_v34 = vld [vmem:[%s12182_s29 + $0x10] sm:$0xf]  ;;  %v11532_v37 = vld [vmem:[#allocation3 + $0x84] sm:$0xf0]  ;;  %v371_v39 = vshrl.u32 %v297_v33, 16  ;;  %v374_v40 = vshll.u32 %v297_v33, 16 }
  0x2c   : > { %3797 = vmatpush.bf16.msra.mxu2 %v12188_v48  ;;  %v354_v30 = vrot.slane %v353_v18, 4  ;;  %v380_v41 = vshll.u32 %v12222_v34, 16  ;;  %v10488_v42 = vld [vmem:[#allocation3 + $0x100] sm:$0xf]  ;;  %v11548_v43 = vld [vmem:[#allocation3 + $0x104] sm:$0xf0]  ;;  %v10361_v46 = vor.u32 %v11516_v22, %v10360_v21  ;;  %v2271_v50 = vunpack.c.l.b16 %v800_v31 }
  0x2d   : > { %v364_v38 = vrot.slane %v363_v24, 4  ;;  %v384_v45 = vshrl.u32 %v12222_v34, 16  ;;  %v2272_v51 = vunpack.c.l.b16 %v803_v32  ;;  %v11626_v54 = vld [vmem:[#allocation3 + $0x374] sm:$0xf0]  ;;  %v10672_v57 = vld [vmem:[#allocation3 + $0x270] sm:$0xf]  ;;  %v12234_v60 = vor.u32 %v11532_v37, %v10424_v29 }
  0x2e   : > { %3620 = vmatpush.bf16.msra.mxu0 %v10377_v52  ;;  %11785 = vmatpush.bf16.msra.mxu3 %v10377_v52  ;;  %v359_v44 = vsel %vm12210_vm5, %v354_v30, %v358_v12  ;;  %v10800_v52 = vld [vmem:[#allocation3 + $0x370] sm:$0xf]  ;;  %v373_v58 = vrot.slane %v371_v39, 4  ;;  %v376_v59 = vrot.slane %v374_v40, 5  ;;  %v12236_v61 = vor.u32 %v11548_v43, %v10488_v42  ;;  %v11467_v62 = vld [vmem:[%s12182_s29] sm:$0xff]  ;;  %v11479_v63 = vld [vmem:[%s12182_s29 + $0x90] sm:$0xff] }
  0x2f   : > { %3709 = vmatpush.bf16.msra.mxu1 %v12191_v53  ;;  %v369_v49 = vsel %vm12210_vm5, %v364_v38, %v368_v27  ;;  %v2207_v55 = vunpack.c.l.b16 %v359_v44  ;;  %v11594_v0 = vld [vmem:[#allocation3 + $0x274] sm:$0xf0]  ;;  %v328_v1 = vld [vmem:[%s12182_s29 + $0x14] sm:$0x1]  ;;  %v382_v2 = vrot.slane %v380_v41, 5  ;;  %v386_v3 = vrot.slane %v384_v45, 4 }
  0x30   : > { %3798 = vmatpush.bf16.msra.mxu2 %v12198_v10  ;;  %v2208_v56 = vunpack.c.l.b16 %v369_v49  ;;  %v10801_v4 = vor.u32 %v11626_v54, %v10800_v52  ;;  %v10736_v5 = vld [vmem:[#allocation3 + $0x2f0] sm:$0xf]  ;;  %v11610_v6 = vld [vmem:[#allocation3 + $0x2f4] sm:$0xf0]  ;;  %v10792_v9 = vld [vmem:[#allocation3 + $0x360] sm:$0xf]  ;;  %v12243_v13 = vpack.c.b16 %v2272_v51, %v2271_v50  ;;  %v377_v15 = vor.u32 %v376_v59, %v373_v58 }
  0x31   : > { %v11624_v11 = vld [vmem:[#allocation3 + $0x364] sm:$0xf0]  ;;  %v390_v18 = vshll.u32 %v328_v1, 16  ;;  %v10737_v21 = vor.u32 %v11610_v6, %v10736_v5  ;;  %v387_v22 = vor.u32 %v386_v3, %v382_v2  ;;  %v731_v24 = vld [vmem:[%s12182_s29 + $0xc] sm:$0xe]  ;;  %v806_v27 = vrot.slane %v12222_v34, 5 }
  0x32   : > { %3621 = vmatpush.bf16.msra.mxu0 %v10369_v19  ;;  %11786 = vmatpush.bf16.msra.mxu3 %v10369_v19  ;;  %v12241_v12 = vpack.c.b16 %v2208_v56, %v2207_v55  ;;  %15888 = vst [vmem:[#allocation9_spill] sm:$0xff] %v12243_v13  ;;  %v10673_v19 = vor.u32 %v11594_v0, %v10672_v57  ;;  %v299_v30 = vld [vmem:[%s12182_s29 + $0x18] sm:$0xf]  ;;  %v12252_v31 = vld [vmem:[%s12182_s29 + $0x1c] sm:$0xf]  ;;  %v378_v32 = vrot.slane %v377_v15, 4 }
  0x33   : > { %3710 = vmatpush.bf16.msra.mxu1 %v12206_v20  ;;  %v10793_v29 = vor.u32 %v11624_v11, %v10792_v9  ;;  %v392_v33 = vrot.slane %v390_v18, 5  ;;  %v9991_v37 = vrot.slane %v731_v24, 9  ;;  %v809_v38 = vrot.slane %v328_v1, 5  ;;  %v10664_v39 = vld [vmem:[#allocation3 + $0x260] sm:$0xf]  ;;  %v11480_v5 = vld [vmem:[%s12182_s29 + $0x9c] sm:$0xff] }
  0x34   : > { %3799 = vmatpush.bf16.msra.mxu2 %v12214_v28  ;;  %v388_v34 = vrot.slane %v387_v22, 4  ;;  %v11592_v40 = vld [vmem:[#allocation3 + $0x264] sm:$0xf0]  ;;  %v10728_v41 = vld [vmem:[#allocation3 + $0x2e0] sm:$0xf]  ;;  %v395_v42 = vshrl.u32 %v299_v30, 16  ;;  %v383_v52 = vsel %vm12210_vm5, %v378_v32, %v382_v2 }
  0x35   : > { %v398_v43 = vshll.u32 %v299_v30, 16  ;;  %v10665_v44 = vor.u32 %v11592_v40, %v10664_v39  ;;  %v11608_v45 = vld [vmem:[#allocation3 + $0x2e4] sm:$0xf0]  ;;  %v408_v49 = vshrl.u32 %v12252_v31, 16  ;;  %v807_v51 = vsel %vm12202_vm4, %v9991_v37, %v806_v27  ;;  %v10784_v30 = vld [vmem:[#allocation3 + $0x350] sm:$0xf] }
  0x36   : > { %3622 = vmatpush.bf16.msra.mxu0 %v10361_v46  ;;  %11787 = vmatpush.bf16.msra.mxu3 %v10361_v46  ;;  %v404_v46 = vshll.u32 %v12252_v31, 16  ;;  %v10729_v50 = vor.u32 %v11608_v45, %v10728_v41  ;;  %v397_v55 = vrot.slane %v395_v42, 4  ;;  %v329_v57 = vld [vmem:[%s12182_s29 + $0x20] sm:$0x1]  ;;  %v2273_v0 = vunpack.c.l.b16 %v807_v51  ;;  %v10656_v32 = vld [vmem:[#allocation3 + $0x250] sm:$0xf] }
  0x37   : > { %3711 = vmatpush.bf16.msra.mxu1 %v12234_v60  ;;  %v400_v56 = vrot.slane %v398_v43, 5  ;;  %v410_v59 = vrot.slane %v408_v49, 4  ;;  %v414_v3 = vshll.u32 %v329_v57, 16  ;;  %v813_v9 = vrot.slane %v12252_v31, 5  ;;  %v11622_v31 = vld [vmem:[#allocation3 + $0x354] sm:$0xf0] }
  0x38   : > { %3800 = vmatpush.bf16.msra.mxu2 %v12236_v61  ;;  %v406_v58 = vrot.slane %v404_v46, 5  ;;  %v10720_v37 = vld [vmem:[#allocation3 + $0x2d0] sm:$0xf]  ;;  %v330_v46 = vld [vmem:[%s12182_s29 + $0x2c] sm:$0x1]  ;;  %vm5784_vm11 = vcmask 1043456  }
  0x39   : > { %3623 = vmatmul.bf16.vlgmr.msra.gmra.mxu0 %v11467_v62  ;;  %3683 = vmatmul.bf16.vlgmr.msra.gmra.mxu3 %v11479_v63  ;;  %v2209_v62 = vunpack.c.l.b16 %v383_v52  ;;  %v401_v2 = vor.u32 %v400_v56, %v397_v55  ;;  %v815_v24 = vrot.slane %v813_v9, 4  ;;  %vm5330_vm7 = vsmask.f32 256  ;;  %s286_s23 = sand.u32 1, %s12038_s25   ;;  %s11779_s17 = sshll.u32 %s12115_s28, 8 }
  0x3a   : > { %11788 = vmatpush.bf16.msrb.mxu3 %v12156_v7  ;;  %3712 = vmatmul.bf16.vlgmr.msra.gmra.mxu1 %v12241_v12  ;;  %v808_v7 = vrot.slane %v806_v27, 4  ;;  %v411_v6 = vor.u32 %v410_v59, %v406_v58  ;;  %v301_v27 = vld [vmem:[%s12182_s29 + $0x24] sm:$0xf]  ;;  %vm13495_vm8 = vmand %vm5329_vm6, %vm5330_vm7  ;;  %vm5380_vm9 = vsmask.f32 7938  ;;  %s9988_s8 = sshll.u32 %s286_s23, 8 }
  0x3b   : > { %3801 = vmatmul.bf16.vlgmr.msra.gmra.mxu2 %v12243_v13  ;;  %3971 = vmatpush.bf16.msrb.mxu0 %v10673_v19  ;;  %v402_v18 = vrot.slane %v401_v2, 4  ;;  %v416_v19 = vrot.slane %v414_v3, 5  ;;  %v419_v39 = vshrl.u32 %v301_v27, 16  ;;  %v303_v3 = vld [vmem:[%s12182_s29 + $0x30] sm:$0xf]  ;;  %vm13529_vm10 = vmand %vm5329_vm6, %vm5380_vm9  ;;  %s15471_s9 = scalar_lea.vmem [#allocation6], %s9988_s8 }
  0x3c   : > { %4149 = vmatpush.bf16.msrb.mxu2 %v10801_v4  ;;  %4060 = vmatpush.bf16.msrb.mxu1 %v10737_v21  ;;  %v810_v54 = vsel %vm12202_vm4, %v808_v7, %v809_v38  ;;  %v11468_v4 = vld [vmem:[%s12182_s29 + $0xc] sm:$0xff]  ;;  %v412_v22 = vrot.slane %v411_v6, 4  ;;  %vm5462_vm12 = vsmask.f32 4368  ;;  %vm13637_vm13 = vmand %vm5784_vm11, %vm5380_vm9  ;;  %s9905_s20 = sshll.u32 %s15471_s9, 4  ;;  %s9893_s28 = scalar_lea.sflag [#allocation5], %s286_s23  ;;  %s9906_s20 = int_to_ptr.vmem [resolvable:$true] %s9905_s20 }
  0x3d   : > { %v2274_v1 = vunpack.c.l.b16 %v810_v54  ;;  %v11606_v38 = vld [vmem:[#allocation3 + $0x2d4] sm:$0xf0]  ;;  %v407_v43 = vsel %vm12210_vm5, %v402_v18, %v406_v58  ;;  %v421_v49 = vrot.slane %v419_v39, 4  ;;  %v823_v18 = vrot.slane %v330_v46, 5  ;;  %vm13670_vm14 = vmor %vm5330_vm7, %vm5462_vm12  ;;  %s12000_s15 = scalar_lea.hbm %s15795_s7, 512 }
  0x3e   : > { %11789 = vmatpush.bf16.msrb.mxu3 %v12162_v16  ;;  %v393_v16 = vsel %vm12210_vm5, %v388_v34, %v392_v33  ;;  %v10785_v33 = vor.u32 %v11622_v31, %v10784_v30  ;;  %v422_v34 = vshll.u32 %v301_v27, 16  ;;  %v10721_v40 = vor.u32 %v11606_v38, %v10720_v37  ;;  %v11620_v27 = vld [vmem:[#allocation3 + $0x344] sm:$0xf0] }
  0x3f   : > { %3972 = vmatpush.bf16.msrb.mxu0 %v10665_v44  ;;  %v2210_v63 = vunpack.c.l.b16 %v393_v16  ;;  %v12276_v15 = vpack.c.b16 %v2274_v1, %v2273_v0  ;;  %v417_v44 = vsel %vm12210_vm5, %v412_v22, %v416_v19  ;;  %v2211_v16 = vunpack.c.l.b16 %v407_v43  ;;  %v733_v0 = vld [vmem:[%s12182_s29 + $0x24] sm:$0xe]  ;;  %v12317_v22 = vld [vmem:[%s12182_s29 + $0x94] sm:$0xf] }
  0x40   : > { %4150 = vmatpush.bf16.msrb.mxu2 %v10793_v29  ;;  %4061 = vmatpush.bf16.msrb.mxu1 %v10729_v50  ;;  %v12281_v29 = vld [vmem:[%s12182_s29 + $0x28] sm:$0xf]  ;;  %v424_v50 = vrot.slane %v422_v34, 5  ;;  %v2212_v54 = vunpack.c.l.b16 %v417_v44  ;;  %v644_v37 = vshll.u32 %v12317_v22, 16  ;;  %v648_v38 = vshrl.u32 %v12317_v22, 16 }
  0x41   : > { %v12274_v11 = vpack.c.b16 %v2210_v63, %v2209_v62  ;;  %15889 = vst [vmem:[#allocation10_spill] sm:$0xff] %v12276_v15  ;;  %v428_v41 = vshll.u32 %v12281_v29, 16  ;;  %v432_v42 = vshrl.u32 %v12281_v29, 16  ;;  %v820_v59 = vrot.slane %v12281_v29, 5  ;;  %v11481_v62 = vld [vmem:[%s12182_s29 + $0xa8] sm:$0xff] }
  0x42   : > { %11790 = vmatpush.bf16.msrb.mxu3 %v12169_v25  ;;  %v732_v25 = vld [vmem:[%s12182_s29 + $0x18] sm:$0xe]  ;;  %v425_v58 = vor.u32 %v424_v50, %v421_v49  ;;  %v12304_v1 = vpack.c.b16 %v2212_v54, %v2211_v16  ;;  %v331_v44 = vld [vmem:[%s12182_s29 + $0x38] sm:$0x1] }
  0x43   : > { %v9992_v21 = vrot.slane %v732_v25, 9  ;;  %v430_v51 = vrot.slane %v428_v41, 5  ;;  %v434_v52 = vrot.slane %v432_v42, 4  ;;  %v9993_v25 = vrot.slane %v733_v0, 9 }
  0x44   : > { %4151 = vmatpush.bf16.msrb.mxu2 %v10785_v33  ;;  %4062 = vmatpush.bf16.msrb.mxu1 %v10721_v40  ;;  %v426_v6 = vrot.slane %v425_v58, 4  ;;  %v11470_v58 = vld [vmem:[%s12182_s29 + $0x24] sm:$0xff] }
  0x45   : > { %v435_v63 = vor.u32 %v434_v52, %v430_v51 }
  0x46   : > { %11791 = vmatpush.bf16.msrb.mxu3 %v12175_v35  ;;  %v816_v35 = vrot.slane %v329_v57, 5  ;;  %v438_v57 = vshll.u32 %v330_v46, 16  ;;  %v431_v33 = vsel %vm12210_vm5, %v426_v6, %v430_v51  ;;  %v650_v46 = vrot.slane %v648_v38, 4  ;;  %v11604_v38 = vld [vmem:[#allocation3 + $0x2c4] sm:$0xf0] }
  0x47   : > { %v436_v19 = vrot.slane %v435_v63, 4  ;;  %v2213_v49 = vunpack.c.l.b16 %v431_v33 }
  0x48   : > { %v817_v45 = vsel %vm12202_vm4, %v815_v24, %v816_v35  ;;  %v446_v35 = vshll.u32 %v303_v3, 16  ;;  %v10776_v24 = vld [vmem:[#allocation3 + $0x340] sm:$0xf] }
  0x49   : > { %3628 = vmatmul.bf16.gmra.mxu0 %v11468_v4  ;;  %3688 = vmatmul.bf16.gmra.mxu3 %v11480_v5  ;;  %v2276_v56 = vunpack.c.l.b16 %v817_v45  ;;  %v12310_v4 = vld [vmem:[%s12182_s29 + $0x34] sm:$0xf]  ;;  %v440_v5 = vrot.slane %v438_v57, 5  ;;  %v12338_v45 = vrot.slane %v644_v37, 5 }
  0x4a   : > { %11792 = vmatpush.bf16.msrb.mxu3 %v12186_v47  ;;  %3717 = vmatmul.bf16.gmra.mxu1 %v12274_v11  ;;  %v11590_v47 = vld [vmem:[#allocation3 + $0x254] sm:$0xf0]  ;;  %v456_v29 = vshrl.u32 %v12310_v4, 16  ;;  %v827_v57 = vrot.slane %v12310_v4, 5 }
  0x4b   : > { %3806 = vmatmul.bf16.gmra.mxu2 %v12276_v15  ;;  %v10657_v7 = vor.u32 %v11590_v47, %v10656_v32  ;;  %v10777_v32 = vor.u32 %v11620_v27, %v10776_v24  ;;  %v821_v47 = vsel %vm12202_vm4, %v9993_v25, %v820_v59  ;;  %v441_v39 = vsel %vm12210_vm5, %v436_v19, %v440_v5  ;;  %v321_v5 = vld [vmem:[%s12182_s29 + $0x9c] sm:$0xf] }
  0x4c   : > { %v458_v41 = vrot.slane %v456_v29, 4  ;;  %v2214_v50 = vunpack.c.l.b16 %v441_v39  ;;  %v2277_v51 = vunpack.c.l.b16 %v821_v47  ;;  %v830_v19 = vrot.slane %v331_v44, 5 }
  0x4d   : > { %3973 = vmatpush.bf16.msrb.mxu0 %v10657_v7  ;;  %4152 = vmatpush.bf16.msrb.mxu2 %v10777_v32  ;;  %v448_v7 = vrot.slane %v446_v35, 5  ;;  %v659_v29 = vshrl.u32 %v321_v5, 16  ;;  %v662_v32 = vshll.u32 %v321_v5, 16 }
  0x4e   : > { %11793 = vmatpush.bf16.msrb.mxu3 %v12191_v53  ;;  %v814_v53 = vsel %vm12202_vm4, %v9992_v21, %v813_v9  ;;  %v822_v9 = vrot.slane %v820_v59, 4  ;;  %v443_v21 = vshrl.u32 %v303_v3, 16  ;;  %v11482_v59 = vld [vmem:[%s12182_s29 + $0xb4] sm:$0xff]  ;;  %v12348_v63 = vpack.c.b16 %v2214_v50, %v2213_v49  ;;  %v305_v3 = vld [vmem:[%s12182_s29 + $0x3c] sm:$0xf] }
  0x4f   : > { %v2275_v55 = vunpack.c.l.b16 %v814_v53  ;;  %v12336_v53 = vld [vmem:[%s12182_s29 + $0x98] sm:$0x1]  ;;  %v467_v24 = vshrl.u32 %v305_v3, 16  ;;  %v470_v27 = vshll.u32 %v305_v3, 16  ;;  %v661_v49 = vrot.slane %v659_v29, 4 }
  0x50   : > { %v445_v34 = vrot.slane %v443_v21, 4  ;;  %v12356_v21 = vld [vmem:[%s12182_s29 + $0xa0] sm:$0xf]  ;;  %v664_v50 = vrot.slane %v662_v32, 5 }
  0x51   : > { %v12306_v2 = vpack.c.b16 %v2276_v56, %v2275_v55  ;;  %v462_v55 = vshll.u32 %v331_v44, 16  ;;  %v654_v56 = vshll.u32 %v12336_v53, 16  ;;  %v668_v33 = vshll.u32 %v12356_v21, 16 }
  0x52   : > { %11794 = vmatpush.bf16.msrb.mxu3 %v12206_v20  ;;  %v11469_v20 = vld [vmem:[%s12182_s29 + $0x18] sm:$0xff]  ;;  %v449_v16 = vor.u32 %v448_v7, %v445_v34  ;;  %v672_v47 = vshrl.u32 %v12356_v21, 16 }
  0x53   : > { %15890 = vst [vmem:[#allocation11_spill] sm:$0xff] %v12306_v2 }
  0x54   : > { %v450_v6 = vrot.slane %v449_v16, 4 }
  0x56   : > { %11795 = vmatpush.bf16.msrb.mxu3 %v12234_v60  ;;  %v319_v60 = vld [vmem:[%s12182_s29 + $0x90] sm:$0xf] }
  0x57   : > { %v635_v30 = vshrl.u32 %v319_v60, 16  ;;  %v638_v31 = vshll.u32 %v319_v60, 16  ;;  %v829_v60 = vrot.slane %v827_v57, 4 }
  0x59   : > { %3633 = vmatmul.bf16.gmra.mxu0 %v11469_v20  ;;  %3693 = vmatmul.bf16.gmra.mxu3 %v11481_v62  ;;  %v637_v42 = vrot.slane %v635_v30, 4  ;;  %v640_v43 = vrot.slane %v638_v31, 5  ;;  %v651_v20 = vor.u32 %v650_v46, %v12338_v45  ;;  %v734_v62 = vld [vmem:[%s12182_s29 + $0x30] sm:$0xe]  ;;  %v10648_v30 = vld [vmem:[#allocation3 + $0x240] sm:$0xf]  ;;  %v831_v44 = vsel %vm12202_vm4, %v829_v60, %v830_v19 }
  0x5a   : > { %11796 = vmatpush.bf16.msra.mxu3 %v12158_v8  ;;  %v452_v8 = vshll.u32 %v12310_v4, 16  ;;  %3722 = vmatmul.bf16.gmra.mxu1 %v12304_v1  ;;  %v656_v4 = vrot.slane %v654_v56, 5  ;;  %v10712_v31 = vld [vmem:[#allocation3 + $0x2c0] sm:$0xf]  ;;  %v469_v46 = vrot.slane %v467_v24, 4 }
  0x5b   : > { %3811 = vmatmul.bf16.gmra.mxu2 %v12306_v2  ;;  %v652_v35 = vrot.slane %v651_v20, 4  ;;  %v10713_v34 = vor.u32 %v11604_v38, %v10712_v31  ;;  %v2280_v20 = vunpack.c.l.b16 %v831_v44  ;;  %v307_v24 = vld [vmem:[%s12182_s29 + $0x48] sm:$0xf]  ;;  %v11656_v2 = vld [vmem:[#allocation3 + $0x464] sm:$0xf0] }
  0x5c   : > { %v12331_v40 = vrot.slane %v452_v8, 5  ;;  %v12359_v8 = vld [vmem:[%s12182_s29 + $0x40] sm:$0xf]  ;;  %v323_v38 = vld [vmem:[%s12182_s29 + $0xa8] sm:$0xf] }
  0x5d   : > { %v476_v39 = vshll.u32 %v12359_v8, 16  ;;  %4063 = vmatpush.bf16.msrb.mxu1 %v10713_v34  ;;  %v11618_v34 = vld [vmem:[#allocation3 + $0x334] sm:$0xf0]  ;;  %v10704_v44 = vld [vmem:[#allocation3 + $0x2b0] sm:$0xf] }
  0x5e   : > { %11797 = vmatpush.bf16.msra.mxu3 %v12164_v17  ;;  %v824_v17 = vsel %vm12202_vm4, %v822_v9, %v823_v18  ;;  %v459_v54 = vor.u32 %v458_v41, %v12331_v40  ;;  %v9994_v18 = vrot.slane %v734_v62, 9  ;;  %v455_v7 = vsel %vm12210_vm5, %v450_v6, %v12331_v40 }
  0x5f   : > { %v2278_v52 = vunpack.c.l.b16 %v824_v17  ;;  %v480_v17 = vshrl.u32 %v12359_v8, 16  ;;  %v472_v40 = vrot.slane %v470_v27, 5  ;;  %v12388_v16 = vrot.slane %v476_v39, 5  ;;  %v12415_v39 = vld [vmem:[%s12182_s29 + $0xac] sm:$0xf] }
  0x60   : > { %v460_v25 = vrot.slane %v459_v54, 4 }
  0x61   : > { %v12350_v0 = vpack.c.b16 %v2278_v52, %v2277_v51  ;;  %v12382_v51 = vrot.slane %v668_v33, 5  ;;  %v674_v52 = vrot.slane %v672_v47, 4  ;;  %v482_v54 = vrot.slane %v480_v17, 4  ;;  %v12410_v33 = vld [vmem:[%s12182_s29 + $0x4c] sm:$0xf] }
  0x62   : > { %11798 = vmatpush.bf16.msra.mxu3 %v12171_v26  ;;  %v641_v26 = vor.u32 %v640_v43, %v637_v42  ;;  %v657_v43 = vsel %vm12210_vm5, %v652_v35, %v656_v4  ;;  %v473_v62 = vor.u32 %v472_v40, %v469_v46  ;;  %v491_v47 = vshrl.u32 %v307_v24, 16  ;;  %v10768_v17 = vld [vmem:[#allocation3 + $0x330] sm:$0xf]  ;;  %v11602_v46 = vld [vmem:[#allocation3 + $0x2b4] sm:$0xf0] }
  0x63   : > { %15891 = vst [vmem:[#allocation12_spill] sm:$0xff] %v12350_v0  ;;  %v675_v5 = vor.u32 %v674_v52, %v12382_v51  ;;  %v500_v40 = vshll.u32 %v12410_v33, 16  ;;  %v10705_v52 = vor.u32 %v11602_v46, %v10704_v44 }
  0x64   : > { %v642_v9 = vrot.slane %v641_v26, 4  ;;  %v2215_v26 = vunpack.c.l.b16 %v455_v7  ;;  %v474_v35 = vrot.slane %v473_v62, 4  ;;  %v10640_v7 = vld [vmem:[#allocation3 + $0x230] sm:$0xf] }
  0x65   : > { %4064 = vmatpush.bf16.msrb.mxu1 %v10705_v52 }
  0x66   : > { %11799 = vmatpush.bf16.msra.mxu3 %v12177_v36  ;;  %v464_v36 = vrot.slane %v462_v55, 5  ;;  %v647_v42 = vsel %vm12210_vm5, %v642_v9, %v12338_v45  ;;  %v12386_v45 = vld [vmem:[%s12182_s29 + $0x44] sm:$0x1]  ;;  %v11471_v9 = vld [vmem:[%s12182_s29 + $0x30] sm:$0xff] }
  0x67   : > { %v12391_v55 = vld [vmem:[%s12182_s29 + $0xa4] sm:$0x1]  ;;  %v2231_v56 = vunpack.c.l.b16 %v647_v42  ;;  %v486_v3 = vshll.u32 %v12386_v45, 16  ;;  %v837_v32 = vrot.slane %v12386_v45, 5  ;;  %v683_v45 = vshrl.u32 %v323_v38, 16 }
  0x68   : > { %v465_v41 = vsel %vm12210_vm5, %v460_v25, %v464_v36  ;;  %v678_v6 = vshll.u32 %v12391_v55, 16  ;;  %v483_v25 = vor.u32 %v482_v54, %v12388_v16  ;;  %v834_v36 = vrot.slane %v12359_v8, 5 }
  0x69   : > { %3638 = vmatmul.bf16.gmra.mxu0 %v11470_v58  ;;  %3698 = vmatmul.bf16.gmra.mxu3 %v11482_v59  ;;  %v2216_v58 = vunpack.c.l.b16 %v465_v41  ;;  %v488_v27 = vrot.slane %v486_v3, 5  ;;  %v686_v54 = vshll.u32 %v323_v38, 16  ;;  %v493_v3 = vrot.slane %v491_v47, 4 }
  0x6a   : > { %11800 = vmatpush.bf16.msra.mxu3 %v12188_v48  ;;  %3727 = vmatmul.bf16.gmra.mxu1 %v12348_v63  ;;  %v11588_v48 = vld [vmem:[#allocation3 + $0x244] sm:$0xf0]  ;;  %v836_v8 = vrot.slane %v834_v36, 4 }
  0x6b   : > { %3816 = vmatmul.bf16.gmra.mxu2 %v12350_v0  ;;  %v10649_v37 = vor.u32 %v11588_v48, %v10648_v30  ;;  %v12403_v60 = vpack.c.b16 %v2216_v58, %v2215_v26  ;;  %v680_v30 = vrot.slane %v678_v6, 5  ;;  %v484_v48 = vrot.slane %v483_v25, 4  ;;  %v10474_v0 = vld [vmem:[#allocation3 + $0xe8] sm:$0xf0] }
  0x6c   : > { %v692_v26 = vshll.u32 %v12415_v39, 16  ;;  %v838_v62 = vsel %vm12202_vm4, %v836_v8, %v837_v32  ;;  %v685_v25 = vrot.slane %v683_v45, 4  ;;  %v11472_v8 = vld [vmem:[%s12182_s29 + $0x3c] sm:$0xff] }
  0x6d   : > { %3974 = vmatpush.bf16.msrb.mxu0 %v10649_v37  ;;  %v494_v37 = vshll.u32 %v307_v24, 16  ;;  %v489_v58 = vsel %vm12210_vm5, %v484_v48, %v488_v27 }
  0x6e   : > { %11801 = vmatpush.bf16.msra.mxu3 %v12198_v10  ;;  %v828_v10 = vsel %vm12202_vm4, %v9994_v18, %v827_v57  ;;  %v2232_v57 = vunpack.c.l.b16 %v657_v43  ;;  %v735_v18 = vld [vmem:[%s12182_s29 + $0x3c] sm:$0xe]  ;;  %v11586_v43 = vld [vmem:[#allocation3 + $0x234] sm:$0xf0]  ;;  %v2218_v24 = vunpack.c.l.b16 %v489_v58 }
  0x6f   : > { %v2279_v59 = vunpack.c.l.b16 %v828_v10  ;;  %v9995_v31 = vrot.slane %v735_v18, 9  ;;  %v10769_v10 = vor.u32 %v11618_v34, %v10768_v17  ;;  %v736_v17 = vld [vmem:[%s12182_s29 + $0x48] sm:$0xe] }
  0x70   : > { %v12400_v4 = vpack.c.b16 %v2232_v57, %v2231_v56  ;;  %v479_v56 = vsel %vm12210_vm5, %v474_v35, %v12388_v16  ;;  %v333_v16 = vld [vmem:[%s12182_s29 + $0x50] sm:$0x1] }
  0x71   : > { %v12405_v19 = vpack.c.b16 %v2280_v20, %v2279_v59  ;;  %4153 = vmatpush.bf16.msrb.mxu2 %v10769_v10  ;;  %v835_v57 = vsel %vm12202_vm4, %v9995_v31, %v834_v36  ;;  %v694_v36 = vrot.slane %v692_v26, 5  ;;  %v2217_v35 = vunpack.c.l.b16 %v479_v56  ;;  %v12453_v10 = vld [vmem:[%s12182_s29 + $0x58] sm:$0xf] }
  0x72   : > { %11802 = vmatpush.bf16.msra.mxu3 %v12214_v28  ;;  %v665_v28 = vor.u32 %v664_v50, %v661_v49  ;;  %15892 = vst [vmem:[#allocation13_spill] sm:$0xff] %v12400_v4  ;;  %v504_v49 = vshrl.u32 %v12410_v33, 16  ;;  %v10641_v50 = vor.u32 %v11586_v43, %v10640_v7  ;;  %v2281_v27 = vunpack.c.l.b16 %v835_v57  ;;  %v12462_v56 = vld [vmem:[%s12182_s29 + $0xb8] sm:$0xf] }
  0x73   : > { %15893 = vst [vmem:[#allocation14_spill] sm:$0xff] %v12405_v19  ;;  %v510_v31 = vshll.u32 %v333_v16, 16  ;;  %v12446_v34 = vpack.c.b16 %v2218_v24, %v2217_v35  ;;  %v524_v26 = vshll.u32 %v12453_v10, 16  ;;  %v844_v58 = vrot.slane %v333_v16, 5 }
  0x74   : > { %v666_v29 = vrot.slane %v665_v28, 4  ;;  %3975 = vmatpush.bf16.msrb.mxu0 %v10641_v50  ;;  %v496_v28 = vrot.slane %v494_v37, 5  ;;  %v506_v6 = vrot.slane %v504_v49, 4  ;;  %v325_v49 = vld [vmem:[%s12182_s29 + $0xb4] sm:$0xf]  ;;  %v716_v16 = vshll.u32 %v12462_v56, 16 }
  0x75   : > { %15895 = vst [vmem:[#allocation16_spill] sm:$0xff] %v12446_v34  ;;  %v512_v46 = vrot.slane %v510_v31, 5 }
  0x76   : > { %11803 = vmatpush.bf16.msra.mxu3 %v12236_v61  ;;  %v676_v61 = vrot.slane %v675_v5, 4  ;;  %v671_v41 = vsel %vm12210_vm5, %v666_v29, %v12382_v51  ;;  %v696_v51 = vshrl.u32 %v12415_v39, 16  ;;  %v502_v5 = vrot.slane %v500_v40, 5 }
  0x77   : > { %v2233_v59 = vunpack.c.l.b16 %v671_v41  ;;  %v2282_v29 = vunpack.c.l.b16 %v838_v62  ;;  %v841_v41 = vrot.slane %v12410_v33, 5  ;;  %v9996_v40 = vrot.slane %v736_v17, 9 }
  0x78   : > { %v681_v42 = vsel %vm12210_vm5, %v676_v61, %v680_v30  ;;  %v698_v18 = vrot.slane %v696_v51, 4  ;;  %v12439_v61 = vld [vmem:[%s12182_s29 + $0xb0] sm:$0x1]  ;;  %v497_v30 = vor.u32 %v496_v28, %v493_v3  ;;  %v507_v48 = vor.u32 %v506_v6, %v502_v5 }
  0x79   : > { %3643 = vmatmul.bf16.gmra.mxu0 %v11471_v9  ;;  %3772 = vmatmul.bf16.vlgmr.msrb.gmra.mxu3 %v12400_v4  ;;  %v2234_v20 = vunpack.c.l.b16 %v681_v42  ;;  %v688_v9 = vrot.slane %v686_v54, 5  ;;  %v702_v38 = vshll.u32 %v12439_v61, 16  ;;  %v12448_v7 = vpack.c.b16 %v2282_v29, %v2281_v27  ;;  %v309_v42 = vld [vmem:[%s12182_s29 + $0x54] sm:$0xf]  ;;  %v12481_v29 = vld [vmem:[%s12182_s29 + $0x5c] sm:$0x1] }
  0x7a   : > { %3732 = vmatmul.bf16.gmra.mxu1 %v12403_v60  ;;  %v699_v37 = vor.u32 %v698_v18, %v694_v36  ;;  %v498_v43 = vrot.slane %v497_v30, 4  ;;  %v508_v44 = vrot.slane %v507_v48, 4  ;;  %v515_v33 = vshrl.u32 %v309_v42, 16 }
  0x7b   : > { %3821 = vmatmul.bf16.gmra.mxu2 %v12405_v19  ;;  %v12442_v32 = vpack.c.b16 %v2234_v20, %v2233_v59  ;;  %v689_v47 = vor.u32 %v688_v9, %v685_v25  ;;  %15896 = vst [vmem:[#allocation17_spill] sm:$0xff] %v12448_v7  ;;  %v704_v45 = vrot.slane %v702_v38, 5  ;;  %v518_v54 = vshll.u32 %v309_v42, 16 }
  0x7c   : > { %v700_v52 = vrot.slane %v699_v37, 4  ;;  %v528_v51 = vshrl.u32 %v12453_v10, 16  ;;  %v843_v57 = vrot.slane %v841_v41, 4  ;;  %v707_v59 = vshrl.u32 %v325_v49, 16  ;;  %v12484_v37 = vld [vmem:[%s12182_s29 + $0xbc] sm:$0x1] }
  0x7d   : > { %15894 = vst [vmem:[#allocation15_spill] sm:$0xff] %v12442_v32  ;;  %v690_v50 = vrot.slane %v689_v47, 4  ;;  %v710_v20 = vshll.u32 %v325_v49, 16  ;;  %v503_v62 = vsel %vm12210_vm5, %v498_v43, %v502_v5  ;;  %v513_v3 = vsel %vm12210_vm5, %v508_v44, %v512_v46  ;;  %v742_v49 = vld [vmem:[%s12182_s29 + $0x90] sm:$0xe] }
  0x7e   : > { %v842_v28 = vsel %vm12202_vm4, %v9996_v40, %v841_v41  ;;  %v705_v25 = vsel %vm12210_vm5, %v700_v52, %v704_v45  ;;  %v720_v9 = vshrl.u32 %v12462_v56, 16  ;;  %v517_v18 = vrot.slane %v515_v33, 4 }
  0x7f   : > { %v695_v6 = vsel %vm12210_vm5, %v690_v50, %v694_v36  ;;  %v520_v35 = vrot.slane %v518_v54, 5  ;;  %v12476_v5 = vrot.slane %v524_v26, 5  ;;  %v530_v24 = vrot.slane %v528_v51, 4  ;;  %v11473_v51 = vld [vmem:[%s12182_s29 + $0x48] sm:$0xff] }
  0x80   : > { %v845_v27 = vsel %vm12202_vm4, %v843_v57, %v844_v58  ;;  %v709_v36 = vrot.slane %v707_v59, 4  ;;  %v712_v30 = vrot.slane %v710_v20, 5  ;;  %v2219_v48 = vunpack.c.l.b16 %v503_v62  ;;  %v737_v59 = vld [vmem:[%s12182_s29 + $0x54] sm:$0xe] }
  0x81   : > { %v2220_v31 = vunpack.c.l.b16 %v513_v3  ;;  %v2283_v47 = vunpack.c.l.b16 %v842_v28  ;;  %v2236_v38 = vunpack.c.l.b16 %v705_v25  ;;  %v12486_v17 = vrot.slane %v716_v16, 5 }
  0x82   : > { %v722_v41 = vrot.slane %v720_v9, 4  ;;  %v883_v42 = vrot.slane %v12317_v22, 5  ;;  %v2284_v43 = vunpack.c.l.b16 %v845_v27  ;;  %v521_v44 = vor.u32 %v520_v35, %v517_v18  ;;  %v10760_v18 = vld [vmem:[#allocation3 + $0x320] sm:$0xf]  ;;  %v11616_v35 = vld [vmem:[#allocation3 + $0x324] sm:$0xf0] }
  0x83   : > { %v531_v46 = vor.u32 %v530_v24, %v12476_v5  ;;  %v534_v40 = vshll.u32 %v12481_v29, 16  ;;  %v886_v50 = vrot.slane %v12336_v53, 5  ;;  %v713_v52 = vor.u32 %v712_v30, %v709_v36 }
  0x84   : > { %v726_v45 = vshll.u32 %v12484_v37, 16  ;;  %v848_v33 = vrot.slane %v12453_v10, 5  ;;  %v10002_v54 = vrot.slane %v742_v49, 9  ;;  %v885_v26 = vrot.slane %v883_v42, 4 }
  0x85   : > { %v12496_v57 = vpack.c.b16 %v2220_v31, %v2219_v48  ;;  %v723_v58 = vor.u32 %v722_v41, %v12486_v17  ;;  %v12502_v20 = vpack.c.b16 %v2284_v43, %v2283_v47  ;;  %v522_v62 = vrot.slane %v521_v44, 4  ;;  %v311_v31 = vld [vmem:[%s12182_s29 + $0x60] sm:$0xf]  ;;  %v11578_v41 = vld [vmem:[#allocation3 + $0x1f4] sm:$0xf0] }
  0x86   : > { %v532_v3 = vrot.slane %v531_v46, 4  ;;  %v536_v53 = vrot.slane %v534_v40, 5  ;;  %v714_v28 = vrot.slane %v713_v52, 4  ;;  %v884_v10 = vsel %vm12202_vm4, %v10002_v54, %v883_v42  ;;  %v10632_v42 = vld [vmem:[#allocation3 + $0x220] sm:$0xf] }
  0x87   : > { %15897 = vst [vmem:[#allocation18_spill] sm:$0xff] %v12496_v57  ;;  %v887_v25 = vsel %vm12202_vm4, %v885_v26, %v886_v50  ;;  %v9997_v16 = vrot.slane %v737_v59, 9  ;;  %v850_v9 = vrot.slane %v848_v33, 4  ;;  %v2295_v24 = vunpack.c.l.b16 %v884_v10  ;;  %v11584_v44 = vld [vmem:[#allocation3 + $0x224] sm:$0xf0] }
  0x88   : > { %15899 = vst [vmem:[#allocation20_spill] sm:$0xff] %v12502_v20  ;;  %v2296_v27 = vunpack.c.l.b16 %v887_v25  ;;  %v724_v36 = vrot.slane %v723_v58, 4  ;;  %v851_v30 = vrot.slane %v12481_v29, 5  ;;  %v10761_v48 = vor.u32 %v11616_v35, %v10760_v18  ;;  %v10696_v46 = vld [vmem:[#allocation3 + $0x2a0] sm:$0xf] }
  0x89   : > { %3648 = vmatmul.bf16.gmra.mxu0 %v11472_v8  ;;  %3777 = vmatmul.bf16.gmra.mxu3 %v12442_v32  ;;  %v2235_v8 = vunpack.c.l.b16 %v695_v6  ;;  %v728_v6 = vrot.slane %v726_v45, 5  ;;  %v11600_v40 = vld [vmem:[#allocation3 + $0x2a4] sm:$0xf0]  ;;  %v539_v49 = vshrl.u32 %v311_v31, 16  ;;  %v542_v29 = vshll.u32 %v311_v31, 16 }
  0x8a   : > { %3737 = vmatmul.bf16.gmra.mxu1 %v12446_v34  ;;  %v12516_v47 = vpack.c.b16 %v2296_v27, %v2295_v24  ;;  %4154 = vmatpush.bf16.msrb.mxu2 %v10761_v48  ;;  %v10633_v50 = vor.u32 %v11584_v44, %v10632_v42  ;;  %v10697_v52 = vor.u32 %v11600_v40, %v10696_v46  ;;  %v10600_v18 = vld [vmem:[#allocation3 + $0x1e0] sm:$0xf]  ;;  %v11576_v35 = vld [vmem:[#allocation3 + $0x1e4] sm:$0xf0]  ;;  %v313_v46 = vld [vmem:[%s12182_s29 + $0x6c] sm:$0xf] }
  0x8b   : > { %3826 = vmatmul.bf16.gmra.mxu2 %v12448_v7  ;;  %v12498_v22 = vpack.c.b16 %v2236_v38, %v2235_v8  ;;  %v12512_v8 = vld [vmem:[%s12182_s29 + $0x64] sm:$0xf]  ;;  %v10608_v38 = vld [vmem:[#allocation3 + $0x1f0] sm:$0xf]  ;;  %v719_v45 = vsel %vm12210_vm5, %v714_v28, %v12486_v17  ;;  %v527_v58 = vsel %vm12210_vm5, %v522_v62, %v12476_v5  ;;  %v537_v59 = vsel %vm12210_vm5, %v532_v3, %v536_v53  ;;  %v738_v44 = vld [vmem:[%s12182_s29 + $0x60] sm:$0xe] }
  0x8c   : > { %15900 = vst [vmem:[#allocation21_spill] sm:$0xff] %v12516_v47  ;;  %v10609_v43 = vor.u32 %v11578_v41, %v10608_v38  ;;  %v548_v54 = vshll.u32 %v12512_v8, 16  ;;  %v552_v26 = vshrl.u32 %v12512_v8, 16  ;;  %3976 = vmatpush.bf16.msrb.mxu0 %v10633_v50  ;;  %4065 = vmatpush.bf16.msrb.mxu1 %v10697_v52  ;;  %v849_v17 = vsel %vm12202_vm4, %v9997_v16, %v848_v33  ;;  %v335_v16 = vld [vmem:[%s12182_s29 + $0x68] sm:$0x1] }
  0x8d   : > { %15898 = vst [vmem:[#allocation19_spill] sm:$0xff] %v12498_v22  ;;  %v852_v28 = vsel %vm12202_vm4, %v850_v9, %v851_v30  ;;  %v2237_v10 = vunpack.c.l.b16 %v719_v45  ;;  %v541_v25 = vrot.slane %v539_v49, 4  ;;  %v10601_v5 = vor.u32 %v11576_v35, %v10600_v18  ;;  %v11474_v30 = vld [vmem:[%s12182_s29 + $0x54] sm:$0xff]  ;;  %v12546_v49 = vld [vmem:[%s12182_s29 + $0x70] sm:$0xf] }
  0x8e   : > { %3882 = vmatpush.bf16.msrb.mxu3 %v10609_v43  ;;  %v550_v27 = vrot.slane %v548_v54, 5  ;;  %v2221_v62 = vunpack.c.l.b16 %v527_v58  ;;  %v2222_v3 = vunpack.c.l.b16 %v537_v59  ;;  %v2285_v53 = vunpack.c.l.b16 %v849_v17  ;;  %v12562_v35 = vld [vmem:[%s12182_s29 + $0x74] sm:$0x1] }
  0x8f   : > { %v2286_v33 = vunpack.c.l.b16 %v852_v28  ;;  %v558_v38 = vshll.u32 %v335_v16, 16  ;;  %v855_v41 = vrot.slane %v12512_v8, 5  ;;  %v9998_v52 = vrot.slane %v738_v44, 9 }
  0x90   : > { %v12539_v42 = vpack.c.b16 %v2222_v3, %v2221_v62  ;;  %v858_v8 = vrot.slane %v335_v16, 5  ;;  %v563_v54 = vshrl.u32 %v313_v46, 16  ;;  %v566_v58 = vshll.u32 %v313_v46, 16  ;;  %v10752_v3 = vld [vmem:[#allocation3 + $0x310] sm:$0xf] }
  0x91   : > { %v12541_v43 = vpack.c.b16 %v2286_v33, %v2285_v53  ;;  %v560_v50 = vrot.slane %v558_v38, 5  ;;  %v857_v45 = vrot.slane %v855_v41, 4  ;;  %v572_v59 = vshll.u32 %v12546_v49, 16  ;;  %v11614_v53 = vld [vmem:[#allocation3 + $0x314] sm:$0xf0] }
  0x92   : > { %3883 = vmatpush.bf16.msrb.mxu3 %v10601_v5  ;;  %15902 = vst [vmem:[#allocation23_spill] sm:$0xff] %v12539_v42  ;;  %v576_v17 = vshrl.u32 %v12546_v49, 16  ;;  %v10584_v33 = vld [vmem:[#allocation3 + $0x1c0] sm:$0xf]  ;;  %v11582_v38 = vld [vmem:[#allocation3 + $0x214] sm:$0xf0] }
  0x93   : > { %15903 = vst [vmem:[#allocation24_spill] sm:$0xff] %v12541_v43  ;;  %v859_v18 = vsel %vm12202_vm4, %v857_v45, %v858_v8  ;;  %v12564_v5 = vrot.slane %v572_v59, 5 }
  0x94   : > { %v578_v62 = vrot.slane %v576_v17, 4  ;;  %v2288_v44 = vunpack.c.l.b16 %v859_v18  ;;  %v862_v18 = vrot.slane %v12546_v49, 5 }
  0x96   : > { %v579_v8 = vor.u32 %v578_v62, %v12564_v5 }
  0x98   : > { %v580_v62 = vrot.slane %v579_v8, 4 }
  0x99   : > { %3653 = vmatmul.bf16.gmra.mxu0 %v11473_v51  ;;  %3782 = vmatmul.bf16.gmra.mxu3 %v12498_v22  ;;  %v729_v51 = vsel %vm12210_vm5, %v724_v36, %v728_v6  ;;  %v544_v6 = vrot.slane %v542_v29, 5  ;;  %v554_v36 = vrot.slane %v552_v26, 4  ;;  %v10592_v26 = vld [vmem:[#allocation3 + $0x1d0] sm:$0xf] }
  0x9a   : > { %3742 = vmatmul.bf16.gmra.mxu1 %v12496_v57  ;;  %v2238_v24 = vunpack.c.l.b16 %v729_v51  ;;  %v11574_v51 = vld [vmem:[#allocation3 + $0x1d4] sm:$0xf0] }
  0x9b   : > { %3831 = vmatmul.bf16.gmra.mxu2 %v12502_v20  ;;  %v545_v9 = vor.u32 %v544_v6, %v541_v25  ;;  %v555_v31 = vor.u32 %v554_v36, %v550_v27  ;;  %v10593_v28 = vor.u32 %v11574_v51, %v10592_v26  ;;  %v856_v6 = vsel %vm12202_vm4, %v9998_v52, %v855_v41  ;;  %v11475_v26 = vld [vmem:[%s12182_s29 + $0x60] sm:$0xff]  ;;  %v743_v51 = vld [vmem:[%s12182_s29 + $0x9c] sm:$0xe]  ;;  %v11650_v57 = vld [vmem:[#allocation3 + $0x434] sm:$0xf0] }
  0x9c   : > { %v12536_v48 = vpack.c.b16 %v2238_v24, %v2237_v10  ;;  %v565_v24 = vrot.slane %v563_v54, 4  ;;  %v568_v36 = vrot.slane %v566_v58, 5  ;;  %v2287_v16 = vunpack.c.l.b16 %v856_v6 }
  0x9d   : > { %v546_v40 = vrot.slane %v545_v9, 4  ;;  %v556_v29 = vrot.slane %v555_v31, 4  ;;  %3884 = vmatpush.bf16.msrb.mxu3 %v10593_v28  ;;  %v10753_v9 = vor.u32 %v11614_v53, %v10752_v3  ;;  %v10624_v31 = vld [vmem:[#allocation3 + $0x210] sm:$0xf]  ;;  %v582_v54 = vshll.u32 %v12562_v35, 16 }
  0x9e   : > { %15901 = vst [vmem:[#allocation22_spill] sm:$0xff] %v12536_v48  ;;  %v569_v52 = vor.u32 %v568_v36, %v565_v24  ;;  %v890_v58 = vrot.slane %v12356_v21, 5  ;;  %v12573_v28 = vpack.c.b16 %v2288_v44, %v2287_v16  ;;  %v12578_v24 = vld [vmem:[%s12182_s29 + $0x7c] sm:$0xf]  ;;  %v739_v53 = vld [vmem:[%s12182_s29 + $0x6c] sm:$0xe] }
  0x9f   : > { %v551_v10 = vsel %vm12210_vm5, %v546_v40, %v550_v27  ;;  %v561_v25 = vsel %vm12210_vm5, %v556_v29, %v560_v50  ;;  %v10625_v40 = vor.u32 %v11582_v38, %v10624_v31  ;;  %v10688_v29 = vld [vmem:[#allocation3 + $0x290] sm:$0xf]  ;;  %v11598_v50 = vld [vmem:[#allocation3 + $0x294] sm:$0xf0]  ;;  %4155 = vmatpush.bf16.msrb.mxu2 %v10753_v9  ;;  %v584_v3 = vrot.slane %v582_v54, 5 }
  0xa0   : > { %v2223_v27 = vunpack.c.l.b16 %v551_v10  ;;  %v2224_v41 = vunpack.c.l.b16 %v561_v25  ;;  %v10689_v45 = vor.u32 %v11598_v50, %v10688_v29  ;;  %15905 = vst [vmem:[#allocation26_spill] sm:$0xff] %v12573_v28  ;;  %v315_v10 = vld [vmem:[%s12182_s29 + $0x78] sm:$0xf]  ;;  %v570_v6 = vrot.slane %v569_v52, 4  ;;  %v10576_v31 = vld [vmem:[#allocation3 + $0x1b0] sm:$0xf] }
  0xa1   : > { %3977 = vmatpush.bf16.msrb.mxu0 %v10625_v40  ;;  %v892_v21 = vrot.slane %v890_v58, 4  ;;  %v587_v16 = vshrl.u32 %v315_v10, 16  ;;  %v590_v9 = vshll.u32 %v315_v10, 16  ;;  %v596_v49 = vshll.u32 %v12578_v24, 16  ;;  %v11570_v38 = vld [vmem:[#allocation3 + $0x1b4] sm:$0xf0] }
  0xa2   : > { %4066 = vmatpush.bf16.msrb.mxu1 %v10689_v45  ;;  %v12571_v17 = vpack.c.b16 %v2224_v41, %v2223_v27  ;;  %v893_v27 = vrot.slane %v12391_v55, 5  ;;  %v9999_v41 = vrot.slane %v739_v53, 9  ;;  %v864_v44 = vrot.slane %v862_v18, 4  ;;  %v11568_v53 = vld [vmem:[#allocation3 + $0x1a4] sm:$0xf0] }
  0xa3   : > { %v10577_v40 = vor.u32 %v11570_v38, %v10576_v31  ;;  %v575_v55 = vsel %vm12210_vm5, %v570_v6, %v12564_v5  ;;  %v585_v52 = vsel %vm12210_vm5, %v580_v62, %v584_v3  ;;  %v589_v54 = vrot.slane %v587_v16, 4  ;;  %v12608_v3 = vld [vmem:[%s12182_s29 + $0x80] sm:$0x1] }
  0xa4   : > { %15904 = vst [vmem:[#allocation25_spill] sm:$0xff] %v12571_v17  ;;  %v894_v8 = vsel %vm12202_vm4, %v892_v21, %v893_v27  ;;  %v2225_v62 = vunpack.c.l.b16 %v575_v55  ;;  %v606_v31 = vshll.u32 %v12608_v3, 16  ;;  %v11476_v55 = vld [vmem:[%s12182_s29 + $0x6c] sm:$0xff] }
  0xa5   : > { %v2298_v27 = vunpack.c.l.b16 %v894_v8 }
  0xa9   : > { %3658 = vmatmul.bf16.gmra.mxu0 %v11474_v30  ;;  %3787 = vmatmul.bf16.gmra.mxu3 %v12536_v48  ;;  %v11572_v30 = vld [vmem:[#allocation3 + $0x1c4] sm:$0xf0] }
  0xaa   : > { %3747 = vmatmul.bf16.gmra.mxu1 %v12539_v42  ;;  %v10585_v46 = vor.u32 %v11572_v30, %v10584_v33  ;;  %v10003_v33 = vrot.slane %v743_v51, 9  ;;  %v600_v30 = vshrl.u32 %v12578_v24, 16  ;;  %v592_v51 = vrot.slane %v590_v9, 5 }
  0xab   : > { %3836 = vmatmul.bf16.gmra.mxu2 %v12541_v43 }
  0xac   : > { %3885 = vmatpush.bf16.msrb.mxu3 %v10585_v46  ;;  %v865_v46 = vrot.slane %v12562_v35, 5  ;;  %v891_v45 = vsel %vm12202_vm4, %v10003_v33, %v890_v58  ;;  %v602_v5 = vrot.slane %v600_v30, 4  ;;  %v2226_v33 = vunpack.c.l.b16 %v585_v52 }
  0xad   : > { %v2297_v21 = vunpack.c.l.b16 %v891_v45  ;;  %v593_v30 = vor.u32 %v592_v51, %v589_v54  ;;  %v897_v45 = vrot.slane %v12415_v39, 5  ;;  %v10744_v39 = vld [vmem:[#allocation3 + $0x300] sm:$0xf] }
  0xae   : > { %v866_v6 = vsel %vm12202_vm4, %v864_v44, %v865_v46  ;;  %v869_v44 = vrot.slane %v12578_v24, 5  ;;  %v744_v46 = vld [vmem:[%s12182_s29 + $0xa8] sm:$0xe]  ;;  %v608_v24 = vrot.slane %v606_v31, 5  ;;  %v10616_v31 = vld [vmem:[#allocation3 + $0x200] sm:$0xf] }
  0xaf   : > { %v12620_v52 = vpack.c.b16 %v2298_v27, %v2297_v21  ;;  %v594_v51 = vrot.slane %v593_v30, 4  ;;  %v900_v21 = vrot.slane %v12439_v61, 5  ;;  %v899_v27 = vrot.slane %v897_v45, 4 }
  0xb0   : > { %3886 = vmatpush.bf16.msrb.mxu3 %v10577_v40 }
  0xb1   : > { %15907 = vst [vmem:[#allocation28_spill] sm:$0xff] %v12620_v52 }
  0xb6   : > { %v3624_v59 = vpop.f32.mrf.mxu0 }
  0xb7   : > { %v3713_v25 = vpop.f32.mrf.mxu1 }
  0xb8   : > { %v3714_v36 = vadd.f32 %v3713_v25, %v3624_v59  ;;  %v12601_v59 = vrot.slane %v596_v49, 5  ;;  %v863_v25 = vsel %vm12202_vm4, %v9999_v41, %v862_v18  ;;  %v2290_v49 = vunpack.c.l.b16 %v866_v6  ;;  %v740_v41 = vld [vmem:[%s12182_s29 + $0x78] sm:$0xe] }
  0xb9   : > { %3663 = vmatmul.bf16.gmra.mxu0 %v11475_v26  ;;  %3861 = vmatmul.bf16.vlgmr.msra.gmra.mxu3 %v12516_v47  ;;  %v2289_v9 = vunpack.c.l.b16 %v863_v25  ;;  %v10000_v6 = vrot.slane %v740_v41, 9  ;;  %v11580_v41 = vld [vmem:[#allocation3 + $0x204] sm:$0xf0] }
  0xba   : > { %3752 = vmatmul.bf16.gmra.mxu1 %v12571_v17  ;;  %v603_v18 = vor.u32 %v602_v5, %v12601_v59 }
  0xbb   : > { %3841 = vmatmul.bf16.gmra.mxu2 %v12573_v28  ;;  %v10418_v28 = vld [vmem:[#allocation3 + $0x78] sm:$0xf0] }
  0xbc   : > { %v12588_v29 = vpop.f32.mrf.mxu3  ;;  %v604_v5 = vrot.slane %v603_v18, 4  ;;  %v11566_v18 = vld [vmem:[#allocation3 + $0x194] sm:$0xf0] }
  0xbe   : > { %v3802_v50 = vpop.f32.mrf.mxu2  ;;  %v3626_v26 = vpop.f32.mrf.mxu0 }
  0xbf   : > { %v12599_v35 = vadd.f32 %v3802_v50, %v3714_v36  ;;  %v3715_v10 = vpop.f32.mrf.mxu1  ;;  %v10568_v36 = vld [vmem:[#allocation3 + $0x1a0] sm:$0xf]  ;;  %v12618_v50 = vpack.c.b16 %v2226_v33, %v2225_v62  ;;  %v10004_v62 = vrot.slane %v744_v46, 9  ;;  %v871_v33 = vrot.slane %v869_v44, 4 }
  0xc0   : > { %v3716_v58 = vadd.f32 %v3715_v10, %v3626_v26  ;;  %v10569_v16 = vor.u32 %v11568_v53, %v10568_v36  ;;  %v12625_v26 = vpack.c.b16 %v2290_v49, %v2289_v9  ;;  %v317_v10 = vld [vmem:[%s12182_s29 + $0x84] sm:$0xf]  ;;  %v872_v36 = vrot.slane %v12608_v3, 5  ;;  %v12632_v9 = vld [vmem:[%s12182_s29 + $0x88] sm:$0xf] }
  0xc1   : > { %15906 = vst [vmem:[#allocation27_spill] sm:$0xff] %v12618_v50  ;;  %v611_v49 = vshrl.u32 %v317_v10, 16  ;;  %v614_v30 = vshll.u32 %v317_v10, 16  ;;  %v10560_v3 = vld [vmem:[#allocation3 + $0x190] sm:$0xf]  ;;  %v898_v47 = vsel %vm12202_vm4, %v10004_v62, %v897_v45 }
  0xc2   : > { %3887 = vmatpush.bf16.msrb.mxu3 %v10569_v16  ;;  %15908 = vst [vmem:[#allocation29_spill] sm:$0xff] %v12625_v26  ;;  %v10561_v61 = vor.u32 %v11566_v18, %v10560_v3  ;;  %v10680_v46 = vld [vmem:[#allocation3 + $0x280] sm:$0xf]  ;;  %v11564_v62 = vld [vmem:[#allocation3 + $0x184] sm:$0xf0] }
  0xc3   : > { %v10552_v45 = vld [vmem:[#allocation3 + $0x180] sm:$0xf] }
  0xc4   : > { %v12612_v38 = vpop.f32.mrf.mxu3 }
  0xc6   : > { %v3804_v40 = vpop.f32.mrf.mxu2  ;;  %v3629_v54 = vpop.f32.mrf.mxu0  ;;  %3888 = vmatpush.bf16.msrb.mxu3 %v10561_v61 }
  0xc7   : > { %v12623_v8 = vadd.f32 %v3804_v40, %v3716_v58  ;;  %v3718_v25 = vpop.f32.mrf.mxu1  ;;  %v11612_v58 = vld [vmem:[#allocation3 + $0x304] sm:$0xf0] }
  0xc8   : > { %v3719_v53 = vadd.f32 %v3718_v25, %v3629_v54  ;;  %v10745_v16 = vor.u32 %v11612_v58, %v10744_v39  ;;  %v11596_v40 = vld [vmem:[#allocation3 + $0x284] sm:$0xf0]  ;;  %v620_v54 = vshll.u32 %v12632_v9, 16  ;;  %v624_v25 = vshrl.u32 %v12632_v9, 16 }
  0xc9   : > { %3668 = vmatmul.bf16.gmra.mxu0 %v11476_v55  ;;  %3866 = vmatmul.bf16.gmra.mxu3 %v12620_v52  ;;  %v10617_v39 = vor.u32 %v11580_v41, %v10616_v31  ;;  %v10681_v10 = vor.u32 %v11596_v40, %v10680_v46  ;;  %v599_v52 = vsel %vm12210_vm5, %v594_v51, %v12601_v59  ;;  %v613_v51 = vrot.slane %v611_v49, 4 }
  0xca   : > { %3757 = vmatmul.bf16.gmra.mxu1 %v12618_v50  ;;  %4156 = vmatpush.bf16.msrb.mxu2 %v10745_v16  ;;  %v870_v16 = vsel %vm12202_vm4, %v10000_v6, %v869_v44  ;;  %v901_v31 = vsel %vm12202_vm4, %v899_v27, %v900_v21  ;;  %v609_v59 = vsel %vm12210_vm5, %v604_v5, %v608_v24  ;;  %v616_v6 = vrot.slane %v614_v30, 5  ;;  %v338_v27 = vld [vmem:[%s12182_s29 + $0x8c] sm:$0x1] }
  0xcb   : > { %3846 = vmatmul.bf16.gmra.mxu2 %v12625_v26  ;;  %3978 = vmatpush.bf16.msrb.mxu0 %v10617_v39  ;;  %v873_v44 = vsel %vm12202_vm4, %v871_v33, %v872_v36  ;;  %v12655_v61 = vrot.slane %v620_v54, 5  ;;  %v626_v46 = vrot.slane %v624_v25, 4  ;;  %v2299_v40 = vunpack.c.l.b16 %v898_v47  ;;  %v11477_v25 = vld [vmem:[%s12182_s29 + $0x78] sm:$0xff]  ;;  %v11529_v26 = vld [vmem:[#allocation3 + $0x74] sm:$0xf] }
  0xcc   : > { %v12636_v55 = vpop.f32.mrf.mxu3  ;;  %4067 = vmatpush.bf16.msrb.mxu1 %v10681_v10  ;;  %v2300_v21 = vunpack.c.l.b16 %v901_v31  ;;  %v10553_v39 = vor.u32 %v11564_v62, %v10552_v45  ;;  %v2227_v10 = vunpack.c.l.b16 %v599_v52  ;;  %v2291_v5 = vunpack.c.l.b16 %v870_v16 }
  0xcd   : > { %v2292_v24 = vunpack.c.l.b16 %v873_v44  ;;  %v617_v33 = vor.u32 %v616_v6, %v613_v51  ;;  %v627_v49 = vor.u32 %v626_v46, %v12655_v61  ;;  %v630_v30 = vshll.u32 %v338_v27, 16  ;;  %v745_v44 = vld [vmem:[%s12182_s29 + $0xb4] sm:$0xe] }
  0xce   : > { %v3807_v58 = vpop.f32.mrf.mxu2  ;;  %v3631_v18 = vpop.f32.mrf.mxu0  ;;  %3889 = vmatpush.bf16.msrb.mxu3 %v10553_v39  ;;  %v12662_v47 = vpack.c.b16 %v2300_v21, %v2299_v40  ;;  %v904_v51 = vrot.slane %v12462_v56, 5  ;;  %v10006_v21 = vld [vmem:[%s12182_s29 + $0xc] sm:$0xf]  ;;  %v879_v39 = vrot.slane %v338_v27, 5  ;;  %v907_v56 = vrot.slane %v12484_v37, 5 }
  0xcf   : > { %v12645_v3 = vadd.f32 %v3807_v58, %v3719_v53  ;;  %v3720_v41 = vpop.f32.mrf.mxu1  ;;  %v2228_v58 = vunpack.c.l.b16 %v609_v59  ;;  %v741_v59 = vld [vmem:[%s12182_s29 + $0x84] sm:$0xe]  ;;  %v618_v45 = vrot.slane %v617_v33, 4  ;;  %v628_v62 = vrot.slane %v627_v49, 4  ;;  %v12680_v33 = vld [vmem:[%s12182_s29 + $0x10] sm:$0xf] }
  0xd0   : > { %v3721_v53 = vadd.f32 %v3720_v41, %v3631_v18  ;;  %15909 = vst [vmem:[#allocation30_spill] sm:$0xff] %v12662_v47  ;;  %v876_v18 = vrot.slane %v12632_v9, 5  ;;  %v12669_v41 = vpack.c.b16 %v2292_v24, %v2291_v5  ;;  %v632_v40 = vrot.slane %v630_v30, 5  ;;  %v10864_v5 = vld [vmem:[#allocation3 + $0x3f0] sm:$0xf] }
  0xd1   : > { %v12667_v16 = vpack.c.b16 %v2228_v58, %v2227_v10  ;;  %v10001_v9 = vrot.slane %v741_v59, 9  ;;  %v10005_v10 = vrot.slane %v745_v44, 9  ;;  %v906_v58 = vrot.slane %v904_v51, 4  ;;  %v11642_v24 = vld [vmem:[#allocation3 + $0x3f4] sm:$0xf0] }
  0xd2   : > { %15911 = vst [vmem:[#allocation32_spill] sm:$0xff] %v12669_v41  ;;  %v959_v49 = vshrl.u32 %v10006_v21, 16  ;;  %v962_v30 = vshll.u32 %v10006_v21, 16  ;;  %v623_v27 = vsel %vm12210_vm5, %v618_v45, %v12655_v61  ;;  %v633_v59 = vsel %vm12210_vm5, %v628_v62, %v632_v40 }
  0xd3   : > { %15910 = vst [vmem:[#allocation31_spill] sm:$0xff] %v12667_v16  ;;  %v877_v37 = vsel %vm12202_vm4, %v10001_v9, %v876_v18  ;;  %v908_v61 = vsel %vm12202_vm4, %v906_v58, %v907_v56  ;;  %v968_v45 = vshll.u32 %v12680_v33, 16  ;;  %v972_v62 = vshrl.u32 %v12680_v33, 16  ;;  %v11658_v56 = vld [vmem:[#allocation3 + $0x474] sm:$0xf0] }
  0xd4   : > { %v12658_v36 = vpop.f32.mrf.mxu3 }
  0xd5   : > { %v970_v43 = vrot.slane %v968_v45, 5  ;;  %v974_v20 = vrot.slane %v972_v62, 4 }
  0xd6   : > { %v3809_v54 = vpop.f32.mrf.mxu2  ;;  %v3634_v31 = vpop.f32.mrf.mxu0 }
  0xd7   : > { %v12665_v52 = vadd.f32 %v3809_v54, %v3721_v53  ;;  %v3723_v6 = vpop.f32.mrf.mxu1  ;;  %v878_v53 = vrot.slane %v876_v18, 4  ;;  %v10865_v54 = vor.u32 %v11642_v24, %v10864_v5  ;;  %v961_v24 = vrot.slane %v959_v49, 4 }
  0xd8   : > { %v3724_v46 = vadd.f32 %v3723_v6, %v3634_v31  ;;  %v905_v6 = vsel %vm12202_vm4, %v10005_v10, %v904_v51  ;;  %v964_v18 = vrot.slane %v962_v30, 5  ;;  %v11545_v51 = vld [vmem:[#allocation3 + $0xf4] sm:$0xf]  ;;  %v10482_v10 = vld [vmem:[#allocation3 + $0xf8] sm:$0xf0]  ;;  %v10421_v30 = vor.u32 %v11529_v26, %v10418_v28 }
  0xd9   : > { %3673 = vmatmul.bf16.gmra.mxu0 %v11477_v25  ;;  %3871 = vmatmul.bf16.gmra.mxu3 %v12662_v47  ;;  %v880_v44 = vsel %vm12202_vm4, %v878_v53, %v879_v39  ;;  %v2229_v47 = vunpack.c.l.b16 %v623_v27  ;;  %v2230_v53 = vunpack.c.l.b16 %v633_v59  ;;  %v2293_v39 = vunpack.c.l.b16 %v877_v37  ;;  %v11478_v37 = vld [vmem:[%s12182_s29 + $0x84] sm:$0xff] }
  0xda   : > { %3762 = vmatmul.bf16.gmra.mxu1 %v12667_v16  ;;  %4238 = vmatpush.bf16.msra.mxu3 %v10865_v54  ;;  %v2294_v54 = vunpack.c.l.b16 %v880_v44  ;;  %v10485_v58 = vor.u32 %v11545_v51, %v10482_v10  ;;  %v975_v28 = vor.u32 %v974_v20, %v970_v43  ;;  %v1408_v10 = vrot.slane %v12680_v33, 5 }
  0xdb   : > { %3851 = vmatmul.bf16.gmra.mxu2 %v12669_v41  ;;  %v2302_v41 = vunpack.c.l.b16 %v908_v61  ;;  %4416 = vmatpush.bf16.msra.mxu1 %v10421_v30  ;;  %v12705_v44 = vpack.c.b16 %v2230_v53, %v2229_v47  ;;  %v965_v61 = vor.u32 %v964_v18, %v961_v24  ;;  %v10008_v18 = vld [vmem:[%s12182_s29 + $0x18] sm:$0xf] }
  0xdc   : > { %v12682_v25 = vpop.f32.mrf.mxu3  ;;  %4505 = vmatpush.bf16.msra.mxu2 %v10485_v58  ;;  %v12711_v62 = vpack.c.b16 %v2294_v54, %v2293_v39  ;;  %v10054_v58 = vld [vmem:[%s12182_s29 + $0xc] sm:$0xe]  ;;  %v1410_v20 = vrot.slane %v1408_v10, 4  ;;  %v10009_v39 = vld [vmem:[%s12182_s29 + $0x1c] sm:$0xf] }
  0xdd   : > { %15912 = vst [vmem:[#allocation33_spill] sm:$0xff] %v12705_v44  ;;  %v966_v47 = vrot.slane %v965_v61, 4  ;;  %v992_v61 = vshll.u32 %v10009_v39, 16 }
  0xde   : > { %v3812_v31 = vpop.f32.mrf.mxu2  ;;  %v3636_v5 = vpop.f32.mrf.mxu0  ;;  %15914 = vst [vmem:[#allocation35_spill] sm:$0xff] %v12711_v62 }
  0xdf   : > { %v12695_v21 = vadd.f32 %v3812_v31, %v3724_v46  ;;  %v3725_v40 = vpop.f32.mrf.mxu1  ;;  %v10928_v46 = vld [vmem:[#allocation3 + $0x470] sm:$0xf]  ;;  %v2301_v31 = vunpack.c.l.b16 %v905_v6 }
  0xe0   : > { %v3726_v9 = vadd.f32 %v3725_v40, %v3636_v5  ;;  %v10929_v49 = vor.u32 %v11658_v56, %v10928_v46  ;;  %v10038_v5 = vld [vmem:[%s12182_s29 + $0x14] sm:$0x1]  ;;  %v983_v56 = vshrl.u32 %v10008_v18, 16 }
  0xe1   : > { %v12707_v6 = vpack.c.b16 %v2302_v41, %v2301_v31  ;;  %v978_v26 = vshll.u32 %v10038_v5, 16  ;;  %v976_v41 = vrot.slane %v975_v28, 4  ;;  %v1411_v53 = vrot.slane %v10038_v5, 5 }
  0xe2   : > { %4327 = vmatpush.bf16.msra.mxu0 %v10929_v49  ;;  %v971_v31 = vsel %vm12210_vm5, %v966_v47, %v970_v43  ;;  %v986_v49 = vshll.u32 %v10008_v18, 16 }
  0xe3   : > { %15913 = vst [vmem:[#allocation34_spill] sm:$0xff] %v12707_v6  ;;  %v980_v24 = vrot.slane %v978_v26, 5  ;;  %v1412_v26 = vsel %vm12202_vm4, %v1410_v20, %v1411_v53  ;;  %v1415_v53 = vrot.slane %v10009_v39, 5 }
  0xe4   : > { %v12702_v27 = vpop.f32.mrf.mxu3  ;;  %v988_v47 = vrot.slane %v986_v49, 5  ;;  %v11499_v49 = vld [vmem:[%s12182_s29 + $0x18] sm:$0xff] }
  0xe6   : > { %v3814_v59 = vpop.f32.mrf.mxu2  ;;  %v3639_v45 = vpop.f32.mrf.mxu0 }
  0xe7   : > { %v12709_v40 = vadd.f32 %v3814_v59, %v3726_v9  ;;  %v3728_v51 = vpop.f32.mrf.mxu1  ;;  %v10070_v9 = vrot.slane %v10054_v58, 9 }
  0xe8   : > { %v3729_v46 = vadd.f32 %v3728_v51, %v3639_v45  ;;  %v996_v45 = vshrl.u32 %v10009_v39, 16  ;;  %v2415_v51 = vunpack.c.l.b16 %v971_v31 }
  0xe9   : > { %3678 = vmatmul.bf16.gmra.mxu0 %v11478_v37  ;;  %3876 = vmatmul.bf16.gmra.mxu3 %v12707_v6  ;;  %v981_v37 = vsel %vm12210_vm5, %v976_v41, %v980_v24  ;;  %v1409_v28 = vsel %vm12202_vm4, %v10070_v9, %v1408_v10  ;;  %v994_v41 = vrot.slane %v992_v61, 5  ;;  %v10039_v6 = vld [vmem:[%s12182_s29 + $0x20] sm:$0x1]  ;;  %v11483_v10 = vld [vmem:[%s12182_s29 + $0xc] sm:$0xff]  ;;  %v10055_v61 = vld [vmem:[%s12182_s29 + $0x18] sm:$0xe] }
  0xea   : > { %3767 = vmatmul.bf16.gmra.mxu1 %v12705_v44  ;;  %v2416_v58 = vunpack.c.l.b16 %v981_v37  ;;  %v2479_v18 = vunpack.c.l.b16 %v1409_v28  ;;  %v998_v24 = vrot.slane %v996_v45, 4  ;;  %v1418_v39 = vrot.slane %v10039_v6, 5 }
  0xeb   : > { %3856 = vmatmul.bf16.gmra.mxu2 %v12711_v62 }
  0xec   : > { %v12720_v54 = vpop.f32.mrf.mxu3  ;;  %v12736_v9 = vpack.c.b16 %v2416_v58, %v2415_v51  ;;  %v999_v37 = vor.u32 %v998_v24, %v994_v41  ;;  %v10071_v58 = vrot.slane %v10055_v61, 9 }
  0xee   : > { %v3817_v33 = vpop.f32.mrf.mxu2  ;;  %v3641_v59 = vpop.f32.mrf.mxu0  ;;  %15915 = vst [vmem:[#allocation36_spill] sm:$0xff] %v12736_v9 }
  0xef   : > { %v12724_v30 = vadd.f32 %v3817_v33, %v3729_v46  ;;  %v3730_v5 = vpop.f32.mrf.mxu1  ;;  %v985_v46 = vrot.slane %v983_v56, 4  ;;  %v2480_v33 = vunpack.c.l.b16 %v1412_v26  ;;  %v10010_v26 = vld [vmem:[%s12182_s29 + $0x24] sm:$0xf] }
  0xf0   : > { %v3731_v43 = vadd.f32 %v3730_v5, %v3641_v59  ;;  %v1002_v5 = vshll.u32 %v10039_v6, 16  ;;  %v1007_v24 = vshrl.u32 %v10010_v26, 16  ;;  %v1010_v19 = vshll.u32 %v10010_v26, 16 }
  0xf1   : > { %v989_v20 = vor.u32 %v988_v47, %v985_v46  ;;  %v12740_v59 = vpack.c.b16 %v2480_v33, %v2479_v18  ;;  %v1417_v46 = vrot.slane %v1415_v53, 4  ;;  %v10856_v47 = vld [vmem:[#allocation3 + $0x3e0] sm:$0xf]  ;;  %v11640_v18 = vld [vmem:[#allocation3 + $0x3e4] sm:$0xf0] }
  0xf2   : > { %v12748_v33 = vld [vmem:[%s12182_s29 + $0x28] sm:$0xf] }
  0xf3   : > { %15916 = vst [vmem:[#allocation37_spill] sm:$0xff] %v12740_v59  ;;  %v990_v51 = vrot.slane %v989_v20, 4 }
  0xf4   : > { %v12733_v62 = vpop.f32.mrf.mxu3 }
  0xf5   : > { %v995_v6 = vsel %vm12210_vm5, %v990_v51, %v994_v41  ;;  %v1012_v41 = vrot.slane %v1010_v19, 5  ;;  %v10040_v19 = vld [vmem:[%s12182_s29 + $0x2c] sm:$0x1] }
  0xf6   : > { %v3819_v7 = vpop.f32.mrf.mxu2  ;;  %v3644_v56 = vpop.f32.mrf.mxu0 }
  0xf7   : > { %v12738_v31 = vadd.f32 %v3819_v7, %v3731_v43  ;;  %v3733_v45 = vpop.f32.mrf.mxu1  ;;  %v1000_v7 = vrot.slane %v999_v37, 4  ;;  %v1004_v43 = vrot.slane %v1002_v5, 5  ;;  %v1419_v37 = vsel %vm12202_vm4, %v1417_v46, %v1418_v39  ;;  %v10920_v46 = vld [vmem:[#allocation3 + $0x460] sm:$0xf] }
  0xf8   : > { %v3734_v28 = vadd.f32 %v3733_v45, %v3644_v56  ;;  %v10857_v56 = vor.u32 %v11640_v18, %v10856_v47  ;;  %v1020_v47 = vshrl.u32 %v12748_v33, 16 }
  0xf9   : > { %3890 = vmatmul.bf16.vlgmr.msrb.gmra.mxu3 %v11483_v10  ;;  %3979 = vmatmul.bf16.vlgmr.msrb.gmra.mxu0 %v12736_v9  ;;  %v1005_v26 = vsel %vm12210_vm5, %v1000_v7, %v1004_v43  ;;  %v11527_v7 = vld [vmem:[#allocation3 + $0x64] sm:$0xf]  ;;  %v10410_v43 = vld [vmem:[#allocation3 + $0x68] sm:$0xf0]  ;;  %v10921_v9 = vor.u32 %v11656_v2, %v10920_v46  ;;  %v1026_v46 = vshll.u32 %v10040_v19, 16 }
  0xfa   : > { %4068 = vmatmul.bf16.vlgmr.msrb.gmra.mxu1 %v12740_v59  ;;  %4239 = vmatpush.bf16.msra.mxu3 %v10857_v56  ;;  %v2418_v39 = vunpack.c.l.b16 %v1005_v26  ;;  %v2482_v56 = vunpack.c.l.b16 %v1419_v37  ;;  %v1022_v59 = vrot.slane %v1020_v47, 4  ;;  %v11484_v37 = vld [vmem:[%s12182_s29 + $0x18] sm:$0xff]  ;;  %v11500_v47 = vld [vmem:[%s12182_s29 + $0x24] sm:$0xff] }
  0xfb   : > { %4157 = vmatmul.bf16.vlgmr.msrb.gmra.mxu2 %v11499_v49  ;;  %v1416_v49 = vsel %vm12202_vm4, %v10071_v58, %v1415_v53  ;;  %v2417_v53 = vunpack.c.l.b16 %v995_v6  ;;  %v11543_v58 = vld [vmem:[#allocation3 + $0xe4] sm:$0xf]  ;;  %4328 = vmatpush.bf16.msra.mxu0 %v10921_v9 }
  0xfc   : > { %v3773_v45 = vpop.f32.mrf.mxu3 }
  0xfd   : > { %v12751_v10 = vadd.f32 %v3773_v45, %v12588_v29  ;;  %v1016_v29 = vshll.u32 %v12748_v33, 16  ;;  %v1009_v45 = vrot.slane %v1007_v24, 4  ;;  %v10413_v24 = vor.u32 %v11527_v7, %v10410_v43  ;;  %v10056_v7 = vld [vmem:[%s12182_s29 + $0x24] sm:$0xe] }
  0xfe   : > { %v3822_v20 = vpop.f32.mrf.mxu2  ;;  %v3646_v61 = vpop.f32.mrf.mxu0 }
  0xff   : > { %v12759_v5 = vadd.f32 %v3822_v20, %v3734_v28  ;;  %v3735_v18 = vpop.f32.mrf.mxu1  ;;  %v2481_v28 = vunpack.c.l.b16 %v1416_v49  ;;  %v10477_v20 = vor.u32 %v11543_v58, %v10474_v0  ;;  %v1018_v15 = vrot.slane %v1016_v29, 5  ;;  %4417 = vmatpush.bf16.msra.mxu1 %v10413_v24 }
 0x100   : > { %v3736_v51 = vadd.f32 %v3735_v18, %v3646_v61  ;;  %v12770_v0 = vpack.c.b16 %v2418_v39, %v2417_v53  ;;  %v1013_v26 = vor.u32 %v1012_v41, %v1009_v45  ;;  %v1028_v41 = vrot.slane %v1026_v46, 5 }
 0x101   : > { %4506 = vmatpush.bf16.msra.mxu2 %v10477_v20  ;;  %v12774_v2 = vpack.c.b16 %v2482_v56, %v2481_v28  ;;  %v1023_v58 = vor.u32 %v1022_v59, %v1018_v15  ;;  %v1422_v20 = vrot.slane %v12748_v33, 5  ;;  %v10072_v39 = vrot.slane %v10056_v7, 9  ;;  %v12783_v56 = vld [vmem:[%s12182_s29 + $0x34] sm:$0xf] }
 0x102   : > { %15917 = vst [vmem:[#allocation38_spill] sm:$0xff] %v12770_v0  ;;  %v1014_v53 = vrot.slane %v1013_v26, 4  ;;  %v1425_v59 = vrot.slane %v10040_v19, 5  ;;  %v1040_v19 = vshll.u32 %v12783_v56, 16 }
 0x103   : > { %15918 = vst [vmem:[#allocation39_spill] sm:$0xff] %v12774_v2  ;;  %v1024_v45 = vrot.slane %v1023_v58, 4  ;;  %v1424_v28 = vrot.slane %v1422_v20, 4  ;;  %v1044_v58 = vshrl.u32 %v12783_v56, 16 }
 0x104   : > { %v3775_v61 = vpop.f32.mrf.mxu3 }
 0x105   : > { %v12767_v6 = vadd.f32 %v3775_v61, %v12612_v38  ;;  %v1019_v61 = vsel %vm12210_vm5, %v1014_v53, %v1018_v15  ;;  %v1426_v15 = vsel %vm12202_vm4, %v1424_v28, %v1425_v59 }
 0x106   : > { %v3824_v49 = vpop.f32.mrf.mxu2  ;;  %v3649_v29 = vpop.f32.mrf.mxu0 }
 0x107   : > { %v12772_v18 = vadd.f32 %v3824_v49, %v3736_v51  ;;  %v3738_v9 = vpop.f32.mrf.mxu1  ;;  %v10012_v51 = vld [vmem:[%s12182_s29 + $0x30] sm:$0xf] }
 0x108   : > { %v3739_v38 = vadd.f32 %v3738_v9, %v3649_v29  ;;  %v1031_v49 = vshrl.u32 %v10012_v51, 16 }
 0x109   : > { %3895 = vmatmul.bf16.gmra.mxu3 %v11484_v37  ;;  %3984 = vmatmul.bf16.gmra.mxu0 %v12770_v0  ;;  %v1034_v37 = vshll.u32 %v10012_v51, 16 }
 0x10a   : > { %4073 = vmatmul.bf16.gmra.mxu1 %v12774_v2  ;;  %v1033_v53 = vrot.slane %v1031_v49, 4  ;;  %v10041_v2 = vld [vmem:[%s12182_s29 + $0x38] sm:$0x1] }
 0x10b   : > { %4162 = vmatmul.bf16.gmra.mxu2 %v11500_v47  ;;  %v1029_v47 = vsel %vm12210_vm5, %v1024_v45, %v1028_v41  ;;  %v1036_v51 = vrot.slane %v1034_v37, 5  ;;  %v2484_v45 = vunpack.c.l.b16 %v1426_v15  ;;  %v1042_v41 = vrot.slane %v1040_v19, 5 }
 0x10c   : > { %v3778_v43 = vpop.f32.mrf.mxu3  ;;  %v2420_v7 = vunpack.c.l.b16 %v1029_v47  ;;  %v11501_v47 = vld [vmem:[%s12182_s29 + $0x30] sm:$0xff] }
 0x10d   : > { %v12786_v33 = vadd.f32 %v3778_v43, %v12636_v55  ;;  %v1423_v55 = vsel %vm12202_vm4, %v10072_v39, %v1422_v20  ;;  %v11485_v39 = vld [vmem:[%s12182_s29 + $0x24] sm:$0xff]  ;;  %v1037_v59 = vor.u32 %v1036_v51, %v1033_v53 }
 0x10e   : > { %v3827_v24 = vpop.f32.mrf.mxu2  ;;  %v3651_v29 = vpop.f32.mrf.mxu0  ;;  %v2483_v43 = vunpack.c.l.b16 %v1423_v55  ;;  %v10848_v51 = vld [vmem:[#allocation3 + $0x3d0] sm:$0xf] }
 0x10f   : > { %v12790_v26 = vadd.f32 %v3827_v24, %v3739_v38  ;;  %v3740_v46 = vpop.f32.mrf.mxu1  ;;  %v2419_v38 = vunpack.c.l.b16 %v1019_v61  ;;  %v1046_v24 = vrot.slane %v1044_v58, 4  ;;  %v1429_v61 = vrot.slane %v12783_v56, 5 }
 0x110   : > { %v3741_v9 = vadd.f32 %v3740_v46, %v3651_v29  ;;  %v12810_v29 = vpack.c.b16 %v2484_v45, %v2483_v43  ;;  %v1050_v58 = vshll.u32 %v10041_v2, 16  ;;  %v10057_v46 = vld [vmem:[%s12182_s29 + $0x30] sm:$0xe]  ;;  %v1038_v15 = vrot.slane %v1037_v59, 4  ;;  %v12818_v45 = vld [vmem:[%s12182_s29 + $0x40] sm:$0xf] }
 0x111   : > { %v12805_v28 = vpack.c.b16 %v2420_v7, %v2419_v38  ;;  %v1047_v19 = vor.u32 %v1046_v24, %v1042_v41  ;;  %v10073_v38 = vrot.slane %v10057_v46, 9  ;;  %v1431_v7 = vrot.slane %v1429_v61, 4  ;;  %v11638_v43 = vld [vmem:[#allocation3 + $0x3d4] sm:$0xf0] }
 0x112   : > { %15920 = vst [vmem:[#allocation41_spill] sm:$0xff] %v12810_v29  ;;  %v1432_v56 = vrot.slane %v10041_v2, 5  ;;  %v1052_v53 = vrot.slane %v1050_v58, 5  ;;  %v1043_v2 = vsel %vm12210_vm5, %v1038_v15, %v1042_v41 }
 0x113   : > { %15919 = vst [vmem:[#allocation40_spill] sm:$0xff] %v12805_v28 }
 0x114   : > { %v3780_v0 = vpop.f32.mrf.mxu3 }
 0x115   : > { %v12802_v13 = vadd.f32 %v3780_v0, %v12658_v36  ;;  %v10014_v0 = vld [vmem:[%s12182_s29 + $0x3c] sm:$0xf] }
 0x116   : > { %v3829_v20 = vpop.f32.mrf.mxu2  ;;  %v3654_v37 = vpop.f32.mrf.mxu0  ;;  %v1055_v24 = vshrl.u32 %v10014_v0, 16 }
 0x117   : > { %v12808_v49 = vadd.f32 %v3829_v20, %v3741_v9  ;;  %v3743_v55 = vpop.f32.mrf.mxu1  ;;  %v1048_v9 = vrot.slane %v1047_v19, 4  ;;  %v1058_v20 = vshll.u32 %v10014_v0, 16  ;;  %v1433_v19 = vsel %vm12202_vm4, %v1431_v7, %v1432_v56  ;;  %v10912_v7 = vld [vmem:[#allocation3 + $0x450] sm:$0xf] }
 0x118   : > { %v3744_v36 = vadd.f32 %v3743_v55, %v3654_v37  ;;  %v10849_v37 = vor.u32 %v11638_v43, %v10848_v51  ;;  %v1068_v51 = vshrl.u32 %v12818_v45, 16 }
 0x119   : > { %3900 = vmatmul.bf16.gmra.mxu3 %v11485_v39  ;;  %3989 = vmatmul.bf16.gmra.mxu0 %v12805_v28  ;;  %v1053_v0 = vsel %vm12210_vm5, %v1048_v9, %v1052_v53  ;;  %v1060_v41 = vrot.slane %v1058_v20, 5  ;;  %v11654_v28 = vld [vmem:[#allocation3 + $0x454] sm:$0xf0]  ;;  %v11525_v9 = vld [vmem:[#allocation3 + $0x54] sm:$0xf] }
 0x11a   : > { %4078 = vmatmul.bf16.gmra.mxu1 %v12810_v29  ;;  %4240 = vmatpush.bf16.msra.mxu3 %v10849_v37  ;;  %v10466_v29 = vld [vmem:[#allocation3 + $0xd8] sm:$0xf0]  ;;  %v2422_v56 = vunpack.c.l.b16 %v1053_v0  ;;  %v2486_v37 = vunpack.c.l.b16 %v1433_v19  ;;  %v1070_v22 = vrot.slane %v1068_v51, 4  ;;  %v10913_v32 = vor.u32 %v11654_v28, %v10912_v7  ;;  %v10042_v20 = vld [vmem:[%s12182_s29 + $0x44] sm:$0x1] }
 0x11b   : > { %4167 = vmatmul.bf16.gmra.mxu2 %v11501_v47  ;;  %v1430_v47 = vsel %vm12202_vm4, %v10073_v38, %v1429_v61  ;;  %v2421_v61 = vunpack.c.l.b16 %v1043_v2  ;;  %v11541_v38 = vld [vmem:[#allocation3 + $0xd4] sm:$0xf]  ;;  %v10402_v53 = vld [vmem:[#allocation3 + $0x58] sm:$0xf0]  ;;  %v1074_v7 = vshll.u32 %v10042_v20, 16 }
 0x11c   : > { %v3783_v55 = vpop.f32.mrf.mxu3  ;;  %4329 = vmatpush.bf16.msra.mxu0 %v10913_v32  ;;  %v11486_v19 = vld [vmem:[%s12182_s29 + $0x30] sm:$0xff] }
 0x11d   : > { %v12821_v39 = vadd.f32 %v3783_v55, %v12682_v25  ;;  %v1064_v25 = vshll.u32 %v12818_v45, 16  ;;  %v1057_v55 = vrot.slane %v1055_v24, 4  ;;  %v10405_v24 = vor.u32 %v11525_v9, %v10402_v53  ;;  %v10058_v9 = vld [vmem:[%s12182_s29 + $0x3c] sm:$0xe] }
 0x11e   : > { %v3832_v59 = vpop.f32.mrf.mxu2  ;;  %v3656_v46 = vpop.f32.mrf.mxu0 }
 0x11f   : > { %v12829_v58 = vadd.f32 %v3832_v59, %v3744_v36  ;;  %v3745_v43 = vpop.f32.mrf.mxu1  ;;  %v2485_v36 = vunpack.c.l.b16 %v1430_v47  ;;  %v10469_v59 = vor.u32 %v11541_v38, %v10466_v29  ;;  %v1066_v48 = vrot.slane %v1064_v25, 5  ;;  %4418 = vmatpush.bf16.msra.mxu1 %v10405_v24 }
 0x120   : > { %v3746_v15 = vadd.f32 %v3745_v43, %v3656_v46  ;;  %v12840_v29 = vpack.c.b16 %v2422_v56, %v2421_v61  ;;  %v1061_v0 = vor.u32 %v1060_v41, %v1057_v55  ;;  %v11502_v43 = vld [vmem:[%s12182_s29 + $0x3c] sm:$0xff]  ;;  %v10016_v56 = vld [vmem:[%s12182_s29 + $0x48] sm:$0xf]  ;;  %v1076_v41 = vrot.slane %v1074_v7, 5 }
 0x121   : > { %4507 = vmatpush.bf16.msra.mxu2 %v10469_v59  ;;  %v12844_v28 = vpack.c.b16 %v2486_v37, %v2485_v36  ;;  %v1071_v38 = vor.u32 %v1070_v22, %v1066_v48  ;;  %v1436_v59 = vrot.slane %v12818_v45, 5  ;;  %v1439_v22 = vrot.slane %v10042_v20, 5  ;;  %v12853_v37 = vld [vmem:[%s12182_s29 + $0x4c] sm:$0xf] }
 0x122   : > { %15921 = vst [vmem:[#allocation42_spill] sm:$0xff] %v12840_v29  ;;  %v1062_v61 = vrot.slane %v1061_v0, 4  ;;  %v1079_v24 = vshrl.u32 %v10016_v56, 16  ;;  %v1082_v45 = vshll.u32 %v10016_v56, 16  ;;  %v1088_v20 = vshll.u32 %v12853_v37, 16 }
 0x123   : > { %15922 = vst [vmem:[#allocation43_spill] sm:$0xff] %v12844_v28  ;;  %v1072_v55 = vrot.slane %v1071_v38, 4  ;;  %v1438_v36 = vrot.slane %v1436_v59, 4  ;;  %v1092_v38 = vshrl.u32 %v12853_v37, 16 }
 0x124   : > { %v3785_v46 = vpop.f32.mrf.mxu3 }
 0x125   : > { %v12837_v2 = vadd.f32 %v3785_v46, %v12702_v27 }
 0x126   : > { %v3834_v47 = vpop.f32.mrf.mxu2  ;;  %v3659_v51 = vpop.f32.mrf.mxu0 }
 0x127   : > { %v12842_v25 = vadd.f32 %v3834_v47, %v3746_v15  ;;  %v3748_v32 = vpop.f32.mrf.mxu1  ;;  %v10074_v15 = vrot.slane %v10058_v9, 9  ;;  %v1081_v9 = vrot.slane %v1079_v24, 4 }
 0x128   : > { %v3749_v27 = vadd.f32 %v3748_v32, %v3659_v51  ;;  %v1440_v32 = vsel %vm12202_vm4, %v1438_v36, %v1439_v22  ;;  %v11487_v36 = vld [vmem:[%s12182_s29 + $0x3c] sm:$0xff] }
 0x129   : > { %3905 = vmatmul.bf16.gmra.mxu3 %v11486_v19  ;;  %3994 = vmatmul.bf16.gmra.mxu0 %v12840_v29  ;;  %v1067_v19 = vsel %vm12210_vm5, %v1062_v61, %v1066_v48 }
 0x12a   : > { %4083 = vmatmul.bf16.gmra.mxu1 %v12844_v28  ;;  %v2423_v61 = vunpack.c.l.b16 %v1067_v19  ;;  %v1094_v28 = vrot.slane %v1092_v38, 4 }
 0x12b   : > { %4172 = vmatmul.bf16.gmra.mxu2 %v11502_v43  ;;  %v1077_v43 = vsel %vm12210_vm5, %v1072_v55, %v1076_v41  ;;  %v2488_v55 = vunpack.c.l.b16 %v1440_v32  ;;  %v10043_v41 = vld [vmem:[%s12182_s29 + $0x50] sm:$0x1]  ;;  %v10018_v32 = vld [vmem:[%s12182_s29 + $0x54] sm:$0xf] }
 0x12c   : > { %v3788_v53 = vpop.f32.mrf.mxu3  ;;  %v2424_v56 = vunpack.c.l.b16 %v1077_v43  ;;  %v1098_v24 = vshll.u32 %v10043_v41, 16 }
 0x12d   : > { %v12856_v46 = vadd.f32 %v3788_v53, %v12720_v54  ;;  %v1437_v54 = vsel %vm12202_vm4, %v10074_v15, %v1436_v59 }
 0x12e   : > { %v3837_v47 = vpop.f32.mrf.mxu2  ;;  %v3661_v51 = vpop.f32.mrf.mxu0  ;;  %v2487_v53 = vunpack.c.l.b16 %v1437_v54  ;;  %v12875_v22 = vpack.c.b16 %v2424_v56, %v2423_v61 }
 0x12f   : > { %v12860_v0 = vadd.f32 %v3837_v47, %v3749_v27  ;;  %v3750_v7 = vpop.f32.mrf.mxu1  ;;  %v1084_v27 = vrot.slane %v1082_v45, 5  ;;  %v1090_v47 = vrot.slane %v1088_v20, 5  ;;  %v1443_v45 = vrot.slane %v12853_v37, 5  ;;  %v11503_v20 = vld [vmem:[%s12182_s29 + $0x48] sm:$0xff] }
 0x130   : > { %v3751_v48 = vadd.f32 %v3750_v7, %v3661_v51  ;;  %15923 = vst [vmem:[#allocation44_spill] sm:$0xff] %v12875_v22  ;;  %v12880_v43 = vpack.c.b16 %v2488_v55, %v2487_v53  ;;  %v10059_v7 = vld [vmem:[%s12182_s29 + $0x48] sm:$0xe]  ;;  %v1103_v53 = vshrl.u32 %v10018_v32, 16  ;;  %v11636_v55 = vld [vmem:[#allocation3 + $0x3c4] sm:$0xf0] }
 0x131   : > { %v1085_v4 = vor.u32 %v1084_v27, %v1081_v9  ;;  %v1095_v38 = vor.u32 %v1094_v28, %v1090_v47  ;;  %v12886_v9 = vld [vmem:[%s12182_s29 + $0x58] sm:$0xf]  ;;  %v1100_v27 = vrot.slane %v1098_v24, 5  ;;  %v10075_v61 = vrot.slane %v10059_v7, 9 }
 0x132   : > { %15924 = vst [vmem:[#allocation45_spill] sm:$0xff] %v12880_v43  ;;  %v1445_v37 = vrot.slane %v1443_v45, 4  ;;  %v10840_v28 = vld [vmem:[#allocation3 + $0x3c0] sm:$0xf] }
 0x133   : > { %v1096_v56 = vrot.slane %v1095_v38, 4 }
 0x134   : > { %v3790_v29 = vpop.f32.mrf.mxu3 }
 0x135   : > { %v12872_v59 = vadd.f32 %v3790_v29, %v12733_v62  ;;  %v1086_v29 = vrot.slane %v1085_v4, 4  ;;  %v1116_v4 = vshrl.u32 %v12886_v9, 16  ;;  %v1101_v7 = vsel %vm12210_vm5, %v1096_v56, %v1100_v27  ;;  %v11652_v27 = vld [vmem:[#allocation3 + $0x444] sm:$0xf0]  ;;  %v11523_v56 = vld [vmem:[#allocation3 + $0x44] sm:$0xf] }
 0x136   : > { %v3839_v15 = vpop.f32.mrf.mxu2  ;;  %v3664_v51 = vpop.f32.mrf.mxu0  ;;  %v2426_v16 = vunpack.c.l.b16 %v1101_v7 }
 0x137   : > { %v12878_v19 = vadd.f32 %v3839_v15, %v3751_v48  ;;  %v3753_v54 = vpop.f32.mrf.mxu1  ;;  %v1446_v48 = vrot.slane %v10043_v41, 5  ;;  %v1106_v15 = vshll.u32 %v10018_v32, 16  ;;  %v1091_v41 = vsel %vm12210_vm5, %v1086_v29, %v1090_v47  ;;  %v11539_v29 = vld [vmem:[#allocation3 + $0xc4] sm:$0xf] }
 0x138   : > { %v3754_v62 = vadd.f32 %v3753_v54, %v3664_v51  ;;  %v1112_v51 = vshll.u32 %v12886_v9, 16  ;;  %v10841_v54 = vor.u32 %v11636_v55, %v10840_v28  ;;  %v1444_v32 = vsel %vm12202_vm4, %v10075_v61, %v1443_v45  ;;  %v10394_v45 = vld [vmem:[#allocation3 + $0x48] sm:$0xf0] }
 0x139   : > { %3910 = vmatmul.bf16.gmra.mxu3 %v11487_v36  ;;  %3999 = vmatmul.bf16.gmra.mxu0 %v12875_v22  ;;  %v1447_v28 = vsel %vm12202_vm4, %v1445_v37, %v1446_v48  ;;  %v1118_v22 = vrot.slane %v1116_v4, 4  ;;  %v2489_v61 = vunpack.c.l.b16 %v1444_v32  ;;  %v10044_v37 = vld [vmem:[%s12182_s29 + $0x5c] sm:$0x1] }
 0x13a   : > { %4088 = vmatmul.bf16.gmra.mxu1 %v12880_v43  ;;  %4241 = vmatpush.bf16.msra.mxu3 %v10841_v54  ;;  %v1105_v43 = vrot.slane %v1103_v53, 4  ;;  %v2425_v54 = vunpack.c.l.b16 %v1091_v41  ;;  %v2490_v17 = vunpack.c.l.b16 %v1447_v28  ;;  %v10397_v53 = vor.u32 %v11523_v56, %v10394_v45 }
 0x13b   : > { %4177 = vmatmul.bf16.gmra.mxu2 %v11503_v20  ;;  %v1122_v28 = vshll.u32 %v10044_v37, 16  ;;  %v1453_v45 = vrot.slane %v10044_v37, 5 }
 0x13c   : > { %v3862_v36 = vpop.f32.mrf.mxu3  ;;  %4419 = vmatpush.bf16.msra.mxu1 %v10397_v53  ;;  %v12910_v7 = vpack.c.b16 %v2426_v16, %v2425_v54 }
 0x13d   : > { %v12893_v24 = vadd.f32 %v3862_v36, %v12751_v10  ;;  %v1108_v10 = vrot.slane %v1106_v15, 5  ;;  %v1114_v36 = vrot.slane %v1112_v51, 5  ;;  %v1124_v54 = vrot.slane %v1122_v28, 5 }
 0x13e   : > { %v3842_v44 = vpop.f32.mrf.mxu2  ;;  %v3666_v38 = vpop.f32.mrf.mxu0  ;;  %15925 = vst [vmem:[#allocation46_spill] sm:$0xff] %v12910_v7 }
 0x13f   : > { %v12897_v20 = vadd.f32 %v3842_v44, %v3754_v62  ;;  %v3755_v55 = vpop.f32.mrf.mxu1  ;;  %v10458_v44 = vld [vmem:[#allocation3 + $0xc8] sm:$0xf0]  ;;  %v10904_v62 = vld [vmem:[#allocation3 + $0x440] sm:$0xf]  ;;  %v1109_v51 = vor.u32 %v1108_v10, %v1105_v43  ;;  %v1119_v32 = vor.u32 %v1118_v22, %v1114_v36  ;;  %v10020_v22 = vld [vmem:[%s12182_s29 + $0x60] sm:$0xf] }
 0x140   : > { %v3756_v47 = vadd.f32 %v3755_v55, %v3666_v38  ;;  %v10461_v50 = vor.u32 %v11539_v29, %v10458_v44  ;;  %v10905_v48 = vor.u32 %v11652_v27, %v10904_v62  ;;  %v11488_v38 = vld [vmem:[%s12182_s29 + $0x48] sm:$0xff]  ;;  %v11504_v43 = vld [vmem:[%s12182_s29 + $0x54] sm:$0xff]  ;;  %v1450_v44 = vrot.slane %v12886_v9, 5 }
 0x141   : > { %v1110_v27 = vrot.slane %v1109_v51, 4  ;;  %v1120_v16 = vrot.slane %v1119_v32, 4  ;;  %v1130_v53 = vshll.u32 %v10020_v22, 16 }
 0x142   : > { %4508 = vmatpush.bf16.msra.mxu2 %v10461_v50  ;;  %4330 = vmatpush.bf16.msra.mxu0 %v10905_v48  ;;  %v12914_v50 = vpack.c.b16 %v2490_v17, %v2489_v61  ;;  %v1452_v56 = vrot.slane %v1450_v44, 4  ;;  %v1127_v48 = vshrl.u32 %v10020_v22, 16 }
 0x143   : > { %v1115_v9 = vsel %vm12210_vm5, %v1110_v27, %v1114_v36 }
 0x144   : > { %v3864_v15 = vpop.f32.mrf.mxu3  ;;  %15926 = vst [vmem:[#allocation47_spill] sm:$0xff] %v12914_v50 }
 0x145   : > { %v12907_v41 = vadd.f32 %v3864_v15, %v12767_v6  ;;  %v10060_v6 = vld [vmem:[%s12182_s29 + $0x54] sm:$0xe] }
 0x146   : > { %v3844_v4 = vpop.f32.mrf.mxu2  ;;  %v3669_v29 = vpop.f32.mrf.mxu0  ;;  %v10076_v17 = vrot.slane %v10060_v6, 9  ;;  %v1129_v6 = vrot.slane %v1127_v48, 4 }
 0x147   : > { %v12912_v55 = vadd.f32 %v3844_v4, %v3756_v47  ;;  %v3758_v10 = vpop.f32.mrf.mxu1  ;;  %v12923_v47 = vld [vmem:[%s12182_s29 + $0x64] sm:$0xf]  ;;  %v1125_v4 = vsel %vm12210_vm5, %v1120_v16, %v1124_v54  ;;  %v1132_v16 = vrot.slane %v1130_v53, 5 }
 0x148   : > { %v3759_v62 = vadd.f32 %v3758_v10, %v3669_v29  ;;  %v1140_v32 = vshrl.u32 %v12923_v47, 16  ;;  %v1451_v36 = vsel %vm12202_vm4, %v10076_v17, %v1450_v44  ;;  %v2428_v27 = vunpack.c.l.b16 %v1125_v4 }
 0x149   : > { %3915 = vmatmul.bf16.gmra.mxu3 %v11488_v38  ;;  %4004 = vmatmul.bf16.gmra.mxu0 %v12910_v7  ;;  %v1136_v38 = vshll.u32 %v12923_v47, 16  ;;  %v1133_v7 = vor.u32 %v1132_v16, %v1129_v6  ;;  %v1457_v48 = vrot.slane %v12923_v47, 5  ;;  %v10022_v47 = vld [vmem:[%s12182_s29 + $0x6c] sm:$0xf] }
 0x14a   : > { %4093 = vmatmul.bf16.gmra.mxu1 %v12914_v50  ;;  %v1142_v22 = vrot.slane %v1140_v32, 4 }
 0x14b   : > { %4182 = vmatmul.bf16.gmra.mxu2 %v11504_v43  ;;  %v2427_v43 = vunpack.c.l.b16 %v1115_v9  ;;  %v1138_v54 = vrot.slane %v1136_v38, 5  ;;  %v1459_v6 = vrot.slane %v1457_v48, 4 }
 0x14c   : > { %v3867_v61 = vpop.f32.mrf.mxu3 }
 0x14d   : > { %v12928_v51 = vadd.f32 %v3867_v61, %v12786_v33  ;;  %v1454_v33 = vsel %vm12202_vm4, %v1452_v56, %v1453_v45  ;;  %v2491_v61 = vunpack.c.l.b16 %v1451_v36  ;;  %v12941_v9 = vpack.c.b16 %v2428_v27, %v2427_v43  ;;  %v11489_v56 = vld [vmem:[%s12182_s29 + $0x54] sm:$0xff] }
 0x14e   : > { %v3847_v15 = vpop.f32.mrf.mxu2  ;;  %v3671_v37 = vpop.f32.mrf.mxu0  ;;  %v1143_v45 = vor.u32 %v1142_v22, %v1138_v54  ;;  %v11634_v22 = vld [vmem:[#allocation3 + $0x3b4] sm:$0xf0] }
 0x14f   : > { %15927 = vst [vmem:[#allocation48_spill] sm:$0xff] %v12928_v51  ;;  %v12934_v28 = vadd.f32 %v3847_v15, %v3759_v62  ;;  %v3760_v29 = vpop.f32.mrf.mxu1  ;;  %v2492_v62 = vunpack.c.l.b16 %v1454_v33  ;;  %v10045_v15 = vld [vmem:[%s12182_s29 + $0x68] sm:$0x1]  ;;  %v1134_v33 = vrot.slane %v1133_v7, 4 }
 0x150   : > { %v3761_v10 = vadd.f32 %v3760_v29, %v3671_v37  ;;  %15928 = vst [vmem:[#allocation49_spill] sm:$0xff] %v12941_v9  ;;  %v1146_v4 = vshll.u32 %v10045_v15, 16  ;;  %v10061_v37 = vld [vmem:[%s12182_s29 + $0x60] sm:$0xe]  ;;  %v1460_v16 = vrot.slane %v10045_v15, 5 }
 0x151   : > { %v12951_v32 = vpack.c.b16 %v2492_v62, %v2491_v61  ;;  %v11505_v29 = vld [vmem:[%s12182_s29 + $0x60] sm:$0xff]  ;;  %v10077_v27 = vrot.slane %v10061_v37, 9  ;;  %v12958_v61 = vld [vmem:[%s12182_s29 + $0x70] sm:$0xf]  ;;  %v1139_v7 = vsel %vm12210_vm5, %v1134_v33, %v1138_v54  ;;  %v1154_v54 = vshll.u32 %v10022_v47, 16 }
 0x152   : > { %v1461_v37 = vsel %vm12202_vm4, %v1459_v6, %v1460_v16  ;;  %v1160_v33 = vshll.u32 %v12958_v61, 16 }
 0x153   : > { %15930 = vst [vmem:[#allocation51_spill] sm:$0xff] %v12951_v32  ;;  %v1156_v6 = vrot.slane %v1154_v54, 5 }
 0x154   : > { %v3869_v50 = vpop.f32.mrf.mxu3  ;;  %v1162_v16 = vrot.slane %v1160_v33, 5 }
 0x155   : > { %v12944_v17 = vadd.f32 %v3869_v50, %v12802_v13  ;;  %v1144_v13 = vrot.slane %v1143_v45, 4  ;;  %v1148_v50 = vrot.slane %v1146_v4, 5 }
 0x156   : > { %v3849_v44 = vpop.f32.mrf.mxu2  ;;  %v3674_v38 = vpop.f32.mrf.mxu0 }
 0x157   : > { %15929 = vst [vmem:[#allocation50_spill] sm:$0xff] %v12944_v17  ;;  %v12949_v53 = vadd.f32 %v3849_v44, %v3761_v10  ;;  %v3763_v43 = vpop.f32.mrf.mxu1  ;;  %v10832_v10 = vld [vmem:[#allocation3 + $0x3b0] sm:$0xf]  ;;  %v1149_v15 = vsel %vm12210_vm5, %v1144_v13, %v1148_v50  ;;  %v10046_v13 = vld [vmem:[%s12182_s29 + $0x74] sm:$0x1] }
 0x158   : > { %v3764_v36 = vadd.f32 %v3763_v43, %v3674_v38  ;;  %v10833_v62 = vor.u32 %v11634_v22, %v10832_v10  ;;  %v1151_v38 = vshrl.u32 %v10022_v47, 16  ;;  %v2494_v22 = vunpack.c.l.b16 %v1461_v37  ;;  %v10896_v47 = vld [vmem:[#allocation3 + $0x430] sm:$0xf] }
 0x159   : > { %3920 = vmatmul.bf16.gmra.mxu3 %v11489_v56  ;;  %4009 = vmatmul.bf16.gmra.mxu0 %v12941_v9  ;;  %v1458_v56 = vsel %vm12202_vm4, %v10077_v27, %v1457_v48  ;;  %v1164_v48 = vshrl.u32 %v12958_v61, 16  ;;  %v10897_v54 = vor.u32 %v11650_v57, %v10896_v47  ;;  %v10024_v57 = vld [vmem:[%s12182_s29 + $0x78] sm:$0xf]  ;;  %v1467_v47 = vrot.slane %v10046_v13, 5 }
 0x15a   : > { %4098 = vmatmul.bf16.gmra.mxu1 %v12951_v32  ;;  %4242 = vmatpush.bf16.msra.mxu3 %v10833_v62  ;;  %v2493_v10 = vunpack.c.l.b16 %v1458_v56  ;;  %v2430_v32 = vunpack.c.l.b16 %v1149_v15  ;;  %v1153_v50 = vrot.slane %v1151_v38, 4  ;;  %v10386_v56 = vld [vmem:[#allocation3 + $0x38] sm:$0xf0]  ;;  %v11490_v15 = vld [vmem:[%s12182_s29 + $0x60] sm:$0xff] }
 0x15b   : > { %4187 = vmatmul.bf16.gmra.mxu2 %v11505_v29  ;;  %v1166_v62 = vrot.slane %v1164_v48, 4  ;;  %4331 = vmatpush.bf16.msra.mxu0 %v10897_v54 }
 0x15c   : > { %v3872_v44 = vpop.f32.mrf.mxu3  ;;  %v12976_v42 = vpack.c.b16 %v2494_v22, %v2493_v10  ;;  %v11506_v10 = vld [vmem:[%s12182_s29 + $0x6c] sm:$0xff]  ;;  %v1157_v22 = vor.u32 %v1156_v6, %v1153_v50  ;;  %v12993_v6 = vld [vmem:[%s12182_s29 + $0x7c] sm:$0xf] }
 0x15d   : > { %v12965_v4 = vadd.f32 %v3872_v44, %v12821_v39  ;;  %v2429_v44 = vunpack.c.l.b16 %v1139_v7  ;;  %v1188_v54 = vshrl.u32 %v12993_v6, 16 }
 0x15e   : > { %v3852_v45 = vpop.f32.mrf.mxu2  ;;  %v3676_v43 = vpop.f32.mrf.mxu0  ;;  %15932 = vst [vmem:[#allocation53_spill] sm:$0xff] %v12976_v42 }
 0x15f   : > { %15931 = vst [vmem:[#allocation52_spill] sm:$0xff] %v12965_v4  ;;  %v12971_v29 = vadd.f32 %v3852_v45, %v3764_v36  ;;  %v3765_v27 = vpop.f32.mrf.mxu1  ;;  %v11537_v36 = vld [vmem:[#allocation3 + $0xb4] sm:$0xf]  ;;  %v10450_v45 = vld [vmem:[#allocation3 + $0xb8] sm:$0xf0]  ;;  %v12982_v38 = vpack.c.b16 %v2430_v32, %v2429_v44 }
 0x160   : > { %v3766_v39 = vadd.f32 %v3765_v27, %v3676_v43  ;;  %v10453_v4 = vor.u32 %v11537_v36, %v10450_v45  ;;  %v11521_v43 = vld [vmem:[#allocation3 + $0x34] sm:$0xf]  ;;  %v1167_v36 = vor.u32 %v1166_v62, %v1162_v16  ;;  %v1170_v45 = vshll.u32 %v10046_v13, 16 }
 0x161   : > { %15934 = vst [vmem:[#allocation55_spill] sm:$0xff] %v12982_v38  ;;  %v10389_v33 = vor.u32 %v11521_v43, %v10386_v56  ;;  %v10062_v32 = vld [vmem:[%s12182_s29 + $0x6c] sm:$0xe]  ;;  %v1175_v43 = vshrl.u32 %v10024_v57, 16  ;;  %v1178_v56 = vshll.u32 %v10024_v57, 16 }
 0x162   : > { %4509 = vmatpush.bf16.msra.mxu2 %v10453_v4  ;;  %v1168_v44 = vrot.slane %v1167_v36, 4  ;;  %v1172_v50 = vrot.slane %v1170_v45, 5  ;;  %v10078_v4 = vrot.slane %v10062_v32, 9 }
 0x163   : > { %4420 = vmatpush.bf16.msra.mxu1 %v10389_v33  ;;  %v1177_v32 = vrot.slane %v1175_v43, 4 }
 0x164   : > { %v3874_v9 = vpop.f32.mrf.mxu3  ;;  %v1173_v13 = vsel %vm12210_vm5, %v1168_v44, %v1172_v50  ;;  %v10047_v44 = vld [vmem:[%s12182_s29 + $0x80] sm:$0x1] }
 0x165   : > { %v12979_v7 = vadd.f32 %v3874_v9, %v12837_v2  ;;  %v1464_v2 = vrot.slane %v12958_v61, 5  ;;  %v1194_v43 = vshll.u32 %v10047_v44, 16 }
 0x166   : > { %v3854_v37 = vpop.f32.mrf.mxu2  ;;  %v3679_v27 = vpop.f32.mrf.mxu0 }
 0x167   : > { %15933 = vst [vmem:[#allocation54_spill] sm:$0xff] %v12979_v7  ;;  %v12984_v48 = vadd.f32 %v3854_v37, %v3766_v39  ;;  %v3768_v17 = vpop.f32.mrf.mxu1  ;;  %v1158_v39 = vrot.slane %v1157_v22, 4  ;;  %v1466_v62 = vrot.slane %v1464_v2, 4  ;;  %v1465_v36 = vsel %vm12202_vm4, %v10078_v4, %v1464_v2  ;;  %v11491_v4 = vld [vmem:[%s12182_s29 + $0x6c] sm:$0xff] }
 0x168   : > { %v3769_v9 = vadd.f32 %v3768_v17, %v3679_v27 }
 0x169   : > { %3925 = vmatmul.bf16.gmra.mxu3 %v11490_v15  ;;  %4014 = vmatmul.bf16.gmra.mxu0 %v12982_v38  ;;  %v1184_v15 = vshll.u32 %v12993_v6, 16 }
 0x16a   : > { %4103 = vmatmul.bf16.gmra.mxu1 %v12976_v42  ;;  %v1190_v42 = vrot.slane %v1188_v54, 4 }
 0x16b   : > { %4192 = vmatmul.bf16.gmra.mxu2 %v11506_v10  ;;  %v1163_v10 = vsel %vm12210_vm5, %v1158_v39, %v1162_v16  ;;  %v2495_v16 = vunpack.c.l.b16 %v1465_v36 }
 0x16c   : > { %v3877_v61 = vpop.f32.mrf.mxu3  ;;  %v2431_v57 = vunpack.c.l.b16 %v1163_v10  ;;  %v1471_v10 = vrot.slane %v12993_v6, 5 }
 0x16d   : > { %v12996_v37 = vadd.f32 %v3877_v61, %v12856_v46  ;;  %v1468_v46 = vsel %vm12202_vm4, %v1466_v62, %v1467_v47  ;;  %v2432_v61 = vunpack.c.l.b16 %v1173_v13 }
 0x16e   : > { %v3857_v17 = vpop.f32.mrf.mxu2  ;;  %v3681_v27 = vpop.f32.mrf.mxu0  ;;  %v2496_v39 = vunpack.c.l.b16 %v1468_v46  ;;  %v1196_v46 = vrot.slane %v1194_v43, 5 }
 0x16f   : > { %15935 = vst [vmem:[#allocation56_spill] sm:$0xff] %v12996_v37  ;;  %v13000_v33 = vadd.f32 %v3857_v17, %v3769_v9  ;;  %v3770_v22 = vpop.f32.mrf.mxu1  ;;  %v1180_v9 = vrot.slane %v1178_v56, 5  ;;  %v1186_v17 = vrot.slane %v1184_v15, 5  ;;  %v13015_v62 = vpack.c.b16 %v2432_v61, %v2431_v57  ;;  %v10824_v57 = vld [vmem:[#allocation3 + $0x3a0] sm:$0xf] }
 0x170   : > { %v3771_v45 = vadd.f32 %v3770_v22, %v3681_v27  ;;  %v13019_v54 = vpack.c.b16 %v2496_v39, %v2495_v16  ;;  %v11507_v27 = vld [vmem:[%s12182_s29 + $0x78] sm:$0xff]  ;;  %v11632_v61 = vld [vmem:[#allocation3 + $0x3a4] sm:$0xf0] }
 0x171   : > { %v1181_v38 = vor.u32 %v1180_v9, %v1177_v32  ;;  %15937 = vst [vmem:[#allocation58_spill] sm:$0xff] %v13015_v62  ;;  %v1191_v47 = vor.u32 %v1190_v42, %v1186_v17  ;;  %v10063_v22 = vld [vmem:[%s12182_s29 + $0x78] sm:$0xe]  ;;  %v10026_v32 = vld [vmem:[%s12182_s29 + $0x84] sm:$0xf]  ;;  %v10825_v16 = vor.u32 %v11632_v61, %v10824_v57 }
 0x172   : > { %15938 = vst [vmem:[#allocation59_spill] sm:$0xff] %v13019_v54  ;;  %v10079_v42 = vrot.slane %v10063_v22, 9  ;;  %v13028_v9 = vld [vmem:[%s12182_s29 + $0x88] sm:$0xf]  ;;  %v1202_v43 = vshll.u32 %v10026_v32, 16 }
 0x173   : > { %v1182_v36 = vrot.slane %v1181_v38, 4  ;;  %v1212_v22 = vshrl.u32 %v13028_v9, 16  ;;  %4243 = vmatpush.bf16.msra.mxu3 %v10825_v16 }
 0x174   : > { %v3879_v50 = vpop.f32.mrf.mxu3 }
 0x175   : > { %v13012_v2 = vadd.f32 %v3879_v50, %v12872_v59  ;;  %v1192_v59 = vrot.slane %v1191_v47, 4  ;;  %v1187_v38 = vsel %vm12210_vm5, %v1182_v36, %v1186_v17  ;;  %v1199_v47 = vshrl.u32 %v10026_v32, 16 }
 0x176   : > { %v3859_v37 = vpop.f32.mrf.mxu2  ;;  %v3980_v15 = vpop.f32.mrf.mxu0  ;;  %v1472_v17 = vsel %vm12202_vm4, %v10079_v42, %v1471_v10  ;;  %v2433_v36 = vunpack.c.l.b16 %v1187_v38  ;;  %v1204_v32 = vrot.slane %v1202_v43, 5  ;;  %v1214_v51 = vrot.slane %v1212_v22, 4 }
 0x177   : > { %15936 = vst [vmem:[#allocation57_spill] sm:$0xff] %v13012_v2  ;;  %v13017_v56 = vadd.f32 %v3859_v37, %v3771_v45  ;;  %v4069_v13 = vpop.f32.mrf.mxu1  ;;  %v1473_v37 = vrot.slane %v1471_v10, 4  ;;  %v1474_v45 = vrot.slane %v10047_v44, 5  ;;  %v2497_v61 = vunpack.c.l.b16 %v1472_v17  ;;  %v10048_v2 = vld [vmem:[%s12182_s29 + $0x8c] sm:$0x1] }
 0x178   : > { %v10888_v10 = vld [vmem:[#allocation3 + $0x420] sm:$0xf] }
 0x179   : > { %3930 = vmatmul.bf16.gmra.mxu3 %v11491_v4  ;;  %4019 = vmatmul.bf16.gmra.mxu0 %v13015_v62  ;;  %v1197_v4 = vsel %vm12210_vm5, %v1192_v59, %v1196_v46  ;;  %v1201_v46 = vrot.slane %v1199_v47, 4  ;;  %v11492_v47 = vld [vmem:[%s12182_s29 + $0x78] sm:$0xff] }
 0x17a   : > { %4108 = vmatmul.bf16.gmra.mxu1 %v13019_v54  ;;  %v2434_v57 = vunpack.c.l.b16 %v1197_v4 }
 0x17b   : > { %4197 = vmatmul.bf16.gmra.mxu2 %v11507_v27  ;;  %v1208_v27 = vshll.u32 %v13028_v9, 16  ;;  %v1205_v43 = vor.u32 %v1204_v32, %v1201_v46  ;;  %v10028_v32 = vld [vmem:[%s12182_s29 + $0x90] sm:$0xf] }
 0x17c   : > { %v3891_v6 = vpop.f32.mrf.mxu3  ;;  %v13044_v34 = vpack.c.b16 %v2434_v57, %v2433_v36  ;;  %v1218_v36 = vshll.u32 %v10048_v2, 16 }
 0x17d   : > { %v3892_v39 = vadd.f32 %v3891_v6, %v12599_v35  ;;  %v1475_v35 = vsel %vm12202_vm4, %v1473_v37, %v1474_v45  ;;  %v1210_v7 = vrot.slane %v1208_v27, 5  ;;  %v11648_v45 = vld [vmem:[#allocation3 + $0x424] sm:$0xf0]  ;;  %v1206_v46 = vrot.slane %v1205_v43, 4 }
 0x17e   : > { %v4158_v50 = vpop.f32.mrf.mxu2  ;;  %v3982_v44 = vpop.f32.mrf.mxu0  ;;  %v2498_v6 = vunpack.c.l.b16 %v1475_v35  ;;  %15939 = vst [vmem:[#allocation60_spill] sm:$0xff] %v13044_v34  ;;  %v10889_v27 = vor.u32 %v11648_v45, %v10888_v10  ;;  %v11508_v35 = vld [vmem:[%s12182_s29 + $0x84] sm:$0xff] }
 0x17f   : > { %v3981_v54 = vadd.f32 %v3980_v15, %v3892_v39  ;;  %v4071_v62 = vpop.f32.mrf.mxu1  ;;  %v11535_v15 = vld [vmem:[#allocation3 + $0xa4] sm:$0xf]  ;;  %v10442_v39 = vld [vmem:[#allocation3 + $0xa8] sm:$0xf0] }
 0x180   : > { %v10445_v37 = vor.u32 %v11535_v15, %v10442_v39  ;;  %v13048_v17 = vpack.c.b16 %v2498_v6, %v2497_v61  ;;  %v1478_v39 = vrot.slane %v13028_v9, 5  ;;  %4332 = vmatpush.bf16.msra.mxu0 %v10889_v27  ;;  %v1220_v61 = vrot.slane %v1218_v36, 5  ;;  %v13057_v6 = vld [vmem:[%s12182_s29 + $0x94] sm:$0xf] }
 0x181   : > { %v4070_v59 = vadd.f32 %v4069_v13, %v3981_v54  ;;  %v11519_v54 = vld [vmem:[#allocation3 + $0x24] sm:$0xf]  ;;  %v10378_v13 = vld [vmem:[#allocation3 + $0x28] sm:$0xf0]  ;;  %v1232_v43 = vshll.u32 %v13057_v6, 16  ;;  %v1236_v27 = vshrl.u32 %v13057_v6, 16 }
 0x182   : > { %15940 = vst [vmem:[#allocation61_spill] sm:$0xff] %v13048_v17  ;;  %4510 = vmatpush.bf16.msra.mxu2 %v10445_v37  ;;  %v1480_v9 = vrot.slane %v1478_v39, 4  ;;  %v1481_v37 = vrot.slane %v10048_v2, 5 }
 0x183   : > { %v13042_v16 = vadd.f32 %v4158_v50, %v4070_v59  ;;  %v10381_v50 = vor.u32 %v11519_v54, %v10378_v13  ;;  %v1215_v59 = vor.u32 %v1214_v51, %v1210_v7  ;;  %v1223_v54 = vshrl.u32 %v10028_v32, 16 }
 0x184   : > { %v3893_v42 = vpop.f32.mrf.mxu3 }
 0x185   : > { %v3894_v38 = vadd.f32 %v3893_v42, %v12623_v8  ;;  %4421 = vmatpush.bf16.msra.mxu1 %v10381_v50  ;;  %v10064_v8 = vld [vmem:[%s12182_s29 + $0x84] sm:$0xe]  ;;  %v1216_v51 = vrot.slane %v1215_v59, 4 }
 0x186   : > { %v4160_v4 = vpop.f32.mrf.mxu2  ;;  %v3985_v22 = vpop.f32.mrf.mxu0  ;;  %v10080_v10 = vrot.slane %v10064_v8, 9 }
 0x187   : > { %v3983_v57 = vadd.f32 %v3982_v44, %v3894_v38  ;;  %v4074_v15 = vpop.f32.mrf.mxu1 }
 0x188   : > { %v1479_v59 = vsel %vm12202_vm4, %v10080_v10, %v1478_v39 }
 0x189   : > { %v4072_v42 = vadd.f32 %v4071_v62, %v3983_v57  ;;  %3935 = vmatmul.bf16.gmra.mxu3 %v11492_v47  ;;  %4024 = vmatmul.bf16.gmra.mxu0 %v13044_v34  ;;  %v1226_v62 = vshll.u32 %v10028_v32, 16  ;;  %v1211_v47 = vsel %vm12210_vm5, %v1206_v46, %v1210_v7  ;;  %v1225_v7 = vrot.slane %v1223_v54, 4 }
 0x18a   : > { %4113 = vmatmul.bf16.gmra.mxu1 %v13048_v17  ;;  %v2435_v36 = vunpack.c.l.b16 %v1211_v47  ;;  %v1234_v46 = vrot.slane %v1232_v43, 5  ;;  %v1238_v32 = vrot.slane %v1236_v27, 4  ;;  %v11509_v43 = vld [vmem:[%s12182_s29 + $0x90] sm:$0xff]  ;;  %v1485_v27 = vrot.slane %v13057_v6, 5  ;;  %v13090_v6 = vld [vmem:[%s12182_s29 + $0xa0] sm:$0xf] }
 0x18b   : > { %4202 = vmatmul.bf16.gmra.mxu2 %v11508_v35  ;;  %v13059_v44 = vadd.f32 %v4160_v4, %v4072_v42  ;;  %v1221_v4 = vsel %vm12210_vm5, %v1216_v51, %v1220_v61  ;;  %v1228_v57 = vrot.slane %v1226_v62, 5  ;;  %v10049_v51 = vld [vmem:[%s12182_s29 + $0x98] sm:$0x1] }
 0x18c   : > { %v3896_v45 = vpop.f32.mrf.mxu3  ;;  %v2436_v42 = vunpack.c.l.b16 %v1221_v4  ;;  %v1239_v54 = vor.u32 %v1238_v32, %v1234_v46  ;;  %v11630_v32 = vld [vmem:[#allocation3 + $0x394] sm:$0xf0] }
 0x18d   : > { %v3897_v13 = vadd.f32 %v3896_v45, %v12645_v3  ;;  %v1482_v3 = vsel %vm12202_vm4, %v1480_v9, %v1481_v37  ;;  %v2499_v45 = vunpack.c.l.b16 %v1479_v59  ;;  %v1229_v39 = vor.u32 %v1228_v57, %v1225_v7  ;;  %v11493_v37 = vld [vmem:[%s12182_s29 + $0x84] sm:$0xff] }
 0x18e   : > { %v4163_v38 = vpop.f32.mrf.mxu2  ;;  %v3987_v50 = vpop.f32.mrf.mxu0  ;;  %v2500_v17 = vunpack.c.l.b16 %v1482_v3  ;;  %v1487_v7 = vrot.slane %v1485_v27, 4  ;;  %v1488_v57 = vrot.slane %v10049_v51, 5 }
 0x18f   : > { %v3986_v35 = vadd.f32 %v3985_v22, %v3897_v13  ;;  %v4076_v2 = vpop.f32.mrf.mxu1  ;;  %v13077_v13 = vpack.c.b16 %v2436_v42, %v2435_v36  ;;  %v1230_v59 = vrot.slane %v1229_v39, 4 }
 0x190   : > { %v13079_v47 = vpack.c.b16 %v2500_v17, %v2499_v45 }
 0x191   : > { %v4075_v8 = vadd.f32 %v4074_v15, %v3986_v35  ;;  %15941 = vst [vmem:[#allocation62_spill] sm:$0xff] %v13077_v13  ;;  %v1242_v15 = vshll.u32 %v10049_v51, 16  ;;  %v10065_v35 = vld [vmem:[%s12182_s29 + $0x90] sm:$0xe] }
 0x192   : > { %15942 = vst [vmem:[#allocation63_spill] sm:$0xff] %v13079_v47  ;;  %v10081_v17 = vrot.slane %v10065_v35, 9 }
 0x193   : > { %v13073_v22 = vadd.f32 %v4163_v38, %v4075_v8  ;;  %v1244_v36 = vrot.slane %v1242_v15, 5  ;;  %v10030_v8 = vld [vmem:[%s12182_s29 + $0x9c] sm:$0xf]  ;;  %v1256_v15 = vshll.u32 %v13090_v6, 16 }
 0x194   : > { %v3898_v61 = vpop.f32.mrf.mxu3  ;;  %v1250_v51 = vshll.u32 %v10030_v8, 16 }
 0x195   : > { %v3899_v10 = vadd.f32 %v3898_v61, %v12665_v52  ;;  %v1240_v52 = vrot.slane %v1239_v54, 4  ;;  %v1247_v54 = vshrl.u32 %v10030_v8, 16 }
 0x196   : > { %v4165_v9 = vpop.f32.mrf.mxu2  ;;  %v3990_v62 = vpop.f32.mrf.mxu0  ;;  %v1252_v8 = vrot.slane %v1250_v51, 5  ;;  %v11494_v51 = vld [vmem:[%s12182_s29 + $0x90] sm:$0xff] }
 0x197   : > { %v3988_v4 = vadd.f32 %v3987_v50, %v3899_v10  ;;  %v4079_v38 = vpop.f32.mrf.mxu1  ;;  %v10816_v50 = vld [vmem:[#allocation3 + $0x390] sm:$0xf] }
 0x198   : > { %v10817_v61 = vor.u32 %v11630_v32, %v10816_v50 }
 0x199   : > { %v4077_v3 = vadd.f32 %v4076_v2, %v3988_v4  ;;  %3940 = vmatmul.bf16.gmra.mxu3 %v11493_v37  ;;  %4029 = vmatmul.bf16.gmra.mxu0 %v13077_v13  ;;  %v1235_v2 = vsel %vm12210_vm5, %v1230_v59, %v1234_v46  ;;  %v1245_v37 = vsel %vm12210_vm5, %v1240_v52, %v1244_v36  ;;  %v1249_v36 = vrot.slane %v1247_v54, 4 }
 0x19a   : > { %4118 = vmatmul.bf16.gmra.mxu1 %v13079_v47  ;;  %4244 = vmatpush.bf16.msra.mxu3 %v10817_v61  ;;  %v1486_v46 = vsel %vm12202_vm4, %v10081_v17, %v1485_v27  ;;  %v2437_v59 = vunpack.c.l.b16 %v1235_v2  ;;  %v1258_v47 = vrot.slane %v1256_v15, 5  ;;  %v10880_v27 = vld [vmem:[#allocation3 + $0x410] sm:$0xf]  ;;  %v10370_v2 = vld [vmem:[#allocation3 + $0x18] sm:$0xf0] }
 0x19b   : > { %4207 = vmatmul.bf16.gmra.mxu2 %v11509_v43  ;;  %v13087_v42 = vadd.f32 %v4165_v9, %v4077_v3  ;;  %v1260_v43 = vshrl.u32 %v13090_v6, 16  ;;  %v2438_v3 = vunpack.c.l.b16 %v1245_v37  ;;  %v2501_v50 = vunpack.c.l.b16 %v1486_v46 }
 0x19c   : > { %v3901_v45 = vpop.f32.mrf.mxu3  ;;  %v1253_v15 = vor.u32 %v1252_v8, %v1249_v36 }
 0x19d   : > { %v3902_v39 = vadd.f32 %v3901_v45, %v12695_v21  ;;  %v1489_v21 = vsel %vm12202_vm4, %v1487_v7, %v1488_v57  ;;  %v10050_v45 = vld [vmem:[%s12182_s29 + $0xa4] sm:$0x1]  ;;  %v1262_v13 = vrot.slane %v1260_v43, 4  ;;  %v13106_v34 = vpack.c.b16 %v2438_v3, %v2437_v59  ;;  %v11646_v57 = vld [vmem:[#allocation3 + $0x414] sm:$0xf0] }
 0x19e   : > { %v4168_v10 = vpop.f32.mrf.mxu2  ;;  %v3992_v9 = vpop.f32.mrf.mxu0  ;;  %v2502_v32 = vunpack.c.l.b16 %v1489_v21  ;;  %v10881_v43 = vor.u32 %v11646_v57, %v10880_v27  ;;  %v11510_v21 = vld [vmem:[%s12182_s29 + $0x9c] sm:$0xff]  ;;  %v1254_v36 = vrot.slane %v1253_v15, 4 }
 0x19f   : > { %v3991_v4 = vadd.f32 %v3990_v62, %v3902_v39  ;;  %v4081_v35 = vpop.f32.mrf.mxu1  ;;  %v11533_v62 = vld [vmem:[#allocation3 + $0x94] sm:$0xf]  ;;  %v10434_v39 = vld [vmem:[#allocation3 + $0x98] sm:$0xf0]  ;;  %15944 = vst [vmem:[#allocation65_spill] sm:$0xff] %v13106_v34 }
 0x1a0   : > { %v10437_v7 = vor.u32 %v11533_v62, %v10434_v39  ;;  %v13110_v46 = vpack.c.b16 %v2502_v32, %v2501_v50  ;;  %v1492_v62 = vrot.slane %v13090_v6, 5  ;;  %4333 = vmatpush.bf16.msra.mxu0 %v10881_v43  ;;  %v10032_v50 = vld [vmem:[%s12182_s29 + $0xa8] sm:$0xf]  ;;  %v1495_v6 = vrot.slane %v10050_v45, 5 }
 0x1a1   : > { %v4080_v52 = vadd.f32 %v4079_v38, %v3991_v4  ;;  %v11517_v38 = vld [vmem:[#allocation3 + $0x14] sm:$0xf] }
 0x1a2   : > { %15945 = vst [vmem:[#allocation66_spill] sm:$0xff] %v13110_v46  ;;  %4511 = vmatpush.bf16.msra.mxu2 %v10437_v7  ;;  %v1494_v27 = vrot.slane %v1492_v62, 4 }
 0x1a3   : > { %v13104_v61 = vadd.f32 %v4168_v10, %v4080_v52  ;;  %v10373_v10 = vor.u32 %v11517_v38, %v10370_v2  ;;  %v1263_v52 = vor.u32 %v1262_v13, %v1258_v47  ;;  %v1259_v38 = vsel %vm12210_vm5, %v1254_v36, %v1258_v47 }
 0x1a4   : > { %v3903_v17 = vpop.f32.mrf.mxu3  ;;  %v1271_v2 = vshrl.u32 %v10032_v50, 16  ;;  %v1496_v47 = vsel %vm12202_vm4, %v1494_v27, %v1495_v6  ;;  %v11495_v27 = vld [vmem:[%s12182_s29 + $0x9c] sm:$0xff] }
 0x1a5   : > { %15943 = vst [vmem:[#allocation64_spill] sm:$0xff] %v13104_v61  ;;  %v3904_v37 = vadd.f32 %v3903_v17, %v12709_v40  ;;  %v1266_v61 = vshll.u32 %v10050_v45, 16  ;;  %4422 = vmatpush.bf16.msra.mxu1 %v10373_v10  ;;  %v10066_v40 = vld [vmem:[%s12182_s29 + $0x9c] sm:$0xe]  ;;  %v1264_v13 = vrot.slane %v1263_v52, 4  ;;  %v2439_v10 = vunpack.c.l.b16 %v1259_v38 }
 0x1a6   : > { %v4170_v54 = vpop.f32.mrf.mxu2  ;;  %v3995_v4 = vpop.f32.mrf.mxu0  ;;  %v13121_v17 = vld [vmem:[%s12182_s29 + $0xac] sm:$0xf]  ;;  %v2504_v36 = vunpack.c.l.b16 %v1496_v47 }
 0x1a7   : > { %v3993_v59 = vadd.f32 %v3992_v9, %v3904_v37  ;;  %v4084_v3 = vpop.f32.mrf.mxu1  ;;  %v1268_v8 = vrot.slane %v1266_v61, 5  ;;  %v10082_v9 = vrot.slane %v10066_v40, 9  ;;  %v1274_v37 = vshll.u32 %v10032_v50, 16 }
 0x1a8   : > { %v1284_v45 = vshrl.u32 %v13121_v17, 16 }
 0x1a9   : > { %v4082_v39 = vadd.f32 %v4081_v35, %v3993_v59  ;;  %3945 = vmatmul.bf16.gmra.mxu3 %v11494_v51  ;;  %4034 = vmatmul.bf16.gmra.mxu0 %v13106_v34  ;;  %v1269_v61 = vsel %vm12210_vm5, %v1264_v13, %v1268_v8  ;;  %v1273_v59 = vrot.slane %v1271_v2, 4  ;;  %v1276_v40 = vrot.slane %v1274_v37, 5  ;;  %v11511_v2 = vld [vmem:[%s12182_s29 + $0xa8] sm:$0xff] }
 0x1aa   : > { %4123 = vmatmul.bf16.gmra.mxu1 %v13110_v46  ;;  %v2440_v52 = vunpack.c.l.b16 %v1269_v61  ;;  %v1286_v8 = vrot.slane %v1284_v45, 4 }
 0x1ab   : > { %4212 = vmatmul.bf16.gmra.mxu2 %v11510_v21  ;;  %v13118_v32 = vadd.f32 %v4170_v54, %v4082_v39  ;;  %v1280_v54 = vshll.u32 %v13121_v17, 16 }
 0x1ac   : > { %v3906_v7 = vpop.f32.mrf.mxu3  ;;  %v13139_v6 = vpack.c.b16 %v2440_v52, %v2439_v10  ;;  %v13149_v10 = vld [vmem:[%s12182_s29 + $0xb8] sm:$0xf] }
 0x1ad   : > { %v3907_v35 = vadd.f32 %v3906_v7, %v12724_v30  ;;  %v1493_v30 = vsel %vm12202_vm4, %v10082_v9, %v1492_v62  ;;  %v1282_v13 = vrot.slane %v1280_v54, 5 }
 0x1ae   : > { %v4173_v57 = vpop.f32.mrf.mxu2  ;;  %v3997_v51 = vpop.f32.mrf.mxu0  ;;  %v2503_v39 = vunpack.c.l.b16 %v1493_v30  ;;  %15946 = vst [vmem:[#allocation67_spill] sm:$0xff] %v13139_v6  ;;  %v10034_v30 = vld [vmem:[%s12182_s29 + $0xb4] sm:$0xf] }
 0x1af   : > { %v3996_v15 = vadd.f32 %v3995_v4, %v3907_v35  ;;  %v4086_v43 = vpop.f32.mrf.mxu1  ;;  %v10051_v4 = vld [vmem:[%s12182_s29 + $0xb0] sm:$0x1]  ;;  %v1287_v37 = vor.u32 %v1286_v8, %v1282_v13  ;;  %v11628_v8 = vld [vmem:[#allocation3 + $0x384] sm:$0xf0] }
 0x1b0   : > { %v13141_v38 = vpack.c.b16 %v2504_v36, %v2503_v39  ;;  %v1290_v61 = vshll.u32 %v10051_v4, 16  ;;  %v10808_v36 = vld [vmem:[#allocation3 + $0x380] sm:$0xf] }
 0x1b1   : > { %v4085_v21 = vadd.f32 %v4084_v3, %v3996_v15  ;;  %v1277_v3 = vor.u32 %v1276_v40, %v1273_v59  ;;  %v10067_v15 = vld [vmem:[%s12182_s29 + $0xa8] sm:$0xe] }
 0x1b2   : > { %15947 = vst [vmem:[#allocation68_spill] sm:$0xff] %v13141_v38  ;;  %v1292_v52 = vrot.slane %v1290_v61, 5  ;;  %v10083_v59 = vrot.slane %v10067_v15, 9 }
 0x1b3   : > { %v13134_v50 = vadd.f32 %v4173_v57, %v4085_v21  ;;  %v1499_v57 = vrot.slane %v13121_v17, 5  ;;  %v1288_v21 = vrot.slane %v1287_v37, 4  ;;  %v1502_v17 = vrot.slane %v10051_v4, 5 }
 0x1b4   : > { %v3908_v62 = vpop.f32.mrf.mxu3 }
 0x1b5   : > { %v3909_v9 = vadd.f32 %v3908_v62, %v12738_v31  ;;  %v1278_v31 = vrot.slane %v1277_v3, 4  ;;  %v1501_v40 = vrot.slane %v1499_v57, 4  ;;  %v1298_v62 = vshll.u32 %v10034_v30, 16 }
 0x1b6   : > { %v4175_v7 = vpop.f32.mrf.mxu2  ;;  %v4000_v35 = vpop.f32.mrf.mxu0  ;;  %v10809_v3 = vor.u32 %v11628_v8, %v10808_v36  ;;  %v1293_v4 = vsel %vm12210_vm5, %v1288_v21, %v1292_v52  ;;  %v13166_v36 = vld [vmem:[%s12182_s29 + $0xbc] sm:$0x1] }
 0x1b7   : > { %v3998_v54 = vadd.f32 %v3997_v51, %v3909_v9  ;;  %v4089_v45 = vpop.f32.mrf.mxu1  ;;  %v1295_v51 = vshrl.u32 %v10034_v30, 16  ;;  %v1304_v9 = vshll.u32 %v13149_v10, 16  ;;  %v1500_v30 = vsel %vm12202_vm4, %v10083_v59, %v1499_v57  ;;  %v11531_v57 = vld [vmem:[#allocation3 + $0x84] sm:$0xf]  ;;  %v10426_v59 = vld [vmem:[#allocation3 + $0x88] sm:$0xf0] }
 0x1b8   : > { %4245 = vmatpush.bf16.msra.mxu3 %v10809_v3  ;;  %v1300_v8 = vrot.slane %v1298_v62, 5  ;;  %v2505_v21 = vunpack.c.l.b16 %v1500_v30  ;;  %v1314_v52 = vshll.u32 %v13166_v36, 16 }
 0x1b9   : > { %v4087_v47 = vadd.f32 %v4086_v43, %v3998_v54  ;;  %3950 = vmatmul.bf16.gmra.mxu3 %v11495_v27  ;;  %4039 = vmatmul.bf16.gmra.mxu0 %v13139_v6  ;;  %v1308_v27 = vshrl.u32 %v13149_v10, 16  ;;  %v2442_v6 = vunpack.c.l.b16 %v1293_v4 }
 0x1ba   : > { %4128 = vmatmul.bf16.gmra.mxu1 %v13141_v38 }
 0x1bb   : > { %4217 = vmatmul.bf16.gmra.mxu2 %v11511_v2  ;;  %v13152_v39 = vadd.f32 %v4175_v7, %v4087_v47  ;;  %v1283_v7 = vsel %vm12210_vm5, %v1278_v31, %v1282_v13  ;;  %v1503_v47 = vsel %vm12202_vm4, %v1501_v40, %v1502_v17  ;;  %v1310_v38 = vrot.slane %v1308_v27, 4  ;;  %v10872_v40 = vld [vmem:[#allocation3 + $0x400] sm:$0xf]  ;;  %v11644_v27 = vld [vmem:[#allocation3 + $0x404] sm:$0xf0] }
 0x1bc   : > { %v3911_v43 = vpop.f32.mrf.mxu3  ;;  %v2441_v31 = vunpack.c.l.b16 %v1283_v7 }
 0x1bd   : > { %v3912_v2 = vadd.f32 %v3911_v43, %v12759_v5  ;;  %v1297_v5 = vrot.slane %v1295_v51, 4  ;;  %v13168_v43 = vrot.slane %v1304_v9, 5  ;;  %v10429_v9 = vor.u32 %v11531_v57, %v10426_v59 }
 0x1be   : > { %v4178_v37 = vpop.f32.mrf.mxu2  ;;  %v4002_v61 = vpop.f32.mrf.mxu0  ;;  %v13176_v30 = vpack.c.b16 %v2442_v6, %v2441_v31  ;;  %v1506_v57 = vrot.slane %v13149_v10, 5  ;;  %v10068_v6 = vld [vmem:[%s12182_s29 + $0xb4] sm:$0xe] }
 0x1bf   : > { %v4001_v54 = vadd.f32 %v4000_v35, %v3912_v2  ;;  %v4091_v15 = vpop.f32.mrf.mxu1  ;;  %v2506_v35 = vunpack.c.l.b16 %v1503_v47  ;;  %v1301_v51 = vor.u32 %v1300_v8, %v1297_v5  ;;  %v1311_v62 = vor.u32 %v1310_v38, %v13168_v43  ;;  %v10362_v2 = vld [vmem:[#allocation3 + $0x8] sm:$0xf0]  ;;  %v11512_v5 = vld [vmem:[%s12182_s29 + $0xb4] sm:$0xff]  ;;  %4512 = vmatpush.bf16.msra.mxu2 %v10429_v9 }
 0x1c0   : > { %15948 = vst [vmem:[#allocation69_spill] sm:$0xff] %v13176_v30  ;;  %v1508_v10 = vrot.slane %v1506_v57, 4  ;;  %v1509_v9 = vrot.slane %v13166_v36, 5 }
 0x1c1   : > { %v4090_v13 = vadd.f32 %v4089_v45, %v4001_v54  ;;  %v11515_v45 = vld [vmem:[#allocation3 + $0x4] sm:$0xf]  ;;  %v11496_v54 = vld [vmem:[%s12182_s29 + $0xa8] sm:$0xff]  ;;  %v13178_v46 = vpack.c.b16 %v2506_v35, %v2505_v21  ;;  %v1312_v59 = vrot.slane %v1311_v62, 4  ;;  %v13187_v21 = vld [vmem:[%s12182_s29 + $0xc4] sm:$0xf] }
 0x1c2   : > { %v10365_v47 = vor.u32 %v11515_v45, %v10362_v2  ;;  %v10084_v35 = vrot.slane %v10068_v6, 9 }
 0x1c3   : > { %v13171_v3 = vadd.f32 %v4178_v37, %v4090_v13  ;;  %v10873_v37 = vor.u32 %v11644_v27, %v10872_v40  ;;  %15949 = vst [vmem:[#allocation70_spill] sm:$0xff] %v13178_v46  ;;  %v10036_v40 = vld [vmem:[%s12182_s29 + $0xc0] sm:$0xf] }
 0x1c4   : > { %v3913_v17 = vpop.f32.mrf.mxu3  ;;  %4423 = vmatpush.bf16.msra.mxu1 %v10365_v47  ;;  %v1319_v62 = vshrl.u32 %v10036_v40, 16  ;;  %v1322_v2 = vshll.u32 %v10036_v40, 16  ;;  %v1507_v47 = vsel %vm12202_vm4, %v10084_v35, %v1506_v57 }
 0x1c5   : > { %v3914_v7 = vadd.f32 %v3913_v17, %v12772_v18  ;;  %4334 = vmatpush.bf16.msra.mxu0 %v10873_v37  ;;  %v1302_v18 = vrot.slane %v1301_v51, 4  ;;  %v1316_v17 = vrot.slane %v1314_v52, 5 }
 0x1c6   : > { %v4180_v4 = vpop.f32.mrf.mxu2  ;;  %v4005_v13 = vpop.f32.mrf.mxu0 }
 0x1c7   : > { %v4003_v38 = vadd.f32 %v4002_v61, %v3914_v7  ;;  %v4094_v8 = vpop.f32.mrf.mxu1  ;;  %v1317_v52 = vsel %vm12210_vm5, %v1312_v59, %v1316_v17  ;;  %v1328_v7 = vshll.u32 %v13187_v21, 16  ;;  %v1324_v59 = vrot.slane %v1322_v2, 5 }
 0x1c9   : > { %v4092_v31 = vadd.f32 %v4091_v15, %v4003_v38  ;;  %3955 = vmatmul.bf16.gmra.mxu3 %v11496_v54  ;;  %4044 = vmatmul.bf16.gmra.mxu0 %v13176_v30  ;;  %v1307_v15 = vsel %vm12210_vm5, %v1302_v18, %v13168_v43  ;;  %v1510_v43 = vsel %vm12202_vm4, %v1508_v10, %v1509_v9  ;;  %v2444_v38 = vunpack.c.l.b16 %v1317_v52  ;;  %v11497_v9 = vld [vmem:[%s12182_s29 + $0xb4] sm:$0xff]  ;;  %v11577_v30 = vld [vmem:[#allocation3 + $0x1f4] sm:$0xf] }
 0x1ca   : > { %4133 = vmatmul.bf16.gmra.mxu1 %v13178_v46  ;;  %v1330_v17 = vrot.slane %v1328_v7, 5  ;;  %v2508_v40 = vunpack.c.l.b16 %v1510_v43  ;;  %v11513_v7 = vld [vmem:[%s12182_s29 + $0xc0] sm:$0xff] }
 0x1cb   : > { %4222 = vmatmul.bf16.gmra.mxu2 %v11512_v5  ;;  %v13189_v61 = vadd.f32 %v4180_v4, %v4092_v31  ;;  %v1332_v4 = vshrl.u32 %v13187_v21, 16  ;;  %v2443_v5 = vunpack.c.l.b16 %v1307_v15  ;;  %v2507_v31 = vunpack.c.l.b16 %v1507_v47  ;;  %v10069_v47 = vld [vmem:[%s12182_s29 + $0xc0] sm:$0xe] }
 0x1cc   : > { %v3916_v51 = vpop.f32.mrf.mxu3 }
 0x1cd   : > { %v3917_v27 = vadd.f32 %v3916_v51, %v12790_v26  ;;  %v1321_v26 = vrot.slane %v1319_v62, 4  ;;  %v1334_v6 = vrot.slane %v1332_v4, 4  ;;  %v10053_v51 = vld [vmem:[%s12182_s29 + $0xc8] sm:$0x1]  ;;  %v13207_v57 = vpack.c.b16 %v2444_v38, %v2443_v5 }
 0x1ce   : > { %v4183_v45 = vpop.f32.mrf.mxu2  ;;  %v4007_v54 = vpop.f32.mrf.mxu0  ;;  %v1338_v52 = vshll.u32 %v10053_v51, 16  ;;  %v13211_v2 = vpack.c.b16 %v2508_v40, %v2507_v31  ;;  %v1513_v4 = vrot.slane %v13187_v21, 5  ;;  %v13222_v21 = vld [vmem:[%s12182_s29 + $0x1c] sm:$0xf]  ;;  %v10546_v40 = vld [vmem:[#allocation3 + $0x178] sm:$0xf0] }
 0x1cf   : > { %v4006_v36 = vadd.f32 %v4005_v13, %v3917_v27  ;;  %v4096_v37 = vpop.f32.mrf.mxu1  ;;  %15950 = vst [vmem:[#allocation71_spill] sm:$0xff] %v13207_v57  ;;  %v1325_v15 = vor.u32 %v1324_v59, %v1321_v26  ;;  %v10086_v26 = vld [vmem:[%s12182_s29 + $0x18] sm:$0xf] }
 0x1d0   : > { %15951 = vst [vmem:[#allocation72_spill] sm:$0xff] %v13211_v2  ;;  %v1340_v38 = vrot.slane %v1338_v52, 5  ;;  %v1515_v59 = vrot.slane %v1513_v4, 4 }
 0x1d1   : > { %v4095_v18 = vadd.f32 %v4094_v8, %v4006_v36  ;;  %v1335_v8 = vor.u32 %v1334_v6, %v1330_v17  ;;  %v1516_v6 = vrot.slane %v10053_v51, 5 }
 0x1d3   : > { %v13205_v13 = vadd.f32 %v4183_v45, %v4095_v18  ;;  %v1336_v5 = vrot.slane %v1335_v8, 4  ;;  %v10085_v18 = vrot.slane %v10069_v47, 9 }
 0x1d4   : > { %v3918_v27 = vpop.f32.mrf.mxu3 }
 0x1d5   : > { %v3919_v35 = vadd.f32 %v3918_v27, %v12808_v49  ;;  %v1326_v49 = vrot.slane %v1325_v15, 4  ;;  %v1568_v27 = vshrl.u32 %v10086_v26, 16 }
 0x1d6   : > { %v4185_v10 = vpop.f32.mrf.mxu2  ;;  %v4010_v62 = vpop.f32.mrf.mxu0 }
 0x1d7   : > { %v4008_v36 = vadd.f32 %v4007_v54, %v3919_v35  ;;  %v4099_v45 = vpop.f32.mrf.mxu1  ;;  %v11561_v54 = vld [vmem:[#allocation3 + $0x174] sm:$0xf]  ;;  %v1571_v35 = vshll.u32 %v10086_v26, 16  ;;  %v1331_v52 = vsel %vm12210_vm5, %v1326_v49, %v1330_v17  ;;  %v1514_v26 = vsel %vm12202_vm4, %v10085_v18, %v1513_v4 }
 0x1d8   : > { %v1570_v49 = vrot.slane %v1568_v27, 4  ;;  %v10610_v27 = vld [vmem:[#allocation3 + $0x1f8] sm:$0xf0] }
 0x1d9   : > { %v4097_v43 = vadd.f32 %v4096_v37, %v4008_v36  ;;  %3960 = vmatmul.bf16.gmra.mxu3 %v11497_v9  ;;  %4049 = vmatmul.bf16.gmra.mxu0 %v13207_v57  ;;  %v10549_v9 = vor.u32 %v11561_v54, %v10546_v40  ;;  %v1581_v36 = vshrl.u32 %v13222_v21, 16  ;;  %v2445_v54 = vunpack.c.l.b16 %v1331_v52 }
 0x1da   : > { %4138 = vmatmul.bf16.gmra.mxu1 %v13211_v2  ;;  %v1573_v40 = vrot.slane %v1571_v35, 5  ;;  %v10118_v2 = vld [vmem:[%s12182_s29 + $0x20] sm:$0x1]  ;;  %v11593_v35 = vld [vmem:[#allocation3 + $0x274] sm:$0xf] }
 0x1db   : > { %4227 = vmatmul.bf16.gmra.mxu2 %v11513_v7  ;;  %v13219_v31 = vadd.f32 %v4185_v10, %v4097_v43  ;;  %v1341_v7 = vsel %vm12210_vm5, %v1336_v5, %v1340_v38  ;;  %v1577_v10 = vshll.u32 %v13222_v21, 16  ;;  %4594 = vmatpush.bf16.msrb.mxu3 %v10549_v9  ;;  %v2509_v38 = vunpack.c.l.b16 %v1514_v26 }
 0x1dc   : > { %v3921_v37 = vpop.f32.mrf.mxu3  ;;  %v2446_v17 = vunpack.c.l.b16 %v1341_v7  ;;  %v1583_v46 = vrot.slane %v1581_v36, 4  ;;  %v10613_v36 = vor.u32 %v11577_v30, %v10610_v27 }
 0x1dd   : > { %v3922_v15 = vadd.f32 %v3921_v37, %v12829_v58  ;;  %v1517_v58 = vsel %vm12202_vm4, %v1515_v59, %v1516_v6  ;;  %v1579_v57 = vrot.slane %v1577_v10, 5  ;;  %v1574_v59 = vor.u32 %v1573_v40, %v1570_v49  ;;  %v11498_v10 = vld [vmem:[%s12182_s29 + $0xc0] sm:$0xff] }
 0x1de   : > { %v4188_v8 = vpop.f32.mrf.mxu2  ;;  %v4012_v51 = vpop.f32.mrf.mxu0  ;;  %v2510_v37 = vunpack.c.l.b16 %v1517_v58  ;;  %v13238_v18 = vpack.c.b16 %v2446_v17, %v2445_v54  ;;  %v11514_v54 = vld [vmem:[%s12182_s29 + $0xcc] sm:$0xff]  ;;  %v2017_v49 = vrot.slane %v13222_v21, 5  ;;  %4683 = vmatpush.bf16.msrb.mxu0 %v10613_v36 }
 0x1df   : > { %v4011_v47 = vadd.f32 %v4010_v62, %v3922_v15  ;;  %v4101_v43 = vpop.f32.mrf.mxu1  ;;  %v11609_v62 = vld [vmem:[#allocation3 + $0x2f4] sm:$0xf]  ;;  %v10738_v15 = vld [vmem:[#allocation3 + $0x2f8] sm:$0xf0]  ;;  %v1584_v17 = vor.u32 %v1583_v46, %v1579_v57  ;;  %v1575_v30 = vrot.slane %v1574_v59, 4 }
 0x1e0   : > { %15952 = vst [vmem:[#allocation73_spill] sm:$0xff] %v13238_v18  ;;  %v10741_v6 = vor.u32 %v11609_v62, %v10738_v15  ;;  %v13242_v58 = vpack.c.b16 %v2510_v37, %v2509_v38  ;;  %v10134_v62 = vld [vmem:[%s12182_s29 + $0x18] sm:$0xe]  ;;  %v13250_v38 = vld [vmem:[%s12182_s29 + $0x28] sm:$0xf]  ;;  %v2019_v37 = vrot.slane %v2017_v49, 4 }
 0x1e1   : > { %v4100_v5 = vadd.f32 %v4099_v45, %v4011_v47  ;;  %v10674_v45 = vld [vmem:[#allocation3 + $0x278] sm:$0xf0]  ;;  %v1585_v46 = vrot.slane %v1584_v17, 4  ;;  %v10150_v21 = vrot.slane %v10134_v62, 9 }
 0x1e2   : > { %v10677_v47 = vor.u32 %v11593_v35, %v10674_v45  ;;  %15953 = vst [vmem:[#allocation74_spill] sm:$0xff] %v13242_v58  ;;  %4861 = vmatpush.bf16.msrb.mxu2 %v10741_v6 }
 0x1e3   : > { %v13236_v9 = vadd.f32 %v4188_v8, %v4100_v5  ;;  %v1587_v8 = vshll.u32 %v10118_v2, 16 }
 0x1e4   : > { %v3923_v4 = vpop.f32.mrf.mxu3  ;;  %4772 = vmatpush.bf16.msrb.mxu1 %v10677_v47 }
 0x1e5   : > { %v3924_v52 = vadd.f32 %v3923_v4, %v12842_v25  ;;  %v10088_v25 = vld [vmem:[%s12182_s29 + $0x24] sm:$0xf]  ;;  %v1589_v4 = vrot.slane %v1587_v8, 5  ;;  %v1580_v8 = vsel %vm12210_vm5, %v1575_v30, %v1579_v57 }
 0x1e6   : > { %v4190_v7 = vpop.f32.mrf.mxu2  ;;  %v4015_v26 = vpop.f32.mrf.mxu0  ;;  %v1592_v27 = vshrl.u32 %v10088_v25, 16  ;;  %v1595_v35 = vshll.u32 %v10088_v25, 16 }
 0x1e7   : > { %v4013_v40 = vadd.f32 %v4012_v51, %v3924_v52  ;;  %v4104_v5 = vpop.f32.mrf.mxu1  ;;  %v2020_v51 = vrot.slane %v10118_v2, 5  ;;  %v1605_v52 = vshrl.u32 %v13250_v38, 16  ;;  %v1590_v2 = vsel %vm12210_vm5, %v1585_v46, %v1589_v4 }
 0x1e8   : > { %v1597_v62 = vrot.slane %v1595_v35, 5  ;;  %v2624_v57 = vunpack.c.l.b16 %v1590_v2 }
 0x1e9   : > { %v4102_v15 = vadd.f32 %v4101_v43, %v4013_v40  ;;  %3965 = vmatmul.bf16.gmra.mxu3 %v11498_v10  ;;  %4054 = vmatmul.bf16.gmra.mxu0 %v13238_v18  ;;  %v1601_v43 = vshll.u32 %v13250_v38, 16  ;;  %v2021_v47 = vsel %vm12202_vm4, %v2019_v37, %v2020_v51  ;;  %v1594_v40 = vrot.slane %v1592_v27, 4  ;;  %v10119_v18 = vld [vmem:[%s12182_s29 + $0x2c] sm:$0x1] }
 0x1ea   : > { %4143 = vmatmul.bf16.gmra.mxu1 %v13242_v58  ;;  %v2688_v58 = vunpack.c.l.b16 %v2021_v47  ;;  %v1611_v34 = vshll.u32 %v10119_v18, 16 }
 0x1eb   : > { %4232 = vmatmul.bf16.gmra.mxu2 %v11514_v54  ;;  %v13253_v6 = vadd.f32 %v4190_v7, %v4102_v15  ;;  %v2018_v7 = vsel %vm12202_vm4, %v10150_v21, %v2017_v49  ;;  %v1603_v25 = vrot.slane %v1601_v43, 5  ;;  %v1607_v15 = vrot.slane %v1605_v52, 4  ;;  %v10135_v43 = vld [vmem:[%s12182_s29 + $0x24] sm:$0xe] }
 0x1ec   : > { %v3926_v45 = vpop.f32.mrf.mxu3  ;;  %v2687_v30 = vunpack.c.l.b16 %v2018_v7  ;;  %v1598_v46 = vor.u32 %v1597_v62, %v1594_v40  ;;  %v1613_v2 = vrot.slane %v1611_v34, 5  ;;  %v11864_v40 = vld [vmem:[%s12182_s29] sm:$0xff]  ;;  %v13286_v62 = vld [vmem:[%s12182_s29 + $0x34] sm:$0xf]  ;;  %v11559_v34 = vld [vmem:[#allocation3 + $0x164] sm:$0xf] }
 0x1ed   : > { %v3927_v59 = vadd.f32 %v3926_v45, %v12860_v0  ;;  %v2623_v0 = vunpack.c.l.b16 %v1580_v8  ;;  %v1608_v21 = vor.u32 %v1607_v15, %v1603_v25 }
 0x1ee   : > { %v4193_v10 = vpop.f32.mrf.mxu2  ;;  %v4017_v36 = vpop.f32.mrf.mxu0  ;;  %v13272_v27 = vpack.c.b16 %v2688_v58, %v2687_v30  ;;  %v2027_v58 = vrot.slane %v10119_v18, 5 }
 0x1ef   : > { %v4016_v54 = vadd.f32 %v4015_v26, %v3927_v59  ;;  %v4106_v17 = vpop.f32.mrf.mxu1  ;;  %v13270_v51 = vpack.c.b16 %v2624_v57, %v2623_v0  ;;  %v1609_v8 = vrot.slane %v1608_v21, 4  ;;  %v1625_v21 = vshll.u32 %v13286_v62, 16 }
 0x1f0   : > { %15955 = vst [vmem:[#allocation76_spill] sm:$0xff] %v13272_v27 }
 0x1f1   : > { %v4105_v45 = vadd.f32 %v4104_v5, %v4016_v54  ;;  %15954 = vst [vmem:[#allocation75_spill] sm:$0xff] %v13270_v51  ;;  %v2024_v5 = vrot.slane %v13250_v38, 5  ;;  %v10090_v54 = vld [vmem:[%s12182_s29 + $0x30] sm:$0xf]  ;;  %v1614_v15 = vsel %vm12210_vm5, %v1609_v8, %v1613_v2 }
 0x1f2   : > { %v1619_v18 = vshll.u32 %v10090_v54, 16 }
 0x1f3   : > { %v13267_v4 = vadd.f32 %v4193_v10, %v4105_v45  ;;  %v1599_v10 = vrot.slane %v1598_v46, 4  ;;  %v2026_v47 = vrot.slane %v2024_v5, 4  ;;  %v1616_v45 = vshrl.u32 %v10090_v54, 16 }
 0x1f4   : > { %v3928_v49 = vpop.f32.mrf.mxu3 }
 0x1f5   : > { %v3929_v26 = vadd.f32 %v3928_v49, %v12878_v19  ;;  %v10151_v19 = vrot.slane %v10135_v43, 9  ;;  %v1618_v2 = vrot.slane %v1616_v45, 4  ;;  %v11591_v45 = vld [vmem:[#allocation3 + $0x264] sm:$0xf] }
 0x1f6   : > { %v4195_v37 = vpop.f32.mrf.mxu2  ;;  %v4020_v35 = vpop.f32.mrf.mxu0 }
 0x1f7   : > { %v4018_v52 = vadd.f32 %v4017_v36, %v3929_v26  ;;  %v4109_v59 = vpop.f32.mrf.mxu1  ;;  %v1604_v36 = vsel %vm12210_vm5, %v1599_v10, %v1603_v25  ;;  %v2028_v25 = vsel %vm12202_vm4, %v2026_v47, %v2027_v58  ;;  %v1629_v26 = vshrl.u32 %v13286_v62, 16  ;;  %v11607_v47 = vld [vmem:[#allocation3 + $0x2e4] sm:$0xf]  ;;  %v10730_v58 = vld [vmem:[#allocation3 + $0x2e8] sm:$0xf0] }
 0x1f8   : > { %v2626_v10 = vunpack.c.l.b16 %v1614_v15  ;;  %v10733_v15 = vor.u32 %v11607_v47, %v10730_v58  ;;  %v11865_v47 = vld [vmem:[%s12182_s29 + $0xc] sm:$0xff] }
 0x1f9   : > { %v4107_v7 = vadd.f32 %v4106_v17, %v4018_v52  ;;  %4246 = vmatmul.bf16.vlgmr.msra.gmra.mxu3 %v13270_v51  ;;  %4335 = vmatmul.bf16.vlgmr.msra.gmra.mxu0 %v13272_v27  ;;  %v10538_v17 = vld [vmem:[#allocation3 + $0x168] sm:$0xf0]  ;;  %v2625_v52 = vunpack.c.l.b16 %v1604_v36 }
 0x1fa   : > { %4424 = vmatmul.bf16.vlgmr.msra.gmra.mxu1 %v11864_v40  ;;  %v10541_v57 = vor.u32 %v11559_v34, %v10538_v17  ;;  %v10120_v40 = vld [vmem:[%s12182_s29 + $0x38] sm:$0x1]  ;;  %v11575_v17 = vld [vmem:[#allocation3 + $0x1e4] sm:$0xf]  ;;  %4862 = vmatpush.bf16.msrb.mxu2 %v10733_v15 }
 0x1fb   : > { %4513 = vmatmul.bf16.vlgmr.msra.gmra.mxu2 %v12241_v12  ;;  %v13281_v38 = vadd.f32 %v4195_v37, %v4107_v7  ;;  %v2025_v12 = vsel %vm12202_vm4, %v10151_v19, %v2024_v5  ;;  %v1621_v7 = vrot.slane %v1619_v18, 5  ;;  %v1627_v5 = vrot.slane %v1625_v21, 5 }
 0x1fc   : > { %v3931_v0 = vpop.f32.mrf.mxu3  ;;  %4595 = vmatpush.bf16.msrb.mxu3 %v10541_v57  ;;  %v2689_v8 = vunpack.c.l.b16 %v2025_v12  ;;  %v1631_v19 = vrot.slane %v1629_v26, 4  ;;  %v13300_v27 = vpack.c.b16 %v2626_v10, %v2625_v52  ;;  %v10602_v57 = vld [vmem:[#allocation3 + $0x1e8] sm:$0xf0]  ;;  %v2034_v58 = vrot.slane %v10120_v40, 5 }
 0x1fd   : > { %v3932_v30 = vadd.f32 %v3931_v0, %v12897_v20  ;;  %v2690_v20 = vunpack.c.l.b16 %v2028_v25  ;;  %v1622_v36 = vor.u32 %v1621_v7, %v1618_v2  ;;  %v10605_v12 = vor.u32 %v11575_v17, %v10602_v57 }
 0x1fe   : > { %v4198_v46 = vpop.f32.mrf.mxu2  ;;  %v4022_v49 = vpop.f32.mrf.mxu0  ;;  %15956 = vst [vmem:[#allocation77_spill] sm:$0xff] %v13300_v27  ;;  %v1632_v26 = vor.u32 %v1631_v19, %v1627_v5 }
 0x1ff   : > { %v4021_v37 = vadd.f32 %v4020_v35, %v3932_v30  ;;  %v4111_v43 = vpop.f32.mrf.mxu1  ;;  %v13302_v35 = vpack.c.b16 %v2690_v20, %v2689_v8  ;;  %v10136_v8 = vld [vmem:[%s12182_s29 + $0x30] sm:$0xe]  ;;  %4684 = vmatpush.bf16.msrb.mxu0 %v10605_v12  ;;  %v10092_v20 = vld [vmem:[%s12182_s29 + $0x3c] sm:$0xf] }
 0x201   : > { %v4110_v54 = vadd.f32 %v4109_v59, %v4021_v37  ;;  %15957 = vst [vmem:[#allocation78_spill] sm:$0xff] %v13302_v35  ;;  %v10666_v59 = vld [vmem:[#allocation3 + $0x268] sm:$0xf0]  ;;  %v2031_v37 = vrot.slane %v13286_v62, 5  ;;  %v1633_v62 = vrot.slane %v1632_v26, 4 }
 0x202   : > { %v10669_v25 = vor.u32 %v11591_v45, %v10666_v59 }
 0x203   : > { %v13298_v34 = vadd.f32 %v4198_v46, %v4110_v54  ;;  %v1635_v46 = vshll.u32 %v10120_v40, 16  ;;  %v13311_v54 = vld [vmem:[%s12182_s29 + $0x40] sm:$0xf]  ;;  %v2033_v19 = vrot.slane %v2031_v37, 4 }
 0x204   : > { %v3933_v0 = vpop.f32.mrf.mxu3  ;;  %4773 = vmatpush.bf16.msrb.mxu1 %v10669_v25  ;;  %v1649_v57 = vshll.u32 %v13311_v54, 16 }
 0x205   : > { %v3934_v18 = vadd.f32 %v3933_v0, %v12912_v55  ;;  %v1623_v55 = vrot.slane %v1622_v36, 4  ;;  %v1637_v7 = vrot.slane %v1635_v46, 5  ;;  %v1640_v0 = vshrl.u32 %v10092_v20, 16 }
 0x206   : > { %v4200_v30 = vpop.f32.mrf.mxu2  ;;  %v4025_v21 = vpop.f32.mrf.mxu0  ;;  %v1653_v36 = vshrl.u32 %v13311_v54, 16  ;;  %v2035_v46 = vsel %vm12202_vm4, %v2033_v19, %v2034_v58 }
 0x207   : > { %v4023_v52 = vadd.f32 %v4022_v49, %v3934_v18  ;;  %v4114_v10 = vpop.f32.mrf.mxu1  ;;  %v10152_v49 = vrot.slane %v10136_v8, 9  ;;  %v1628_v18 = vsel %vm12210_vm5, %v1623_v55, %v1627_v5  ;;  %v1638_v40 = vsel %vm12210_vm5, %v1633_v62, %v1637_v7 }
 0x208   : > { %v1642_v26 = vrot.slane %v1640_v0, 4  ;;  %v1651_v8 = vrot.slane %v1649_v57, 5  ;;  %v2628_v5 = vunpack.c.l.b16 %v1638_v40  ;;  %v10137_v57 = vld [vmem:[%s12182_s29 + $0x3c] sm:$0xe] }
 0x209   : > { %v4112_v2 = vadd.f32 %v4111_v43, %v4023_v52  ;;  %4251 = vmatmul.bf16.gmra.mxu3 %v13300_v27  ;;  %4340 = vmatmul.bf16.gmra.mxu0 %v13302_v35  ;;  %v1643_v43 = vshll.u32 %v10092_v20, 16  ;;  %v1655_v20 = vrot.slane %v1653_v36, 4 }
 0x20a   : > { %4429 = vmatmul.bf16.gmra.mxu1 %v11865_v47  ;;  %v2692_v47 = vunpack.c.l.b16 %v2035_v46 }
 0x20b   : > { %4518 = vmatmul.bf16.gmra.mxu2 %v12274_v11  ;;  %v13315_v17 = vadd.f32 %v4200_v30, %v4112_v2  ;;  %v2032_v30 = vsel %vm12202_vm4, %v10152_v49, %v2031_v37  ;;  %v1645_v52 = vrot.slane %v1643_v43, 5  ;;  %v1656_v49 = vor.u32 %v1655_v20, %v1651_v8 }
 0x20c   : > { %v3936_v15 = vpop.f32.mrf.mxu3  ;;  %v2691_v55 = vunpack.c.l.b16 %v2032_v30 }
 0x20d   : > { %v3937_v45 = vadd.f32 %v3936_v15, %v12934_v28  ;;  %v2627_v28 = vunpack.c.l.b16 %v1628_v18  ;;  %v10121_v15 = vld [vmem:[%s12182_s29 + $0x44] sm:$0x1]  ;;  %v1646_v62 = vor.u32 %v1645_v52, %v1642_v26  ;;  %v1657_v18 = vrot.slane %v1656_v49, 4  ;;  %v10094_v26 = vld [vmem:[%s12182_s29 + $0x48] sm:$0xf]  ;;  %v11866_v52 = vld [vmem:[%s12182_s29 + $0x18] sm:$0xff] }
 0x20e   : > { %v4203_v59 = vpop.f32.mrf.mxu2  ;;  %v4027_v11 = vpop.f32.mrf.mxu0  ;;  %v1659_v35 = vshll.u32 %v10121_v15, 16  ;;  %v13334_v0 = vpack.c.b16 %v2692_v47, %v2691_v55  ;;  %v1667_v55 = vshll.u32 %v10094_v26, 16 }
 0x20f   : > { %v4026_v12 = vadd.f32 %v4025_v21, %v3937_v45  ;;  %v4116_v25 = vpop.f32.mrf.mxu1  ;;  %v13332_v58 = vpack.c.b16 %v2628_v5, %v2627_v28  ;;  %v13348_v28 = vld [vmem:[%s12182_s29 + $0x4c] sm:$0xf]  ;;  %v1664_v5 = vshrl.u32 %v10094_v26, 16 }
 0x210   : > { %15959 = vst [vmem:[#allocation80_spill] sm:$0xff] %v13334_v0  ;;  %v1661_v40 = vrot.slane %v1659_v35, 5  ;;  %v11557_v35 = vld [vmem:[#allocation3 + $0x154] sm:$0xf]  ;;  %v1673_v49 = vshll.u32 %v13348_v28, 16 }
 0x211   : > { %v4115_v2 = vadd.f32 %v4114_v10, %v4026_v12  ;;  %15958 = vst [vmem:[#allocation79_spill] sm:$0xff] %v13332_v58  ;;  %v2038_v10 = vrot.slane %v13311_v54, 5  ;;  %v2041_v12 = vrot.slane %v10121_v15, 5 }
 0x213   : > { %v13329_v7 = vadd.f32 %v4203_v59, %v4115_v2  ;;  %v1647_v59 = vrot.slane %v1646_v62, 4  ;;  %v2040_v46 = vrot.slane %v2038_v10, 4  ;;  %v1662_v2 = vsel %vm12210_vm5, %v1657_v18, %v1661_v40 }
 0x214   : > { %v3938_v37 = vpop.f32.mrf.mxu3  ;;  %v1666_v40 = vrot.slane %v1664_v5, 4  ;;  %v11589_v5 = vld [vmem:[#allocation3 + $0x254] sm:$0xf] }
 0x215   : > { %v3939_v21 = vadd.f32 %v3938_v37, %v12949_v53  ;;  %v10153_v53 = vrot.slane %v10137_v57, 9 }
 0x216   : > { %v4205_v19 = vpop.f32.mrf.mxu2  ;;  %v4030_v43 = vpop.f32.mrf.mxu0 }
 0x217   : > { %v4028_v36 = vadd.f32 %v4027_v11, %v3939_v21  ;;  %v4119_v45 = vpop.f32.mrf.mxu1  ;;  %v1652_v11 = vsel %vm12210_vm5, %v1647_v59, %v1651_v8  ;;  %v2042_v8 = vsel %vm12202_vm4, %v2040_v46, %v2041_v12  ;;  %v1677_v21 = vshrl.u32 %v13348_v28, 16  ;;  %v11605_v46 = vld [vmem:[#allocation3 + $0x2d4] sm:$0xf]  ;;  %v10722_v12 = vld [vmem:[#allocation3 + $0x2d8] sm:$0xf0] }
 0x218   : > { %v2630_v59 = vunpack.c.l.b16 %v1662_v2  ;;  %v10725_v2 = vor.u32 %v11605_v46, %v10722_v12  ;;  %v11867_v46 = vld [vmem:[%s12182_s29 + $0x24] sm:$0xff] }
 0x219   : > { %v4117_v30 = vadd.f32 %v4116_v25, %v4028_v36  ;;  %4256 = vmatmul.bf16.gmra.mxu3 %v13332_v58  ;;  %4345 = vmatmul.bf16.gmra.mxu0 %v13334_v0  ;;  %v10530_v25 = vld [vmem:[#allocation3 + $0x158] sm:$0xf0]  ;;  %v2629_v36 = vunpack.c.l.b16 %v1652_v11 }
 0x21a   : > { %4434 = vmatmul.bf16.gmra.mxu1 %v11866_v52  ;;  %v10533_v47 = vor.u32 %v11557_v35, %v10530_v25  ;;  %v10122_v52 = vld [vmem:[%s12182_s29 + $0x50] sm:$0x1]  ;;  %v11573_v25 = vld [vmem:[#allocation3 + $0x1d4] sm:$0xf]  ;;  %4863 = vmatpush.bf16.msrb.mxu2 %v10725_v2  ;;  %v10642_v58 = vld [vmem:[#allocation3 + $0x238] sm:$0xf0] }
 0x21b   : > { %4523 = vmatmul.bf16.gmra.mxu2 %v12304_v1  ;;  %v13343_v54 = vadd.f32 %v4205_v19, %v4117_v30  ;;  %v2039_v1 = vsel %vm12202_vm4, %v10153_v53, %v2038_v10  ;;  %v1669_v30 = vrot.slane %v1667_v55, 5  ;;  %v1675_v10 = vrot.slane %v1673_v49, 5 }
 0x21c   : > { %v3941_v20 = vpop.f32.mrf.mxu3  ;;  %4596 = vmatpush.bf16.msrb.mxu3 %v10533_v47  ;;  %v2693_v18 = vunpack.c.l.b16 %v2039_v1  ;;  %v1679_v53 = vrot.slane %v1677_v21, 4  ;;  %v13362_v0 = vpack.c.b16 %v2630_v59, %v2629_v36  ;;  %v10594_v47 = vld [vmem:[#allocation3 + $0x1d8] sm:$0xf0]  ;;  %v2048_v12 = vrot.slane %v10122_v52, 5 }
 0x21d   : > { %v3942_v15 = vadd.f32 %v3941_v20, %v12971_v29  ;;  %v2694_v29 = vunpack.c.l.b16 %v2042_v8  ;;  %v1670_v11 = vor.u32 %v1669_v30, %v1666_v40  ;;  %v10597_v1 = vor.u32 %v11573_v25, %v10594_v47 }
 0x21e   : > { %v4208_v62 = vpop.f32.mrf.mxu2  ;;  %v4032_v37 = vpop.f32.mrf.mxu0  ;;  %15960 = vst [vmem:[#allocation81_spill] sm:$0xff] %v13362_v0  ;;  %v1680_v21 = vor.u32 %v1679_v53, %v1675_v10 }
 0x21f   : > { %v4031_v19 = vadd.f32 %v4030_v43, %v3942_v15  ;;  %v4121_v57 = vpop.f32.mrf.mxu1  ;;  %v13364_v43 = vpack.c.b16 %v2694_v29, %v2693_v18  ;;  %v10138_v18 = vld [vmem:[%s12182_s29 + $0x48] sm:$0xe]  ;;  %4685 = vmatpush.bf16.msrb.mxu0 %v10597_v1  ;;  %v10096_v29 = vld [vmem:[%s12182_s29 + $0x54] sm:$0xf] }
 0x221   : > { %v4120_v26 = vadd.f32 %v4119_v45, %v4031_v19  ;;  %15961 = vst [vmem:[#allocation82_spill] sm:$0xff] %v13364_v43  ;;  %v10658_v45 = vld [vmem:[#allocation3 + $0x258] sm:$0xf0]  ;;  %v2045_v19 = vrot.slane %v13348_v28, 5  ;;  %v1681_v28 = vrot.slane %v1680_v21, 4 }
 0x222   : > { %v10661_v8 = vor.u32 %v11589_v5, %v10658_v45 }
 0x223   : > { %v13360_v35 = vadd.f32 %v4208_v62, %v4120_v26  ;;  %v1683_v62 = vshll.u32 %v10122_v52, 16  ;;  %v13373_v26 = vld [vmem:[%s12182_s29 + $0x58] sm:$0xf]  ;;  %v2047_v53 = vrot.slane %v2045_v19, 4 }
 0x224   : > { %v3943_v20 = vpop.f32.mrf.mxu3  ;;  %4774 = vmatpush.bf16.msrb.mxu1 %v10661_v8  ;;  %v1697_v47 = vshll.u32 %v13373_v26, 16 }
 0x225   : > { %v3944_v55 = vadd.f32 %v3943_v20, %v12984_v48  ;;  %v1671_v48 = vrot.slane %v1670_v11, 4  ;;  %v1685_v30 = vrot.slane %v1683_v62, 5  ;;  %v1688_v20 = vshrl.u32 %v10096_v29, 16 }
 0x226   : > { %v4210_v15 = vpop.f32.mrf.mxu2  ;;  %v4035_v49 = vpop.f32.mrf.mxu0  ;;  %v1701_v11 = vshrl.u32 %v13373_v26, 16  ;;  %v2049_v62 = vsel %vm12202_vm4, %v2047_v53, %v2048_v12 }
 0x227   : > { %v4033_v36 = vadd.f32 %v4032_v37, %v3944_v55  ;;  %v4124_v59 = vpop.f32.mrf.mxu1  ;;  %v10154_v37 = vrot.slane %v10138_v18, 9  ;;  %v1676_v55 = vsel %vm12210_vm5, %v1671_v48, %v1675_v10  ;;  %v1686_v52 = vsel %vm12210_vm5, %v1681_v28, %v1685_v30 }
 0x228   : > { %v1690_v21 = vrot.slane %v1688_v20, 4  ;;  %v1699_v18 = vrot.slane %v1697_v47, 5  ;;  %v2632_v10 = vunpack.c.l.b16 %v1686_v52  ;;  %v10139_v47 = vld [vmem:[%s12182_s29 + $0x54] sm:$0xe] }
 0x229   : > { %v4122_v40 = vadd.f32 %v4121_v57, %v4033_v36  ;;  %4261 = vmatmul.bf16.gmra.mxu3 %v13362_v0  ;;  %4350 = vmatmul.bf16.gmra.mxu0 %v13364_v43  ;;  %v1691_v57 = vshll.u32 %v10096_v29, 16  ;;  %v1703_v29 = vrot.slane %v1701_v11, 4  ;;  %v10706_v0 = vld [vmem:[#allocation3 + $0x2b8] sm:$0xf0] }
 0x22a   : > { %4439 = vmatmul.bf16.gmra.mxu1 %v11867_v46  ;;  %v2696_v46 = vunpack.c.l.b16 %v2049_v62 }
 0x22b   : > { %4528 = vmatmul.bf16.gmra.mxu2 %v12348_v63  ;;  %v13377_v25 = vadd.f32 %v4210_v15, %v4122_v40  ;;  %v2046_v15 = vsel %vm12202_vm4, %v10154_v37, %v2045_v19  ;;  %v1693_v36 = vrot.slane %v1691_v57, 5  ;;  %v1704_v37 = vor.u32 %v1703_v29, %v1699_v18 }
 0x22c   : > { %v3946_v2 = vpop.f32.mrf.mxu3  ;;  %v2695_v48 = vunpack.c.l.b16 %v2046_v15 }
 0x22d   : > { %v3947_v5 = vadd.f32 %v3946_v2, %v13000_v33  ;;  %v2631_v33 = vunpack.c.l.b16 %v1676_v55  ;;  %v10123_v2 = vld [vmem:[%s12182_s29 + $0x5c] sm:$0x1]  ;;  %v1694_v28 = vor.u32 %v1693_v36, %v1690_v21  ;;  %v1705_v55 = vrot.slane %v1704_v37, 4  ;;  %v10098_v21 = vld [vmem:[%s12182_s29 + $0x60] sm:$0xf]  ;;  %v11868_v36 = vld [vmem:[%s12182_s29 + $0x30] sm:$0xff] }
 0x22e   : > { %v4213_v45 = vpop.f32.mrf.mxu2  ;;  %v4037_v63 = vpop.f32.mrf.mxu0  ;;  %v1707_v43 = vshll.u32 %v10123_v2, 16  ;;  %v13396_v20 = vpack.c.b16 %v2696_v46, %v2695_v48  ;;  %v1715_v48 = vshll.u32 %v10098_v21, 16 }
 0x22f   : > { %v4036_v1 = vadd.f32 %v4035_v49, %v3947_v5  ;;  %v4126_v8 = vpop.f32.mrf.mxu1  ;;  %v13394_v12 = vpack.c.b16 %v2632_v10, %v2631_v33  ;;  %v13410_v33 = vld [vmem:[%s12182_s29 + $0x64] sm:$0xf]  ;;  %v1712_v10 = vshrl.u32 %v10098_v21, 16 }
 0x230   : > { %15963 = vst [vmem:[#allocation84_spill] sm:$0xff] %v13396_v20  ;;  %v1709_v52 = vrot.slane %v1707_v43, 5  ;;  %v11555_v43 = vld [vmem:[#allocation3 + $0x144] sm:$0xf]  ;;  %v1721_v37 = vshll.u32 %v13410_v33, 16 }
 0x231   : > { %v4125_v40 = vadd.f32 %v4124_v59, %v4036_v1  ;;  %15962 = vst [vmem:[#allocation83_spill] sm:$0xff] %v13394_v12  ;;  %v2052_v59 = vrot.slane %v13373_v26, 5  ;;  %v2055_v1 = vrot.slane %v10123_v2, 5 }
 0x233   : > { %v13391_v30 = vadd.f32 %v4213_v45, %v4125_v40  ;;  %v1695_v45 = vrot.slane %v1694_v28, 4  ;;  %v2054_v62 = vrot.slane %v2052_v59, 4  ;;  %v1710_v40 = vsel %vm12210_vm5, %v1705_v55, %v1709_v52 }
 0x234   : > { %v3948_v19 = vpop.f32.mrf.mxu3  ;;  %v1714_v52 = vrot.slane %v1712_v10, 4  ;;  %v11587_v10 = vld [vmem:[#allocation3 + $0x244] sm:$0xf] }
 0x235   : > { %v3949_v49 = vadd.f32 %v3948_v19, %v13017_v56  ;;  %v10155_v56 = vrot.slane %v10139_v47, 9 }
 0x236   : > { %v4215_v53 = vpop.f32.mrf.mxu2  ;;  %v4040_v57 = vpop.f32.mrf.mxu0 }
 0x237   : > { %v4038_v11 = vadd.f32 %v4037_v63, %v3949_v49  ;;  %v4129_v5 = vpop.f32.mrf.mxu1  ;;  %v1700_v63 = vsel %vm12210_vm5, %v1695_v45, %v1699_v18  ;;  %v2056_v18 = vsel %vm12202_vm4, %v2054_v62, %v2055_v1  ;;  %v1725_v49 = vshrl.u32 %v13410_v33, 16  ;;  %v11603_v62 = vld [vmem:[#allocation3 + $0x2c4] sm:$0xf]  ;;  %v10714_v1 = vld [vmem:[#allocation3 + $0x2c8] sm:$0xf0] }
 0x238   : > { %v2634_v45 = vunpack.c.l.b16 %v1710_v40  ;;  %v10717_v40 = vor.u32 %v11603_v62, %v10714_v1  ;;  %v11869_v1 = vld [vmem:[%s12182_s29 + $0x3c] sm:$0xff] }
 0x239   : > { %v4127_v15 = vadd.f32 %v4126_v8, %v4038_v11  ;;  %4266 = vmatmul.bf16.gmra.mxu3 %v13394_v12  ;;  %4355 = vmatmul.bf16.gmra.mxu0 %v13396_v20  ;;  %v10522_v8 = vld [vmem:[#allocation3 + $0x148] sm:$0xf0]  ;;  %v2633_v11 = vunpack.c.l.b16 %v1700_v63 }
 0x23a   : > { %4444 = vmatmul.bf16.gmra.mxu1 %v11868_v36  ;;  %v10525_v46 = vor.u32 %v11555_v43, %v10522_v8  ;;  %v10124_v36 = vld [vmem:[%s12182_s29 + $0x68] sm:$0x1]  ;;  %v11571_v8 = vld [vmem:[#allocation3 + $0x1c4] sm:$0xf]  ;;  %4864 = vmatpush.bf16.msrb.mxu2 %v10717_v40 }
 0x23b   : > { %4533 = vmatmul.bf16.gmra.mxu2 %v12403_v60  ;;  %v13405_v26 = vadd.f32 %v4215_v53, %v4127_v15  ;;  %v2053_v60 = vsel %vm12202_vm4, %v10155_v56, %v2052_v59  ;;  %v1717_v15 = vrot.slane %v1715_v48, 5  ;;  %v1723_v59 = vrot.slane %v1721_v37, 5 }
 0x23c   : > { %v3951_v29 = vpop.f32.mrf.mxu3  ;;  %4597 = vmatpush.bf16.msrb.mxu3 %v10525_v46  ;;  %v2697_v55 = vunpack.c.l.b16 %v2053_v60  ;;  %v1727_v56 = vrot.slane %v1725_v49, 4  ;;  %v13424_v46 = vpack.c.b16 %v2634_v45, %v2633_v11  ;;  %v1731_v60 = vshll.u32 %v10124_v36, 16  ;;  %v10140_v11 = vld [vmem:[%s12182_s29 + $0x60] sm:$0xe] }
 0x23d   : > { %v3952_v2 = vadd.f32 %v3951_v29, %v12893_v24  ;;  %v2698_v24 = vunpack.c.l.b16 %v2056_v18  ;;  %v1718_v63 = vor.u32 %v1717_v15, %v1714_v52  ;;  %v2059_v45 = vrot.slane %v13410_v33, 5  ;;  %v10100_v52 = vld [vmem:[%s12182_s29 + $0x6c] sm:$0xf]  ;;  %v13433_v15 = vld [vmem:[%s12182_s29 + $0x70] sm:$0xf] }
 0x23e   : > { %v4218_v28 = vpop.f32.mrf.mxu2  ;;  %v4042_v19 = vpop.f32.mrf.mxu0  ;;  %15965 = vst [vmem:[#allocation86_spill] sm:$0xff] %v13424_v46  ;;  %v1733_v62 = vrot.slane %v1731_v60, 5  ;;  %v1736_v40 = vshrl.u32 %v10100_v52, 16 }
 0x23f   : > { %v4041_v53 = vadd.f32 %v4040_v57, %v3952_v2  ;;  %v4131_v47 = vpop.f32.mrf.mxu1  ;;  %v13426_v57 = vpack.c.b16 %v2698_v24, %v2697_v55  ;;  %v10586_v2 = vld [vmem:[#allocation3 + $0x1c8] sm:$0xf0] }
 0x240   : > { %v10589_v18 = vor.u32 %v11571_v8, %v10586_v2  ;;  %v15967_v8 = vld [vmem:[#allocation16_spill] sm:$0xff] }
 0x241   : > { %v4130_v21 = vadd.f32 %v4129_v5, %v4041_v53  ;;  %15966 = vst [vmem:[#allocation87_spill] sm:$0xff] %v13426_v57  ;;  %v10650_v5 = vld [vmem:[#allocation3 + $0x248] sm:$0xf0]  ;;  %v1728_v53 = vor.u32 %v1727_v56, %v1723_v59  ;;  %v10156_v56 = vrot.slane %v10140_v11, 9 }
 0x242   : > { %v10653_v37 = vor.u32 %v11587_v10, %v10650_v5  ;;  %4686 = vmatpush.bf16.msrb.mxu0 %v10589_v18  ;;  %v1739_v10 = vshll.u32 %v10100_v52, 16  ;;  %v1749_v5 = vshrl.u32 %v13433_v15, 16 }
 0x243   : > { %v13422_v43 = vadd.f32 %v4218_v28, %v4130_v21  ;;  %v1729_v33 = vrot.slane %v1728_v53, 4 }
 0x244   : > { %v3953_v29 = vpop.f32.mrf.mxu3  ;;  %4775 = vmatpush.bf16.msrb.mxu1 %v10653_v37 }
 0x245   : > { %15964 = vst [vmem:[#allocation85_spill] sm:$0xff] %v13422_v43  ;;  %v3954_v48 = vadd.f32 %v3953_v29, %v12907_v41  ;;  %v1719_v41 = vrot.slane %v1718_v63, 4  ;;  %v2062_v29 = vrot.slane %v10124_v36, 5  ;;  %v15969_v63 = vld [vmem:[#allocation48_spill] sm:$0xff]  ;;  %v1734_v36 = vsel %vm12210_vm5, %v1729_v33, %v1733_v62 }
 0x246   : > { %v4220_v28 = vpop.f32.mrf.mxu2  ;;  %v4045_v49 = vpop.f32.mrf.mxu0 }
 0x247   : > { %v4043_v55 = vadd.f32 %v4042_v19, %v3954_v48  ;;  %v4134_v24 = vpop.f32.mrf.mxu1  ;;  %v2061_v19 = vrot.slane %v2059_v45, 4  ;;  %v1724_v37 = vsel %vm12210_vm5, %v1719_v41, %v1723_v59  ;;  %v2636_v41 = vunpack.c.l.b16 %v1734_v36 }
 0x249   : > { %v4132_v21 = vadd.f32 %v4131_v47, %v4043_v55  ;;  %4271 = vmatmul.bf16.gmra.mxu3 %v13424_v46  ;;  %4360 = vmatmul.bf16.gmra.mxu0 %v13426_v57  ;;  %v1745_v47 = vshll.u32 %v13433_v15, 16  ;;  %v2063_v53 = vsel %vm12202_vm4, %v2061_v19, %v2062_v29  ;;  %v1738_v55 = vrot.slane %v1736_v40, 4  ;;  %v10125_v57 = vld [vmem:[%s12182_s29 + $0x74] sm:$0x1]  ;;  %v15971_v19 = vld [vmem:[#allocation50_spill] sm:$0xff] }
 0x24a   : > { %4449 = vmatmul.bf16.gmra.mxu1 %v11869_v1  ;;  %v1741_v1 = vrot.slane %v1739_v10, 5  ;;  %v2700_v20 = vunpack.c.l.b16 %v2063_v53 }
 0x24b   : > { %4538 = vmatmul.bf16.gmra.mxu2 %v15967_v8  ;;  %v13439_v2 = vadd.f32 %v4220_v28, %v4132_v21  ;;  %v2060_v28 = vsel %vm12202_vm4, %v10156_v56, %v2059_v45  ;;  %v1747_v8 = vrot.slane %v1745_v47, 5  ;;  %v1755_v56 = vshll.u32 %v10125_v57, 16  ;;  %v10141_v47 = vld [vmem:[%s12182_s29 + $0x6c] sm:$0xe] }
 0x24c   : > { %v3956_v48 = vpop.f32.mrf.mxu3  ;;  %v2699_v46 = vunpack.c.l.b16 %v2060_v28  ;;  %v1742_v33 = vor.u32 %v1741_v1, %v1738_v55  ;;  %v10157_v53 = vrot.slane %v10141_v47, 9  ;;  %v15974_v1 = vld [vmem:[#allocation18_spill] sm:$0xff] }
 0x24d   : > { %15968 = vst [vmem:[#allocation16_spill] sm:$0xff] %v13439_v2  ;;  %v3957_v60 = vadd.f32 %v3956_v48, %v15969_v63  ;;  %v1751_v48 = vrot.slane %v1749_v5, 4  ;;  %v2635_v63 = vunpack.c.l.b16 %v1724_v37  ;;  %v1757_v28 = vrot.slane %v1755_v56, 5 }
 0x24e   : > { %v4223_v18 = vpop.f32.mrf.mxu2  ;;  %v4047_v11 = vpop.f32.mrf.mxu0  ;;  %v13458_v10 = vpack.c.b16 %v2700_v20, %v2699_v46  ;;  %v1743_v37 = vrot.slane %v1742_v33, 4  ;;  %v2069_v20 = vrot.slane %v10125_v57, 5  ;;  %v10102_v46 = vld [vmem:[%s12182_s29 + $0x78] sm:$0xf] }
 0x24f   : > { %v4046_v52 = vadd.f32 %v4045_v49, %v3957_v60  ;;  %v4136_v21 = vpop.f32.mrf.mxu1  ;;  %v1752_v45 = vor.u32 %v1751_v48, %v1747_v8  ;;  %v13456_v40 = vpack.c.b16 %v2636_v41, %v2635_v63  ;;  %v11553_v63 = vld [vmem:[#allocation3 + $0x134] sm:$0xf]  ;;  %v1760_v33 = vshrl.u32 %v10102_v46, 16 }
 0x250   : > { %15973 = vst [vmem:[#allocation88_spill] sm:$0xff] %v13458_v10  ;;  %v1748_v48 = vsel %vm12210_vm5, %v1743_v37, %v1747_v8 }
 0x251   : > { %v4135_v59 = vadd.f32 %v4134_v24, %v4046_v52  ;;  %15972 = vst [vmem:[#allocation50_spill] sm:$0xff] %v13456_v40  ;;  %v2066_v24 = vrot.slane %v13433_v15, 5  ;;  %v1753_v36 = vrot.slane %v1752_v45, 4  ;;  %v11870_v52 = vld [vmem:[%s12182_s29 + $0x48] sm:$0xff]  ;;  %v13468_v15 = vld [vmem:[%s12182_s29 + $0x7c] sm:$0xf] }
 0x252   : > { %v1763_v45 = vshll.u32 %v10102_v46, 16  ;;  %v1769_v8 = vshll.u32 %v13468_v15, 16 }
 0x253   : > { %v13453_v62 = vadd.f32 %v4223_v18, %v4135_v59  ;;  %v10514_v59 = vld [vmem:[#allocation3 + $0x138] sm:$0xf0]  ;;  %v2067_v57 = vsel %vm12202_vm4, %v10157_v53, %v2066_v24 }
 0x254   : > { %v3958_v12 = vpop.f32.mrf.mxu3  ;;  %v10517_v56 = vor.u32 %v11553_v63, %v10514_v59  ;;  %v2701_v53 = vunpack.c.l.b16 %v2067_v57  ;;  %v10126_v59 = vld [vmem:[%s12182_s29 + $0x80] sm:$0x1] }
 0x255   : > { %15970 = vst [vmem:[#allocation48_spill] sm:$0xff] %v13453_v62  ;;  %v3959_v29 = vadd.f32 %v3958_v12, %v15971_v19  ;;  %v2068_v12 = vrot.slane %v2066_v24, 4  ;;  %v15976_v19 = vld [vmem:[#allocation52_spill] sm:$0xff]  ;;  %v15980_v57 = vld [vmem:[#allocation54_spill] sm:$0xff] }
 0x256   : > { %v4225_v49 = vpop.f32.mrf.mxu2  ;;  %v4050_v5 = vpop.f32.mrf.mxu0  ;;  %4598 = vmatpush.bf16.msrb.mxu3 %v10517_v56 }
 0x257   : > { %v4048_v60 = vadd.f32 %v4047_v11, %v3959_v29  ;;  %v4139_v18 = vpop.f32.mrf.mxu1  ;;  %v2070_v47 = vsel %vm12202_vm4, %v2068_v12, %v2069_v20 }
 0x258   : > { %v2702_v46 = vunpack.c.l.b16 %v2070_v47 }
 0x259   : > { %v4137_v55 = vadd.f32 %v4136_v21, %v4048_v60  ;;  %4276 = vmatmul.bf16.gmra.mxu3 %v13456_v40  ;;  %4365 = vmatmul.bf16.gmra.mxu0 %v13458_v10  ;;  %v1758_v21 = vsel %vm12210_vm5, %v1753_v36, %v1757_v28  ;;  %v1773_v60 = vshrl.u32 %v13468_v15, 16 }
 0x25a   : > { %4454 = vmatmul.bf16.gmra.mxu1 %v11870_v52  ;;  %v2638_v24 = vunpack.c.l.b16 %v1758_v21  ;;  %v1762_v52 = vrot.slane %v1760_v33, 4  ;;  %v13488_v56 = vpack.c.b16 %v2702_v46, %v2701_v53  ;;  %v10142_v21 = vld [vmem:[%s12182_s29 + $0x78] sm:$0xe]  ;;  %v13503_v53 = vld [vmem:[%s12182_s29 + $0x88] sm:$0xf] }
 0x25b   : > { %4543 = vmatmul.bf16.gmra.mxu2 %v15974_v1  ;;  %v13470_v11 = vadd.f32 %v4225_v49, %v4137_v55  ;;  %v2637_v55 = vunpack.c.l.b16 %v1748_v48  ;;  %v1765_v1 = vrot.slane %v1763_v45, 5  ;;  %v1779_v48 = vshll.u32 %v10126_v59, 16 }
 0x25c   : > { %v3961_v41 = vpop.f32.mrf.mxu3  ;;  %15979 = vst [vmem:[#allocation90_spill] sm:$0xff] %v13488_v56 }
 0x25d   : > { %15975 = vst [vmem:[#allocation18_spill] sm:$0xff] %v13470_v11  ;;  %v3962_v29 = vadd.f32 %v3961_v41, %v15976_v19  ;;  %v1771_v41 = vrot.slane %v1769_v8, 5  ;;  %v1775_v19 = vrot.slane %v1773_v60, 4  ;;  %v13486_v10 = vpack.c.b16 %v2638_v24, %v2637_v55  ;;  %v10104_v60 = vld [vmem:[%s12182_s29 + $0x84] sm:$0xf] }
 0x25e   : > { %v4228_v49 = vpop.f32.mrf.mxu2  ;;  %v4052_v37 = vpop.f32.mrf.mxu0 }
 0x25f   : > { %v4051_v36 = vadd.f32 %v4050_v5, %v3962_v29  ;;  %v4141_v28 = vpop.f32.mrf.mxu1  ;;  %15978 = vst [vmem:[#allocation89_spill] sm:$0xff] %v13486_v10  ;;  %v1766_v5 = vor.u32 %v1765_v1, %v1762_v52  ;;  %v1776_v45 = vor.u32 %v1775_v19, %v1771_v41  ;;  %v1781_v52 = vrot.slane %v1779_v48, 5 }
 0x260   : > { %v10158_v1 = vrot.slane %v10142_v21, 9  ;;  %v1784_v19 = vshrl.u32 %v10104_v60, 16  ;;  %v1797_v48 = vshrl.u32 %v13503_v53, 16 }
 0x261   : > { %v4140_v63 = vadd.f32 %v4139_v18, %v4051_v36  ;;  %v5332_v18 = vld [vmem:[#allocation2 + $0xc] sm:$0x1]  ;;  %v1767_v46 = vrot.slane %v1766_v5, 4  ;;  %v1793_v5 = vshll.u32 %v13503_v53, 16 }
 0x262   : > { %v5333_v24 = vsel %vm13495_vm8, 0, %v5332_v18  ;;  %v2076_v18 = vrot.slane %v10126_v59, 5 }
 0x263   : > { %v13484_v12 = vadd.f32 %v4228_v49, %v4140_v63  ;;  %v2073_v49 = vrot.slane %v13468_v15, 5  ;;  %5334 = vst [vmem:[#allocation2 + $0xc] sm:$0x1] %v5333_v24  ;;  %v1777_v63 = vrot.slane %v1776_v45, 4  ;;  %v15985_v24 = vld [vmem:[#allocation56_spill] sm:$0xff]  ;;  %v13525_v40 = vrot.slane %v1793_v5, 5 }
 0x264   : > { %v3963_v20 = vpop.f32.mrf.mxu3 }
 0x265   : > { %15977 = vst [vmem:[#allocation52_spill] sm:$0xff] %v13484_v12  ;;  %v3964_v29 = vadd.f32 %v3963_v20, %v15980_v57  ;;  %v1787_v20 = vshll.u32 %v10104_v60, 16  ;;  %v15983_v57 = vld [vmem:[#allocation23_spill] sm:$0xff]  ;;  %v2074_v45 = vsel %vm12202_vm4, %v10158_v1, %v2073_v49  ;;  %v1782_v59 = vsel %vm12210_vm5, %v1777_v63, %v1781_v52 }
 0x266   : > { %v4230_v33 = vpop.f32.mrf.mxu2  ;;  %v4055_v47 = vpop.f32.mrf.mxu0  ;;  %v13518_v60 = vld [vmem:[%s12182_s29 + $0x8c] sm:$0x1] }
 0x267   : > { %v4053_v36 = vadd.f32 %v4052_v37, %v3964_v29  ;;  %v4144_v55 = vpop.f32.mrf.mxu1  ;;  %v11871_v37 = vld [vmem:[%s12182_s29 + $0x54] sm:$0xff]  ;;  %v2075_v29 = vrot.slane %v2073_v49, 4  ;;  %v1803_v52 = vshll.u32 %v13518_v60, 16 }
 0x269   : > { %v4142_v15 = vadd.f32 %v4141_v28, %v4053_v36  ;;  %4281 = vmatmul.bf16.gmra.mxu3 %v13486_v10  ;;  %4370 = vmatmul.bf16.gmra.mxu0 %v13488_v56  ;;  %v1772_v36 = vsel %vm12210_vm5, %v1767_v46, %v1771_v41  ;;  %v1786_v56 = vrot.slane %v1784_v19, 4  ;;  %v1789_v10 = vrot.slane %v1787_v20, 5 }
 0x26a   : > { %4459 = vmatmul.bf16.gmra.mxu1 %v11871_v37  ;;  %v1799_v41 = vrot.slane %v1797_v48, 4  ;;  %v2639_v63 = vunpack.c.l.b16 %v1772_v36  ;;  %v2640_v19 = vunpack.c.l.b16 %v1782_v59  ;;  %v2703_v20 = vunpack.c.l.b16 %v2074_v45  ;;  %v10578_v48 = vld [vmem:[#allocation3 + $0x1b8] sm:$0xf0]  ;;  %v10143_v59 = vld [vmem:[%s12182_s29 + $0x84] sm:$0xe] }
 0x26b   : > { %4548 = vmatmul.bf16.gmra.mxu2 %v15983_v57  ;;  %v13511_v21 = vadd.f32 %v4230_v33, %v4142_v15  ;;  %v2077_v15 = vsel %vm12202_vm4, %v2075_v29, %v2076_v18  ;;  %v11569_v29 = vld [vmem:[#allocation3 + $0x1b4] sm:$0xf]  ;;  %v1790_v27 = vor.u32 %v1789_v10, %v1786_v56  ;;  %v2080_v10 = vrot.slane %v13503_v53, 5  ;;  %v10106_v56 = vld [vmem:[%s12182_s29 + $0x90] sm:$0xf] }
 0x26c   : > { %v3966_v28 = vpop.f32.mrf.mxu3  ;;  %v2704_v5 = vunpack.c.l.b16 %v2077_v15  ;;  %v10581_v51 = vor.u32 %v11569_v29, %v10578_v48  ;;  %v1800_v36 = vor.u32 %v1799_v41, %v13525_v40 }
 0x26d   : > { %15984 = vst [vmem:[#allocation54_spill] sm:$0xff] %v13511_v21  ;;  %v3967_v37 = vadd.f32 %v3966_v28, %v15985_v24  ;;  %v5382_v28 = vld [vmem:[#allocation2 + $0x14] sm:$0x1]  ;;  %v11601_v24 = vld [vmem:[#allocation3 + $0x2b4] sm:$0xf]  ;;  %v1791_v41 = vrot.slane %v1790_v27, 4 }
 0x26e   : > { %v4233_v57 = vpop.f32.mrf.mxu2  ;;  %v4057_v33 = vpop.f32.mrf.mxu0  ;;  %v5383_v12 = vsel %vm13529_vm10, 0, %v5382_v28  ;;  %4687 = vmatpush.bf16.msrb.mxu0 %v10581_v51  ;;  %v13545_v28 = vpack.c.b16 %v2704_v5, %v2703_v20  ;;  %v1801_v29 = vrot.slane %v1800_v36, 4  ;;  %v2082_v48 = vrot.slane %v2080_v10, 4 }
 0x26f   : > { %v4056_v46 = vadd.f32 %v4055_v47, %v3967_v37  ;;  %v4146_v49 = vpop.f32.mrf.mxu1  ;;  %v10709_v47 = vor.u32 %v11601_v24, %v10706_v0  ;;  %v11585_v37 = vld [vmem:[#allocation3 + $0x234] sm:$0xf]  ;;  %5384 = vst [vmem:[#allocation2 + $0x14] sm:$0x1] %v5383_v12  ;;  %v13540_v0 = vpack.c.b16 %v2640_v19, %v2639_v63  ;;  %v10159_v12 = vrot.slane %v10143_v59, 9 }
 0x270   : > { %v10645_v21 = vor.u32 %v11585_v37, %v10642_v58  ;;  %v15990_v58 = vld [vmem:[#allocation57_spill] sm:$0xff]  ;;  %v1811_v19 = vshll.u32 %v10106_v56, 16  ;;  %v2083_v20 = vrot.slane %v13518_v60, 5  ;;  %v1796_v36 = vsel %vm12210_vm5, %v1791_v41, %v13525_v40  ;;  %v13574_v40 = vld [vmem:[%s15791_s3] ss:$0 sm:$0xff] }
 0x271   : > { %v4145_v18 = vadd.f32 %v4144_v55, %v4056_v46  ;;  %4865 = vmatpush.bf16.msrb.mxu2 %v10709_v47  ;;  %15989 = vst [vmem:[#allocation56_spill] sm:$0xff] %v13540_v0  ;;  %v13548_v47 = vld [vmem:[%s12182_s29 + $0x94] sm:$0xf]  ;;  %v15992_v37 = vld [vmem:[#allocation25_spill] sm:$0xff]  ;;  %v2081_v59 = vsel %vm12202_vm4, %v10159_v12, %v2080_v10 }
 0x272   : > { %4776 = vmatpush.bf16.msrb.mxu1 %v10645_v21  ;;  %15991 = vst [vmem:[#allocation57_spill] sm:$0xff] %v13545_v28  ;;  %v1808_v21 = vshrl.u32 %v10106_v56, 16  ;;  %v1821_v5 = vshrl.u32 %v13548_v47, 16  ;;  %v1813_v56 = vrot.slane %v1811_v19, 5  ;;  %v10108_v10 = vld [vmem:[%s12182_s29 + $0x9c] sm:$0xf] }
 0x273   : > { %v13537_v45 = vadd.f32 %v4233_v57, %v4145_v18  ;;  %v1805_v57 = vrot.slane %v1803_v52, 5  ;;  %v5335_v18 = vld [vmem:[#allocation2 + $0x18] sm:$0x1]  ;;  %v1817_v52 = vshll.u32 %v13548_v47, 16  ;;  %v5385_v19 = vld [vmem:[#allocation2 + $0x20] sm:$0x1] }
 0x274   : > { %v3968_v55 = vpop.f32.mrf.mxu3  ;;  %v5336_v53 = vsel %vm13495_vm8, 0, %v5335_v18 }
 0x275   : > { %15988 = vst [vmem:[#allocation23_spill] sm:$0xff] %v13537_v45  ;;  %v3969_v15 = vadd.f32 %v3968_v55, %v15990_v58  ;;  %v1806_v60 = vsel %vm12210_vm5, %v1801_v29, %v1805_v57  ;;  %v1810_v55 = vrot.slane %v1808_v21, 4  ;;  %v1823_v57 = vrot.slane %v1821_v5, 4 }
 0x276   : > { %v4235_v46 = vpop.f32.mrf.mxu2  ;;  %v4336_v24 = vpop.f32.mrf.mxu0  ;;  %5337 = vst [vmem:[#allocation2 + $0x18] sm:$0x1] %v5336_v53  ;;  %v2642_v53 = vunpack.c.l.b16 %v1806_v60  ;;  %v2705_v21 = vunpack.c.l.b16 %v2081_v59  ;;  %v5386_v5 = vsel %vm13529_vm10, 0, %v5385_v19  ;;  %v1835_v60 = vshll.u32 %v10108_v10, 16 }
 0x277   : > { %v4058_v63 = vadd.f32 %v4057_v33, %v3969_v15  ;;  %v4425_v51 = vpop.f32.mrf.mxu1  ;;  %v11872_v33 = vld [vmem:[%s12182_s29 + $0x60] sm:$0xff]  ;;  %v2084_v15 = vsel %vm12202_vm4, %v2082_v48, %v2083_v20  ;;  %5387 = vst [vmem:[#allocation2 + $0x20] sm:$0x1] %v5386_v5 }
 0x278   : > { %v13585_v20 = vld [vmem:[%s15792_s4] ss:$0 sm:$0xff] }
 0x279   : > { %v4147_v27 = vadd.f32 %v4146_v49, %v4058_v63  ;;  %4286 = vmatmul.bf16.gmra.mxu3 %v13540_v0  ;;  %4375 = vmatmul.bf16.gmra.mxu0 %v13545_v28  ;;  %v2641_v63 = vunpack.c.l.b16 %v1796_v36  ;;  %v1832_v36 = vshrl.u32 %v10108_v10, 16 }
 0x27a   : > { %4464 = vmatmul.bf16.gmra.mxu1 %v11872_v33  ;;  %v13590_v33 = vld [vmem:[%s12182_s29 + $0xa0] sm:$0xf] }
 0x27b   : > { %4553 = vmatmul.bf16.gmra.mxu2 %v15992_v37  ;;  %v13564_v49 = vadd.f32 %v4235_v46, %v4147_v27  ;;  %v13576_v46 = vrot.slane %v1817_v52, 5  ;;  %v2706_v52 = vunpack.c.l.b16 %v2084_v15  ;;  %v2087_v37 = vrot.slane %v13548_v47, 5 }
 0x27c   : > { %v4247_v58 = vpop.f32.mrf.mxu3  ;;  %v1841_v15 = vshll.u32 %v13590_v33, 16  ;;  %v1845_v19 = vshrl.u32 %v13590_v33, 16  ;;  %v1834_v0 = vrot.slane %v1832_v36, 4 }
 0x27d   : > { %15993 = vst [vmem:[#allocation25_spill] sm:$0xff] %v13564_v49  ;;  %v4248_v18 = vadd.f32 %v4247_v58, %v13042_v16  ;;  %v10128_v16 = vld [vmem:[%s12182_s29 + $0x98] sm:$0x1]  ;;  %v1824_v59 = vor.u32 %v1823_v57, %v13576_v46  ;;  %v1837_v57 = vrot.slane %v1835_v60, 5 }
 0x27e   : > { %v4514_v41 = vpop.f32.mrf.mxu2  ;;  %v4338_v12 = vpop.f32.mrf.mxu0  ;;  %v1827_v58 = vshll.u32 %v10128_v16, 16  ;;  %v2090_v5 = vrot.slane %v10128_v16, 5  ;;  %v1847_v16 = vrot.slane %v1845_v19, 4  ;;  %v15998_v19 = vld [vmem:[#allocation27_spill] sm:$0xff] }
 0x27f   : > { %v13579_v29 = vadd.f32 %v4514_v41, %v4425_v51  ;;  %v4337_v48 = vadd.f32 %v4336_v24, %v4248_v18  ;;  %v4427_v27 = vpop.f32.mrf.mxu1  ;;  %v1814_v51 = vor.u32 %v1813_v56, %v1810_v55  ;;  %v10144_v18 = vld [vmem:[%s12182_s29 + $0x90] sm:$0xe]  ;;  %v13596_v41 = vpack.c.b16 %v2642_v53, %v2641_v63 }
 0x280   : > { %v13601_v56 = vpack.c.b16 %v2706_v52, %v2705_v21  ;;  %v10160_v28 = vrot.slane %v10144_v18, 9  ;;  %v1825_v49 = vrot.slane %v1824_v59, 4  ;;  %v1829_v45 = vrot.slane %v1827_v58, 5  ;;  %v13607_v21 = vld [vmem:[%s12182_s29 + $0xa4] sm:$0x1] }
 0x281   : > { %15994 = vst [vmem:[#allocation91_spill] sm:$0xff] %v13579_v29  ;;  %v5221_v24 = vmul.f32 %v13574_v40, %v4337_v48  ;;  %v1815_v47 = vrot.slane %v1814_v51, 4  ;;  %v2089_v48 = vrot.slane %v2087_v37, 4  ;;  %v13609_v52 = vrot.slane %v1841_v15, 5  ;;  %v11551_v58 = vld [vmem:[#allocation3 + $0x124] sm:$0xf] }
 0x282   : > { %15995 = vst [vmem:[#allocation92_spill] sm:$0xff] %v13596_v41  ;;  %v1838_v59 = vor.u32 %v1837_v57, %v1834_v0  ;;  %v10506_v15 = vld [vmem:[#allocation3 + $0x128] sm:$0xf0] }
 0x283   : > { %v5257_v55 = vadd.f32 %v13585_v20, %v5221_v24  ;;  %15996 = vst [vmem:[#allocation93_spill] sm:$0xff] %v13601_v56  ;;  %v5338_v24 = vld [vmem:[#allocation2 + $0x24] sm:$0x1]  ;;  %v1820_v36 = vsel %vm12210_vm5, %v1815_v47, %v13576_v46  ;;  %v2091_v60 = vsel %vm12202_vm4, %v2089_v48, %v2090_v5  ;;  %v1830_v46 = vsel %vm12210_vm5, %v1825_v49, %v1829_v45  ;;  %v13633_v49 = vld [vmem:[%s12182_s29 + $0x9c] sm:$0xe] }
 0x284   : > { %v4249_v10 = vpop.f32.mrf.mxu3  ;;  %v2643_v0 = vunpack.c.l.b16 %v1820_v36  ;;  %v1848_v47 = vor.u32 %v1847_v16, %v13609_v52  ;;  %v13641_v16 = vrot.slane %v1838_v59, 4  ;;  %v10110_v36 = vld [vmem:[%s12182_s29 + $0xa8] sm:$0xf]  ;;  %v10161_v59 = vrot.slane %v13633_v49, 9  ;;  %v11567_v49 = vld [vmem:[#allocation3 + $0x1a4] sm:$0xf] }
 0x285   : > { %v5289_v29 = vmax.f32 %v5257_v55, 0.0  ;;  %v4250_v63 = vadd.f32 %v4249_v10, %v13059_v44  ;;  %v5339_v44 = vsel %vm13495_vm8, 0, %v5338_v24  ;;  %v10509_v55 = vor.u32 %v11551_v58, %v10506_v15 }
 0x286   : > { %v4516_v53 = vpop.f32.mrf.mxu2  ;;  %v4341_v62 = vpop.f32.mrf.mxu0  ;;  %5340 = vst [vmem:[#allocation2 + $0x24] sm:$0x1] %v5339_v44  ;;  %v2644_v24 = vunpack.c.l.b16 %v1830_v46  ;;  %v5388_v46 = vld [vmem:[#allocation2 + $0x2c] sm:$0x1] }
 0x287   : > { %v13604_v11 = vadd.f32 %v4516_v53, %v4427_v27  ;;  %v5430_v51 = vpack.c.bf16 %v5289_v29, %v5289_v29  ;;  %v4339_v18 = vadd.f32 %v4338_v12, %v4250_v63  ;;  %v4430_v2 = vpop.f32.mrf.mxu1  ;;  %v2088_v27 = vsel %vm12202_vm4, %v10160_v28, %v2087_v37  ;;  %v11873_v37 = vld [vmem:[%s12182_s29 + $0x6c] sm:$0xff]  ;;  %4599 = vmatpush.bf16.msrb.mxu3 %v10509_v55 }
 0x288   : > { %v1851_v28 = vshll.u32 %v13607_v21, 16  ;;  %v2707_v45 = vunpack.c.l.b16 %v2088_v27  ;;  %v5786_v63 = vld [vmem:[#allocation2 + $0xc] sm:$0xf] }
 0x289   : > { %15997 = vst [vmem:[#allocation94_spill] sm:$0xff] %v13604_v11  ;;  %v5465_v29 = vshrl.u32 %v5430_v51, 16  ;;  %v5222_v12 = vmul.f32 %v13574_v40, %v4339_v18  ;;  %4291 = vmatmul.bf16.gmra.mxu3 %v13596_v41  ;;  %4380 = vmatmul.bf16.gmra.mxu0 %v13601_v56  ;;  %v5468_v10 = vshll.u32 %v5430_v51, 16  ;;  %v2708_v18 = vunpack.c.l.b16 %v2091_v60  ;;  %v10570_v41 = vld [vmem:[#allocation3 + $0x1a8] sm:$0xf0] }
 0x28a   : > { %4469 = vmatmul.bf16.gmra.mxu1 %v11873_v37  ;;  %v13647_v58 = vrot.slane %v1851_v28, 5  ;;  %v13651_v60 = vrot.slane %v1848_v47, 4  ;;  %v13659_v28 = vld [vmem:[%s12182_s29 + $0xac] sm:$0xf]  ;;  %v13662_v11 = vpack.c.b16 %v2644_v24, %v2643_v0  ;;  %v5790_v0 = vld [vmem:[#allocation2 + $0x14] sm:$0x1] }
 0x28b   : > { %4558 = vmatmul.bf16.gmra.mxu2 %v15998_v19  ;;  %v13629_v5 = vrot.slane %v5465_v29, 7  ;;  %v5258_v48 = vadd.f32 %v13585_v20, %v5222_v12  ;;  %v1856_v19 = vshrl.u32 %v10110_v36, 16 }
 0x28c   : > { %v4252_v53 = vpop.f32.mrf.mxu3  ;;  %16002 = vst [vmem:[#allocation95_spill] sm:$0xff] %v13662_v11 }
 0x28d   : > { %v5470_v44 = vor.u32 %v5468_v10, %v13629_v5  ;;  %v5290_v27 = vmax.f32 %v5258_v48, 0.0  ;;  %v4253_v29 = vadd.f32 %v4252_v53, %v13073_v22  ;;  %v5389_v22 = vsel %vm13529_vm10, 0, %v5388_v46  ;;  %v10698_v53 = vld [vmem:[#allocation3 + $0x2a8] sm:$0xf0] }
 0x28e   : > { %v4519_v12 = vpop.f32.mrf.mxu2  ;;  %v4343_v37 = vpop.f32.mrf.mxu0  ;;  %5390 = vst [vmem:[#allocation2 + $0x2c] sm:$0x1] %v5389_v22 }
 0x28f   : > { %v13649_v15 = vadd.f32 %v4519_v12, %v4430_v2  ;;  %v5787_v55 = vsel %vm13637_vm13, %v5470_v44, %v5786_v63  ;;  %v5431_v10 = vpack.c.bf16 %v5290_v27, %v5290_v27  ;;  %v4342_v51 = vadd.f32 %v4341_v62, %v4253_v29  ;;  %v4432_v48 = vpop.f32.mrf.mxu1  ;;  %v11599_v2 = vld [vmem:[#allocation3 + $0x2a4] sm:$0xf]  ;;  %v10634_v27 = vld [vmem:[#allocation3 + $0x228] sm:$0xf0] }
 0x290   : > { %5788 = vst [vmem:[#allocation2 + $0xc] sm:$0xf] %v5787_v55  ;;  %v10701_v56 = vor.u32 %v11599_v2, %v10698_v53  ;;  %v13664_v63 = vpack.c.b16 %v2708_v18, %v2707_v45  ;;  %v10573_v62 = vor.u32 %v11567_v49, %v10570_v41  ;;  %v11583_v44 = vld [vmem:[#allocation3 + $0x224] sm:$0xf]  ;;  %v16006_v41 = vrot.slane %v13590_v33, 5  ;;  %v16008_v33 = vld [vmem:[#allocation31_spill] sm:$0xff] }
 0x291   : > { %16001 = vst [vmem:[#allocation27_spill] sm:$0xff] %v13649_v15  ;;  %v5473_v12 = vshrl.u32 %v5431_v10, 16  ;;  %v5223_v47 = vmul.f32 %v13574_v40, %v4342_v51  ;;  %v1859_v15 = vshll.u32 %v10110_v36, 16  ;;  %v5476_v46 = vshll.u32 %v5431_v10, 16  ;;  %v5341_v49 = vld [vmem:[#allocation2 + $0x30] sm:$0x1] }
 0x292   : > { %16003 = vst [vmem:[#allocation96_spill] sm:$0xff] %v13664_v63  ;;  %4866 = vmatpush.bf16.msrb.mxu2 %v10701_v56  ;;  %v10637_v43 = vor.u32 %v11583_v44, %v10634_v27  ;;  %v5471_v51 = vrot.slane %v13629_v5, 4  ;;  %4688 = vmatpush.bf16.msrb.mxu0 %v10573_v62  ;;  %v2096_v24 = vrot.slane %v16006_v41, 4  ;;  %v2097_v18 = vrot.slane %v13607_v21, 5 }
 0x293   : > { %v5475_v29 = vrot.slane %v5473_v12, 7  ;;  %v5259_v55 = vadd.f32 %v13585_v20, %v5223_v47  ;;  %v1865_v10 = vshll.u32 %v13659_v28, 16  ;;  %v1858_v44 = vrot.slane %v1856_v19, 4 }
 0x294   : > { %v4254_v45 = vpop.f32.mrf.mxu3  ;;  %4777 = vmatpush.bf16.msrb.mxu1 %v10637_v43  ;;  %v1861_v62 = vrot.slane %v1859_v15, 5  ;;  %v1869_v27 = vshrl.u32 %v13659_v28, 16  ;;  %v1844_v43 = vsel %vm12210_vm5, %v13641_v16, %v13609_v52  ;;  %v1854_v15 = vsel %vm12210_vm5, %v13651_v60, %v13647_v58  ;;  %v11874_v16 = vld [vmem:[%s12182_s29 + $0x78] sm:$0xff]  ;;  %v13708_v58 = vld [vmem:[%s12182_s29 + $0xb0] sm:$0x1] }
 0x295   : > { %v5478_v56 = vor.u32 %v5476_v46, %v5475_v29  ;;  %v5480_v22 = vrot.slane %v5475_v29, 4  ;;  %v5291_v2 = vmax.f32 %v5259_v55, 0.0  ;;  %v4255_v5 = vadd.f32 %v4254_v45, %v13087_v42 }
 0x296   : > { %v4521_v53 = vpop.f32.mrf.mxu2  ;;  %v4346_v47 = vpop.f32.mrf.mxu0  ;;  %v16007_v19 = vmov %v16006_v41  ;;  %v2098_v52 = vsel %vm12202_vm4, %v2096_v24, %v2097_v18  ;;  %v1862_v60 = vor.u32 %v1861_v62, %v1858_v44  ;;  %v1871_v45 = vrot.slane %v1869_v27, 4  ;;  %v16009_v44 = vld [vmem:[#allocation64_spill] sm:$0xff] }
 0x297   : > { %v13679_v12 = vadd.f32 %v4521_v53, %v4432_v48  ;;  %v5479_v21 = vsel %vm13670_vm14, %v5471_v51, %v5478_v56  ;;  %v5791_v29 = vsel %vm13495_vm8, %v5480_v22, %v5790_v0  ;;  %v5432_v46 = vpack.c.bf16 %v5291_v2, %v5291_v2  ;;  %v4435_v42 = vpop.f32.mrf.mxu1  ;;  %v5793_v2 = vld [vmem:[#allocation2 + $0x18] sm:$0xf] }
 0x298   : > { %v4344_v55 = vadd.f32 %v4343_v37, %v4255_v5  ;;  %5789 = vst [vmem:[#allocation2 + $0x10] sm:$0xf] %v5479_v21  ;;  %v2095_v48 = vsel %vm12202_vm4, %v10161_v59, %v16007_v19  ;;  %v5342_v37 = vsel %vm13495_vm8, 0, %v5341_v49  ;;  %v13710_v59 = vrot.slane %v1865_v10, 5 }
 0x299   : > { %5792 = vst [vmem:[#allocation2 + $0x14] sm:$0x1] %v5791_v29  ;;  %v5482_v51 = vshrl.u32 %v5432_v46, 16  ;;  %4296 = vmatmul.bf16.gmra.mxu3 %v13662_v11  ;;  %4385 = vmatmul.bf16.gmra.mxu0 %v13664_v63  ;;  %v5485_v56 = vshll.u32 %v5432_v46, 16  ;;  %v2645_v24 = vunpack.c.l.b16 %v1844_v43  ;;  %v2646_v18 = vunpack.c.l.b16 %v1854_v15  ;;  %v10146_v15 = vld [vmem:[%s12182_s29 + $0xa8] sm:$0xe] }
 0x29a   : > { %v5224_v0 = vmul.f32 %v13574_v40, %v4344_v55  ;;  %4474 = vmatmul.bf16.gmra.mxu1 %v11874_v16  ;;  %5343 = vst [vmem:[#allocation2 + $0x30] sm:$0x1] %v5342_v37  ;;  %v2709_v53 = vunpack.c.l.b16 %v2095_v48  ;;  %v2710_v49 = vunpack.c.l.b16 %v2098_v52  ;;  %v1875_v27 = vshll.u32 %v13708_v58, 16  ;;  %v10112_v55 = vld [vmem:[%s12182_s29 + $0xb4] sm:$0xf] }
 0x29b   : > { %4563 = vmatmul.bf16.gmra.mxu2 %v16008_v33  ;;  %v13712_v41 = vrot.slane %v5482_v51, 7  ;;  %v5391_v37 = vld [vmem:[#allocation2 + $0x38] sm:$0x1]  ;;  %v13721_v51 = vrot.slane %v1862_v60, 4  ;;  %v1872_v43 = vor.u32 %v1871_v45, %v13710_v59  ;;  %v2101_v60 = vrot.slane %v13659_v28, 5 }
 0x29c   : > { %v5260_v22 = vadd.f32 %v13585_v20, %v5224_v0  ;;  %v4257_v5 = vpop.f32.mrf.mxu3  ;;  %v5392_v33 = vsel %vm13529_vm10, 0, %v5391_v37  ;;  %v1880_v45 = vshrl.u32 %v10112_v55, 16  ;;  %v5797_v37 = vld [vmem:[#allocation2 + $0x20] sm:$0x1] }
 0x29d   : > { %v5487_v21 = vor.u32 %v5485_v56, %v13712_v41  ;;  %v4258_v10 = vadd.f32 %v4257_v5, %v16009_v44  ;;  %v13730_v56 = vld [vmem:[%s12182_s29 + $0xb8] sm:$0xf]  ;;  %5393 = vst [vmem:[#allocation2 + $0x38] sm:$0x1] %v5392_v33 }
 0x29e   : > { %v5292_v29 = vmax.f32 %v5260_v22, 0.0  ;;  %v4524_v62 = vpop.f32.mrf.mxu2  ;;  %v4348_v19 = vpop.f32.mrf.mxu0  ;;  %v13734_v22 = vpack.c.b16 %v2710_v49, %v2709_v53  ;;  %v1893_v49 = vshrl.u32 %v13730_v56, 16 }
 0x29f   : > { %v13719_v46 = vadd.f32 %v4524_v62, %v4435_v42  ;;  %v5794_v48 = vsel %vm13637_vm13, %v5487_v21, %v5793_v2  ;;  %v4347_v52 = vadd.f32 %v4346_v47, %v4258_v10  ;;  %v4437_v16 = vpop.f32.mrf.mxu1  ;;  %v13732_v42 = vpack.c.b16 %v2646_v18, %v2645_v24 }
 0x2a0   : > { %v5433_v0 = vpack.c.bf16 %v5292_v29, %v5292_v29  ;;  %5795 = vst [vmem:[#allocation2 + $0x18] sm:$0xf] %v5794_v48  ;;  %v1877_v2 = vrot.slane %v1875_v27, 5  ;;  %v10162_v47 = vrot.slane %v10146_v15, 9  ;;  %v1868_v21 = vsel %vm12210_vm5, %v13721_v51, %v13710_v59 }
 0x2a1   : > { %16010 = vst [vmem:[#allocation31_spill] sm:$0xff] %v13732_v42  ;;  %v5225_v44 = vmul.f32 %v13574_v40, %v4347_v52  ;;  %v1873_v29 = vrot.slane %v1872_v43, 4  ;;  %v1883_v10 = vshll.u32 %v10112_v55, 16  ;;  %v1889_v24 = vshll.u32 %v13730_v56, 16 }
 0x2a2   : > { %16011 = vst [vmem:[#allocation64_spill] sm:$0xff] %v13734_v22  ;;  %v5490_v5 = vshrl.u32 %v5433_v0, 16  ;;  %v5493_v53 = vshll.u32 %v5433_v0, 16  ;;  %v5488_v62 = vrot.slane %v13712_v41, 4  ;;  %v2103_v15 = vrot.slane %v2101_v60, 4 }
 0x2a3   : > { %v5261_v28 = vadd.f32 %v13585_v20, %v5225_v44  ;;  %v2104_v48 = vrot.slane %v13708_v58, 5  ;;  %v1882_v52 = vrot.slane %v1880_v45, 4  ;;  %v5344_v44 = vld [vmem:[#allocation2 + $0x3c] sm:$0x1]  ;;  %v1885_v63 = vrot.slane %v1883_v10, 5 }
 0x2a4   : > { %v5492_v18 = vrot.slane %v5490_v5, 7  ;;  %v4259_v27 = vpop.f32.mrf.mxu3  ;;  %v13750_v41 = vrot.slane %v1889_v24, 5  ;;  %v1895_v11 = vrot.slane %v1893_v49, 4  ;;  %v2102_v10 = vsel %vm12202_vm4, %v10162_v47, %v2101_v60  ;;  %v13766_v49 = vld [vmem:[%s12182_s29 + $0xb4] sm:$0xe]  ;;  %v16012_v60 = vld [vmem:[#allocation33_spill] sm:$0xff] }
 0x2a5   : > { %v5293_v55 = vmax.f32 %v5261_v28, 0.0  ;;  %v4260_v51 = vadd.f32 %v4259_v27, %v13118_v32  ;;  %v13757_v28 = vld [vmem:[%s12182_s29 + $0xbc] sm:$0x1]  ;;  %v5345_v24 = vsel %vm13495_vm8, 0, %v5344_v44  ;;  %v2647_v47 = vunpack.c.l.b16 %v1868_v21  ;;  %v10498_v27 = vld [vmem:[#allocation3 + $0x118] sm:$0xf0] }
 0x2a6   : > { %v5495_v33 = vor.u32 %v5493_v53, %v5492_v18  ;;  %v5497_v59 = vrot.slane %v5492_v18, 4  ;;  %v4526_v43 = vpop.f32.mrf.mxu2  ;;  %v4351_v5 = vpop.f32.mrf.mxu0  ;;  %5346 = vst [vmem:[#allocation2 + $0x3c] sm:$0x1] %v5345_v24 }
 0x2a7   : > { %v13748_v0 = vadd.f32 %v4526_v43, %v4437_v16  ;;  %v5434_v18 = vpack.c.bf16 %v5293_v55, %v5293_v55  ;;  %v4349_v53 = vadd.f32 %v4348_v19, %v4260_v51  ;;  %v4440_v32 = vpop.f32.mrf.mxu1  ;;  %v1878_v16 = vsel %vm12210_vm5, %v1873_v29, %v1877_v2  ;;  %v11549_v2 = vld [vmem:[#allocation3 + $0x114] sm:$0xf]  ;;  %v11875_v29 = vld [vmem:[%s12182_s29 + $0x84] sm:$0xff] }
 0x2a8   : > { %v5496_v58 = vsel %vm13670_vm14, %v5488_v62, %v5495_v33  ;;  %v5798_v45 = vsel %vm13495_vm8, %v5497_v59, %v5797_v37  ;;  %v2105_v19 = vsel %vm12202_vm4, %v2103_v15, %v2104_v48  ;;  %v1886_v33 = vor.u32 %v1885_v63, %v1882_v52  ;;  %v5800_v15 = vld [vmem:[#allocation2 + $0x24] sm:$0xf] }
 0x2a9   : > { %5796 = vst [vmem:[#allocation2 + $0x1c] sm:$0xf] %v5496_v58  ;;  %v5499_v62 = vshrl.u32 %v5434_v18, 16  ;;  %v5226_v37 = vmul.f32 %v13574_v40, %v4349_v53  ;;  %4301 = vmatmul.bf16.gmra.mxu3 %v13732_v42  ;;  %4390 = vmatmul.bf16.gmra.mxu0 %v13734_v22  ;;  %v1896_v59 = vor.u32 %v1895_v11, %v13750_v41  ;;  %v1899_v55 = vshll.u32 %v13757_v28, 16 }
 0x2aa   : > { %5799 = vst [vmem:[#allocation2 + $0x20] sm:$0x1] %v5798_v45  ;;  %4479 = vmatmul.bf16.gmra.mxu1 %v11875_v29  ;;  %v5502_v43 = vshll.u32 %v5434_v18, 16  ;;  %v10501_v58 = vor.u32 %v11549_v2, %v10498_v27  ;;  %v2648_v45 = vunpack.c.l.b16 %v1878_v16  ;;  %v2711_v53 = vunpack.c.l.b16 %v2102_v10  ;;  %v5394_v2 = vld [vmem:[#allocation2 + $0x44] sm:$0x1] }
 0x2ab   : > { %4568 = vmatmul.bf16.gmra.mxu2 %v16012_v60  ;;  %v13777_v51 = vrot.slane %v5499_v62, 7  ;;  %v5262_v44 = vadd.f32 %v13585_v20, %v5226_v37  ;;  %v2712_v29 = vunpack.c.l.b16 %v2105_v19  ;;  %v2108_v62 = vrot.slane %v13730_v56, 5 }
 0x2ac   : > { %v4262_v48 = vpop.f32.mrf.mxu3  ;;  %4600 = vmatpush.bf16.msrb.mxu3 %v10501_v58  ;;  %v13786_v60 = vrot.slane %v1886_v33, 4  ;;  %v13788_v16 = vrot.slane %v1896_v59, 4  ;;  %v13790_v10 = vrot.slane %v1899_v55, 5  ;;  %v5395_v56 = vsel %vm13529_vm10, 0, %v5394_v2  ;;  %v11565_v55 = vld [vmem:[#allocation3 + $0x194] sm:$0xf] }
 0x2ad   : > { %v5504_v24 = vor.u32 %v5502_v43, %v13777_v51  ;;  %v5294_v63 = vmax.f32 %v5262_v44, 0.0  ;;  %v4263_v11 = vadd.f32 %v4262_v48, %v13134_v50  ;;  %v10690_v44 = vld [vmem:[#allocation3 + $0x298] sm:$0xf0]  ;;  %v13798_v21 = vpack.c.b16 %v2648_v45, %v2647_v47  ;;  %5396 = vst [vmem:[#allocation2 + $0x44] sm:$0x1] %v5395_v56 }
 0x2ae   : > { %v4529_v52 = vpop.f32.mrf.mxu2  ;;  %v4353_v37 = vpop.f32.mrf.mxu0  ;;  %v2110_v47 = vrot.slane %v2108_v62, 4  ;;  %v2111_v45 = vrot.slane %v13757_v28, 5 }
 0x2af   : > { %v13784_v18 = vadd.f32 %v4529_v52, %v4440_v32  ;;  %v5801_v19 = vsel %vm13637_vm13, %v5504_v24, %v5800_v15  ;;  %v5435_v27 = vpack.c.bf16 %v5294_v63, %v5294_v63  ;;  %v4352_v50 = vadd.f32 %v4351_v5, %v4263_v11  ;;  %v4442_v43 = vpop.f32.mrf.mxu1  ;;  %v11597_v32 = vld [vmem:[#allocation3 + $0x294] sm:$0xf]  ;;  %v10114_v52 = vld [vmem:[%s12182_s29 + $0xc0] sm:$0xf]  ;;  %v10562_v5 = vld [vmem:[#allocation3 + $0x198] sm:$0xf0] }
 0x2b0   : > { %5802 = vst [vmem:[#allocation2 + $0x24] sm:$0xf] %v5801_v19  ;;  %v10693_v48 = vor.u32 %v11597_v32, %v10690_v44  ;;  %v13800_v15 = vpack.c.b16 %v2712_v29, %v2711_v53  ;;  %v11581_v24 = vld [vmem:[#allocation3 + $0x214] sm:$0xf]  ;;  %v10626_v63 = vld [vmem:[#allocation3 + $0x218] sm:$0xf0]  ;;  %v10565_v19 = vor.u32 %v11565_v55, %v10562_v5 }
 0x2b1   : > { %16013 = vst [vmem:[#allocation33_spill] sm:$0xff] %v13784_v18  ;;  %v5507_v58 = vshrl.u32 %v5435_v27, 16  ;;  %v5510_v33 = vshll.u32 %v5435_v27, 16  ;;  %v5227_v59 = vmul.f32 %v13574_v40, %v4352_v50  ;;  %v10629_v22 = vor.u32 %v11581_v24, %v10626_v63  ;;  %v13804_v27 = vld [vmem:[%s12182_s29 + $0xc4] sm:$0xf] }
 0x2b2   : > { %16014 = vst [vmem:[#allocation97_spill] sm:$0xff] %v13800_v15  ;;  %4867 = vmatpush.bf16.msrb.mxu2 %v10693_v48  ;;  %v5505_v50 = vrot.slane %v13777_v51, 4  ;;  %v5804_v32 = vld [vmem:[#allocation2 + $0x2c] sm:$0x1]  ;;  %v1904_v53 = vshrl.u32 %v10114_v52, 16  ;;  %4689 = vmatpush.bf16.msrb.mxu0 %v10565_v19  ;;  %v1907_v5 = vshll.u32 %v10114_v52, 16 }
 0x2b3   : > { %v5509_v11 = vrot.slane %v5507_v58, 7  ;;  %v5263_v2 = vadd.f32 %v13585_v20, %v5227_v59  ;;  %4778 = vmatpush.bf16.msrb.mxu1 %v10629_v22  ;;  %v5347_v55 = vld [vmem:[#allocation2 + $0x48] sm:$0x1]  ;;  %v1913_v51 = vshll.u32 %v13804_v27, 16  ;;  %v1917_v24 = vshrl.u32 %v13804_v27, 16 }
 0x2b4   : > { %v4264_v44 = vpop.f32.mrf.mxu3  ;;  %v1892_v22 = vsel %vm12210_vm5, %v13786_v60, %v13750_v41  ;;  %v1902_v41 = vsel %vm12210_vm5, %v13788_v16, %v13790_v10 }
 0x2b5   : > { %v5512_v29 = vor.u32 %v5510_v33, %v5509_v11  ;;  %v5514_v42 = vrot.slane %v5509_v11, 4  ;;  %v5295_v18 = vmax.f32 %v5263_v2, 0.0  ;;  %v4265_v58 = vadd.f32 %v4264_v44, %v13152_v39 }
 0x2b6   : > { %v4531_v59 = vpop.f32.mrf.mxu2  ;;  %v4356_v56 = vpop.f32.mrf.mxu0  ;;  %v5348_v2 = vsel %vm13495_vm8, 0, %v5347_v55  ;;  %v13836_v60 = vrot.slane %v1913_v51, 5  ;;  %v2649_v10 = vunpack.c.l.b16 %v1892_v22  ;;  %v2650_v51 = vunpack.c.l.b16 %v1902_v41 }
 0x2b7   : > { %v13809_v48 = vadd.f32 %v4531_v59, %v4442_v43  ;;  %v5513_v28 = vsel %vm13670_vm14, %v5505_v50, %v5512_v29  ;;  %v5805_v33 = vsel %vm13495_vm8, %v5514_v42, %v5804_v32  ;;  %v5436_v39 = vpack.c.bf16 %v5295_v18, %v5295_v18  ;;  %v4445_v11 = vpop.f32.mrf.mxu1  ;;  %v16016_v18 = vld [vmem:[#allocation13_spill] sm:$0xff]  ;;  %5349 = vst [vmem:[#allocation2 + $0x48] sm:$0x1] %v5348_v2  ;;  %v5807_v59 = vld [vmem:[#allocation2 + $0x30] sm:$0xf] }
 0x2b8   : > { %v4354_v63 = vadd.f32 %v4353_v37, %v4265_v58  ;;  %5803 = vst [vmem:[#allocation2 + $0x28] sm:$0xf] %v5513_v28  ;;  %v16015_v43 = vrot.slane %v13766_v49, 9  ;;  %v11876_v49 = vld [vmem:[%s12182_s29 + $0x90] sm:$0xff]  ;;  %v1909_v37 = vrot.slane %v1907_v5, 5  ;;  %v1919_v50 = vrot.slane %v1917_v24, 4 }
 0x2b9   : > { %5806 = vst [vmem:[#allocation2 + $0x2c] sm:$0x1] %v5805_v33  ;;  %v5516_v19 = vshrl.u32 %v5436_v39, 16  ;;  %4306 = vmatmul.bf16.gmra.mxu3 %v13798_v21  ;;  %4395 = vmatmul.bf16.gmra.mxu0 %v13800_v15  ;;  %v5519_v44 = vshll.u32 %v5436_v39, 16  ;;  %v2112_v58 = vsel %vm12202_vm4, %v2110_v47, %v2111_v45  ;;  %v5397_v2 = vld [vmem:[#allocation2 + $0x50] sm:$0x1] }
 0x2ba   : > { %v2109_v52 = vsel %vm12202_vm4, %v16015_v43, %v2108_v62  ;;  %v5228_v42 = vmul.f32 %v13574_v40, %v4354_v63  ;;  %4484 = vmatmul.bf16.gmra.mxu1 %v11876_v49  ;;  %v1906_v62 = vrot.slane %v1904_v53, 4  ;;  %v10132_v63 = vld [vmem:[%s12182_s29 + $0xc8] sm:$0x1]  ;;  %v2714_v43 = vunpack.c.l.b16 %v2112_v58  ;;  %v10148_v49 = vld [vmem:[%s12182_s29 + $0xc0] sm:$0xe] }
 0x2bb   : > { %4573 = vmatmul.bf16.gmra.mxu2 %v16016_v18  ;;  %v5518_v32 = vrot.slane %v5516_v19, 7  ;;  %v2713_v55 = vunpack.c.l.b16 %v2109_v52  ;;  %v1920_v47 = vor.u32 %v1919_v50, %v13836_v60  ;;  %v1923_v41 = vshll.u32 %v10132_v63, 16 }
 0x2bc   : > { %v5264_v29 = vadd.f32 %v13585_v20, %v5228_v42  ;;  %v4267_v16 = vpop.f32.mrf.mxu3  ;;  %v1910_v19 = vor.u32 %v1909_v37, %v1906_v62  ;;  %v13853_v62 = vpack.c.b16 %v2650_v51, %v2649_v10 }
 0x2bd   : > { %v5521_v28 = vor.u32 %v5519_v44, %v5518_v32  ;;  %v4268_v53 = vadd.f32 %v4267_v16, %v13171_v3  ;;  %v5398_v3 = vsel %vm13529_vm10, 0, %v5397_v2  ;;  %v13855_v37 = vpack.c.b16 %v2714_v43, %v2713_v55 }
 0x2be   : > { %v5296_v33 = vmax.f32 %v5264_v29, 0.0  ;;  %v4534_v5 = vpop.f32.mrf.mxu2  ;;  %v4358_v39 = vpop.f32.mrf.mxu0  ;;  %5399 = vst [vmem:[#allocation2 + $0x50] sm:$0x1] %v5398_v3  ;;  %v1911_v50 = vrot.slane %v1910_v19, 4  ;;  %v10164_v29 = vrot.slane %v10148_v49, 9  ;;  %v1921_v16 = vrot.slane %v1920_v47, 4 }
 0x2bf   : > { %v13843_v24 = vadd.f32 %v4534_v5, %v4445_v11  ;;  %v5808_v45 = vsel %vm13637_vm13, %v5521_v28, %v5807_v59  ;;  %v4357_v52 = vadd.f32 %v4356_v56, %v4268_v53  ;;  %v4447_v42 = vpop.f32.mrf.mxu1  ;;  %v2115_v11 = vrot.slane %v13804_v27, 5  ;;  %16017 = vst [vmem:[#allocation13_spill] sm:$0xff] %v13853_v62  ;;  %v10116_v19 = vld [vmem:[%s12182_s29 + $0xcc] sm:$0xf]  ;;  %v5350_v47 = vld [vmem:[#allocation2 + $0x54] sm:$0x1] }
 0x2c0   : > { %v5437_v22 = vpack.c.bf16 %v5296_v33, %v5296_v33  ;;  %5809 = vst [vmem:[#allocation2 + $0x30] sm:$0xf] %v5808_v45  ;;  %v5522_v28 = vrot.slane %v5518_v32, 4  ;;  %v5811_v33 = vld [vmem:[#allocation2 + $0x38] sm:$0x1]  ;;  %v1925_v27 = vrot.slane %v1923_v41, 5  ;;  %v1916_v32 = vsel %vm12210_vm5, %v1911_v50, %v13836_v60 }
 0x2c1   : > { %v5229_v44 = vmul.f32 %v13574_v40, %v4357_v52  ;;  %16018 = vst [vmem:[#allocation98_spill] sm:$0xff] %v13855_v37  ;;  %v2117_v5 = vrot.slane %v2115_v11, 4  ;;  %v2118_v2 = vrot.slane %v10132_v63, 5  ;;  %v2116_v60 = vsel %vm12202_vm4, %v10164_v29, %v2115_v11  ;;  %v16019_v11 = vld [vmem:[#allocation15_spill] sm:$0xff] }
 0x2c2   : > { %v5524_v18 = vshrl.u32 %v5437_v22, 16  ;;  %v5527_v58 = vshll.u32 %v5437_v22, 16  ;;  %v1928_v50 = vshrl.u32 %v10116_v19, 16  ;;  %v2651_v29 = vunpack.c.l.b16 %v1916_v32 }
 0x2c3   : > { %v5265_v59 = vadd.f32 %v13585_v20, %v5229_v44  ;;  %v5351_v44 = vsel %vm13495_vm8, 0, %v5350_v47  ;;  %v2715_v47 = vunpack.c.l.b16 %v2116_v60 }
 0x2c4   : > { %v5526_v56 = vrot.slane %v5524_v18, 7  ;;  %v4269_v53 = vpop.f32.mrf.mxu3  ;;  %v13870_v18 = vld [vmem:[%s12182_s29 + $0xd0] sm:$0xf]  ;;  %5352 = vst [vmem:[#allocation2 + $0x54] sm:$0x1] %v5351_v44  ;;  %v1930_v32 = vrot.slane %v1928_v50, 4 }
 0x2c5   : > { %v5297_v51 = vmax.f32 %v5265_v59, 0.0  ;;  %v4270_v55 = vadd.f32 %v4269_v53, %v13189_v61  ;;  %v11547_v59 = vld [vmem:[#allocation3 + $0x104] sm:$0xf]  ;;  %v1937_v53 = vshll.u32 %v13870_v18, 16 }
 0x2c6   : > { %v5529_v45 = vor.u32 %v5527_v58, %v5526_v56  ;;  %v5531_v10 = vrot.slane %v5526_v56, 4  ;;  %v4536_v43 = vpop.f32.mrf.mxu2  ;;  %v4361_v22 = vpop.f32.mrf.mxu0 }
 0x2c7   : > { %v13860_v52 = vadd.f32 %v4536_v43, %v4447_v42  ;;  %v5438_v49 = vpack.c.bf16 %v5297_v51, %v5297_v51  ;;  %v4359_v41 = vadd.f32 %v4358_v39, %v4270_v55  ;;  %v4450_v61 = vpop.f32.mrf.mxu1  ;;  %v1926_v42 = vsel %vm12210_vm5, %v1921_v16, %v1925_v27 }
 0x2c8   : > { %v5530_v3 = vsel %vm13670_vm14, %v5522_v28, %v5529_v45  ;;  %v5812_v63 = vsel %vm13495_vm8, %v5531_v10, %v5811_v33  ;;  %v2119_v39 = vsel %vm12202_vm4, %v2117_v5, %v2118_v2  ;;  %v1931_v16 = vshll.u32 %v10116_v19, 16  ;;  %v11877_v28 = vld [vmem:[%s12182_s29 + $0x9c] sm:$0xff]  ;;  %v10490_v33 = vld [vmem:[#allocation3 + $0x108] sm:$0xf0]  ;;  %v13891_v5 = vld [vmem:[%s12182_s29 + $0xd4] sm:$0x1] }
 0x2c9   : > { %5810 = vst [vmem:[#allocation2 + $0x34] sm:$0xf] %v5530_v3  ;;  %v5533_v56 = vshrl.u32 %v5438_v49, 16  ;;  %v5230_v58 = vmul.f32 %v13574_v40, %v4359_v41  ;;  %4311 = vmatmul.bf16.gmra.mxu3 %v13853_v62  ;;  %4400 = vmatmul.bf16.gmra.mxu0 %v13855_v37  ;;  %v1941_v27 = vshrl.u32 %v13870_v18, 16  ;;  %v5536_v10 = vshll.u32 %v5438_v49, 16 }
 0x2ca   : > { %5813 = vst [vmem:[#allocation2 + $0x38] sm:$0x1] %v5812_v63  ;;  %4489 = vmatmul.bf16.gmra.mxu1 %v11877_v28  ;;  %v10493_v55 = vor.u32 %v11547_v59, %v10490_v33  ;;  %v5814_v2 = vld [vmem:[#allocation2 + $0x3c] sm:$0xf]  ;;  %v2652_v19 = vunpack.c.l.b16 %v1926_v42  ;;  %v2716_v3 = vunpack.c.l.b16 %v2119_v39  ;;  %v1947_v42 = vshll.u32 %v13891_v5, 16 }
 0x2cb   : > { %4578 = vmatmul.bf16.gmra.mxu2 %v16019_v11  ;;  %v13887_v45 = vrot.slane %v5533_v56, 7  ;;  %v5266_v51 = vadd.f32 %v13585_v20, %v5230_v58  ;;  %v1933_v56 = vrot.slane %v1931_v16, 5  ;;  %v5400_v59 = vld [vmem:[#allocation2 + $0x5c] sm:$0x1]  ;;  %v13897_v11 = vrot.slane %v1937_v53, 5 }
 0x2cc   : > { %v4272_v43 = vpop.f32.mrf.mxu3  ;;  %4601 = vmatpush.bf16.msrb.mxu3 %v10493_v55  ;;  %v1943_v33 = vrot.slane %v1941_v27, 4  ;;  %v11595_v16 = vld [vmem:[#allocation3 + $0x284] sm:$0xf]  ;;  %v13907_v37 = vpack.c.b16 %v2716_v3, %v2715_v47  ;;  %v10149_v62 = vld [vmem:[%s12182_s29 + $0xcc] sm:$0xe] }
 0x2cd   : > { %v5538_v63 = vor.u32 %v5536_v10, %v13887_v45  ;;  %v5298_v41 = vmax.f32 %v5266_v51, 0.0  ;;  %v4273_v44 = vadd.f32 %v4272_v43, %v13205_v13  ;;  %v5401_v13 = vsel %vm13529_vm10, 0, %v5400_v59  ;;  %v11563_v43 = vld [vmem:[#allocation3 + $0x184] sm:$0xf] }
 0x2ce   : > { %v4539_v28 = vpop.f32.mrf.mxu2  ;;  %v4363_v58 = vpop.f32.mrf.mxu0  ;;  %5402 = vst [vmem:[#allocation2 + $0x5c] sm:$0x1] %v5401_v13 }
 0x2cf   : > { %v13895_v49 = vadd.f32 %v4539_v28, %v4450_v61  ;;  %v5815_v60 = vsel %vm13637_vm13, %v5538_v63, %v5814_v2  ;;  %v5439_v50 = vpack.c.bf16 %v5298_v41, %v5298_v41  ;;  %v4362_v39 = vadd.f32 %v4361_v22, %v4273_v44  ;;  %v4452_v10 = vpop.f32.mrf.mxu1  ;;  %v10682_v61 = vld [vmem:[#allocation3 + $0x288] sm:$0xf0]  ;;  %v11579_v22 = vld [vmem:[#allocation3 + $0x204] sm:$0xf] }
 0x2d0   : > { %5816 = vst [vmem:[#allocation2 + $0x3c] sm:$0xf] %v5815_v60  ;;  %v10685_v27 = vor.u32 %v11595_v16, %v10682_v61  ;;  %v13905_v28 = vpack.c.b16 %v2652_v19, %v2651_v29  ;;  %v10554_v2 = vld [vmem:[#allocation3 + $0x188] sm:$0xf0]  ;;  %v1934_v61 = vor.u32 %v1933_v56, %v1930_v32  ;;  %v1944_v29 = vor.u32 %v1943_v33, %v13897_v11 }
 0x2d1   : > { %v5541_v51 = vshrl.u32 %v5439_v50, 16  ;;  %v5544_v55 = vshll.u32 %v5439_v50, 16  ;;  %v5231_v53 = vmul.f32 %v13574_v40, %v4362_v39  ;;  %v10618_v63 = vld [vmem:[#allocation3 + $0x208] sm:$0xf0]  ;;  %v10557_v59 = vor.u32 %v11563_v43, %v10554_v2 }
 0x2d2   : > { %4868 = vmatpush.bf16.msrb.mxu2 %v10685_v27  ;;  %v10621_v60 = vor.u32 %v11579_v22, %v10618_v63  ;;  %v5539_v50 = vrot.slane %v13887_v45, 4  ;;  %v5818_v39 = vld [vmem:[#allocation2 + $0x44] sm:$0x1]  ;;  %v2122_v19 = vrot.slane %v13870_v18, 5  ;;  %v10165_v43 = vrot.slane %v10149_v62, 9 }
 0x2d3   : > { %v5543_v41 = vrot.slane %v5541_v51, 7  ;;  %v5267_v44 = vadd.f32 %v13585_v20, %v5231_v53  ;;  %4690 = vmatpush.bf16.msrb.mxu0 %v10557_v59  ;;  %v5353_v45 = vld [vmem:[#allocation2 + $0x60] sm:$0x1]  ;;  %v1945_v2 = vrot.slane %v1944_v29, 4  ;;  %v1949_v22 = vrot.slane %v1947_v42, 5 }
 0x2d4   : > { %v4274_v16 = vpop.f32.mrf.mxu3  ;;  %4779 = vmatpush.bf16.msrb.mxu1 %v10621_v60 }
 0x2d5   : > { %v5546_v47 = vor.u32 %v5544_v55, %v5543_v41  ;;  %v5548_v3 = vrot.slane %v5543_v41, 4  ;;  %v5299_v15 = vmax.f32 %v5267_v44, 0.0  ;;  %v4275_v51 = vadd.f32 %v4274_v16, %v13219_v31  ;;  %v16020_v44 = vld [vmem:[#allocation19_spill] sm:$0xff] }
 0x2d6   : > { %v4541_v53 = vpop.f32.mrf.mxu2  ;;  %v4366_v13 = vpop.f32.mrf.mxu0  ;;  %v1935_v31 = vrot.slane %v1934_v61, 4  ;;  %v2124_v41 = vrot.slane %v2122_v19, 4  ;;  %v1950_v16 = vsel %vm12210_vm5, %v1945_v2, %v1949_v22 }
 0x2d7   : > { %v13915_v27 = vadd.f32 %v4541_v53, %v4452_v10  ;;  %v5547_v32 = vsel %vm13670_vm14, %v5539_v50, %v5546_v47  ;;  %v5819_v56 = vsel %vm13495_vm8, %v5548_v3, %v5818_v39  ;;  %v5440_v18 = vpack.c.bf16 %v5299_v15, %v5299_v15  ;;  %v4455_v55 = vpop.f32.mrf.mxu1  ;;  %v5821_v50 = vld [vmem:[#allocation2 + $0x48] sm:$0xf] }
 0x2d8   : > { %v4364_v33 = vadd.f32 %v4363_v58, %v4275_v51  ;;  %5817 = vst [vmem:[#allocation2 + $0x40] sm:$0xf] %v5547_v32  ;;  %v5354_v10 = vsel %vm13495_vm8, 0, %v5353_v45  ;;  %v2125_v15 = vrot.slane %v13891_v5, 5  ;;  %v11878_v58 = vld [vmem:[%s12182_s29 + $0xa8] sm:$0xff]  ;;  %v2123_v5 = vsel %vm12202_vm4, %v10165_v43, %v2122_v19 }
 0x2d9   : > { %5820 = vst [vmem:[#allocation2 + $0x44] sm:$0x1] %v5819_v56  ;;  %v5550_v62 = vshrl.u32 %v5440_v18, 16  ;;  %4316 = vmatmul.bf16.gmra.mxu3 %v13905_v28  ;;  %4405 = vmatmul.bf16.gmra.mxu0 %v13907_v37  ;;  %v5553_v59 = vshll.u32 %v5440_v18, 16  ;;  %v5403_v45 = vld [vmem:[#allocation2 + $0x68] sm:$0x1] }
 0x2da   : > { %v5232_v63 = vmul.f32 %v13574_v40, %v4364_v33  ;;  %4494 = vmatmul.bf16.gmra.mxu1 %v11878_v58  ;;  %5355 = vst [vmem:[#allocation2 + $0x60] sm:$0x1] %v5354_v10  ;;  %v1940_v40 = vsel %vm12210_vm5, %v1935_v31, %v13897_v11  ;;  %v5404_v19 = vsel %vm13529_vm10, 0, %v5403_v45  ;;  %v2717_v33 = vunpack.c.l.b16 %v2123_v5 }
 0x2db   : > { %4583 = vmatmul.bf16.gmra.mxu2 %v16020_v44  ;;  %v5552_v42 = vrot.slane %v5550_v62, 7  ;;  %v2653_v43 = vunpack.c.l.b16 %v1940_v40  ;;  %5405 = vst [vmem:[#allocation2 + $0x68] sm:$0x1] %v5404_v19  ;;  %v13955_v62 = vld [vmem:[%s15792_s4] ss:$0 sm:$0xff] }
 0x2dc   : > { %v5268_v60 = vadd.f32 %v13585_v20, %v5232_v63  ;;  %v4277_v39 = vpop.f32.mrf.mxu3  ;;  %v2126_v20 = vsel %vm12202_vm4, %v2124_v41, %v2125_v15  ;;  %v5825_v15 = vld [vmem:[#allocation2 + $0x50] sm:$0x1]  ;;  %v16021_v19 = vld [vmem:[#allocation22_spill] sm:$0xff] }
 0x2dd   : > { %v5555_v61 = vor.u32 %v5553_v59, %v5552_v42  ;;  %v4278_v47 = vadd.f32 %v4277_v39, %v13236_v9  ;;  %v2654_v9 = vunpack.c.l.b16 %v1950_v16  ;;  %v2718_v31 = vunpack.c.l.b16 %v2126_v20 }
 0x2de   : > { %v5300_v29 = vmax.f32 %v5268_v60, 0.0  ;;  %v4544_v3 = vpop.f32.mrf.mxu2  ;;  %v4368_v53 = vpop.f32.mrf.mxu0  ;;  %v5556_v41 = vrot.slane %v5552_v42, 4 }
 0x2df   : > { %v13940_v51 = vadd.f32 %v4544_v3, %v4455_v55  ;;  %v5822_v11 = vsel %vm13637_vm13, %v5555_v61, %v5821_v50  ;;  %v4367_v56 = vadd.f32 %v4366_v13, %v4278_v47  ;;  %v4457_v18 = vpop.f32.mrf.mxu1  ;;  %v13949_v55 = vld [vmem:[%s15791_s3] ss:$0 sm:$0xff]  ;;  %v13958_v44 = vpack.c.b16 %v2654_v9, %v2653_v43  ;;  %v10802_v43 = vld [vmem:[#allocation3 + $0x378] sm:$0xf0] }
 0x2e0   : > { %v5441_v32 = vpack.c.bf16 %v5300_v29, %v5300_v29  ;;  %5823 = vst [vmem:[#allocation2 + $0x48] sm:$0xf] %v5822_v11  ;;  %v13960_v59 = vpack.c.b16 %v2718_v31, %v2717_v33  ;;  %v5356_v29 = vld [vmem:[#allocation2 + $0x6c] sm:$0x1] }
 0x2e1   : > { %v5233_v22 = vmul.f32 %v13949_v55, %v4367_v56  ;;  %v5357_v11 = vsel %vm13495_vm8, 0, %v5356_v29  ;;  %v11625_v56 = vld [vmem:[#allocation3 + $0x374] sm:$0xf] }
 0x2e2   : > { %v5558_v2 = vshrl.u32 %v5441_v32, 16  ;;  %v5561_v13 = vshll.u32 %v5441_v32, 16  ;;  %5358 = vst [vmem:[#allocation2 + $0x6c] sm:$0x1] %v5357_v11  ;;  %v10805_v31 = vor.u32 %v11625_v56, %v10802_v43  ;;  %v11657_v11 = vld [vmem:[#allocation3 + $0x474] sm:$0xf] }
 0x2e3   : > { %v5269_v63 = vadd.f32 %v13955_v62, %v5233_v22  ;;  %v5832_v43 = vld [vmem:[#allocation2 + $0x5c] sm:$0x1] }
 0x2e4   : > { %v5560_v10 = vrot.slane %v5558_v2, 7  ;;  %v4279_v58 = vpop.f32.mrf.mxu3  ;;  %v5828_v2 = vld [vmem:[#allocation2 + $0x54] sm:$0xf]  ;;  %4950 = vmatpush.bf16.msra.mxu3 %v10805_v31 }
 0x2e5   : > { %v5301_v39 = vmax.f32 %v5269_v63, 0.0  ;;  %v4280_v40 = vadd.f32 %v4279_v58, %v13253_v6 }
 0x2e6   : > { %v5563_v60 = vor.u32 %v5561_v13, %v5560_v10  ;;  %v5565_v50 = vrot.slane %v5560_v10, 4  ;;  %v4546_v16 = vpop.f32.mrf.mxu2  ;;  %v4371_v61 = vpop.f32.mrf.mxu0 }
 0x2e7   : > { %v13963_v5 = vadd.f32 %v4546_v16, %v4457_v18  ;;  %v5442_v3 = vpack.c.bf16 %v5301_v39, %v5301_v39  ;;  %v4369_v20 = vadd.f32 %v4368_v53, %v4280_v40  ;;  %v4460_v45 = vpop.f32.mrf.mxu1  ;;  %v11881_v18 = vld [vmem:[%s12182_s29 + $0xb4] sm:$0xff] }
 0x2e8   : > { %v5564_v42 = vsel %vm13670_vm14, %v5556_v41, %v5563_v60  ;;  %v5826_v47 = vsel %vm13495_vm8, %v5565_v50, %v5825_v15  ;;  %v5406_v60 = vld [vmem:[#allocation2 + $0x74] sm:$0x1] }
 0x2e9   : > { %5824 = vst [vmem:[#allocation2 + $0x4c] sm:$0xf] %v5564_v42  ;;  %v5567_v6 = vshrl.u32 %v5442_v3, 16  ;;  %v5234_v32 = vmul.f32 %v13949_v55, %v4369_v20  ;;  %4321 = vmatmul.bf16.gmra.mxu3 %v13958_v44  ;;  %4410 = vmatmul.bf16.gmra.mxu0 %v13960_v59  ;;  %v5570_v9 = vshll.u32 %v5442_v3, 16  ;;  %v5407_v29 = vsel %vm13529_vm10, 0, %v5406_v60 }
 0x2ea   : > { %5827 = vst [vmem:[#allocation2 + $0x50] sm:$0x1] %v5826_v47  ;;  %4499 = vmatmul.bf16.gmra.mxu1 %v11881_v18  ;;  %v11641_v42 = vld [vmem:[#allocation3 + $0x3f4] sm:$0xf]  ;;  %v10866_v20 = vld [vmem:[#allocation3 + $0x3f8] sm:$0xf0] }
 0x2eb   : > { %4588 = vmatmul.bf16.gmra.mxu2 %v16021_v19  ;;  %v5569_v53 = vrot.slane %v5567_v6, 7  ;;  %v5270_v33 = vadd.f32 %v13955_v62, %v5234_v32  ;;  %v10930_v6 = vld [vmem:[#allocation3 + $0x478] sm:$0xf0]  ;;  %5408 = vst [vmem:[#allocation2 + $0x74] sm:$0x1] %v5407_v29 }
 0x2ec   : > { %v4282_v22 = vpop.f32.mrf.mxu3  ;;  %v10933_v18 = vor.u32 %v11657_v11, %v10930_v6  ;;  %v5835_v11 = vld [vmem:[#allocation2 + $0x60] sm:$0xf] }
 0x2ed   : > { %v5572_v10 = vor.u32 %v5570_v9, %v5569_v53  ;;  %v5302_v13 = vmax.f32 %v5270_v33, 0.0  ;;  %v4283_v63 = vadd.f32 %v4282_v22, %v13267_v4  ;;  %v11714_v4 = vld [vmem:[%s15790_s2 + $0x38] sm:$0xff]  ;;  %v5573_v19 = vrot.slane %v5569_v53, 4 }
 0x2ee   : > { %v4549_v41 = vpop.f32.mrf.mxu2  ;;  %v4373_v58 = vpop.f32.mrf.mxu0  ;;  %8923 = vmatpush.bf16.msra.mxu2 %v11714_v4  ;;  %5128 = vmatpush.bf16.msra.mxu1 %v10933_v18  ;;  %v16022_v4 = vld [vmem:[#allocation9_spill] sm:$0xff] }
 0x2ef   : > { %v13978_v15 = vadd.f32 %v4549_v41, %v4460_v45  ;;  %v5829_v50 = vsel %vm13637_vm13, %v5572_v10, %v5828_v2  ;;  %v5443_v39 = vpack.c.bf16 %v5302_v13, %v5302_v13  ;;  %v4372_v40 = vadd.f32 %v4371_v61, %v4283_v63  ;;  %v4462_v16 = vpop.f32.mrf.mxu1  ;;  %v5359_v41 = vld [vmem:[#allocation2 + $0x78] sm:$0x1] }
 0x2f0   : > { %5830 = vst [vmem:[#allocation2 + $0x54] sm:$0xf] %v5829_v50  ;;  %v10869_v45 = vor.u32 %v11641_v42, %v10866_v20  ;;  %v11882_v42 = vld [vmem:[%s12182_s29 + $0xc] sm:$0xff] }
 0x2f1   : > { %v5575_v47 = vshrl.u32 %v5443_v39, 16  ;;  %v5235_v3 = vmul.f32 %v13949_v55, %v4372_v40  ;;  %v5578_v32 = vshll.u32 %v5443_v39, 16 }
 0x2f2   : > { %5039 = vmatpush.bf16.msra.mxu0 %v10869_v45 }
 0x2f3   : > { %v5577_v61 = vrot.slane %v5575_v47, 7  ;;  %v5271_v56 = vadd.f32 %v13955_v62, %v5235_v3  ;;  %v16023_v47 = vld [vmem:[#allocation36_spill] sm:$0xff]  ;;  %v16024_v3 = vld [vmem:[#allocation37_spill] sm:$0xff] }
 0x2f4   : > { %v4284_v9 = vpop.f32.mrf.mxu3 }
 0x2f5   : > { %v5580_v33 = vor.u32 %v5578_v32, %v5577_v61  ;;  %v5582_v31 = vrot.slane %v5577_v61, 4  ;;  %v5303_v2 = vmax.f32 %v5271_v56, 0.0  ;;  %v4285_v22 = vadd.f32 %v4284_v9, %v13281_v38  ;;  %v5409_v9 = vld [vmem:[#allocation2 + $0x80] sm:$0x1] }
 0x2f6   : > { %v4551_v10 = vpop.f32.mrf.mxu2  ;;  %v4376_v63 = vpop.f32.mrf.mxu0  ;;  %v5360_v38 = vsel %vm13495_vm8, 0, %v5359_v41 }
 0x2f7   : > { %v13990_v13 = vadd.f32 %v4551_v10, %v4462_v16  ;;  %v5581_v60 = vsel %vm13670_vm14, %v5573_v19, %v5580_v33  ;;  %v5833_v53 = vsel %vm13495_vm8, %v5582_v31, %v5832_v43  ;;  %v5444_v50 = vpack.c.bf16 %v5303_v2, %v5303_v2  ;;  %v4465_v40 = vpop.f32.mrf.mxu1  ;;  %5361 = vst [vmem:[#allocation2 + $0x78] sm:$0x1] %v5360_v38 }
 0x2f8   : > { %v4374_v39 = vadd.f32 %v4373_v58, %v4285_v22  ;;  %5831 = vst [vmem:[#allocation2 + $0x58] sm:$0xf] %v5581_v60  ;;  %v5410_v10 = vsel %vm13529_vm10, 0, %v5409_v9  ;;  %v11883_v9 = vld [vmem:[%s12182_s29 + $0x18] sm:$0xff] }
 0x2f9   : > { %5834 = vst [vmem:[#allocation2 + $0x5c] sm:$0x1] %v5833_v53  ;;  %v5584_v29 = vshrl.u32 %v5444_v50, 16  ;;  %4602 = vmatmul.bf16.vlgmr.msrb.gmra.mxu3 %v16022_v4  ;;  %4691 = vmatmul.bf16.vlgmr.msrb.gmra.mxu0 %v11882_v42  ;;  %v5587_v58 = vshll.u32 %v5444_v50, 16 }
 0x2fa   : > { %v5236_v16 = vmul.f32 %v13949_v55, %v4374_v39  ;;  %4780 = vmatmul.bf16.vlgmr.msrb.gmra.mxu1 %v16023_v47  ;;  %5411 = vst [vmem:[#allocation2 + $0x80] sm:$0x1] %v5410_v10 }
 0x2fb   : > { %4869 = vmatmul.bf16.vlgmr.msrb.gmra.mxu2 %v16024_v3  ;;  %v5586_v20 = vrot.slane %v5584_v29, 7 }
 0x2fc   : > { %v5272_v45 = vadd.f32 %v13955_v62, %v5236_v16  ;;  %v4287_v6 = vpop.f32.mrf.mxu3 }
 0x2fd   : > { %v5589_v61 = vor.u32 %v5587_v58, %v5586_v20  ;;  %v4288_v56 = vadd.f32 %v4287_v6, %v13298_v34  ;;  %v5590_v39 = vrot.slane %v5586_v20, 4  ;;  %v5362_v58 = vld [vmem:[#allocation2 + $0x84] sm:$0x1] }
 0x2fe   : > { %v5304_v32 = vmax.f32 %v5272_v45, 0.0  ;;  %v4554_v18 = vpop.f32.mrf.mxu2  ;;  %v4378_v43 = vpop.f32.mrf.mxu0 }
 0x2ff   : > { %v14005_v19 = vadd.f32 %v4554_v18, %v4465_v40  ;;  %v5836_v33 = vsel %vm13637_vm13, %v5589_v61, %v5835_v11  ;;  %v4377_v2 = vadd.f32 %v4376_v63, %v4288_v56  ;;  %v4467_v22 = vpop.f32.mrf.mxu1  ;;  %v5839_v40 = vld [vmem:[#allocation2 + $0x68] sm:$0x1]  ;;  %v16025_v18 = vld [vmem:[#allocation10_spill] sm:$0xff] }
 0x300   : > { %v5445_v31 = vpack.c.bf16 %v5304_v32, %v5304_v32  ;;  %5837 = vst [vmem:[#allocation2 + $0x60] sm:$0xf] %v5836_v33  ;;  %v5363_v32 = vsel %vm13495_vm8, 0, %v5362_v58  ;;  %v11623_v33 = vld [vmem:[#allocation3 + $0x364] sm:$0xf] }
 0x301   : > { %v5237_v60 = vmul.f32 %v13949_v55, %v4377_v2  ;;  %v16027_v2 = vld [vmem:[#allocation39_spill] sm:$0xff]  ;;  %5364 = vst [vmem:[#allocation2 + $0x84] sm:$0x1] %v5363_v32  ;;  %v10858_v32 = vld [vmem:[#allocation3 + $0x3e8] sm:$0xf0] }
 0x302   : > { %v5592_v41 = vshrl.u32 %v5445_v31, 16  ;;  %v5595_v53 = vshll.u32 %v5445_v31, 16  ;;  %v16026_v31 = vld [vmem:[#allocation38_spill] sm:$0xff] }
 0x303   : > { %v5273_v50 = vadd.f32 %v13955_v62, %v5237_v60 }
 0x304   : > { %v5594_v34 = vrot.slane %v5592_v41, 7  ;;  %v4289_v38 = vpop.f32.mrf.mxu3 }
 0x305   : > { %v5305_v4 = vmax.f32 %v5273_v50, 0.0  ;;  %v4290_v63 = vadd.f32 %v4289_v38, %v13315_v17 }
 0x306   : > { %v5597_v29 = vor.u32 %v5595_v53, %v5594_v34  ;;  %v5599_v16 = vrot.slane %v5594_v34, 4  ;;  %v4556_v42 = vpop.f32.mrf.mxu2  ;;  %v4381_v3 = vpop.f32.mrf.mxu0  ;;  %v5842_v34 = vld [vmem:[#allocation2 + $0x6c] sm:$0xf] }
 0x307   : > { %v14014_v47 = vadd.f32 %v4556_v42, %v4467_v22  ;;  %v5446_v20 = vpack.c.bf16 %v5305_v4, %v5305_v4  ;;  %v4379_v6 = vadd.f32 %v4378_v43, %v4290_v63  ;;  %v4470_v61 = vpop.f32.mrf.mxu1  ;;  %v10794_v22 = vld [vmem:[#allocation3 + $0x368] sm:$0xf0]  ;;  %v5412_v4 = vld [vmem:[#allocation2 + $0x8c] sm:$0x1] }
 0x308   : > { %v5598_v45 = vsel %vm13670_vm14, %v5590_v39, %v5597_v29  ;;  %v5840_v11 = vsel %vm13495_vm8, %v5599_v16, %v5839_v40  ;;  %v10797_v60 = vor.u32 %v11623_v33, %v10794_v22  ;;  %v5846_v22 = vld [vmem:[#allocation2 + $0x74] sm:$0x1] }
 0x309   : > { %5838 = vst [vmem:[#allocation2 + $0x64] sm:$0xf] %v5598_v45  ;;  %v5601_v17 = vshrl.u32 %v5446_v20, 16  ;;  %v5238_v56 = vmul.f32 %v13949_v55, %v4379_v6  ;;  %4607 = vmatmul.bf16.gmra.mxu3 %v16025_v18  ;;  %4696 = vmatmul.bf16.gmra.mxu0 %v11883_v9  ;;  %v5604_v10 = vshll.u32 %v5446_v20, 16  ;;  %v11639_v20 = vld [vmem:[#allocation3 + $0x3e4] sm:$0xf] }
 0x30a   : > { %5841 = vst [vmem:[#allocation2 + $0x68] sm:$0x1] %v5840_v11  ;;  %4785 = vmatmul.bf16.gmra.mxu1 %v16026_v31  ;;  %4951 = vmatpush.bf16.msra.mxu3 %v10797_v60  ;;  %v5413_v11 = vsel %vm13529_vm10, 0, %v5412_v4  ;;  %v10922_v18 = vld [vmem:[#allocation3 + $0x468] sm:$0xf0] }
 0x30b   : > { %4874 = vmatmul.bf16.gmra.mxu2 %v16027_v2  ;;  %v5603_v43 = vrot.slane %v5601_v17, 7  ;;  %v5274_v41 = vadd.f32 %v13955_v62, %v5238_v56  ;;  %v10861_v17 = vor.u32 %v11639_v20, %v10858_v32  ;;  %v11655_v56 = vld [vmem:[#allocation3 + $0x464] sm:$0xf]  ;;  %5414 = vst [vmem:[#allocation2 + $0x8c] sm:$0x1] %v5413_v11  ;;  %v11884_v20 = vld [vmem:[%s12182_s29 + $0x24] sm:$0xff] }
 0x30c   : > { %v4292_v53 = vpop.f32.mrf.mxu3  ;;  %v10925_v31 = vor.u32 %v11655_v56, %v10922_v18  ;;  %v5849_v56 = vld [vmem:[#allocation2 + $0x78] sm:$0xf] }
 0x30d   : > { %v5606_v50 = vor.u32 %v5604_v10, %v5603_v43  ;;  %v5306_v39 = vmax.f32 %v5274_v41, 0.0  ;;  %v4293_v40 = vadd.f32 %v4292_v53, %v13329_v7  ;;  %v11713_v7 = vld [vmem:[%s15790_s2 + $0x30] sm:$0xff]  ;;  %v5607_v2 = vrot.slane %v5603_v43, 4  ;;  %5040 = vmatpush.bf16.msra.mxu0 %v10861_v17 }
 0x30e   : > { %v4559_v38 = vpop.f32.mrf.mxu2  ;;  %v4383_v16 = vpop.f32.mrf.mxu0  ;;  %8924 = vmatpush.bf16.msra.mxu2 %v11713_v7  ;;  %5129 = vmatpush.bf16.msra.mxu1 %v10925_v31  ;;  %v16028_v7 = vld [vmem:[#allocation11_spill] sm:$0xff] }
 0x30f   : > { %v14029_v29 = vadd.f32 %v4559_v38, %v4470_v61  ;;  %v5843_v63 = vsel %vm13637_vm13, %v5606_v50, %v5842_v34  ;;  %v5447_v42 = vpack.c.bf16 %v5306_v39, %v5306_v39  ;;  %v4382_v58 = vadd.f32 %v4381_v3, %v4293_v40  ;;  %v4472_v45 = vpop.f32.mrf.mxu1  ;;  %v5365_v38 = vld [vmem:[#allocation2 + $0x90] sm:$0x1] }
 0x310   : > { %5844 = vst [vmem:[#allocation2 + $0x6c] sm:$0xf] %v5843_v63 }
 0x311   : > { %v5609_v6 = vshrl.u32 %v5447_v42, 16  ;;  %v5239_v61 = vmul.f32 %v13949_v55, %v4382_v58  ;;  %v5612_v9 = vshll.u32 %v5447_v42, 16 }
 0x313   : > { %v5611_v3 = vrot.slane %v5609_v6, 7  ;;  %v5275_v33 = vadd.f32 %v13955_v62, %v5239_v61  ;;  %v16029_v6 = vld [vmem:[#allocation40_spill] sm:$0xff]  ;;  %v16030_v61 = vld [vmem:[#allocation41_spill] sm:$0xff] }
 0x314   : > { %v4294_v10 = vpop.f32.mrf.mxu3 }
 0x315   : > { %v5614_v41 = vor.u32 %v5612_v9, %v5611_v3  ;;  %v5616_v60 = vrot.slane %v5611_v3, 4  ;;  %v5307_v34 = vmax.f32 %v5275_v33, 0.0  ;;  %v4295_v53 = vadd.f32 %v4294_v10, %v13343_v54  ;;  %v5415_v10 = vld [vmem:[#allocation2 + $0x98] sm:$0x1] }
 0x316   : > { %v4561_v50 = vpop.f32.mrf.mxu2  ;;  %v4386_v40 = vpop.f32.mrf.mxu0  ;;  %v5366_v54 = vsel %vm13495_vm8, 0, %v5365_v38 }
 0x317   : > { %v14041_v39 = vadd.f32 %v4561_v50, %v4472_v45  ;;  %v5615_v4 = vsel %vm13670_vm14, %v5607_v2, %v5614_v41  ;;  %v5847_v43 = vsel %vm13495_vm8, %v5616_v60, %v5846_v22  ;;  %v5448_v63 = vpack.c.bf16 %v5307_v34, %v5307_v34  ;;  %v4475_v58 = vpop.f32.mrf.mxu1  ;;  %5367 = vst [vmem:[#allocation2 + $0x90] sm:$0x1] %v5366_v54 }
 0x318   : > { %v4384_v42 = vadd.f32 %v4383_v16, %v4295_v53  ;;  %5845 = vst [vmem:[#allocation2 + $0x70] sm:$0xf] %v5615_v4  ;;  %v5416_v50 = vsel %vm13529_vm10, 0, %v5415_v10  ;;  %v11885_v10 = vld [vmem:[%s12182_s29 + $0x30] sm:$0xff] }
 0x319   : > { %5848 = vst [vmem:[#allocation2 + $0x74] sm:$0x1] %v5847_v43  ;;  %v5618_v11 = vshrl.u32 %v5448_v63, 16  ;;  %4612 = vmatmul.bf16.gmra.mxu3 %v16028_v7  ;;  %4701 = vmatmul.bf16.gmra.mxu0 %v11884_v20  ;;  %v5621_v16 = vshll.u32 %v5448_v63, 16 }
 0x31a   : > { %v5240_v45 = vmul.f32 %v13949_v55, %v4384_v42  ;;  %4790 = vmatmul.bf16.gmra.mxu1 %v16029_v6  ;;  %5417 = vst [vmem:[#allocation2 + $0x98] sm:$0x1] %v5416_v50 }
 0x31b   : > { %4879 = vmatmul.bf16.gmra.mxu2 %v16030_v61  ;;  %v5620_v32 = vrot.slane %v5618_v11, 7 }
 0x31c   : > { %v5276_v17 = vadd.f32 %v13955_v62, %v5240_v45  ;;  %v4297_v18 = vpop.f32.mrf.mxu3 }
 0x31d   : > { %v5623_v3 = vor.u32 %v5621_v16, %v5620_v32  ;;  %v4298_v33 = vadd.f32 %v4297_v18, %v13360_v35  ;;  %v5624_v42 = vrot.slane %v5620_v32, 4  ;;  %v5368_v16 = vld [vmem:[#allocation2 + $0x9c] sm:$0x1] }
 0x31e   : > { %v5308_v9 = vmax.f32 %v5276_v17, 0.0  ;;  %v4564_v31 = vpop.f32.mrf.mxu2  ;;  %v4388_v22 = vpop.f32.mrf.mxu0 }
 0x31f   : > { %v14056_v2 = vadd.f32 %v4564_v31, %v4475_v58  ;;  %v5850_v41 = vsel %vm13637_vm13, %v5623_v3, %v5849_v56  ;;  %v4387_v34 = vadd.f32 %v4386_v40, %v4298_v33  ;;  %v4477_v53 = vpop.f32.mrf.mxu1  ;;  %v5853_v58 = vld [vmem:[#allocation2 + $0x80] sm:$0x1]  ;;  %v16031_v31 = vld [vmem:[#allocation12_spill] sm:$0xff] }
 0x320   : > { %v5449_v60 = vpack.c.bf16 %v5308_v9, %v5308_v9  ;;  %5851 = vst [vmem:[#allocation2 + $0x78] sm:$0xf] %v5850_v41  ;;  %v5369_v9 = vsel %vm13495_vm8, 0, %v5368_v16  ;;  %v11621_v41 = vld [vmem:[#allocation3 + $0x354] sm:$0xf] }
 0x321   : > { %v5241_v4 = vmul.f32 %v13949_v55, %v4387_v34  ;;  %v16033_v34 = vld [vmem:[#allocation43_spill] sm:$0xff]  ;;  %5370 = vst [vmem:[#allocation2 + $0x9c] sm:$0x1] %v5369_v9  ;;  %v10850_v9 = vld [vmem:[#allocation3 + $0x3d8] sm:$0xf0] }
 0x322   : > { %v5626_v38 = vshrl.u32 %v5449_v60, 16  ;;  %v5629_v43 = vshll.u32 %v5449_v60, 16  ;;  %v16032_v60 = vld [vmem:[#allocation42_spill] sm:$0xff] }
 0x323   : > { %v5277_v63 = vadd.f32 %v13955_v62, %v5241_v4 }
 0x324   : > { %v5628_v35 = vrot.slane %v5626_v38, 7  ;;  %v4299_v54 = vpop.f32.mrf.mxu3 }
 0x325   : > { %v5309_v7 = vmax.f32 %v5277_v63, 0.0  ;;  %v4300_v40 = vadd.f32 %v4299_v54, %v13377_v25 }
 0x326   : > { %v5631_v11 = vor.u32 %v5629_v43, %v5628_v35  ;;  %v5633_v45 = vrot.slane %v5628_v35, 4  ;;  %v4566_v20 = vpop.f32.mrf.mxu2  ;;  %v4391_v61 = vpop.f32.mrf.mxu0  ;;  %v5856_v35 = vld [vmem:[#allocation2 + $0x84] sm:$0xf] }
 0x327   : > { %v14065_v6 = vadd.f32 %v4566_v20, %v4477_v53  ;;  %v5450_v32 = vpack.c.bf16 %v5309_v7, %v5309_v7  ;;  %v4389_v18 = vadd.f32 %v4388_v22, %v4300_v40  ;;  %v4480_v3 = vpop.f32.mrf.mxu1  ;;  %v10786_v53 = vld [vmem:[#allocation3 + $0x358] sm:$0xf0]  ;;  %v5418_v7 = vld [vmem:[#allocation2 + $0xa4] sm:$0x1] }
 0x328   : > { %v5632_v17 = vsel %vm13670_vm14, %v5624_v42, %v5631_v11  ;;  %v5854_v56 = vsel %vm13495_vm8, %v5633_v45, %v5853_v58  ;;  %v10789_v4 = vor.u32 %v11621_v41, %v10786_v53  ;;  %v5860_v53 = vld [vmem:[#allocation2 + $0x8c] sm:$0x1] }
 0x329   : > { %5852 = vst [vmem:[#allocation2 + $0x7c] sm:$0xf] %v5632_v17  ;;  %v5635_v25 = vshrl.u32 %v5450_v32, 16  ;;  %v5242_v33 = vmul.f32 %v13949_v55, %v4389_v18  ;;  %4617 = vmatmul.bf16.gmra.mxu3 %v16031_v31  ;;  %4706 = vmatmul.bf16.gmra.mxu0 %v11885_v10  ;;  %v5638_v50 = vshll.u32 %v5450_v32, 16  ;;  %v11637_v32 = vld [vmem:[#allocation3 + $0x3d4] sm:$0xf] }
 0x32a   : > { %5855 = vst [vmem:[#allocation2 + $0x80] sm:$0x1] %v5854_v56  ;;  %4795 = vmatmul.bf16.gmra.mxu1 %v16032_v60  ;;  %4952 = vmatpush.bf16.msra.mxu3 %v10789_v4  ;;  %v5419_v56 = vsel %vm13529_vm10, 0, %v5418_v7  ;;  %v10914_v31 = vld [vmem:[#allocation3 + $0x458] sm:$0xf0] }
 0x32b   : > { %4884 = vmatmul.bf16.gmra.mxu2 %v16033_v34  ;;  %v5637_v22 = vrot.slane %v5635_v25, 7  ;;  %v5278_v38 = vadd.f32 %v13955_v62, %v5242_v33  ;;  %v10853_v25 = vor.u32 %v11637_v32, %v10850_v9  ;;  %v11653_v33 = vld [vmem:[#allocation3 + $0x454] sm:$0xf]  ;;  %5420 = vst [vmem:[#allocation2 + $0xa4] sm:$0x1] %v5419_v56  ;;  %v11886_v32 = vld [vmem:[%s12182_s29 + $0x3c] sm:$0xff] }
 0x32c   : > { %v4302_v43 = vpop.f32.mrf.mxu3  ;;  %v10917_v60 = vor.u32 %v11653_v33, %v10914_v31  ;;  %v5863_v33 = vld [vmem:[#allocation2 + $0x90] sm:$0xf] }
 0x32d   : > { %v5640_v63 = vor.u32 %v5638_v50, %v5637_v22  ;;  %v5310_v42 = vmax.f32 %v5278_v38, 0.0  ;;  %v4303_v58 = vadd.f32 %v4302_v43, %v13391_v30  ;;  %v11712_v30 = vld [vmem:[%s15790_s2 + $0x28] sm:$0xff]  ;;  %v5641_v34 = vrot.slane %v5637_v22, 4  ;;  %5041 = vmatpush.bf16.msra.mxu0 %v10853_v25 }
 0x32e   : > { %v4569_v54 = vpop.f32.mrf.mxu2  ;;  %v4393_v45 = vpop.f32.mrf.mxu0  ;;  %8925 = vmatpush.bf16.msra.mxu2 %v11712_v30  ;;  %5130 = vmatpush.bf16.msra.mxu1 %v10917_v60  ;;  %v16034_v30 = vld [vmem:[#allocation14_spill] sm:$0xff] }
 0x32f   : > { %v14080_v11 = vadd.f32 %v4569_v54, %v4480_v3  ;;  %v5857_v40 = vsel %vm13637_vm13, %v5640_v63, %v5856_v35  ;;  %v5451_v20 = vpack.c.bf16 %v5310_v42, %v5310_v42  ;;  %v4392_v16 = vadd.f32 %v4391_v61, %v4303_v58  ;;  %v4482_v17 = vpop.f32.mrf.mxu1  ;;  %v5371_v54 = vld [vmem:[#allocation2 + $0xa8] sm:$0x1] }
 0x330   : > { %5858 = vst [vmem:[#allocation2 + $0x84] sm:$0xf] %v5857_v40 }
 0x331   : > { %v5643_v18 = vshrl.u32 %v5451_v20, 16  ;;  %v5243_v3 = vmul.f32 %v13949_v55, %v4392_v16  ;;  %v5646_v10 = vshll.u32 %v5451_v20, 16 }
 0x333   : > { %v5645_v61 = vrot.slane %v5643_v18, 7  ;;  %v5279_v41 = vadd.f32 %v13955_v62, %v5243_v3  ;;  %v16035_v18 = vld [vmem:[#allocation44_spill] sm:$0xff]  ;;  %v16036_v3 = vld [vmem:[#allocation45_spill] sm:$0xff] }
 0x334   : > { %v4304_v50 = vpop.f32.mrf.mxu3 }
 0x335   : > { %v5648_v38 = vor.u32 %v5646_v10, %v5645_v61  ;;  %v5650_v4 = vrot.slane %v5645_v61, 4  ;;  %v5311_v35 = vmax.f32 %v5279_v41, 0.0  ;;  %v4305_v43 = vadd.f32 %v4304_v50, %v13405_v26  ;;  %v16037_v41 = vld [vmem:[#allocation85_spill] sm:$0xff] }
 0x336   : > { %v4571_v63 = vpop.f32.mrf.mxu2  ;;  %v4396_v58 = vpop.f32.mrf.mxu0  ;;  %v5372_v26 = vsel %vm13495_vm8, 0, %v5371_v54 }
 0x337   : > { %v14092_v42 = vadd.f32 %v4571_v63, %v4482_v17  ;;  %v5649_v7 = vsel %vm13670_vm14, %v5641_v34, %v5648_v38  ;;  %v5861_v22 = vsel %vm13495_vm8, %v5650_v4, %v5860_v53  ;;  %v5452_v40 = vpack.c.bf16 %v5311_v35, %v5311_v35  ;;  %v4485_v16 = vpop.f32.mrf.mxu1  ;;  %5373 = vst [vmem:[#allocation2 + $0xa8] sm:$0x1] %v5372_v26  ;;  %v5421_v38 = vld [vmem:[#allocation2 + $0xb0] sm:$0x1] }
 0x338   : > { %v4394_v20 = vadd.f32 %v4393_v45, %v4305_v43  ;;  %5859 = vst [vmem:[#allocation2 + $0x88] sm:$0xf] %v5649_v7  ;;  %v5422_v54 = vsel %vm13529_vm10, 0, %v5421_v38 }
 0x339   : > { %5862 = vst [vmem:[#allocation2 + $0x8c] sm:$0x1] %v5861_v22  ;;  %v5652_v56 = vshrl.u32 %v5452_v40, 16  ;;  %4622 = vmatmul.bf16.gmra.mxu3 %v16034_v30  ;;  %4711 = vmatmul.bf16.gmra.mxu0 %v11886_v32  ;;  %v5655_v45 = vshll.u32 %v5452_v40, 16 }
 0x33a   : > { %v5244_v17 = vmul.f32 %v13949_v55, %v4394_v20  ;;  %4800 = vmatmul.bf16.gmra.mxu1 %v16035_v18  ;;  %5423 = vst [vmem:[#allocation2 + $0xb0] sm:$0x1] %v5422_v54  ;;  %v16040_v54 = vld [vmem:[#allocation46_spill] sm:$0xff] }
 0x33b   : > { %4889 = vmatmul.bf16.gmra.mxu2 %v16036_v3  ;;  %v5654_v9 = vrot.slane %v5652_v56, 7  ;;  %v5867_v56 = vld [vmem:[#allocation2 + $0x98] sm:$0x1] }
 0x33c   : > { %v5280_v25 = vadd.f32 %v13955_v62, %v5244_v17  ;;  %v4307_v31 = vpop.f32.mrf.mxu3 }
 0x33d   : > { %v5657_v61 = vor.u32 %v5655_v45, %v5654_v9  ;;  %v4308_v60 = vadd.f32 %v4307_v31, %v16037_v41  ;;  %v5658_v26 = vrot.slane %v5654_v9, 4  ;;  %v5374_v31 = vld [vmem:[#allocation2 + $0xb4] sm:$0x1] }
 0x33e   : > { %v5312_v10 = vmax.f32 %v5280_v25, 0.0  ;;  %v4574_v34 = vpop.f32.mrf.mxu2  ;;  %v4398_v50 = vpop.f32.mrf.mxu0 }
 0x33f   : > { %v14107_v53 = vadd.f32 %v4574_v34, %v4485_v16  ;;  %v5864_v4 = vsel %vm13637_vm13, %v5657_v61, %v5863_v33  ;;  %v4397_v43 = vadd.f32 %v4396_v58, %v4308_v60  ;;  %v4487_v63 = vpop.f32.mrf.mxu1  ;;  %v16038_v58 = vld [vmem:[#allocation16_spill] sm:$0xff]  ;;  %v5375_v34 = vsel %vm13495_vm8, 0, %v5374_v31  ;;  %v5424_v31 = vld [vmem:[#allocation2 + $0xbc] sm:$0x1] }
 0x340   : > { %v5453_v35 = vpack.c.bf16 %v5312_v10, %v5312_v10  ;;  %5865 = vst [vmem:[#allocation2 + $0x90] sm:$0xf] %v5864_v4 }
 0x341   : > { %v5245_v22 = vmul.f32 %v13949_v55, %v4397_v43  ;;  %v11887_v43 = vld [vmem:[%s12182_s29 + $0x48] sm:$0xff]  ;;  %5376 = vst [vmem:[#allocation2 + $0xb4] sm:$0x1] %v5375_v34  ;;  %v5425_v34 = vsel %vm13529_vm10, 0, %v5424_v31 }
 0x342   : > { %v5660_v7 = vshrl.u32 %v5453_v35, 16  ;;  %v5663_v20 = vshll.u32 %v5453_v35, 16  ;;  %v16039_v35 = vld [vmem:[#allocation17_spill] sm:$0xff]  ;;  %5426 = vst [vmem:[#allocation2 + $0xbc] sm:$0x1] %v5425_v34 }
 0x343   : > { %v5281_v16 = vadd.f32 %v13955_v62, %v5245_v22  ;;  %v10778_v22 = vld [vmem:[#allocation3 + $0x348] sm:$0xf0]  ;;  %v5377_v34 = vld [vmem:[#allocation2 + $0xc0] sm:$0x1] }
 0x344   : > { %v5662_v40 = vrot.slane %v5660_v7, 7  ;;  %v4309_v17 = vpop.f32.mrf.mxu3  ;;  %v16041_v7 = vld [vmem:[#allocation47_spill] sm:$0xff] }
 0x345   : > { %v5313_v18 = vmax.f32 %v5281_v16, 0.0  ;;  %v4310_v3 = vadd.f32 %v4309_v17, %v16038_v58 }
 0x346   : > { %v5665_v30 = vor.u32 %v5663_v20, %v5662_v40  ;;  %v5667_v32 = vrot.slane %v5662_v40, 4  ;;  %v4576_v45 = vpop.f32.mrf.mxu2  ;;  %v4401_v33 = vpop.f32.mrf.mxu0 }
 0x347   : > { %v14116_v25 = vadd.f32 %v4576_v45, %v4487_v63  ;;  %v5454_v9 = vpack.c.bf16 %v5313_v18, %v5313_v18  ;;  %v4399_v41 = vadd.f32 %v4398_v50, %v4310_v3  ;;  %v4490_v60 = vpop.f32.mrf.mxu1  ;;  %v11619_v63 = vld [vmem:[#allocation3 + $0x344] sm:$0xf] }
 0x348   : > { %v5666_v61 = vsel %vm13670_vm14, %v5658_v26, %v5665_v30  ;;  %v5868_v10 = vsel %vm13495_vm8, %v5667_v32, %v5867_v56  ;;  %v10781_v16 = vor.u32 %v11619_v63, %v10778_v22  ;;  %v5870_v26 = vld [vmem:[#allocation2 + $0x9c] sm:$0xf]  ;;  %v16042_v32 = vld [vmem:[#allocation48_spill] sm:$0xff] }
 0x349   : > { %5866 = vst [vmem:[#allocation2 + $0x94] sm:$0xf] %v5666_v61  ;;  %v5669_v38 = vshrl.u32 %v5454_v9, 16  ;;  %v5246_v4 = vmul.f32 %v13949_v55, %v4399_v41  ;;  %4627 = vmatmul.bf16.gmra.mxu3 %v16039_v35  ;;  %4716 = vmatmul.bf16.gmra.mxu0 %v11887_v43  ;;  %v5672_v40 = vshll.u32 %v5454_v9, 16  ;;  %v10842_v43 = vld [vmem:[#allocation3 + $0x3c8] sm:$0xf0] }
 0x34a   : > { %5869 = vst [vmem:[#allocation2 + $0x98] sm:$0x1] %v5868_v10  ;;  %4805 = vmatmul.bf16.gmra.mxu1 %v16040_v54  ;;  %4953 = vmatpush.bf16.msra.mxu3 %v10781_v16  ;;  %v11651_v54 = vld [vmem:[#allocation3 + $0x444] sm:$0xf] }
 0x34b   : > { %4894 = vmatmul.bf16.gmra.mxu2 %v16041_v7  ;;  %v5671_v50 = vrot.slane %v5669_v38, 7  ;;  %v5282_v20 = vadd.f32 %v13955_v62, %v5246_v4  ;;  %v11711_v38 = vld [vmem:[%s15790_s2 + $0x20] sm:$0xff]  ;;  %v11635_v4 = vld [vmem:[#allocation3 + $0x3c4] sm:$0xf] }
 0x34c   : > { %v4312_v56 = vpop.f32.mrf.mxu3  ;;  %8926 = vmatpush.bf16.msra.mxu2 %v11711_v38  ;;  %v10845_v63 = vor.u32 %v11635_v4, %v10842_v43  ;;  %v10906_v7 = vld [vmem:[#allocation3 + $0x448] sm:$0xf0] }
 0x34d   : > { %v5674_v17 = vor.u32 %v5672_v40, %v5671_v50  ;;  %v5314_v30 = vmax.f32 %v5282_v20, 0.0  ;;  %v4313_v18 = vadd.f32 %v4312_v56, %v16042_v32  ;;  %v10909_v20 = vor.u32 %v11651_v54, %v10906_v7  ;;  %v11888_v54 = vld [vmem:[%s12182_s29 + $0x54] sm:$0xff] }
 0x34e   : > { %v4579_v58 = vpop.f32.mrf.mxu2  ;;  %v4403_v45 = vpop.f32.mrf.mxu0  ;;  %v5675_v16 = vrot.slane %v5671_v50, 4  ;;  %5042 = vmatpush.bf16.msra.mxu0 %v10845_v63  ;;  %v16044_v63 = vld [vmem:[#allocation20_spill] sm:$0xff]  ;;  %v16045_v7 = vld [vmem:[#allocation49_spill] sm:$0xff] }
 0x34f   : > { %v14131_v3 = vadd.f32 %v4579_v58, %v4490_v60  ;;  %v5871_v61 = vsel %vm13637_vm13, %v5674_v17, %v5870_v26  ;;  %v5455_v10 = vpack.c.bf16 %v5314_v30, %v5314_v30  ;;  %v4402_v9 = vadd.f32 %v4401_v33, %v4313_v18  ;;  %v4492_v41 = vpop.f32.mrf.mxu1  ;;  %v5874_v26 = vld [vmem:[#allocation2 + $0xa4] sm:$0x1]  ;;  %5131 = vmatpush.bf16.msra.mxu1 %v10909_v20  ;;  %v5877_v20 = vld [vmem:[#allocation2 + $0xa8] sm:$0xf] }
 0x350   : > { %5872 = vst [vmem:[#allocation2 + $0x9c] sm:$0xf] %v5871_v61  ;;  %v16043_v18 = vld [vmem:[#allocation18_spill] sm:$0xff] }
 0x351   : > { %v5677_v35 = vshrl.u32 %v5455_v10, 16  ;;  %v5247_v60 = vmul.f32 %v13949_v55, %v4402_v9  ;;  %v5680_v22 = vshll.u32 %v5455_v10, 16 }
 0x353   : > { %v5679_v33 = vrot.slane %v5677_v35, 7  ;;  %v5283_v40 = vadd.f32 %v13955_v62, %v5247_v60  ;;  %v5378_v60 = vsel %vm13495_vm8, 0, %v5377_v34 }
 0x354   : > { %v4314_v56 = vpop.f32.mrf.mxu3  ;;  %5379 = vst [vmem:[#allocation2 + $0xc0] sm:$0x1] %v5378_v60 }
 0x355   : > { %v5682_v17 = vor.u32 %v5680_v22, %v5679_v33  ;;  %v5684_v30 = vrot.slane %v5679_v33, 4  ;;  %v5315_v32 = vmax.f32 %v5283_v40, 0.0  ;;  %v4315_v58 = vadd.f32 %v4314_v56, %v16043_v18  ;;  %v16046_v33 = vld [vmem:[#allocation51_spill] sm:$0xff] }
 0x356   : > { %v4581_v31 = vpop.f32.mrf.mxu2  ;;  %v4406_v9 = vpop.f32.mrf.mxu0 }
 0x357   : > { %v14143_v61 = vadd.f32 %v4581_v31, %v4492_v41  ;;  %v5683_v10 = vsel %vm13670_vm14, %v5675_v16, %v5682_v17  ;;  %v5875_v50 = vsel %vm13495_vm8, %v5684_v30, %v5874_v26  ;;  %v5456_v38 = vpack.c.bf16 %v5315_v32, %v5315_v32  ;;  %v4495_v35 = vpop.f32.mrf.mxu1  ;;  %v16047_v17 = vld [vmem:[#allocation52_spill] sm:$0xff]  ;;  %v5427_v31 = vld [vmem:[#allocation2 + $0xc8] sm:$0x1] }
 0x358   : > { %v4404_v4 = vadd.f32 %v4403_v45, %v4315_v58  ;;  %5873 = vst [vmem:[#allocation2 + $0xa0] sm:$0xf] %v5683_v10 }
 0x359   : > { %5876 = vst [vmem:[#allocation2 + $0xa4] sm:$0x1] %v5875_v50  ;;  %v5686_v43 = vshrl.u32 %v5456_v38, 16  ;;  %4632 = vmatmul.bf16.gmra.mxu3 %v16044_v63  ;;  %4721 = vmatmul.bf16.gmra.mxu0 %v11888_v54  ;;  %v5689_v45 = vshll.u32 %v5456_v38, 16  ;;  %v5428_v38 = vsel %vm13529_vm10, 0, %v5427_v31 }
 0x35a   : > { %v5248_v41 = vmul.f32 %v13949_v55, %v4404_v4  ;;  %4810 = vmatmul.bf16.gmra.mxu1 %v16045_v7  ;;  %5429 = vst [vmem:[#allocation2 + $0xc8] sm:$0x1] %v5428_v38  ;;  %v5881_v7 = vld [vmem:[#allocation2 + $0xb0] sm:$0x1]  ;;  %v11889_v38 = vld [vmem:[%s12182_s29 + $0x60] sm:$0xff] }
 0x35b   : > { %4899 = vmatmul.bf16.gmra.mxu2 %v16046_v33  ;;  %v5688_v22 = vrot.slane %v5686_v43, 7 }
 0x35c   : > { %v5284_v40 = vadd.f32 %v13955_v62, %v5248_v41  ;;  %v4317_v16 = vpop.f32.mrf.mxu3 }
 0x35d   : > { %v5691_v26 = vor.u32 %v5689_v45, %v5688_v22  ;;  %v4318_v30 = vadd.f32 %v4317_v16, %v16047_v17  ;;  %v5692_v54 = vrot.slane %v5688_v22, 4 }
 0x35e   : > { %v5316_v56 = vmax.f32 %v5284_v40, 0.0  ;;  %v4584_v32 = vpop.f32.mrf.mxu2  ;;  %v4408_v58 = vpop.f32.mrf.mxu0 }
 0x35f   : > { %v14158_v18 = vadd.f32 %v4584_v32, %v4495_v35  ;;  %v5878_v34 = vsel %vm13637_vm13, %v5691_v26, %v5877_v20  ;;  %v4407_v50 = vadd.f32 %v4406_v9, %v4318_v30  ;;  %v4497_v4 = vpop.f32.mrf.mxu1  ;;  %v16048_v20 = vld [vmem:[#allocation54_spill] sm:$0xff] }
 0x360   : > { %v5457_v10 = vpack.c.bf16 %v5316_v56, %v5316_v56  ;;  %5879 = vst [vmem:[#allocation2 + $0xa8] sm:$0xf] %v5878_v34 }
 0x361   : > { %v5249_v43 = vmul.f32 %v13949_v55, %v4407_v50  ;;  %v16049_v50 = vld [vmem:[#allocation24_spill] sm:$0xff] }
 0x362   : > { %v5694_v60 = vshrl.u32 %v5457_v10, 16  ;;  %v5697_v63 = vshll.u32 %v5457_v10, 16 }
 0x363   : > { %v5285_v35 = vadd.f32 %v13955_v62, %v5249_v43  ;;  %v16051_v43 = vld [vmem:[#allocation53_spill] sm:$0xff] }
 0x364   : > { %v5696_v41 = vrot.slane %v5694_v60, 7  ;;  %v4319_v33 = vpop.f32.mrf.mxu3  ;;  %v16050_v60 = vld [vmem:[#allocation55_spill] sm:$0xff] }
 0x365   : > { %v5317_v9 = vmax.f32 %v5285_v35, 0.0  ;;  %v4320_v16 = vadd.f32 %v4319_v33, %v16048_v20  ;;  %v10834_v33 = vld [vmem:[#allocation3 + $0x3b8] sm:$0xf0] }
 0x366   : > { %v5699_v45 = vor.u32 %v5697_v63, %v5696_v41  ;;  %v5701_v40 = vrot.slane %v5696_v41, 4  ;;  %v4586_v1 = vpop.f32.mrf.mxu2  ;;  %v4411_v56 = vpop.f32.mrf.mxu0  ;;  %v10770_v41 = vld [vmem:[#allocation3 + $0x338] sm:$0xf0]  ;;  %v11633_v63 = vld [vmem:[#allocation3 + $0x3b4] sm:$0xf] }
 0x367   : > { %v14167_v26 = vadd.f32 %v4586_v1, %v4497_v4  ;;  %v5458_v32 = vpack.c.bf16 %v5317_v9, %v5317_v9  ;;  %v4409_v22 = vadd.f32 %v4408_v58, %v4320_v16  ;;  %v4500_v31 = vpop.f32.mrf.mxu1  ;;  %v11617_v4 = vld [vmem:[#allocation3 + $0x334] sm:$0xf]  ;;  %v11710_v58 = vld [vmem:[%s15790_s2 + $0x18] sm:$0xff]  ;;  %v10837_v20 = vor.u32 %v11633_v63, %v10834_v33  ;;  %v10898_v16 = vld [vmem:[#allocation3 + $0x438] sm:$0xf0] }
 0x368   : > { %v5700_v17 = vsel %vm13670_vm14, %v5692_v54, %v5699_v45  ;;  %v5882_v30 = vsel %vm13495_vm8, %v5701_v40, %v5881_v7  ;;  %v11649_v45 = vld [vmem:[#allocation3 + $0x434] sm:$0xf]  ;;  %v5884_v40 = vld [vmem:[#allocation2 + $0xb4] sm:$0xf]  ;;  %8927 = vmatpush.bf16.msra.mxu2 %v11710_v58  ;;  %v5888_v33 = vld [vmem:[#allocation2 + $0xbc] sm:$0x1] }
 0x369   : > { %5880 = vst [vmem:[#allocation2 + $0xac] sm:$0xf] %v5700_v17  ;;  %v5703_v34 = vshrl.u32 %v5458_v32, 16  ;;  %v5250_v10 = vmul.f32 %v13949_v55, %v4409_v22  ;;  %4637 = vmatmul.bf16.gmra.mxu3 %v16049_v50  ;;  %4726 = vmatmul.bf16.gmra.mxu0 %v11889_v38  ;;  %v5706_v54 = vshll.u32 %v5458_v32, 16  ;;  %v10773_v55 = vor.u32 %v11617_v4, %v10770_v41  ;;  %v11890_v41 = vld [vmem:[%s15791_s3] ss:$0 sm:$0xff] }
 0x36a   : > { %5883 = vst [vmem:[#allocation2 + $0xb0] sm:$0x1] %v5882_v30  ;;  %4815 = vmatmul.bf16.gmra.mxu1 %v16050_v60  ;;  %v16052_v30 = vld [vmem:[#allocation23_spill] sm:$0xff]  ;;  %5043 = vmatpush.bf16.msra.mxu0 %v10837_v20  ;;  %v10901_v32 = vor.u32 %v11649_v45, %v10898_v16  ;;  %v16053_v20 = vld [vmem:[#allocation25_spill] sm:$0xff] }
 0x36b   : > { %4904 = vmatmul.bf16.gmra.mxu2 %v16051_v43  ;;  %v5705_v35 = vrot.slane %v5703_v34, 7  ;;  %v5286_v7 = vadd.f32 %v13955_v62, %v5250_v10  ;;  %4954 = vmatpush.bf16.msra.mxu3 %v10773_v55 }
 0x36c   : > { %v4322_v9 = vpop.f32.mrf.mxu3  ;;  %5132 = vmatpush.bf16.msra.mxu1 %v10901_v32 }
 0x36d   : > { %v5708_v1 = vor.u32 %v5706_v54, %v5705_v35  ;;  %v5318_v17 = vmax.f32 %v5286_v7, 0.0  ;;  %v4323_v22 = vadd.f32 %v4322_v9, %v16052_v30  ;;  %v11891_v54 = vld [vmem:[%s15792_s4] ss:$0 sm:$0xff]  ;;  %v5709_v55 = vrot.slane %v5705_v35, 4 }
 0x36e   : > { %v4589_v50 = vpop.f32.mrf.mxu2  ;;  %v4413_v34 = vpop.f32.mrf.mxu0 }
 0x36f   : > { %v14183_v38 = vadd.f32 %v4589_v50, %v4500_v31  ;;  %v5885_v62 = vsel %vm13637_vm13, %v5708_v1, %v5884_v40  ;;  %v5459_v10 = vpack.c.bf16 %v5318_v17, %v5318_v17  ;;  %v4412_v4 = vadd.f32 %v4411_v56, %v4323_v22  ;;  %v4502_v60 = vpop.f32.mrf.mxu1 }
 0x370   : > { %5886 = vst [vmem:[#allocation2 + $0xb4] sm:$0xf] %v5885_v62 }
 0x371   : > { %v5711_v43 = vshrl.u32 %v5459_v10, 16  ;;  %v5251_v58 = vmul.f32 %v11890_v41, %v4412_v4  ;;  %v5714_v31 = vshll.u32 %v5459_v10, 16 }
 0x373   : > { %v5713_v63 = vrot.slane %v5711_v43, 7  ;;  %v5287_v7 = vadd.f32 %v11891_v54, %v5251_v58  ;;  %v16054_v43 = vld [vmem:[#allocation26_spill] sm:$0xff]  ;;  %v11892_v58 = vld [vmem:[%s12182_s29 + $0x6c] sm:$0xff] }
 0x374   : > { %v4324_v45 = vpop.f32.mrf.mxu3 }
 0x375   : > { %v5716_v56 = vor.u32 %v5714_v31, %v5713_v63  ;;  %v5718_v40 = vrot.slane %v5713_v63, 4  ;;  %v5319_v9 = vmax.f32 %v5287_v7, 0.0  ;;  %v4325_v16 = vadd.f32 %v4324_v45, %v16053_v20  ;;  %v16056_v63 = vld [vmem:[#allocation59_spill] sm:$0xff]  ;;  %v11615_v45 = vld [vmem:[#allocation3 + $0x324] sm:$0xf] }
 0x376   : > { %v4591_v1 = vpop.f32.mrf.mxu2  ;;  %v4692_v30 = vpop.f32.mrf.mxu0 }
 0x377   : > { %v14194_v17 = vadd.f32 %v4591_v1, %v4502_v60  ;;  %v5717_v22 = vsel %vm13670_vm14, %v5709_v55, %v5716_v56  ;;  %v5889_v50 = vsel %vm13495_vm8, %v5718_v40, %v5888_v33  ;;  %v5460_v32 = vpack.c.bf16 %v5319_v9, %v5319_v9  ;;  %v4781_v62 = vpop.f32.mrf.mxu1  ;;  %v16055_v60 = vld [vmem:[#allocation58_spill] sm:$0xff] }
 0x378   : > { %v4414_v35 = vadd.f32 %v4413_v34, %v4325_v16  ;;  %5887 = vst [vmem:[#allocation2 + $0xb8] sm:$0xf] %v5717_v22  ;;  %v10762_v33 = vld [vmem:[#allocation3 + $0x328] sm:$0xf0]  ;;  %v5891_v56 = vld [vmem:[#allocation2 + $0xc0] sm:$0xf] }
 0x379   : > { %5890 = vst [vmem:[#allocation2 + $0xbc] sm:$0x1] %v5889_v50  ;;  %v5720_v10 = vshrl.u32 %v5460_v32, 16  ;;  %4642 = vmatmul.bf16.gmra.mxu3 %v16054_v43  ;;  %4731 = vmatmul.bf16.gmra.mxu0 %v11892_v58  ;;  %v5723_v7 = vshll.u32 %v5460_v32, 16  ;;  %v10765_v40 = vor.u32 %v11615_v45, %v10762_v33  ;;  %v16057_v16 = vld [vmem:[#allocation91_spill] sm:$0xff] }
 0x37a   : > { %v5252_v4 = vmul.f32 %v11890_v41, %v4414_v35  ;;  %4820 = vmatmul.bf16.gmra.mxu1 %v16055_v60  ;;  %v5895_v58 = vld [vmem:[#allocation2 + $0xc8] sm:$0x1]  ;;  %v10826_v45 = vld [vmem:[#allocation3 + $0x3a8] sm:$0xf0] }
 0x37b   : > { %4909 = vmatmul.bf16.gmra.mxu2 %v16056_v63  ;;  %v5722_v31 = vrot.slane %v5720_v10, 7  ;;  %4955 = vmatpush.bf16.msra.mxu3 %v10765_v40 }
 0x37c   : > { %v5288_v55 = vadd.f32 %v11891_v54, %v5252_v4  ;;  %v4603_v34 = vpop.f32.mrf.mxu3 }
 0x37d   : > { %v5725_v9 = vor.u32 %v5723_v7, %v5722_v31  ;;  %v4604_v41 = vadd.f32 %v4603_v34, %v16057_v16  ;;  %v11709_v7 = vld [vmem:[%s15790_s2 + $0x10] sm:$0xff]  ;;  %v5726_v33 = vrot.slane %v5722_v31, 4  ;;  %v11647_v34 = vld [vmem:[#allocation3 + $0x424] sm:$0xf] }
 0x37e   : > { %v5320_v20 = vmax.f32 %v5288_v55, 0.0  ;;  %v4870_v1 = vpop.f32.mrf.mxu2  ;;  %v4694_v22 = vpop.f32.mrf.mxu0  ;;  %v11631_v55 = vld [vmem:[#allocation3 + $0x3a4] sm:$0xf]  ;;  %8928 = vmatpush.bf16.msra.mxu2 %v11709_v7 }
 0x37f   : > { %v5892_v50 = vsel %vm13637_vm13, %v5725_v9, %v5891_v56  ;;  %v4693_v43 = vadd.f32 %v4692_v30, %v4604_v41  ;;  %v4783_v10 = vpop.f32.mrf.mxu1  ;;  %v10829_v56 = vor.u32 %v11631_v55, %v10826_v45  ;;  %v10890_v30 = vld [vmem:[#allocation3 + $0x428] sm:$0xf0]  ;;  %v16061_v7 = vld [vmem:[#allocation61_spill] sm:$0xff]  ;;  %v16062_v45 = vld [vmem:[#allocation27_spill] sm:$0xff] }
 0x380   : > { %v5461_v35 = vpack.c.bf16 %v5320_v20, %v5320_v20  ;;  %5893 = vst [vmem:[#allocation2 + $0xc0] sm:$0xf] %v5892_v50  ;;  %v16058_v20 = vld [vmem:[#allocation94_spill] sm:$0xff]  ;;  %v10893_v41 = vor.u32 %v11647_v34, %v10890_v30 }
 0x381   : > { %v4782_v32 = vadd.f32 %v4781_v62, %v4693_v43  ;;  %5044 = vmatpush.bf16.msra.mxu0 %v10829_v56 }
 0x382   : > { %v5728_v54 = vshrl.u32 %v5461_v35, 16  ;;  %v5731_v4 = vshll.u32 %v5461_v35, 16  ;;  %5133 = vmatpush.bf16.msra.mxu1 %v10893_v41  ;;  %v16063_v41 = vld [vmem:[#allocation32_spill] sm:$0xff] }
 0x383   : > { %v14207_v63 = vadd.f32 %v4870_v1, %v4782_v32  ;;  %v16059_v32 = vld [vmem:[#allocation29_spill] sm:$0xff] }
 0x384   : > { %v5730_v60 = vrot.slane %v5728_v54, 7  ;;  %v4605_v57 = vpop.f32.mrf.mxu3 }
 0x385   : > { %v4606_v62 = vadd.f32 %v4605_v57, %v16058_v20 }
 0x386   : > { %v5733_v40 = vor.u32 %v5731_v4, %v5730_v60  ;;  %v5735_v9 = vrot.slane %v5730_v60, 4  ;;  %v4872_v16 = vpop.f32.mrf.mxu2  ;;  %v4697_v1 = vpop.f32.mrf.mxu0  ;;  %v11893_v4 = vld [vmem:[%s12182_s29 + $0x78] sm:$0xff]  ;;  %v16060_v60 = vld [vmem:[#allocation60_spill] sm:$0xff] }
 0x387   : > { %v4695_v35 = vadd.f32 %v4694_v22, %v4606_v62  ;;  %v4786_v43 = vpop.f32.mrf.mxu1 }
 0x388   : > { %v5734_v50 = vsel %vm13670_vm14, %v5726_v33, %v5733_v40  ;;  %v5896_v31 = vsel %vm13495_vm8, %v5735_v9, %v5895_v58 }
 0x389   : > { %5894 = vst [vmem:[#allocation2 + $0xc4] sm:$0xf] %v5734_v50  ;;  %v4784_v54 = vadd.f32 %v4783_v10, %v4695_v35  ;;  %4647 = vmatmul.bf16.gmra.mxu3 %v16059_v32  ;;  %4736 = vmatmul.bf16.gmra.mxu0 %v11893_v4  ;;  %v11894_v50 = vld [vmem:[%s12182_s29 + $0x84] sm:$0xff] }
 0x38a   : > { %5897 = vst [vmem:[#allocation2 + $0xc8] sm:$0x1] %v5896_v31  ;;  %4825 = vmatmul.bf16.gmra.mxu1 %v16060_v60  ;;  %v16064_v31 = vld [vmem:[#allocation62_spill] sm:$0xff]  ;;  %v16065_v35 = vld [vmem:[#allocation63_spill] sm:$0xff] }
 0x38b   : > { %4914 = vmatmul.bf16.gmra.mxu2 %v16061_v7  ;;  %v14221_v55 = vadd.f32 %v4872_v16, %v4784_v54  ;;  %v10754_v54 = vld [vmem:[#allocation3 + $0x318] sm:$0xf0] }
 0x38c   : > { %v4608_v36 = vpop.f32.mrf.mxu3 }
 0x38d   : > { %v4609_v8 = vadd.f32 %v4608_v36, %v16062_v45 }
 0x38e   : > { %v4875_v22 = vpop.f32.mrf.mxu2  ;;  %v4699_v58 = vpop.f32.mrf.mxu0 }
 0x38f   : > { %v4698_v33 = vadd.f32 %v4697_v1, %v4609_v8  ;;  %v4788_v57 = vpop.f32.mrf.mxu1 }
 0x391   : > { %v4787_v56 = vadd.f32 %v4786_v43, %v4698_v33  ;;  %v11613_v43 = vld [vmem:[#allocation3 + $0x314] sm:$0xf] }
 0x392   : > { %v10757_v4 = vor.u32 %v11613_v43, %v10754_v54  ;;  %v11629_v33 = vld [vmem:[#allocation3 + $0x394] sm:$0xf]  ;;  %v16067_v43 = vld [vmem:[#allocation65_spill] sm:$0xff]  ;;  %v16068_v54 = vld [vmem:[#allocation66_spill] sm:$0xff] }
 0x393   : > { %v14224_v10 = vadd.f32 %v4875_v22, %v4787_v56 }
 0x394   : > { %v4610_v34 = vpop.f32.mrf.mxu3  ;;  %4956 = vmatpush.bf16.msra.mxu3 %v10757_v4  ;;  %v16069_v4 = vld [vmem:[#allocation33_spill] sm:$0xff] }
 0x395   : > { %v4611_v30 = vadd.f32 %v4610_v34, %v13679_v12 }
 0x396   : > { %v4877_v40 = vpop.f32.mrf.mxu2  ;;  %v4702_v9 = vpop.f32.mrf.mxu0 }
 0x397   : > { %v4700_v20 = vadd.f32 %v4699_v58, %v4611_v30  ;;  %v4791_v62 = vpop.f32.mrf.mxu1  ;;  %v11708_v58 = vld [vmem:[%s15790_s2 + $0x8] sm:$0xff] }
 0x398   : > { %v11645_v30 = vld [vmem:[#allocation3 + $0x414] sm:$0xf]  ;;  %8929 = vmatpush.bf16.msra.mxu2 %v11708_v58 }
 0x399   : > { %v4789_v16 = vadd.f32 %v4788_v57, %v4700_v20  ;;  %4652 = vmatmul.bf16.gmra.mxu3 %v16063_v41  ;;  %4741 = vmatmul.bf16.gmra.mxu0 %v11894_v50  ;;  %v10818_v57 = vld [vmem:[#allocation3 + $0x398] sm:$0xf0] }
 0x39a   : > { %4830 = vmatmul.bf16.gmra.mxu1 %v16064_v31  ;;  %v10821_v34 = vor.u32 %v11629_v33, %v10818_v57  ;;  %v16066_v31 = vld [vmem:[#allocation35_spill] sm:$0xff] }
 0x39b   : > { %4919 = vmatmul.bf16.gmra.mxu2 %v16065_v35  ;;  %v14231_v1 = vadd.f32 %v4877_v40, %v4789_v16  ;;  %v10882_v40 = vld [vmem:[#allocation3 + $0x418] sm:$0xf0] }
 0x39c   : > { %v4613_v32 = vpop.f32.mrf.mxu3  ;;  %5045 = vmatpush.bf16.msra.mxu0 %v10821_v34  ;;  %v11895_v35 = vld [vmem:[%s12182_s29 + $0x90] sm:$0xff] }
 0x39d   : > { %v4614_v12 = vadd.f32 %v4613_v32, %v13719_v46 }
 0x39e   : > { %v4880_v60 = vpop.f32.mrf.mxu2  ;;  %v4704_v7 = vpop.f32.mrf.mxu0 }
 0x39f   : > { %v4703_v36 = vadd.f32 %v4702_v9, %v4614_v12  ;;  %v4793_v45 = vpop.f32.mrf.mxu1  ;;  %v10885_v9 = vor.u32 %v11645_v30, %v10882_v40 }
 0x3a1   : > { %v4792_v8 = vadd.f32 %v4791_v62, %v4703_v36  ;;  %5134 = vmatpush.bf16.msra.mxu1 %v10885_v9  ;;  %v11896_v9 = vld [vmem:[%s12182_s29 + $0x9c] sm:$0xff] }
 0x3a3   : > { %v14234_v22 = vadd.f32 %v4880_v60, %v4792_v8 }
 0x3a4   : > { %v4615_v56 = vpop.f32.mrf.mxu3 }
 0x3a5   : > { %v4616_v46 = vadd.f32 %v4615_v56, %v13748_v0 }
 0x3a6   : > { %v4882_v20 = vpop.f32.mrf.mxu2  ;;  %v4707_v16 = vpop.f32.mrf.mxu0 }
 0x3a7   : > { %v4705_v62 = vadd.f32 %v4704_v7, %v4616_v46  ;;  %v4796_v41 = vpop.f32.mrf.mxu1 }
 0x3a9   : > { %v4794_v50 = vadd.f32 %v4793_v45, %v4705_v62  ;;  %4657 = vmatmul.bf16.gmra.mxu3 %v16066_v31  ;;  %4746 = vmatmul.bf16.gmra.mxu0 %v11895_v35  ;;  %v16071_v62 = vld [vmem:[#allocation67_spill] sm:$0xff]  ;;  %v10746_v31 = vld [vmem:[#allocation3 + $0x308] sm:$0xf0] }
 0x3aa   : > { %4835 = vmatmul.bf16.gmra.mxu1 %v16067_v43 }
 0x3ab   : > { %4924 = vmatmul.bf16.gmra.mxu2 %v16068_v54  ;;  %v14244_v32 = vadd.f32 %v4882_v20, %v4794_v50  ;;  %v16070_v20 = vld [vmem:[#allocation21_spill] sm:$0xff]  ;;  %v16072_v50 = vld [vmem:[#allocation68_spill] sm:$0xff] }
 0x3ac   : > { %v4618_v0 = vpop.f32.mrf.mxu3 }
 0x3ad   : > { %v4619_v12 = vadd.f32 %v4618_v0, %v16069_v4 }
 0x3ae   : > { %v4885_v60 = vpop.f32.mrf.mxu2  ;;  %v4709_v36 = vpop.f32.mrf.mxu0 }
 0x3af   : > { %v4708_v7 = vadd.f32 %v4707_v16, %v4619_v12  ;;  %v4798_v8 = vpop.f32.mrf.mxu1 }
 0x3b1   : > { %v4797_v58 = vadd.f32 %v4796_v41, %v4708_v7  ;;  %v11611_v41 = vld [vmem:[#allocation3 + $0x304] sm:$0xf]  ;;  %v11707_v7 = vld [vmem:[%s15790_s2] sm:$0xff] }
 0x3b2   : > { %v10749_v43 = vor.u32 %v11611_v41, %v10746_v31  ;;  %8930 = vmatpush.bf16.msra.mxu2 %v11707_v7  ;;  %v11897_v41 = vld [vmem:[%s12182_s29 + $0xa8] sm:$0xff]  ;;  %v16074_v31 = vld [vmem:[#allocation69_spill] sm:$0xff] }
 0x3b3   : > { %v14247_v45 = vadd.f32 %v4885_v60, %v4797_v58  ;;  %v10810_v58 = vld [vmem:[#allocation3 + $0x388] sm:$0xf0] }
 0x3b4   : > { %v4620_v33 = vpop.f32.mrf.mxu3  ;;  %4957 = vmatpush.bf16.msra.mxu3 %v10749_v43 }
 0x3b5   : > { %v4621_v57 = vadd.f32 %v4620_v33, %v13809_v48 }
 0x3b6   : > { %v4887_v56 = vpop.f32.mrf.mxu2  ;;  %v4712_v34 = vpop.f32.mrf.mxu0 }
 0x3b7   : > { %v4710_v30 = vadd.f32 %v4709_v36, %v4621_v57  ;;  %v4801_v40 = vpop.f32.mrf.mxu1 }
 0x3b9   : > { %v4799_v46 = vadd.f32 %v4798_v8, %v4710_v30  ;;  %4662 = vmatmul.bf16.gmra.mxu3 %v16070_v20  ;;  %4751 = vmatmul.bf16.gmra.mxu0 %v11896_v9  ;;  %v11627_v8 = vld [vmem:[#allocation3 + $0x384] sm:$0xf]  ;;  %v10874_v30 = vld [vmem:[#allocation3 + $0x408] sm:$0xf0] }
 0x3ba   : > { %4840 = vmatmul.bf16.gmra.mxu1 %v16071_v62  ;;  %v10813_v57 = vor.u32 %v11627_v8, %v10810_v58  ;;  %v12051_v8 = vmov 0  }
 0x3bb   : > { %4929 = vmatmul.bf16.gmra.mxu2 %v16072_v50  ;;  %v14254_v16 = vadd.f32 %v4887_v56, %v4799_v46  ;;  %v11643_v56 = vld [vmem:[#allocation3 + $0x404] sm:$0xf]  ;;  %v16073_v50 = vld [vmem:[#allocation28_spill] sm:$0xff]  ;;  %5321 = vst [vmem:[#allocation2] sm:$0xf] %v12051_v8 }
 0x3bc   : > { %v4623_v35 = vpop.f32.mrf.mxu3  ;;  %5046 = vmatpush.bf16.msra.mxu0 %v10813_v57  ;;  %5322 = vst [vmem:[#allocation2 + $0x4] sm:$0xf] %v12051_v8 }
 0x3bd   : > { %v4624_v48 = vadd.f32 %v4623_v35, %v13843_v24  ;;  %v16075_v35 = vld [vmem:[#allocation70_spill] sm:$0xff]  ;;  %5323 = vst [vmem:[#allocation2 + $0x8] sm:$0x1] %v12051_v8 }
 0x3be   : > { %v4890_v54 = vpop.f32.mrf.mxu2  ;;  %v4714_v0 = vpop.f32.mrf.mxu0  ;;  %5325 = vst [vmem:[#allocation2 + $0xcc] sm:$0xf] %v12051_v8 }
 0x3bf   : > { %v4713_v4 = vadd.f32 %v4712_v34, %v4624_v48  ;;  %v4803_v12 = vpop.f32.mrf.mxu1  ;;  %v10877_v34 = vor.u32 %v11643_v56, %v10874_v30  ;;  %5326 = vst [vmem:[#allocation2 + $0xd0] sm:$0xf] %v12051_v8 }
 0x3c0   : > { %5327 = vst [vmem:[#allocation2 + $0xd4] sm:$0x1] %v12051_v8 }
 0x3c1   : > { %v4802_v60 = vadd.f32 %v4801_v40, %v4713_v4  ;;  %5135 = vmatpush.bf16.msra.mxu1 %v10877_v34  ;;  %v11898_v34 = vld [vmem:[%s12182_s29 + $0xb4] sm:$0xff] }
 0x3c3   : > { %v14257_v36 = vadd.f32 %v4890_v54, %v4802_v60 }
 0x3c4   : > { %v4625_v33 = vpop.f32.mrf.mxu3 }
 0x3c5   : > { %v4626_v24 = vadd.f32 %v4625_v33, %v13860_v52 }
 0x3c6   : > { %v4892_v46 = vpop.f32.mrf.mxu2  ;;  %v4717_v20 = vpop.f32.mrf.mxu0  ;;  %v11706_v14 = vld [vmem:[#allocation2 + $0xcc] sm:$0xff] }
 0x3c7   : > { %v4715_v40 = vadd.f32 %v4714_v0, %v4626_v24  ;;  %v4806_v9 = vpop.f32.mrf.mxu1 }
 0x3c9   : > { %v4804_v62 = vadd.f32 %v4803_v12, %v4715_v40  ;;  %4667 = vmatmul.bf16.gmra.mxu3 %v16073_v50  ;;  %4756 = vmatmul.bf16.gmra.mxu0 %v11897_v41  ;;  %v16078_v40 = vld [vmem:[#allocation72_spill] sm:$0xff] }
 0x3ca   : > { %4845 = vmatmul.bf16.gmra.mxu1 %v16074_v31 }
 0x3cb   : > { %4934 = vmatmul.bf16.gmra.mxu2 %v16075_v35  ;;  %v14267_v43 = vadd.f32 %v4892_v46, %v4804_v62  ;;  %v16076_v46 = vld [vmem:[#allocation30_spill] sm:$0xff] }
 0x3cc   : > { %v4628_v52 = vpop.f32.mrf.mxu3 }
 0x3cd   : > { %v4629_v48 = vadd.f32 %v4628_v52, %v13895_v49 }
 0x3ce   : > { %v4895_v54 = vpop.f32.mrf.mxu2  ;;  %v4719_v4 = vpop.f32.mrf.mxu0 }
 0x3cf   : > { %v4718_v60 = vadd.f32 %v4717_v20, %v4629_v48  ;;  %v4808_v0 = vpop.f32.mrf.mxu1  ;;  %v16077_v20 = vld [vmem:[#allocation71_spill] sm:$0xff] }
 0x3d1   : > { %v4807_v7 = vadd.f32 %v4806_v9, %v4718_v60  ;;  %v11730_v60 = vld [vmem:[%s15790_s2 + $0xb8] sm:$0xff] }
 0x3d2   : > { %9101 = vmatpush.bf16.msrb.mxu0 %v11730_v60  ;;  %v11659_v60 = vld [vmem:[#allocation2] sm:$0xff] }
 0x3d3   : > { %v14270_v12 = vadd.f32 %v4895_v54, %v4807_v7 }
 0x3d4   : > { %v4630_v58 = vpop.f32.mrf.mxu3 }
 0x3d5   : > { %v4631_v33 = vadd.f32 %v4630_v58, %v13915_v27  ;;  %v11722_v27 = vld [vmem:[%s15790_s2 + $0x78] sm:$0xff] }
 0x3d6   : > { %v4897_v57 = vpop.f32.mrf.mxu2  ;;  %v4722_v56 = vpop.f32.mrf.mxu0  ;;  %9012 = vmatpush.bf16.msrb.mxu3 %v11722_v27 }
 0x3d7   : > { %v4720_v49 = vadd.f32 %v4719_v4, %v4631_v33  ;;  %v4811_v30 = vpop.f32.mrf.mxu1  ;;  %v11746_v4 = vld [vmem:[%s15790_s2 + $0x138] sm:$0xff] }
 0x3d8   : > { %9279 = vmatpush.bf16.msrb.mxu2 %v11746_v4 }
 0x3d9   : > { %v4809_v24 = vadd.f32 %v4808_v0, %v4720_v49  ;;  %4672 = vmatmul.bf16.gmra.mxu3 %v16076_v46  ;;  %4761 = vmatmul.bf16.gmra.mxu0 %v11898_v34  ;;  %v16079_v49 = vld [vmem:[#allocation34_spill] sm:$0xff] }
 0x3da   : > { %4850 = vmatmul.bf16.gmra.mxu1 %v16077_v20  ;;  %v16081_v46 = vld [vmem:[#allocation74_spill] sm:$0xff] }
 0x3db   : > { %4939 = vmatmul.bf16.gmra.mxu2 %v16078_v40  ;;  %v14277_v9 = vadd.f32 %v4897_v57, %v4809_v24  ;;  %v16080_v24 = vld [vmem:[#allocation73_spill] sm:$0xff] }
 0x3dc   : > { %v4633_v62 = vpop.f32.mrf.mxu3 }
 0x3dd   : > { %v4634_v50 = vadd.f32 %v4633_v62, %v13940_v51  ;;  %v11738_v51 = vld [vmem:[%s15790_s2 + $0xf8] sm:$0xff] }
 0x3de   : > { %v4900_v41 = vpop.f32.mrf.mxu2  ;;  %v4724_v31 = vpop.f32.mrf.mxu0  ;;  %9190 = vmatpush.bf16.msrb.mxu1 %v11738_v51 }
 0x3df   : > { %v4723_v35 = vadd.f32 %v4722_v56, %v4634_v50  ;;  %v4813_v52 = vpop.f32.mrf.mxu1 }
 0x3e1   : > { %v4812_v48 = vadd.f32 %v4811_v30, %v4723_v35  ;;  %v11899_v30 = vld [vmem:[%s12182_s29 + $0xc0] sm:$0xff] }
 0x3e3   : > { %v14283_v54 = vadd.f32 %v4900_v41, %v4812_v48 }
 0x3e4   : > { %v4635_v0 = vpop.f32.mrf.mxu3 }
 0x3e5   : > { %v4636_v7 = vadd.f32 %v4635_v0, %v13963_v5 }
 0x3e6   : > { %v4902_v8 = vpop.f32.mrf.mxu2  ;;  %v4727_v58 = vpop.f32.mrf.mxu0 }
 0x3e7   : > { %v4725_v33 = vadd.f32 %v4724_v31, %v4636_v7  ;;  %v4816_v57 = vpop.f32.mrf.mxu1 }
 0x3e9   : > { %v4814_v56 = vadd.f32 %v4813_v52, %v4725_v33  ;;  %4677 = vmatmul.bf16.gmra.mxu3 %v16079_v49  ;;  %4766 = vmatmul.bf16.gmra.mxu0 %v11899_v30  ;;  %v16082_v33 = vld [vmem:[#allocation75_spill] sm:$0xff] }
 0x3ea   : > { %4855 = vmatmul.bf16.gmra.mxu1 %v16080_v24 }
 0x3eb   : > { %4944 = vmatmul.bf16.gmra.mxu2 %v16081_v46  ;;  %v14299_v34 = vadd.f32 %v4902_v8, %v4814_v56  ;;  %v11900_v8 = vld [vmem:[%s12182_s29 + $0x18] sm:$0xff] }
 0x3ec   : > { %v4638_v20 = vpop.f32.mrf.mxu3 }
 0x3ed   : > { %v4639_v5 = vadd.f32 %v4638_v20, %v13978_v15  ;;  %v16083_v15 = vld [vmem:[#allocation76_spill] sm:$0xff] }
 0x3ee   : > { %v4905_v40 = vpop.f32.mrf.mxu2  ;;  %v4729_v27 = vpop.f32.mrf.mxu0 }
 0x3ef   : > { %v4728_v62 = vadd.f32 %v4727_v58, %v4639_v5  ;;  %v4818_v50 = vpop.f32.mrf.mxu1 }
 0x3f1   : > { %v4817_v41 = vadd.f32 %v4816_v57, %v4728_v62  ;;  %v11721_v57 = vld [vmem:[%s15790_s2 + $0x70] sm:$0xff] }
 0x3f2   : > { %9013 = vmatpush.bf16.msrb.mxu3 %v11721_v57 }
 0x3f3   : > { %v14302_v31 = vadd.f32 %v4905_v40, %v4817_v41  ;;  %v11745_v40 = vld [vmem:[%s15790_s2 + $0x130] sm:$0xff] }
 0x3f4   : > { %v4640_v35 = vpop.f32.mrf.mxu3  ;;  %9280 = vmatpush.bf16.msrb.mxu2 %v11745_v40 }
 0x3f5   : > { %v4641_v52 = vadd.f32 %v4640_v35, %v13990_v13 }
 0x3f6   : > { %v4907_v48 = vpop.f32.mrf.mxu2  ;;  %v4732_v4 = vpop.f32.mrf.mxu0 }
 0x3f7   : > { %v4730_v51 = vadd.f32 %v4729_v27, %v4641_v52  ;;  %v4821_v0 = vpop.f32.mrf.mxu1  ;;  %v11729_v27 = vld [vmem:[%s15790_s2 + $0xb0] sm:$0xff] }
 0x3f8   : > { %9102 = vmatpush.bf16.msrb.mxu0 %v11729_v27 }
 0x3f9   : > { %v4819_v7 = vadd.f32 %v4818_v50, %v4730_v51  ;;  %4958 = vmatmul.bf16.vlgmr.msra.gmra.mxu3 %v11900_v8  ;;  %5047 = vmatmul.bf16.vlgmr.msra.gmra.mxu0 %v16082_v33  ;;  %v11901_v51 = vld [vmem:[%s12182_s29 + $0x24] sm:$0xff] }
 0x3fa   : > { %5136 = vmatmul.bf16.vlgmr.msra.gmra.mxu1 %v16083_v15 }
 0x3fb   : > { %8931 = vmatmul.bf16.vlgmr.msra.gmra.mxu2 %v11659_v60  ;;  %v14308_v58 = vadd.f32 %v4907_v48, %v4819_v7  ;;  %v16085_v7 = vld [vmem:[#allocation78_spill] sm:$0xff] }
 0x3fc   : > { %v4643_v13 = vpop.f32.mrf.mxu3 }
 0x3fd   : > { %v4644_v56 = vadd.f32 %v4643_v13, %v14005_v19  ;;  %v11737_v19 = vld [vmem:[%s15790_s2 + $0xf0] sm:$0xff] }
 0x3fe   : > { %v4910_v49 = vpop.f32.mrf.mxu2  ;;  %v4734_v30 = vpop.f32.mrf.mxu0  ;;  %9191 = vmatpush.bf16.msrb.mxu1 %v11737_v19 }
 0x3ff   : > { %v4733_v24 = vadd.f32 %v4732_v4, %v4644_v56  ;;  %v4823_v46 = vpop.f32.mrf.mxu1  ;;  %v11660_v4 = vld [vmem:[#allocation2 + $0xc] sm:$0xff] }
 0x401   : > { %v4822_v20 = vadd.f32 %v4821_v0, %v4733_v24  ;;  %v16084_v0 = vld [vmem:[#allocation77_spill] sm:$0xff] }
 0x403   : > { %v14314_v5 = vadd.f32 %v4910_v49, %v4822_v20 }
 0x404   : > { %v4645_v62 = vpop.f32.mrf.mxu3 }
 0x405   : > { %v4646_v50 = vadd.f32 %v4645_v62, %v14014_v47  ;;  %v11661_v62 = vld [vmem:[#allocation2 + $0x18] sm:$0xff] }
 0x406   : > { %v4912_v41 = vpop.f32.mrf.mxu2  ;;  %v4737_v35 = vpop.f32.mrf.mxu0 }
 0x407   : > { %v4735_v52 = vadd.f32 %v4734_v30, %v4646_v50  ;;  %v4826_v48 = vpop.f32.mrf.mxu1 }
 0x409   : > { %v4824_v60 = vadd.f32 %v4823_v46, %v4735_v52  ;;  %4963 = vmatmul.bf16.gmra.mxu3 %v11901_v51  ;;  %5052 = vmatmul.bf16.gmra.mxu0 %v16084_v0  ;;  %v16086_v52 = vld [vmem:[#allocation79_spill] sm:$0xff] }
 0x40a   : > { %5141 = vmatmul.bf16.gmra.mxu1 %v16085_v7 }
 0x40b   : > { %8936 = vmatmul.bf16.gmra.mxu2 %v11660_v4  ;;  %v14329_v8 = vadd.f32 %v4912_v41, %v4824_v60  ;;  %v11902_v41 = vld [vmem:[%s12182_s29 + $0x30] sm:$0xff] }
 0x40c   : > { %v4648_v33 = vpop.f32.mrf.mxu3 }
 0x40d   : > { %v4649_v47 = vadd.f32 %v4648_v33, %v14029_v29  ;;  %v16087_v29 = vld [vmem:[#allocation80_spill] sm:$0xff] }
 0x40e   : > { %v4915_v15 = vpop.f32.mrf.mxu2  ;;  %v4739_v57 = vpop.f32.mrf.mxu0 }
 0x40f   : > { %v4738_v13 = vadd.f32 %v4737_v35, %v4649_v47  ;;  %v4828_v56 = vpop.f32.mrf.mxu1 }
 0x411   : > { %v4827_v49 = vadd.f32 %v4826_v48, %v4738_v13  ;;  %v11720_v48 = vld [vmem:[%s15790_s2 + $0x68] sm:$0xff] }
 0x412   : > { %9014 = vmatpush.bf16.msrb.mxu3 %v11720_v48 }
 0x413   : > { %v14332_v30 = vadd.f32 %v4915_v15, %v4827_v49  ;;  %v11744_v15 = vld [vmem:[%s15790_s2 + $0x128] sm:$0xff] }
 0x414   : > { %v4650_v24 = vpop.f32.mrf.mxu3  ;;  %9281 = vmatpush.bf16.msrb.mxu2 %v11744_v15 }
 0x415   : > { %v4651_v46 = vadd.f32 %v4650_v24, %v14041_v39 }
 0x416   : > { %v4917_v20 = vpop.f32.mrf.mxu2  ;;  %v4742_v40 = vpop.f32.mrf.mxu0 }
 0x417   : > { %v4740_v27 = vadd.f32 %v4739_v57, %v4651_v46  ;;  %v4831_v19 = vpop.f32.mrf.mxu1  ;;  %v11728_v57 = vld [vmem:[%s15790_s2 + $0xa8] sm:$0xff] }
 0x418   : > { %9103 = vmatpush.bf16.msrb.mxu0 %v11728_v57 }
 0x419   : > { %v4829_v50 = vadd.f32 %v4828_v56, %v4740_v27  ;;  %4968 = vmatmul.bf16.gmra.mxu3 %v11902_v41  ;;  %5057 = vmatmul.bf16.gmra.mxu0 %v16086_v52 }
 0x41a   : > { %5146 = vmatmul.bf16.gmra.mxu1 %v16087_v29 }
 0x41b   : > { %8941 = vmatmul.bf16.gmra.mxu2 %v11661_v62  ;;  %v14338_v35 = vadd.f32 %v4917_v20, %v4829_v50  ;;  %v16088_v62 = vld [vmem:[#allocation81_spill] sm:$0xff]  ;;  %v16089_v50 = vld [vmem:[#allocation82_spill] sm:$0xff] }
 0x41c   : > { %v4653_v39 = vpop.f32.mrf.mxu3 }
 0x41d   : > { %v4654_v4 = vadd.f32 %v4653_v39, %v14056_v2  ;;  %v11736_v2 = vld [vmem:[%s15790_s2 + $0xe8] sm:$0xff] }
 0x41e   : > { %v4920_v60 = vpop.f32.mrf.mxu2  ;;  %v4744_v51 = vpop.f32.mrf.mxu0  ;;  %9192 = vmatpush.bf16.msrb.mxu1 %v11736_v2 }
 0x41f   : > { %v4743_v0 = vadd.f32 %v4742_v40, %v4654_v4  ;;  %v4833_v7 = vpop.f32.mrf.mxu1  ;;  %v11662_v40 = vld [vmem:[#allocation2 + $0x24] sm:$0xff] }
 0x421   : > { %v4832_v33 = vadd.f32 %v4831_v19, %v4743_v0  ;;  %v11903_v19 = vld [vmem:[%s12182_s29 + $0x3c] sm:$0xff] }
 0x423   : > { %v14344_v47 = vadd.f32 %v4920_v60, %v4832_v33 }
 0x424   : > { %v4655_v13 = vpop.f32.mrf.mxu3 }
 0x425   : > { %v4656_v56 = vadd.f32 %v4655_v13, %v14065_v6  ;;  %v11663_v13 = vld [vmem:[#allocation2 + $0x30] sm:$0xff] }
 0x426   : > { %v4922_v49 = vpop.f32.mrf.mxu2  ;;  %v4747_v24 = vpop.f32.mrf.mxu0 }
 0x427   : > { %v4745_v46 = vadd.f32 %v4744_v51, %v4656_v56  ;;  %v4836_v20 = vpop.f32.mrf.mxu1 }
 0x429   : > { %v4834_v27 = vadd.f32 %v4833_v7, %v4745_v46  ;;  %4973 = vmatmul.bf16.gmra.mxu3 %v11903_v19  ;;  %5062 = vmatmul.bf16.gmra.mxu0 %v16088_v62  ;;  %v16090_v46 = vld [vmem:[#allocation83_spill] sm:$0xff] }
 0x42a   : > { %5151 = vmatmul.bf16.gmra.mxu1 %v16089_v50 }
 0x42b   : > { %8946 = vmatmul.bf16.gmra.mxu2 %v11662_v40  ;;  %v14359_v41 = vadd.f32 %v4922_v49, %v4834_v27  ;;  %v11904_v49 = vld [vmem:[%s12182_s29 + $0x48] sm:$0xff] }
 0x42c   : > { %v4658_v52 = vpop.f32.mrf.mxu3 }
 0x42d   : > { %v4659_v6 = vadd.f32 %v4658_v52, %v14080_v11  ;;  %v16091_v11 = vld [vmem:[#allocation84_spill] sm:$0xff] }
 0x42e   : > { %v4925_v29 = vpop.f32.mrf.mxu2  ;;  %v4749_v48 = vpop.f32.mrf.mxu0 }
 0x42f   : > { %v4748_v39 = vadd.f32 %v4747_v24, %v4659_v6  ;;  %v4838_v4 = vpop.f32.mrf.mxu1 }
 0x431   : > { %v4837_v60 = vadd.f32 %v4836_v20, %v4748_v39  ;;  %v11719_v20 = vld [vmem:[%s15790_s2 + $0x60] sm:$0xff] }
 0x432   : > { %9015 = vmatpush.bf16.msrb.mxu3 %v11719_v20 }
 0x433   : > { %v14362_v51 = vadd.f32 %v4925_v29, %v4837_v60  ;;  %v11743_v29 = vld [vmem:[%s15790_s2 + $0x120] sm:$0xff] }
 0x434   : > { %v4660_v0 = vpop.f32.mrf.mxu3  ;;  %9282 = vmatpush.bf16.msrb.mxu2 %v11743_v29 }
 0x435   : > { %v4661_v7 = vadd.f32 %v4660_v0, %v14092_v42 }
 0x436   : > { %v4927_v33 = vpop.f32.mrf.mxu2  ;;  %v4752_v15 = vpop.f32.mrf.mxu0 }
 0x437   : > { %v4750_v57 = vadd.f32 %v4749_v48, %v4661_v7  ;;  %v4841_v2 = vpop.f32.mrf.mxu1  ;;  %v11727_v48 = vld [vmem:[%s15790_s2 + $0xa0] sm:$0xff] }
 0x438   : > { %9104 = vmatpush.bf16.msrb.mxu0 %v11727_v48 }
 0x439   : > { %v4839_v56 = vadd.f32 %v4838_v4, %v4750_v57  ;;  %4978 = vmatmul.bf16.gmra.mxu3 %v11904_v49  ;;  %5067 = vmatmul.bf16.gmra.mxu0 %v16090_v46 }
 0x43a   : > { %5156 = vmatmul.bf16.gmra.mxu1 %v16091_v11 }
 0x43b   : > { %8951 = vmatmul.bf16.gmra.mxu2 %v11663_v13  ;;  %v14368_v24 = vadd.f32 %v4927_v33, %v4839_v56  ;;  %v16092_v13 = vld [vmem:[#allocation86_spill] sm:$0xff]  ;;  %v16093_v56 = vld [vmem:[#allocation87_spill] sm:$0xff] }
 0x43c   : > { %v4663_v42 = vpop.f32.mrf.mxu3 }
 0x43d   : > { %v4664_v40 = vadd.f32 %v4663_v42, %v14107_v53  ;;  %v11735_v53 = vld [vmem:[%s15790_s2 + $0xe0] sm:$0xff] }
 0x43e   : > { %v4930_v27 = vpop.f32.mrf.mxu2  ;;  %v4754_v19 = vpop.f32.mrf.mxu0  ;;  %9193 = vmatpush.bf16.msrb.mxu1 %v11735_v53 }
 0x43f   : > { %v4753_v62 = vadd.f32 %v4752_v15, %v4664_v40  ;;  %v4843_v50 = vpop.f32.mrf.mxu1  ;;  %v11664_v15 = vld [vmem:[#allocation2 + $0x3c] sm:$0xff] }
 0x441   : > { %v4842_v52 = vadd.f32 %v4841_v2, %v4753_v62  ;;  %v11905_v2 = vld [vmem:[%s12182_s29 + $0x54] sm:$0xff] }
 0x443   : > { %v14374_v6 = vadd.f32 %v4930_v27, %v4842_v52 }
 0x444   : > { %v4665_v39 = vpop.f32.mrf.mxu3 }
 0x445   : > { %v4666_v4 = vadd.f32 %v4665_v39, %v14116_v25  ;;  %v11665_v39 = vld [vmem:[#allocation2 + $0x48] sm:$0xff] }
 0x446   : > { %v4932_v60 = vpop.f32.mrf.mxu2  ;;  %v4757_v0 = vpop.f32.mrf.mxu0 }
 0x447   : > { %v4755_v7 = vadd.f32 %v4754_v19, %v4666_v4  ;;  %v4846_v33 = vpop.f32.mrf.mxu1 }
 0x449   : > { %v4844_v57 = vadd.f32 %v4843_v50, %v4755_v7  ;;  %4983 = vmatmul.bf16.gmra.mxu3 %v11905_v2  ;;  %5072 = vmatmul.bf16.gmra.mxu0 %v16092_v13  ;;  %v16094_v7 = vld [vmem:[#allocation50_spill] sm:$0xff] }
 0x44a   : > { %5161 = vmatmul.bf16.gmra.mxu1 %v16093_v56 }
 0x44b   : > { %8956 = vmatmul.bf16.gmra.mxu2 %v11664_v15  ;;  %v14389_v49 = vadd.f32 %v4932_v60, %v4844_v57  ;;  %v11906_v60 = vld [vmem:[%s12182_s29 + $0x60] sm:$0xff] }
 0x44c   : > { %v4668_v46 = vpop.f32.mrf.mxu3 }
 0x44d   : > { %v4669_v25 = vadd.f32 %v4668_v46, %v14131_v3  ;;  %v16095_v3 = vld [vmem:[#allocation88_spill] sm:$0xff] }
 0x44e   : > { %v4935_v11 = vpop.f32.mrf.mxu2  ;;  %v4759_v20 = vpop.f32.mrf.mxu0 }
 0x44f   : > { %v4758_v42 = vadd.f32 %v4757_v0, %v4669_v25  ;;  %v4848_v40 = vpop.f32.mrf.mxu1  ;;  %v11742_v25 = vld [vmem:[%s15790_s2 + $0x118] sm:$0xff] }
 0x450   : > { %9283 = vmatpush.bf16.msrb.mxu2 %v11742_v25 }
 0x451   : > { %v4847_v27 = vadd.f32 %v4846_v33, %v4758_v42  ;;  %v11718_v33 = vld [vmem:[%s15790_s2 + $0x58] sm:$0xff] }
 0x452   : > { %9016 = vmatpush.bf16.msrb.mxu3 %v11718_v33 }
 0x453   : > { %v14392_v19 = vadd.f32 %v4935_v11, %v4847_v27  ;;  %v11726_v11 = vld [vmem:[%s15790_s2 + $0x98] sm:$0xff] }
 0x454   : > { %v4670_v62 = vpop.f32.mrf.mxu3  ;;  %9105 = vmatpush.bf16.msrb.mxu0 %v11726_v11 }
 0x455   : > { %v4671_v50 = vadd.f32 %v4670_v62, %v14143_v61 }
 0x456   : > { %v4937_v52 = vpop.f32.mrf.mxu2  ;;  %v4762_v29 = vpop.f32.mrf.mxu0 }
 0x457   : > { %v4760_v48 = vadd.f32 %v4759_v20, %v4671_v50  ;;  %v4851_v53 = vpop.f32.mrf.mxu1  ;;  %v11734_v20 = vld [vmem:[%s15790_s2 + $0xd8] sm:$0xff] }
 0x458   : > { %9194 = vmatpush.bf16.msrb.mxu1 %v11734_v20 }
 0x459   : > { %v4849_v4 = vadd.f32 %v4848_v40, %v4760_v48  ;;  %4988 = vmatmul.bf16.gmra.mxu3 %v11906_v60  ;;  %5077 = vmatmul.bf16.gmra.mxu0 %v16094_v7 }
 0x45a   : > { %5166 = vmatmul.bf16.gmra.mxu1 %v16095_v3 }
 0x45b   : > { %8961 = vmatmul.bf16.gmra.mxu2 %v11665_v39  ;;  %v14398_v0 = vadd.f32 %v4937_v52, %v4849_v4  ;;  %v16096_v39 = vld [vmem:[#allocation89_spill] sm:$0xff]  ;;  %v16097_v4 = vld [vmem:[#allocation90_spill] sm:$0xff] }
 0x45c   : > { %v4673_v61 = vpop.f32.mrf.mxu3 }
 0x45d   : > { %v4674_v15 = vadd.f32 %v4673_v61, %v14158_v18 }
 0x45e   : > { %v4940_v57 = vpop.f32.mrf.mxu2  ;;  %v4764_v2 = vpop.f32.mrf.mxu0 }
 0x45f   : > { %v4763_v13 = vadd.f32 %v4762_v29, %v4674_v15  ;;  %v4853_v56 = vpop.f32.mrf.mxu1  ;;  %v11666_v29 = vld [vmem:[#allocation2 + $0x54] sm:$0xff] }
 0x461   : > { %v4852_v46 = vadd.f32 %v4851_v53, %v4763_v13  ;;  %v11907_v53 = vld [vmem:[%s12182_s29 + $0x6c] sm:$0xff] }
 0x463   : > { %v14413_v18 = vadd.f32 %v4940_v57, %v4852_v46 }
 0x464   : > { %v4675_v42 = vpop.f32.mrf.mxu3 }
 0x465   : > { %v4676_v40 = vadd.f32 %v4675_v42, %v14167_v26  ;;  %v11667_v42 = vld [vmem:[#allocation2 + $0x60] sm:$0xff] }
 0x466   : > { %v4942_v27 = vpop.f32.mrf.mxu2  ;;  %v4767_v62 = vpop.f32.mrf.mxu0 }
 0x467   : > { %v4765_v50 = vadd.f32 %v4764_v2, %v4676_v40  ;;  %v4856_v52 = vpop.f32.mrf.mxu1 }
 0x469   : > { %v4854_v48 = vadd.f32 %v4853_v56, %v4765_v50  ;;  %4993 = vmatmul.bf16.gmra.mxu3 %v11907_v53  ;;  %5082 = vmatmul.bf16.gmra.mxu0 %v16096_v39  ;;  %v16098_v50 = vld [vmem:[#allocation56_spill] sm:$0xff] }
 0x46a   : > { %5171 = vmatmul.bf16.gmra.mxu1 %v16097_v4 }
 0x46b   : > { %8966 = vmatmul.bf16.gmra.mxu2 %v11666_v29  ;;  %v14419_v60 = vadd.f32 %v4942_v27, %v4854_v48  ;;  %v11908_v27 = vld [vmem:[%s12182_s29 + $0x78] sm:$0xff] }
 0x46c   : > { %v4678_v7 = vpop.f32.mrf.mxu3 }
 0x46d   : > { %v4679_v3 = vadd.f32 %v4678_v7, %v14183_v38  ;;  %v16099_v38 = vld [vmem:[#allocation57_spill] sm:$0xff] }
 0x46e   : > { %v4945_v26 = vpop.f32.mrf.mxu2  ;;  %v4769_v33 = vpop.f32.mrf.mxu0 }
 0x46f   : > { %v4768_v61 = vadd.f32 %v4767_v62, %v4679_v3  ;;  %v4858_v15 = vpop.f32.mrf.mxu1  ;;  %v11717_v62 = vld [vmem:[%s15790_s2 + $0x50] sm:$0xff] }
 0x470   : > { %9017 = vmatpush.bf16.msrb.mxu3 %v11717_v62  ;;  %v11741_v3 = vld [vmem:[%s15790_s2 + $0x110] sm:$0xff] }
 0x471   : > { %v4857_v57 = vadd.f32 %v4856_v52, %v4768_v61  ;;  %9284 = vmatpush.bf16.msrb.mxu2 %v11741_v3 }
 0x473   : > { %v14422_v2 = vadd.f32 %v4945_v26, %v4857_v57  ;;  %v11725_v26 = vld [vmem:[%s15790_s2 + $0x90] sm:$0xff] }
 0x474   : > { %v4680_v13 = vpop.f32.mrf.mxu3  ;;  %9106 = vmatpush.bf16.msrb.mxu0 %v11725_v26 }
 0x475   : > { %v4681_v56 = vadd.f32 %v4680_v13, %v14194_v17 }
 0x476   : > { %v4947_v46 = vpop.f32.mrf.mxu2  ;;  %v5048_v25 = vpop.f32.mrf.mxu0 }
 0x477   : > { %v4770_v11 = vadd.f32 %v4769_v33, %v4681_v56  ;;  %v5137_v20 = vpop.f32.mrf.mxu1 }
 0x479   : > { %v4859_v40 = vadd.f32 %v4858_v15, %v4770_v11  ;;  %4998 = vmatmul.bf16.gmra.mxu3 %v11908_v27  ;;  %5087 = vmatmul.bf16.gmra.mxu0 %v16098_v50  ;;  %v11909_v11 = vld [vmem:[%s12182_s29 + $0x84] sm:$0xff] }
 0x47a   : > { %5176 = vmatmul.bf16.gmra.mxu1 %v16099_v38 }
 0x47b   : > { %8971 = vmatmul.bf16.gmra.mxu2 %v11667_v42  ;;  %v14431_v52 = vadd.f32 %v4947_v46, %v4859_v40  ;;  %v11668_v46 = vld [vmem:[#allocation2 + $0x6c] sm:$0xff]  ;;  %v16103_v42 = vld [vmem:[#allocation93_spill] sm:$0xff] }
 0x47c   : > { %v4959_v17 = vpop.f32.mrf.mxu3 }
 0x47d   : > { %v4960_v29 = vadd.f32 %v4959_v17, %v14207_v63  ;;  %v11733_v63 = vld [vmem:[%s15790_s2 + $0xd0] sm:$0xff] }
 0x47e   : > { %v14434_v48 = vpop.f32.mrf.mxu2  ;;  %v5050_v53 = vpop.f32.mrf.mxu0  ;;  %9195 = vmatpush.bf16.msrb.mxu1 %v11733_v63  ;;  %v11669_v63 = vld [vmem:[#allocation2 + $0x78] sm:$0xff] }
 0x47f   : > { %v5049_v39 = vadd.f32 %v5048_v25, %v4960_v29  ;;  %v5139_v4 = vpop.f32.mrf.mxu1 }
 0x481   : > { %v14436_v7 = vadd.f32 %v5137_v20, %v5049_v39  ;;  %v16102_v20 = vld [vmem:[#allocation92_spill] sm:$0xff] }
 0x483   : > { %16100 = vst [vmem:[#allocation15_spill] sm:$0xff] %v14436_v7 }
 0x484   : > { %v4961_v33 = vpop.f32.mrf.mxu3 }
 0x485   : > { %v4962_v61 = vadd.f32 %v4961_v33, %v14221_v55 }
 0x486   : > { %v14448_v15 = vpop.f32.mrf.mxu2  ;;  %v5053_v57 = vpop.f32.mrf.mxu0 }
 0x487   : > { %v5051_v13 = vadd.f32 %v5050_v53, %v4962_v61  ;;  %v5142_v56 = vpop.f32.mrf.mxu1  ;;  %v11910_v61 = vld [vmem:[%s12182_s29 + $0x90] sm:$0xff] }
 0x489   : > { %v14450_v25 = vadd.f32 %v5139_v4, %v5051_v13  ;;  %5003 = vmatmul.bf16.gmra.mxu3 %v11909_v11  ;;  %5092 = vmatmul.bf16.gmra.mxu0 %v16102_v20  ;;  %v16107_v13 = vld [vmem:[#allocation96_spill] sm:$0xff] }
 0x48a   : > { %5181 = vmatmul.bf16.gmra.mxu1 %v16103_v42 }
 0x48b   : > { %16101 = vst [vmem:[#allocation19_spill] sm:$0xff] %v14450_v25  ;;  %8976 = vmatmul.bf16.gmra.mxu2 %v11668_v46 }
 0x48c   : > { %v4964_v40 = vpop.f32.mrf.mxu3 }
 0x48d   : > { %v4965_v27 = vadd.f32 %v4964_v40, %v14224_v10  ;;  %v16106_v10 = vld [vmem:[#allocation95_spill] sm:$0xff] }
 0x48e   : > { %v14456_v55 = vpop.f32.mrf.mxu2  ;;  %v5055_v50 = vpop.f32.mrf.mxu0 }
 0x48f   : > { %v5054_v38 = vadd.f32 %v5053_v57, %v4965_v27  ;;  %v5144_v62 = vpop.f32.mrf.mxu1  ;;  %v11716_v57 = vld [vmem:[%s15790_s2 + $0x48] sm:$0xff] }
 0x490   : > { %9018 = vmatpush.bf16.msrb.mxu3 %v11716_v57  ;;  %v11740_v27 = vld [vmem:[%s15790_s2 + $0x108] sm:$0xff] }
 0x491   : > { %v14458_v17 = vadd.f32 %v5142_v56, %v5054_v38  ;;  %9285 = vmatpush.bf16.msrb.mxu2 %v11740_v27 }
 0x493   : > { %16104 = vst [vmem:[#allocation22_spill] sm:$0xff] %v14458_v17 }
 0x494   : > { %v4966_v29 = vpop.f32.mrf.mxu3 }
 0x495   : > { %v4967_v53 = vadd.f32 %v4966_v29, %v14231_v1 }
 0x496   : > { %v14461_v39 = vpop.f32.mrf.mxu2  ;;  %v5058_v4 = vpop.f32.mrf.mxu0 }
 0x497   : > { %v5056_v3 = vadd.f32 %v5055_v50, %v4967_v53  ;;  %v5147_v26 = vpop.f32.mrf.mxu1  ;;  %v11724_v50 = vld [vmem:[%s15790_s2 + $0x88] sm:$0xff] }
 0x498   : > { %9107 = vmatpush.bf16.msrb.mxu0 %v11724_v50 }
 0x499   : > { %v14463_v33 = vadd.f32 %v5144_v62, %v5056_v3  ;;  %5008 = vmatmul.bf16.gmra.mxu3 %v11910_v61  ;;  %5097 = vmatmul.bf16.gmra.mxu0 %v16106_v10  ;;  %v11911_v61 = vld [vmem:[%s12182_s29 + $0x9c] sm:$0xff]  ;;  %v16110_v10 = vld [vmem:[#allocation31_spill] sm:$0xff] }
 0x49a   : > { %5186 = vmatmul.bf16.gmra.mxu1 %v16107_v13  ;;  %v16111_v13 = vld [vmem:[#allocation64_spill] sm:$0xff] }
 0x49b   : > { %16105 = vst [vmem:[#allocation9_spill] sm:$0xff] %v14463_v33  ;;  %8981 = vmatmul.bf16.gmra.mxu2 %v11669_v63 }
 0x49c   : > { %v4969_v1 = vpop.f32.mrf.mxu3 }
 0x49d   : > { %v4970_v56 = vadd.f32 %v4969_v1, %v14234_v22  ;;  %v11732_v22 = vld [vmem:[%s15790_s2 + $0xc8] sm:$0xff] }
 0x49e   : > { %v14472_v46 = vpop.f32.mrf.mxu2  ;;  %v5060_v11 = vpop.f32.mrf.mxu0  ;;  %9196 = vmatpush.bf16.msrb.mxu1 %v11732_v22 }
 0x49f   : > { %v5059_v20 = vadd.f32 %v5058_v4, %v4970_v56  ;;  %v5149_v42 = vpop.f32.mrf.mxu1 }
 0x4a1   : > { %v14474_v40 = vadd.f32 %v5147_v26, %v5059_v20  ;;  %v11670_v26 = vld [vmem:[#allocation2 + $0x84] sm:$0xff] }
 0x4a3   : > { %16108 = vst [vmem:[#allocation36_spill] sm:$0xff] %v14474_v40 }
 0x4a4   : > { %v4971_v38 = vpop.f32.mrf.mxu3 }
 0x4a5   : > { %v4972_v62 = vadd.f32 %v4971_v38, %v14244_v32 }
 0x4a6   : > { %v14486_v29 = vpop.f32.mrf.mxu2  ;;  %v5063_v53 = vpop.f32.mrf.mxu0 }
 0x4a7   : > { %v5061_v4 = vadd.f32 %v5060_v11, %v4972_v62  ;;  %v5152_v3 = vpop.f32.mrf.mxu1 }
 0x4a9   : > { %v14488_v63 = vadd.f32 %v5149_v42, %v5061_v4  ;;  %5013 = vmatmul.bf16.gmra.mxu3 %v11911_v61  ;;  %5102 = vmatmul.bf16.gmra.mxu0 %v16110_v10  ;;  %v11912_v10 = vld [vmem:[%s12182_s29 + $0xa8] sm:$0xff] }
 0x4aa   : > { %5191 = vmatmul.bf16.gmra.mxu1 %v16111_v13 }
 0x4ab   : > { %16109 = vst [vmem:[#allocation37_spill] sm:$0xff] %v14488_v63  ;;  %8986 = vmatmul.bf16.gmra.mxu2 %v11670_v26  ;;  %v11671_v26 = vld [vmem:[#allocation2 + $0x90] sm:$0xff] }
 0x4ac   : > { %v4974_v57 = vpop.f32.mrf.mxu3 }
 0x4ad   : > { %v4975_v1 = vadd.f32 %v4974_v57, %v14247_v45  ;;  %v16114_v45 = vld [vmem:[#allocation97_spill] sm:$0xff] }
 0x4ae   : > { %v14494_v32 = vpop.f32.mrf.mxu2  ;;  %v5065_v56 = vpop.f32.mrf.mxu0 }
 0x4af   : > { %v5064_v20 = vadd.f32 %v5063_v53, %v4975_v1  ;;  %v5154_v11 = vpop.f32.mrf.mxu1  ;;  %v11715_v53 = vld [vmem:[%s15790_s2 + $0x40] sm:$0xff] }
 0x4b0   : > { %9019 = vmatpush.bf16.msrb.mxu3 %v11715_v53  ;;  %v11913_v53 = vld [vmem:[%s12182_s29 + $0xb4] sm:$0xff] }
 0x4b1   : > { %v14496_v27 = vadd.f32 %v5152_v3, %v5064_v20 }
 0x4b3   : > { %16112 = vst [vmem:[#allocation10_spill] sm:$0xff] %v14496_v27 }
 0x4b4   : > { %v4976_v42 = vpop.f32.mrf.mxu3 }
 0x4b5   : > { %v4977_v50 = vadd.f32 %v4976_v42, %v14254_v16 }
 0x4b6   : > { %v14499_v22 = vpop.f32.mrf.mxu2  ;;  %v5068_v38 = vpop.f32.mrf.mxu0 }
 0x4b7   : > { %v5066_v62 = vadd.f32 %v5065_v56, %v4977_v50  ;;  %v5157_v4 = vpop.f32.mrf.mxu1 }
 0x4b9   : > { %v14501_v61 = vadd.f32 %v5154_v11, %v5066_v62  ;;  %5018 = vmatmul.bf16.gmra.mxu3 %v11912_v10  ;;  %5107 = vmatmul.bf16.gmra.mxu0 %v13798_v21  ;;  %v11739_v21 = vld [vmem:[%s15790_s2 + $0x100] sm:$0xff] }
 0x4ba   : > { %5196 = vmatmul.bf16.gmra.mxu1 %v16114_v45  ;;  %v11723_v11 = vld [vmem:[%s15790_s2 + $0x80] sm:$0xff]  ;;  %9286 = vmatpush.bf16.msrb.mxu2 %v11739_v21 }
 0x4bb   : > { %16113 = vst [vmem:[#allocation38_spill] sm:$0xff] %v14501_v61  ;;  %8991 = vmatmul.bf16.gmra.mxu2 %v11671_v26  ;;  %9108 = vmatpush.bf16.msrb.mxu0 %v11723_v11  ;;  %v11672_v10 = vld [vmem:[#allocation2 + $0x9c] sm:$0xff] }
 0x4bc   : > { %v4979_v16 = vpop.f32.mrf.mxu3 }
 0x4bd   : > { %v4980_v3 = vadd.f32 %v4979_v16, %v14257_v36  ;;  %v11731_v36 = vld [vmem:[%s15790_s2 + $0xc0] sm:$0xff]  ;;  %v16117_v16 = vld [vmem:[#allocation13_spill] sm:$0xff] }
 0x4be   : > { %v14510_v13 = vpop.f32.mrf.mxu2  ;;  %v5070_v57 = vpop.f32.mrf.mxu0  ;;  %9197 = vmatpush.bf16.msrb.mxu1 %v11731_v36 }
 0x4bf   : > { %v5069_v1 = vadd.f32 %v5068_v38, %v4980_v3  ;;  %v5159_v56 = vpop.f32.mrf.mxu1  ;;  %v16118_v3 = vld [vmem:[#allocation98_spill] sm:$0xff] }
 0x4c1   : > { %v14512_v20 = vadd.f32 %v5157_v4, %v5069_v1 }
 0x4c3   : > { %16115 = vst [vmem:[#allocation39_spill] sm:$0xff] %v14512_v20  ;;  %v11914_v20 = vld [vmem:[%s12182_s29 + $0xc0] sm:$0xff] }
 0x4c4   : > { %v4981_v42 = vpop.f32.mrf.mxu3 }
 0x4c5   : > { %v4982_v50 = vadd.f32 %v4981_v42, %v14267_v43 }
 0x4c6   : > { %v14524_v38 = vpop.f32.mrf.mxu2  ;;  %v5073_v62 = vpop.f32.mrf.mxu0 }
 0x4c7   : > { %v5071_v4 = vadd.f32 %v5070_v57, %v4982_v50  ;;  %v5162_v26 = vpop.f32.mrf.mxu1 }
 0x4c9   : > { %v14526_v45 = vadd.f32 %v5159_v56, %v5071_v4  ;;  %5023 = vmatmul.bf16.gmra.mxu3 %v11913_v53  ;;  %5112 = vmatmul.bf16.gmra.mxu0 %v16117_v16 }
 0x4ca   : > { %5201 = vmatmul.bf16.gmra.mxu1 %v16118_v3 }
 0x4cb   : > { %16116 = vst [vmem:[#allocation11_spill] sm:$0xff] %v14526_v45  ;;  %8996 = vmatmul.bf16.gmra.mxu2 %v11672_v10  ;;  %v11673_v10 = vld [vmem:[#allocation2 + $0xa8] sm:$0xff] }
 0x4cc   : > { %v4984_v1 = vpop.f32.mrf.mxu3 }
 0x4cd   : > { %v4985_v21 = vadd.f32 %v4984_v1, %v14270_v12  ;;  %v5898_v12 = vld [vmem:[#allocation2] sm:$0xf] }
 0x4ce   : > { %v14532_v43 = vpop.f32.mrf.mxu2  ;;  %v5075_v11 = vpop.f32.mrf.mxu0 }
 0x4cf   : > { %16119 = vst [vmem:[#allocation40_spill] sm:$0xff] %v14532_v43  ;;  %v5074_v36 = vadd.f32 %v5073_v62, %v4985_v21  ;;  %v5164_v57 = vpop.f32.mrf.mxu1  ;;  %v14547_v62 = vld [vmem:[#allocation2 + $0x4] sm:$0xf]  ;;  %v6539_v43 = vld [vmem:[#allocation2 + $0x20] sm:$0x1] }
 0x4d1   : > { %v14534_v42 = vadd.f32 %v5162_v26, %v5074_v36  ;;  %v6507_v36 = vld [vmem:[#allocation2 + $0x10] sm:$0xf] }
 0x4d3   : > { %16120 = vst [vmem:[#allocation41_spill] sm:$0xff] %v14534_v42 }
 0x4d4   : > { %v4986_v56 = vpop.f32.mrf.mxu3 }
 0x4d5   : > { %v4987_v50 = vadd.f32 %v4986_v56, %v14277_v9  ;;  %v11754_v9 = vld [vmem:[%s15790_s2 + $0x178] sm:$0xff] }
 0x4d6   : > { %v14537_v4 = vpop.f32.mrf.mxu2  ;;  %v5078_v53 = vpop.f32.mrf.mxu0  ;;  %9368 = vmatpush.bf16.msra.mxu3 %v11754_v9 }
 0x4d7   : > { %16121 = vst [vmem:[#allocation12_spill] sm:$0xff] %v14537_v4  ;;  %v5076_v16 = vadd.f32 %v5075_v11, %v4987_v50  ;;  %v5167_v3 = vpop.f32.mrf.mxu1  ;;  %v5947_v11 = vshrl.u32 %v5898_v12, 16 }
 0x4d9   : > { %v14539_v45 = vadd.f32 %v5164_v57, %v5076_v16  ;;  %5028 = vmatmul.bf16.gmra.mxu3 %v11914_v20  ;;  %5117 = vmatmul.bf16.gmra.mxu0 %v13905_v28  ;;  %v5950_v20 = vshll.u32 %v5898_v12, 16  ;;  %v5960_v57 = vshrl.u32 %v14547_v62, 16  ;;  %v6506_v16 = vld [vmem:[#allocation2 + $0xc] sm:$0xf]  ;;  %v5949_v9 = vrot.slane %v5947_v11, 4  ;;  %v11762_v12 = vld [vmem:[%s15790_s2 + $0x1b8] sm:$0xff] }
 0x4da   : > { %5206 = vmatmul.bf16.gmra.mxu1 %v13907_v37  ;;  %v5956_v37 = vshll.u32 %v14547_v62, 16  ;;  %9457 = vmatpush.bf16.msra.mxu0 %v11762_v12  ;;  %v6330_v12 = vld [vmem:[#allocation2] sm:$0xe] }
 0x4db   : > { %16122 = vst [vmem:[#allocation42_spill] sm:$0xff] %v14539_v45  ;;  %9001 = vmatmul.bf16.gmra.mxu2 %v11673_v10  ;;  %v6564_v10 = vshll.u32 %v6507_v36, 16  ;;  %v6568_v45 = vshrl.u32 %v6507_v36, 16  ;;  %v5952_v61 = vrot.slane %v5950_v20, 5  ;;  %v5962_v27 = vrot.slane %v5960_v57, 4 }
 0x4dc   : > { %v4989_v26 = vpop.f32.mrf.mxu3  ;;  %v6555_v36 = vshrl.u32 %v6506_v16, 16  ;;  %v6538_v57 = vld [vmem:[#allocation2 + $0x14] sm:$0x1] }
 0x4dd   : > { %v4990_v1 = vadd.f32 %v4989_v26, %v14283_v54  ;;  %v11778_v54 = vld [vmem:[%s15790_s2 + $0x238] sm:$0xff]  ;;  %v5930_v26 = vld [vmem:[#allocation2 + $0x8] sm:$0x1]  ;;  %v14565_v20 = vrot.slane %v6564_v10, 5  ;;  %v5953_v40 = vor.u32 %v5952_v61, %v5949_v9 }
 0x4de   : > { %v14550_v21 = vpop.f32.mrf.mxu2  ;;  %v5080_v28 = vpop.f32.mrf.mxu0  ;;  %9635 = vmatpush.bf16.msra.mxu2 %v11778_v54  ;;  %v5966_v33 = vshll.u32 %v5930_v26, 16  ;;  %v6557_v7 = vrot.slane %v6555_v36, 4  ;;  %v6399_v36 = vrot.slane %v5930_v26, 5 }
 0x4df   : > { %16123 = vst [vmem:[#allocation43_spill] sm:$0xff] %v14550_v21  ;;  %v5079_v56 = vadd.f32 %v5078_v53, %v4990_v1  ;;  %v5169_v50 = vpop.f32.mrf.mxu1  ;;  %v11770_v53 = vld [vmem:[%s15790_s2 + $0x1f8] sm:$0xff]  ;;  %v5958_v1 = vrot.slane %v5956_v37, 5  ;;  %v6396_v37 = vrot.slane %v14547_v62, 5  ;;  %v5954_v61 = vrot.slane %v5953_v40, 4 }
 0x4e0   : > { %9546 = vmatpush.bf16.msra.mxu1 %v11770_v53  ;;  %v11674_v21 = vld [vmem:[#allocation2 + $0xb4] sm:$0xff]  ;;  %v5968_v9 = vrot.slane %v5966_v33, 5  ;;  %v10934_v62 = vrot.slane %v6330_v12, 9 }
 0x4e1   : > { %v14554_v42 = vadd.f32 %v5167_v3, %v5079_v56  ;;  %v6558_v3 = vshll.u32 %v6506_v16, 16  ;;  %v6570_v56 = vrot.slane %v6568_v45, 4  ;;  %v5963_v25 = vor.u32 %v5962_v27, %v5958_v1 }
 0x4e2   : > { %v6574_v27 = vshll.u32 %v6538_v57, 16 }
 0x4e3   : > { %16124 = vst [vmem:[#allocation14_spill] sm:$0xff] %v14554_v42  ;;  %v6560_v10 = vrot.slane %v6558_v3, 5  ;;  %v6571_v45 = vor.u32 %v6570_v56, %v14565_v20  ;;  %v14577_v3 = vld [vmem:[#allocation2 + $0x10] sm:$0xf] }
 0x4e4   : > { %v4991_v11 = vpop.f32.mrf.mxu3  ;;  %v6576_v33 = vrot.slane %v6574_v27, 5 }
 0x4e5   : > { %v4992_v42 = vadd.f32 %v4991_v11, %v14299_v34  ;;  %v11915_v34 = vld [vmem:[%s12182_s29 + $0xcc] sm:$0xff]  ;;  %v6561_v11 = vor.u32 %v6560_v10, %v6557_v7  ;;  %v6397_v7 = vsel %vm12202_vm4, %v10934_v62, %v6396_v37  ;;  %s9904_s29 = scalar_lea.hbm %s15795_s7, %s11779_s17 }
 0x4e6   : > { %v14568_v63 = vpop.f32.mrf.mxu2  ;;  %v5083_v17 = vpop.f32.mrf.mxu0  ;;  %s9907_s21 = sshll.u32 %s9904_s29, 4  ;;  %s9908_s21 = int_to_ptr.hbm [resolvable:$true] %s9907_s21 }
 0x4e7   : > { %16125 = vst [vmem:[#allocation44_spill] sm:$0xff] %v14568_v63  ;;  %v5081_v16 = vadd.f32 %v5080_v28, %v4992_v42  ;;  %v5172_v54 = vpop.f32.mrf.mxu1  ;;  %v5964_v42 = vrot.slane %v5963_v25, 4  ;;  %v6398_v28 = vrot.slane %v6396_v37, 4  ;;  %v6509_v25 = vld [vmem:[#allocation2 + $0x1c] sm:$0xf]  ;;  %v6562_v10 = vrot.slane %v6561_v11, 4 }
 0x4e8   : > { %v7867_v37 = vunpack.c.l.b16 %v6397_v7  ;;  %v6508_v63 = vld [vmem:[#allocation2 + $0x18] sm:$0xf]  ;;  %s11994_s22 = sshra.s32 %s9908_s21, 4  ;;  %s11995_s22 = int_to_ptr.hbm [resolvable:$true] %s11994_s22 }
 0x4e9   : > { %v14572_v53 = vadd.f32 %v5169_v50, %v5081_v16  ;;  %5033 = vmatmul.bf16.gmra.mxu3 %v11915_v34  ;;  %5122 = vmatmul.bf16.gmra.mxu0 %v13958_v44  ;;  %v6572_v50 = vrot.slane %v6571_v45, 4  ;;  %v5900_v16 = vld [vmem:[#allocation2 + $0xc] sm:$0xf]  ;;  %v5959_v44 = vsel %vm12210_vm5, %v5954_v61, %v5958_v1  ;;  %v6400_v26 = vsel %vm12202_vm4, %v6398_v28, %v6399_v36  ;;  %s11996_s8 = scalar_lea.hbm %s11995_s22, 256  ;;  %p12001_p3 = scmp.lt.s32.totalorder %s11995_s22, %s15795_s7 }
 0x4ea   : > { %5211 = vmatmul.bf16.gmra.mxu1 %v13960_v59  ;;  %v5980_v59 = vshll.u32 %v14577_v3, 16  ;;  %v5971_v1 = vshrl.u32 %v5900_v16, 16  ;;  %v5974_v45 = vshll.u32 %v5900_v16, 16  ;;  %v7803_v61 = vunpack.c.l.b16 %v5959_v44  ;;  %p11997_p0 = scmp.ne.s32.totalorder %s11995_s22, %s11996_s8  ;;  %p12002_p4 = scmp.lt.s32.totalorder %s12000_s15, %s11996_s8 }
 0x4eb   : > { %16126 = vst [vmem:[#allocation45_spill] sm:$0xff] %v14572_v53  ;;  %9006 = vmatmul.bf16.gmra.mxu2 %v11674_v21  ;;  %v5969_v21 = vsel %vm12210_vm5, %v5964_v42, %v5968_v9  ;;  %v6577_v27 = vsel %vm12210_vm5, %v6572_v50, %v6576_v33  ;;  %v7868_v62 = vunpack.c.l.b16 %v6400_v26  ;;  %v6579_v50 = vshrl.u32 %v6508_v63, 16  ;;  %v5931_v26 = vld [vmem:[#allocation2 + $0x14] sm:$0x1] }
 0x4ec   : > { %v4994_v56 = vpop.f32.mrf.mxu3  ;;  %v7804_v42 = vunpack.c.l.b16 %v5969_v21  ;;  %v14596_v28 = vrot.slane %v5980_v59, 5  ;;  %v5973_v11 = vrot.slane %v5971_v1, 4  ;;  %v5976_v16 = vrot.slane %v5974_v45, 5  ;;  %p11998_p1 = pnand %p11997_p0, %p12132_p5  ;;  %p12003_p7 = por %p12002_p4, %p12001_p3 }
 0x4ed   : > { %v4995_v34 = vadd.f32 %v4994_v56, %v14302_v31  ;;  %v5984_v31 = vshrl.u32 %v14577_v3, 16  ;;  %v6588_v56 = vshll.u32 %v6509_v25, 16  ;;  %v8012_v44 = vunpack.c.l.b16 %v6577_v27  ;;  %v11675_v27 = vld [vmem:[#allocation2 + $0xc] sm:$0xff] }
 0x4ee   : > { %v14580_v53 = vpop.f32.mrf.mxu2  ;;  %v5085_v40 = vpop.f32.mrf.mxu0  ;;  %v6582_v33 = vshll.u32 %v6508_v63, 16  ;;  %v7835_v7 = vpack.c.b16 %v7804_v42, %v7803_v61  ;;  %v7899_v59 = vpack.c.b16 %v7868_v62, %v7867_v37  ;;  %v5990_v4 = vshll.u32 %v5931_v26, 16  ;;  %p11999_p2 = pneg %p11998_p1 }
 0x4ef   : > { %16127 = vst [vmem:[#allocation85_spill] sm:$0xff] %v14580_v53  ;;  %v5084_v57 = vadd.f32 %v5083_v17, %v4995_v34  ;;  %v5174_v12 = vpop.f32.mrf.mxu1  ;;  %v6592_v53 = vshrl.u32 %v6509_v25, 16  ;;  %v5986_v36 = vrot.slane %v5984_v31, 4  ;;  %v6567_v17 = vsel %vm12210_vm5, %v6562_v10, %v14565_v20 }
 0x4f0   : > { %v14601_v25 = vrot.slane %v6588_v56, 5  ;;  %v6403_v10 = vrot.slane %v14577_v3, 5  ;;  %v5977_v56 = vor.u32 %v5976_v16, %v5973_v11  ;;  %v6581_v61 = vrot.slane %v6579_v50, 4  ;;  %v11753_v3 = vld [vmem:[%s15790_s2 + $0x170] sm:$0xff]  ;;  %v14614_v16 = vld [vmem:[#allocation2 + $0x1c] sm:$0xf]  ;;  %p12004_p8 = pnand %p12003_p7, %p11999_p2 }
 0x4f1   : > { %v14594_v9 = vadd.f32 %v5172_v54, %v5084_v57  ;;  %v6594_v31 = vrot.slane %v6592_v53, 4  ;;  %v5987_v20 = vor.u32 %v5986_v36, %v14596_v28  ;;  %v6584_v42 = vrot.slane %v6582_v33, 5  ;;  %v5902_v36 = vld [vmem:[#allocation2 + $0x18] sm:$0xf]  ;;  %9369 = vmatpush.bf16.msra.mxu3 %v11753_v3 }
 0x4f2   : > { %v6405_v62 = vrot.slane %v6403_v10, 4  ;;  %v6406_v11 = vrot.slane %v5931_v26, 5  ;;  %v5978_v50 = vrot.slane %v5977_v56, 4  ;;  %v5995_v26 = vshrl.u32 %v5902_v36, 16  ;;  %v6510_v56 = vld [vmem:[#allocation2 + $0x24] sm:$0xf] }
 0x4f3   : > { %16128 = vst [vmem:[#allocation16_spill] sm:$0xff] %v14594_v9  ;;  %v8011_v9 = vunpack.c.l.b16 %v6567_v17  ;;  %v6595_v53 = vor.u32 %v6594_v31, %v14601_v25  ;;  %v5988_v37 = vrot.slane %v5987_v20, 4  ;;  %v6585_v33 = vor.u32 %v6584_v42, %v6581_v61 }
 0x4f4   : > { %v4996_v34 = vpop.f32.mrf.mxu3  ;;  %v5983_v61 = vsel %vm12210_vm5, %v5978_v50, %v14596_v28  ;;  %v5998_v42 = vshll.u32 %v5902_v36, 16  ;;  %v11761_v28 = vld [vmem:[%s15790_s2 + $0x1b0] sm:$0xff] }
 0x4f5   : > { %v4997_v54 = vadd.f32 %v4996_v34, %v14308_v58  ;;  %v8043_v63 = vpack.c.b16 %v8012_v44, %v8011_v9  ;;  %v6598_v9 = vshll.u32 %v6539_v43, 16  ;;  %9458 = vmatpush.bf16.msra.mxu0 %v11761_v28 }
 0x4f6   : > { %v14604_v21 = vpop.f32.mrf.mxu2  ;;  %v5088_v57 = vpop.f32.mrf.mxu0 }
 0x4f7   : > { %v5086_v1 = vadd.f32 %v5085_v40, %v4997_v54  ;;  %v5177_v45 = vpop.f32.mrf.mxu1  ;;  %v6331_v40 = vld [vmem:[#allocation2 + $0xc] sm:$0xe]  ;;  %v6596_v54 = vrot.slane %v6595_v53, 4 }
 0x4f8   : > { %v10935_v43 = vrot.slane %v6331_v40, 9 }
 0x4f9   : > { %v14608_v58 = vadd.f32 %v5174_v12, %v5086_v1  ;;  %9020 = vmatmul.bf16.vlgmr.msrb.gmra.mxu3 %v7835_v7  ;;  %9109 = vmatmul.bf16.vlgmr.msrb.gmra.mxu0 %v7899_v59  ;;  %v5992_v12 = vrot.slane %v5990_v4, 5  ;;  %v6511_v7 = vld [vmem:[#allocation2 + $0x28] sm:$0xf]  ;;  %v6407_v4 = vsel %vm12202_vm4, %v6405_v62, %v6406_v11 }
 0x4fa   : > { %9198 = vmatmul.bf16.vlgmr.msrb.gmra.mxu1 %v11675_v27  ;;  %v6600_v27 = vrot.slane %v6598_v9, 5  ;;  %v6612_v53 = vshll.u32 %v6511_v7, 16  ;;  %v6404_v62 = vsel %vm12202_vm4, %v10935_v43, %v6403_v10  ;;  %v11777_v9 = vld [vmem:[%s15790_s2 + $0x230] sm:$0xff]  ;;  %v6606_v10 = vshll.u32 %v6510_v56, 16 }
 0x4fb   : > { %16129 = vst [vmem:[#allocation17_spill] sm:$0xff] %v14608_v58  ;;  %9287 = vmatmul.bf16.vlgmr.msrb.gmra.mxu2 %v8043_v63  ;;  %v5993_v31 = vsel %vm12210_vm5, %v5988_v37, %v5992_v12  ;;  %v6008_v63 = vshrl.u32 %v14614_v16, 16  ;;  %v6616_v37 = vshrl.u32 %v6511_v7, 16  ;;  %v6603_v12 = vshrl.u32 %v6510_v56, 16 }
 0x4fc   : > { %v4999_v17 = vpop.f32.mrf.mxu3  ;;  %v6601_v40 = vsel %vm12210_vm5, %v6596_v54, %v6600_v27  ;;  %v7806_v36 = vunpack.c.l.b16 %v5993_v31  ;;  %9636 = vmatpush.bf16.msra.mxu2 %v11777_v9  ;;  %v6000_v43 = vrot.slane %v5998_v42, 5  ;;  %v7805_v56 = vunpack.c.l.b16 %v5983_v61 }
 0x4fd   : > { %v5000_v34 = vadd.f32 %v4999_v17, %v14314_v5  ;;  %v6004_v5 = vshll.u32 %v14614_v16, 16  ;;  %v7870_v17 = vunpack.c.l.b16 %v6407_v4  ;;  %v8014_v7 = vunpack.c.l.b16 %v6601_v40 }
 0x4fe   : > { %v14617_v44 = vpop.f32.mrf.mxu2  ;;  %v5090_v59 = vpop.f32.mrf.mxu0  ;;  %v6618_v27 = vrot.slane %v6616_v37, 4  ;;  %v7836_v58 = vpack.c.b16 %v7806_v36, %v7805_v56  ;;  %v11676_v37 = vld [vmem:[#allocation2 + $0x18] sm:$0xff] }
 0x4ff   : > { %16130 = vst [vmem:[#allocation46_spill] sm:$0xff] %v14617_v44  ;;  %v5089_v20 = vadd.f32 %v5088_v57, %v5000_v34  ;;  %v5179_v1 = vpop.f32.mrf.mxu1  ;;  %v6586_v57 = vrot.slane %v6585_v33, 4  ;;  %v5997_v34 = vrot.slane %v5995_v26, 4  ;;  %v14646_v50 = vrot.slane %v6004_v5, 5  ;;  %v5932_v5 = vld [vmem:[#allocation2 + $0x20] sm:$0x1] }
 0x500   : > { %v6010_v33 = vrot.slane %v6008_v63, 4  ;;  %v6608_v63 = vrot.slane %v6606_v10, 5  ;;  %v14658_v10 = vld [vmem:[#allocation2 + $0x28] sm:$0xf] }
 0x501   : > { %v14628_v3 = vadd.f32 %v5177_v45, %v5089_v20  ;;  %v11769_v45 = vld [vmem:[%s15790_s2 + $0x1f0] sm:$0xff]  ;;  %v6591_v11 = vsel %vm12210_vm5, %v6586_v57, %v14601_v25  ;;  %v14648_v20 = vrot.slane %v6612_v53, 5  ;;  %v6605_v57 = vrot.slane %v6603_v12, 4  ;;  %v6540_v53 = vld [vmem:[#allocation2 + $0x2c] sm:$0x1] }
 0x502   : > { %9547 = vmatpush.bf16.msra.mxu1 %v11769_v45  ;;  %v8013_v26 = vunpack.c.l.b16 %v6591_v11  ;;  %v6011_v42 = vor.u32 %v6010_v33, %v14646_v50  ;;  %v6001_v44 = vor.u32 %v6000_v43, %v5997_v34  ;;  %v6014_v12 = vshll.u32 %v5932_v5, 16 }
 0x503   : > { %16131 = vst [vmem:[#allocation47_spill] sm:$0xff] %v14628_v3  ;;  %v7869_v3 = vunpack.c.l.b16 %v6404_v62  ;;  %v6619_v61 = vor.u32 %v6618_v27, %v14648_v20  ;;  %v6609_v36 = vor.u32 %v6608_v63, %v6605_v57  ;;  %v6413_v43 = vrot.slane %v5932_v5, 5  ;;  %v5904_v27 = vld [vmem:[#allocation2 + $0x24] sm:$0xf] }
 0x504   : > { %v5001_v54 = vpop.f32.mrf.mxu3  ;;  %v8044_v45 = vpack.c.b16 %v8014_v7, %v8013_v26  ;;  %v6002_v33 = vrot.slane %v6001_v44, 4  ;;  %v6028_v57 = vshll.u32 %v14658_v10, 16  ;;  %v6032_v63 = vshrl.u32 %v14658_v10, 16 }
 0x505   : > { %v5002_v31 = vadd.f32 %v5001_v54, %v14329_v8  ;;  %v7900_v40 = vpack.c.b16 %v7870_v17, %v7869_v3  ;;  %v6410_v8 = vrot.slane %v14614_v16, 5  ;;  %v6622_v3 = vshll.u32 %v6540_v53, 16 }
 0x506   : > { %v14651_v4 = vpop.f32.mrf.mxu2  ;;  %v5093_v25 = vpop.f32.mrf.mxu0  ;;  %v6012_v17 = vrot.slane %v6011_v42, 4  ;;  %v6620_v54 = vrot.slane %v6619_v61, 4  ;;  %v6610_v56 = vrot.slane %v6609_v36, 4 }
 0x507   : > { %v5091_v9 = vadd.f32 %v5090_v59, %v5002_v31  ;;  %v5182_v28 = vpop.f32.mrf.mxu1  ;;  %v6332_v59 = vld [vmem:[#allocation2 + $0x18] sm:$0xe]  ;;  %v6412_v34 = vrot.slane %v6410_v8, 4  ;;  %v6624_v26 = vrot.slane %v6622_v3, 5 }
 0x509   : > { %v14656_v62 = vadd.f32 %v5179_v1, %v5091_v9  ;;  %9025 = vmatmul.bf16.gmra.mxu3 %v7836_v58  ;;  %9114 = vmatmul.bf16.gmra.mxu0 %v7900_v40  ;;  %v6016_v1 = vrot.slane %v6014_v12, 5  ;;  %v10936_v58 = vrot.slane %v6332_v59, 9  ;;  %v6513_v9 = vld [vmem:[#allocation2 + $0x34] sm:$0xf]  ;;  %v6414_v53 = vsel %vm12202_vm4, %v6412_v34, %v6413_v43  ;;  %v6512_v12 = vld [vmem:[#allocation2 + $0x30] sm:$0xf] }
 0x50a   : > { %9203 = vmatmul.bf16.gmra.mxu1 %v11676_v37  ;;  %v6615_v37 = vsel %vm12210_vm5, %v6610_v56, %v14648_v20  ;;  %v6636_v59 = vshll.u32 %v6513_v9, 16  ;;  %v6640_v36 = vshrl.u32 %v6513_v9, 16  ;;  %v7872_v34 = vunpack.c.l.b16 %v6414_v53 }
 0x50b   : > { %16132 = vst [vmem:[#allocation48_spill] sm:$0xff] %v14656_v62  ;;  %9292 = vmatmul.bf16.gmra.mxu2 %v8044_v45  ;;  %v6017_v42 = vsel %vm12210_vm5, %v6012_v17, %v6016_v1  ;;  %v6411_v5 = vsel %vm12202_vm4, %v10936_v58, %v6410_v8  ;;  %v6019_v45 = vshrl.u32 %v5904_v27, 16  ;;  %v14681_v17 = vrot.slane %v6028_v57, 5 }
 0x50c   : > { %v5004_v11 = vpop.f32.mrf.mxu3  ;;  %v6034_v8 = vrot.slane %v6032_v63, 4  ;;  %v8015_v20 = vunpack.c.l.b16 %v6615_v37  ;;  %v6627_v43 = vshrl.u32 %v6512_v12, 16  ;;  %v14686_v9 = vrot.slane %v6636_v59, 5  ;;  %v11677_v37 = vld [vmem:[#allocation2 + $0x24] sm:$0xff] }
 0x50d   : > { %v5005_v16 = vadd.f32 %v5004_v11, %v14332_v30  ;;  %v6007_v30 = vsel %vm12210_vm5, %v6002_v33, %v14646_v50  ;;  %v6022_v50 = vshll.u32 %v5904_v27, 16  ;;  %v7808_v11 = vunpack.c.l.b16 %v6017_v42  ;;  %v5933_v27 = vld [vmem:[#allocation2 + $0x2c] sm:$0x1] }
 0x50e   : > { %v14661_v7 = vpop.f32.mrf.mxu2  ;;  %v5095_v31 = vpop.f32.mrf.mxu0  ;;  %v7807_v3 = vunpack.c.l.b16 %v6007_v30  ;;  %v7871_v33 = vunpack.c.l.b16 %v6411_v5  ;;  %v6021_v58 = vrot.slane %v6019_v45, 4  ;;  %v6642_v57 = vrot.slane %v6640_v36, 4  ;;  %v11752_v36 = vld [vmem:[%s15790_s2 + $0x168] sm:$0xff] }
 0x50f   : > { %v5094_v40 = vadd.f32 %v5093_v25, %v5005_v16  ;;  %v5184_v44 = vpop.f32.mrf.mxu1  ;;  %v6625_v25 = vsel %vm12210_vm5, %v6620_v54, %v6624_v26  ;;  %v6630_v54 = vshll.u32 %v6512_v12, 16  ;;  %v6024_v26 = vrot.slane %v6022_v50, 5  ;;  %9370 = vmatpush.bf16.msra.mxu3 %v11752_v36 }
 0x510   : > { %v8016_v16 = vunpack.c.l.b16 %v6625_v25  ;;  %v6035_v63 = vor.u32 %v6034_v8, %v14681_v17  ;;  %v7837_v5 = vpack.c.b16 %v7808_v11, %v7807_v3  ;;  %v7901_v53 = vpack.c.b16 %v7872_v34, %v7871_v33  ;;  %v14696_v8 = vld [vmem:[#allocation2 + $0x34] sm:$0xf]  ;;  %v5906_v34 = vld [vmem:[#allocation2 + $0x30] sm:$0xf] }
 0x511   : > { %v14679_v61 = vadd.f32 %v5182_v28, %v5094_v40  ;;  %v6038_v45 = vshll.u32 %v5933_v27, 16  ;;  %v6417_v12 = vrot.slane %v14658_v10, 5  ;;  %v6025_v50 = vor.u32 %v6024_v26, %v6021_v58 }
 0x512   : > { %v8045_v25 = vpack.c.b16 %v8016_v16, %v8015_v20  ;;  %v6643_v59 = vor.u32 %v6642_v57, %v14686_v9  ;;  %v6420_v57 = vrot.slane %v5933_v27, 5  ;;  %v6514_v27 = vld [vmem:[#allocation2 + $0x3c] sm:$0xf] }
 0x513   : > { %16133 = vst [vmem:[#allocation18_spill] sm:$0xff] %v14679_v61  ;;  %v6632_v61 = vrot.slane %v6630_v54, 5  ;;  %v6040_v11 = vrot.slane %v6038_v45, 5  ;;  %v6419_v33 = vrot.slane %v6417_v12, 4  ;;  %v6026_v58 = vrot.slane %v6025_v50, 4 }
 0x514   : > { %v5006_v1 = vpop.f32.mrf.mxu3  ;;  %v6644_v54 = vrot.slane %v6643_v59, 4 }
 0x515   : > { %v5007_v28 = vadd.f32 %v5006_v1, %v14338_v35  ;;  %v6541_v35 = vld [vmem:[#allocation2 + $0x38] sm:$0x1]  ;;  %v6629_v1 = vrot.slane %v6627_v43, 4  ;;  %v6333_v43 = vld [vmem:[#allocation2 + $0x24] sm:$0xe]  ;;  %v6031_v45 = vsel %vm12210_vm5, %v6026_v58, %v14681_v17  ;;  %v11760_v17 = vld [vmem:[%s15790_s2 + $0x1a8] sm:$0xff] }
 0x516   : > { %v14684_v56 = vpop.f32.mrf.mxu2  ;;  %v5098_v40 = vpop.f32.mrf.mxu0  ;;  %v6646_v3 = vshll.u32 %v6541_v35, 16  ;;  %v10937_v35 = vrot.slane %v6333_v43, 9  ;;  %9459 = vmatpush.bf16.msra.mxu0 %v11760_v17 }
 0x517   : > { %v5096_v30 = vadd.f32 %v5095_v31, %v5007_v28  ;;  %v5187_v42 = vpop.f32.mrf.mxu1  ;;  %v6036_v31 = vrot.slane %v6035_v63, 4  ;;  %v6052_v63 = vshll.u32 %v14696_v8, 16 }
 0x519   : > { %v14690_v62 = vadd.f32 %v5184_v44, %v5096_v30  ;;  %9030 = vmatmul.bf16.gmra.mxu3 %v7837_v5  ;;  %9119 = vmatmul.bf16.gmra.mxu0 %v7901_v53  ;;  %v6633_v44 = vor.u32 %v6632_v61, %v6629_v1  ;;  %v6041_v26 = vsel %vm12210_vm5, %v6036_v31, %v6040_v11  ;;  %v6056_v30 = vshrl.u32 %v14696_v8, 16  ;;  %v6515_v5 = vld [vmem:[#allocation2 + $0x40] sm:$0xf] }
 0x51a   : > { %9208 = vmatmul.bf16.gmra.mxu1 %v11677_v37  ;;  %v6648_v37 = vrot.slane %v6646_v3, 5  ;;  %v6421_v1 = vsel %vm12202_vm4, %v6419_v33, %v6420_v57  ;;  %v6664_v36 = vshrl.u32 %v6515_v5, 16  ;;  %v11776_v3 = vld [vmem:[%s15790_s2 + $0x228] sm:$0xff]  ;;  %v7810_v11 = vunpack.c.l.b16 %v6041_v26 }
 0x51b   : > { %16134 = vst [vmem:[#allocation20_spill] sm:$0xff] %v14690_v62  ;;  %9297 = vmatmul.bf16.gmra.mxu2 %v8045_v25  ;;  %v6043_v25 = vshrl.u32 %v5906_v34, 16  ;;  %v6634_v50 = vrot.slane %v6633_v44, 4  ;;  %v14725_v33 = vrot.slane %v6052_v63, 5  ;;  %v6058_v44 = vrot.slane %v6056_v30, 4 }
 0x51c   : > { %v5009_v10 = vpop.f32.mrf.mxu3  ;;  %v6649_v31 = vsel %vm12210_vm5, %v6644_v54, %v6648_v37  ;;  %9637 = vmatpush.bf16.msra.mxu2 %v11776_v3  ;;  %v7809_v57 = vunpack.c.l.b16 %v6031_v45  ;;  %v6654_v26 = vshll.u32 %v6514_v27, 16  ;;  %v5934_v37 = vld [vmem:[#allocation2 + $0x38] sm:$0x1] }
 0x51d   : > { %v5010_v16 = vadd.f32 %v5009_v10, %v14344_v47  ;;  %v6046_v47 = vshll.u32 %v5906_v34, 16  ;;  %v11768_v10 = vld [vmem:[%s15790_s2 + $0x1e8] sm:$0xff]  ;;  %v7874_v34 = vunpack.c.l.b16 %v6421_v1  ;;  %v6045_v58 = vrot.slane %v6043_v25, 4 }
 0x51e   : > { %v14699_v20 = vpop.f32.mrf.mxu2  ;;  %v5100_v28 = vpop.f32.mrf.mxu0  ;;  %9548 = vmatpush.bf16.msra.mxu1 %v11768_v10  ;;  %v6666_v1 = vrot.slane %v6664_v36, 4  ;;  %v7838_v3 = vpack.c.b16 %v7810_v11, %v7809_v57  ;;  %v6542_v10 = vld [vmem:[#allocation2 + $0x44] sm:$0x1]  ;;  %v6656_v62 = vrot.slane %v6654_v26, 5  ;;  %v6427_v57 = vrot.slane %v5934_v37, 5 }
 0x51f   : > { %v5099_v61 = vadd.f32 %v5098_v40, %v5010_v16  ;;  %v5189_v53 = vpop.f32.mrf.mxu1  ;;  %v6660_v40 = vshll.u32 %v6515_v5, 16  ;;  %v6639_v16 = vsel %vm12210_vm5, %v6634_v50, %v14686_v9  ;;  %v6048_v43 = vrot.slane %v6046_v47, 5 }
 0x520   : > { %v8018_v5 = vunpack.c.l.b16 %v6649_v31  ;;  %v8017_v25 = vunpack.c.l.b16 %v6639_v16  ;;  %v6059_v47 = vor.u32 %v6058_v44, %v14725_v33  ;;  %v6424_v50 = vrot.slane %v14696_v8, 5  ;;  %v5908_v16 = vld [vmem:[#allocation2 + $0x3c] sm:$0xf] }
 0x521   : > { %v14710_v59 = vadd.f32 %v5187_v42, %v5099_v61  ;;  %v6418_v42 = vsel %vm12202_vm4, %v10937_v35, %v6417_v12  ;;  %v6651_v61 = vshrl.u32 %v6514_v27, 16  ;;  %v14733_v35 = vrot.slane %v6660_v40, 5 }
 0x522   : > { %v7873_v30 = vunpack.c.l.b16 %v6418_v42  ;;  %v6049_v17 = vor.u32 %v6048_v43, %v6045_v58  ;;  %v6060_v8 = vrot.slane %v6059_v47, 4  ;;  %v6426_v44 = vrot.slane %v6424_v50, 4 }
 0x523   : > { %16135 = vst [vmem:[#allocation49_spill] sm:$0xff] %v14710_v59  ;;  %v6062_v59 = vshll.u32 %v5934_v37, 16  ;;  %v6653_v42 = vrot.slane %v6651_v61, 4  ;;  %v6667_v36 = vor.u32 %v6666_v1, %v14733_v35  ;;  %v6670_v11 = vshll.u32 %v6542_v10, 16  ;;  %v14740_v61 = vld [vmem:[#allocation2 + $0x40] sm:$0xf] }
 0x524   : > { %v5011_v54 = vpop.f32.mrf.mxu3  ;;  %v7902_v27 = vpack.c.b16 %v7874_v34, %v7873_v30  ;;  %v6050_v34 = vrot.slane %v6049_v17, 4  ;;  %v6067_v37 = vshrl.u32 %v5908_v16, 16  ;;  %v6076_v17 = vshll.u32 %v14740_v61, 16 }
 0x525   : > { %v5012_v12 = vadd.f32 %v5011_v54, %v14359_v41  ;;  %v11678_v41 = vld [vmem:[#allocation2 + $0x30] sm:$0xff]  ;;  %v8046_v54 = vpack.c.b16 %v8018_v5, %v8017_v25  ;;  %v6064_v43 = vrot.slane %v6062_v59, 5  ;;  %v6657_v5 = vor.u32 %v6656_v62, %v6653_v42 }
 0x526   : > { %v14731_v63 = vpop.f32.mrf.mxu2  ;;  %v5103_v9 = vpop.f32.mrf.mxu0  ;;  %v6668_v1 = vrot.slane %v6667_v36, 4  ;;  %v6428_v59 = vsel %vm12202_vm4, %v6426_v44, %v6427_v57  ;;  %v6672_v62 = vrot.slane %v6670_v11, 5  ;;  %v6080_v10 = vshrl.u32 %v14740_v61, 16  ;;  %v6516_v36 = vld [vmem:[#allocation2 + $0x48] sm:$0xf] }
 0x527   : > { %v5101_v45 = vadd.f32 %v5100_v28, %v5012_v12  ;;  %v5192_v31 = vpop.f32.mrf.mxu1  ;;  %v6334_v28 = vld [vmem:[#allocation2 + $0x30] sm:$0xe]  ;;  %v6055_v12 = vsel %vm12210_vm5, %v6050_v34, %v14725_v33  ;;  %v6065_v47 = vsel %vm12210_vm5, %v6060_v8, %v6064_v43  ;;  %v7876_v11 = vunpack.c.l.b16 %v6428_v59 }
 0x528   : > { %v10938_v30 = vrot.slane %v6334_v28, 9  ;;  %v6673_v42 = vsel %vm12210_vm5, %v6668_v1, %v6672_v62  ;;  %v7811_v44 = vunpack.c.l.b16 %v6055_v12  ;;  %v6069_v34 = vrot.slane %v6067_v37, 4 }
 0x529   : > { %v14737_v40 = vadd.f32 %v5189_v53, %v5101_v45  ;;  %9035 = vmatmul.bf16.gmra.mxu3 %v7838_v3  ;;  %9124 = vmatmul.bf16.gmra.mxu0 %v7902_v27  ;;  %v6517_v45 = vld [vmem:[#allocation2 + $0x4c] sm:$0xf]  ;;  %v6070_v27 = vshll.u32 %v5908_v16, 16  ;;  %v14763_v43 = vrot.slane %v6076_v17, 5  ;;  %v6678_v1 = vshll.u32 %v6516_v36, 16 }
 0x52a   : > { %9213 = vmatmul.bf16.gmra.mxu1 %v11678_v41  ;;  %v6425_v33 = vsel %vm12202_vm4, %v10938_v30, %v6424_v50  ;;  %v6658_v41 = vrot.slane %v6657_v5, 4  ;;  %v6684_v8 = vshll.u32 %v6517_v45, 16  ;;  %v6688_v28 = vshrl.u32 %v6517_v45, 16 }
 0x52b   : > { %16136 = vst [vmem:[#allocation51_spill] sm:$0xff] %v14737_v40  ;;  %9302 = vmatmul.bf16.gmra.mxu2 %v8046_v54  ;;  %v6082_v50 = vrot.slane %v6080_v10, 4  ;;  %v7875_v57 = vunpack.c.l.b16 %v6425_v33  ;;  %v8020_v5 = vunpack.c.l.b16 %v6673_v42  ;;  %v6675_v30 = vshrl.u32 %v6516_v36, 16  ;;  %v6335_v42 = vld [vmem:[#allocation2 + $0x3c] sm:$0xe] }
 0x52c   : > { %v5014_v58 = vpop.f32.mrf.mxu3  ;;  %v6663_v16 = vsel %vm12210_vm5, %v6658_v41, %v14733_v35  ;;  %v6690_v59 = vrot.slane %v6688_v28, 4 }
 0x52d   : > { %v5015_v53 = vadd.f32 %v5014_v58, %v14362_v51  ;;  %v6072_v58 = vrot.slane %v6070_v27, 5  ;;  %v7903_v35 = vpack.c.b16 %v7876_v11, %v7875_v57  ;;  %v6083_v33 = vor.u32 %v6082_v50, %v14763_v43 }
 0x52e   : > { %v14743_v26 = vpop.f32.mrf.mxu2  ;;  %v5105_v25 = vpop.f32.mrf.mxu0  ;;  %v6677_v40 = vrot.slane %v6675_v30, 4  ;;  %v10939_v11 = vrot.slane %v6335_v42, 9 }
 0x52f   : > { %v5104_v3 = vadd.f32 %v5103_v9, %v5015_v53  ;;  %v5194_v51 = vpop.f32.mrf.mxu1  ;;  %v7812_v9 = vunpack.c.l.b16 %v6065_v47  ;;  %v5935_v53 = vld [vmem:[#allocation2 + $0x44] sm:$0x1]  ;;  %v14768_v47 = vrot.slane %v6684_v8, 5  ;;  %v6073_v10 = vor.u32 %v6072_v58, %v6069_v34  ;;  %v5910_v34 = vld [vmem:[#allocation2 + $0x48] sm:$0xf] }
 0x530   : > { %v6086_v41 = vshll.u32 %v5935_v53, 16  ;;  %v6680_v8 = vrot.slane %v6678_v1, 5 }
 0x531   : > { %v14756_v54 = vadd.f32 %v5192_v31, %v5104_v3  ;;  %v7839_v45 = vpack.c.b16 %v7812_v9, %v7811_v44  ;;  %v8019_v3 = vunpack.c.l.b16 %v6663_v16  ;;  %v6691_v28 = vor.u32 %v6690_v59, %v14768_v47  ;;  %v11751_v44 = vld [vmem:[%s15790_s2 + $0x160] sm:$0xff]  ;;  %v6519_v59 = vld [vmem:[#allocation2 + $0x58] sm:$0xf] }
 0x532   : > { %v6084_v9 = vrot.slane %v6083_v33, 4  ;;  %v6074_v58 = vrot.slane %v6073_v10, 4  ;;  %v6681_v57 = vor.u32 %v6680_v8, %v6677_v40  ;;  %9371 = vmatpush.bf16.msra.mxu3 %v11751_v44  ;;  %v6094_v10 = vshll.u32 %v5910_v34, 16 }
 0x533   : > { %16137 = vst [vmem:[#allocation52_spill] sm:$0xff] %v14756_v54  ;;  %v11679_v54 = vld [vmem:[#allocation2 + $0x3c] sm:$0xff]  ;;  %v8047_v36 = vpack.c.b16 %v8020_v5, %v8019_v3  ;;  %v6692_v30 = vrot.slane %v6691_v28, 4  ;;  %v6434_v3 = vrot.slane %v5935_v53, 5  ;;  %v6708_v8 = vshll.u32 %v6519_v59, 16 }
 0x534   : > { %v5016_v31 = vpop.f32.mrf.mxu3  ;;  %v6712_v28 = vshrl.u32 %v6519_v59, 16 }
 0x535   : > { %v5017_v62 = vadd.f32 %v5016_v31, %v14368_v24  ;;  %v6431_v24 = vrot.slane %v14740_v61, 5  ;;  %v6543_v31 = vld [vmem:[#allocation2 + $0x50] sm:$0x1] }
 0x536   : > { %v14766_v12 = vpop.f32.mrf.mxu2  ;;  %v5108_v37 = vpop.f32.mrf.mxu0  ;;  %v6694_v61 = vshll.u32 %v6543_v31, 16  ;;  %v6682_v31 = vrot.slane %v6681_v57, 4  ;;  %v6714_v59 = vrot.slane %v6712_v28, 4  ;;  %v6544_v28 = vld [vmem:[#allocation2 + $0x5c] sm:$0x1] }
 0x537   : > { %16138 = vst [vmem:[#allocation54_spill] sm:$0xff] %v14766_v12  ;;  %v5106_v27 = vadd.f32 %v5105_v25, %v5017_v62  ;;  %v5197_v17 = vpop.f32.mrf.mxu1  ;;  %v14775_v25 = vld [vmem:[#allocation2 + $0x4c] sm:$0xf]  ;;  %v6433_v50 = vrot.slane %v6431_v24, 4 }
 0x538   : > { %v6100_v1 = vshll.u32 %v14775_v25, 16  ;;  %v6104_v62 = vshrl.u32 %v14775_v25, 16  ;;  %v6696_v42 = vrot.slane %v6694_v61, 5 }
 0x539   : > { %v14772_v12 = vadd.f32 %v5194_v51, %v5106_v27  ;;  %9040 = vmatmul.bf16.gmra.mxu3 %v7839_v45  ;;  %9129 = vmatmul.bf16.gmra.mxu0 %v7903_v35  ;;  %v6088_v51 = vrot.slane %v6086_v41, 5  ;;  %v6079_v35 = vsel %vm12210_vm5, %v6074_v58, %v14763_v43  ;;  %v6091_v27 = vshrl.u32 %v5910_v34, 16 }
 0x53a   : > { %9218 = vmatmul.bf16.gmra.mxu1 %v11679_v54  ;;  %v6432_v41 = vsel %vm12202_vm4, %v10939_v11, %v6431_v24  ;;  %v6697_v43 = vsel %vm12210_vm5, %v6692_v30, %v6696_v42  ;;  %v14798_v53 = vrot.slane %v6100_v1, 5  ;;  %v11759_v24 = vld [vmem:[%s15790_s2 + $0x1a0] sm:$0xff]  ;;  %v6096_v34 = vrot.slane %v6094_v10, 5  ;;  %v5936_v1 = vld [vmem:[#allocation2 + $0x50] sm:$0x1] }
 0x53b   : > { %16139 = vst [vmem:[#allocation24_spill] sm:$0xff] %v14772_v12  ;;  %9307 = vmatmul.bf16.gmra.mxu2 %v8047_v36  ;;  %v6435_v36 = vsel %vm12202_vm4, %v6433_v50, %v6434_v3  ;;  %v11767_v11 = vld [vmem:[%s15790_s2 + $0x1e0] sm:$0xff]  ;;  %v6093_v61 = vrot.slane %v6091_v27, 4  ;;  %v7813_v58 = vunpack.c.l.b16 %v6079_v35  ;;  %v6687_v50 = vsel %vm12210_vm5, %v6682_v31, %v14768_v47  ;;  %9460 = vmatpush.bf16.msra.mxu0 %v11759_v24  ;;  %v11680_v24 = vld [vmem:[#allocation2 + $0x48] sm:$0xff] }
 0x53c   : > { %v5019_v16 = vpop.f32.mrf.mxu3  ;;  %v8022_v30 = vunpack.c.l.b16 %v6697_v43  ;;  %9549 = vmatpush.bf16.msra.mxu1 %v11767_v11  ;;  %v8021_v42 = vunpack.c.l.b16 %v6687_v50 }
 0x53d   : > { %v5020_v5 = vadd.f32 %v5019_v16, %v14374_v6  ;;  %v6089_v6 = vsel %vm12210_vm5, %v6084_v9, %v6088_v51  ;;  %v11775_v9 = vld [vmem:[%s15790_s2 + $0x220] sm:$0xff]  ;;  %v6518_v16 = vld [vmem:[#allocation2 + $0x54] sm:$0xf]  ;;  %v7878_v51 = vunpack.c.l.b16 %v6435_v36  ;;  %v6097_v36 = vor.u32 %v6096_v34, %v6093_v61 }
 0x53e   : > { %v14781_v54 = vpop.f32.mrf.mxu2  ;;  %v5110_v45 = vpop.f32.mrf.mxu0  ;;  %9638 = vmatpush.bf16.msra.mxu2 %v11775_v9  ;;  %v6699_v10 = vshrl.u32 %v6518_v16, 16  ;;  %v6110_v9 = vshll.u32 %v5936_v1, 16  ;;  %v8048_v11 = vpack.c.b16 %v8022_v30, %v8021_v42  ;;  %v6718_v61 = vshll.u32 %v6544_v28, 16  ;;  %v6521_v42 = vld [vmem:[#allocation2 + $0x64] sm:$0xf] }
 0x53f   : > { %v5109_v40 = vadd.f32 %v5108_v37, %v5020_v5  ;;  %v5199_v33 = vpop.f32.mrf.mxu1  ;;  %v6106_v37 = vrot.slane %v6104_v62, 4  ;;  %v7877_v5 = vunpack.c.l.b16 %v6432_v41  ;;  %v14812_v62 = vrot.slane %v6708_v8, 5 }
 0x540   : > { %v6438_v8 = vrot.slane %v14775_v25, 5  ;;  %v6112_v34 = vrot.slane %v6110_v9, 5  ;;  %v14822_v25 = vld [vmem:[#allocation2 + $0x58] sm:$0xf] }
 0x541   : > { %v14794_v44 = vadd.f32 %v5197_v17, %v5109_v40  ;;  %v7814_v17 = vunpack.c.l.b16 %v6089_v6  ;;  %v6107_v35 = vor.u32 %v6106_v37, %v14798_v53  ;;  %v6702_v40 = vshll.u32 %v6518_v16, 16  ;;  %v6336_v16 = vld [vmem:[#allocation2 + $0x48] sm:$0xe] }
 0x542   : > { %v7904_v43 = vpack.c.b16 %v7878_v51, %v7877_v5  ;;  %v6440_v51 = vrot.slane %v6438_v8, 4  ;;  %v10940_v5 = vrot.slane %v6336_v16, 9  ;;  %v6128_v9 = vshrl.u32 %v14822_v25, 16 }
 0x543   : > { %16140 = vst [vmem:[#allocation55_spill] sm:$0xff] %v14794_v44  ;;  %v7840_v47 = vpack.c.b16 %v7814_v17, %v7813_v58  ;;  %v6108_v37 = vrot.slane %v6107_v35, 4  ;;  %v6701_v17 = vrot.slane %v6699_v10, 4  ;;  %v6704_v58 = vrot.slane %v6702_v40, 5 }
 0x544   : > { %v5021_v57 = vpop.f32.mrf.mxu3  ;;  %v6441_v40 = vrot.slane %v5936_v1, 5  ;;  %v6736_v16 = vshrl.u32 %v6521_v42, 16 }
 0x545   : > { %v5022_v3 = vadd.f32 %v5021_v57, %v14389_v49  ;;  %v6715_v49 = vor.u32 %v6714_v59, %v14812_v62  ;;  %v5912_v59 = vld [vmem:[#allocation2 + $0x54] sm:$0xf]  ;;  %v6113_v10 = vsel %vm12210_vm5, %v6108_v37, %v6112_v34  ;;  %v6732_v37 = vshll.u32 %v6521_v42, 16  ;;  %v5937_v42 = vld [vmem:[#allocation2 + $0x5c] sm:$0x1] }
 0x546   : > { %v14815_v27 = vpop.f32.mrf.mxu2  ;;  %v5113_v6 = vpop.f32.mrf.mxu0 }
 0x547   : > { %v5111_v31 = vadd.f32 %v5110_v45, %v5022_v3  ;;  %v5202_v41 = vpop.f32.mrf.mxu1  ;;  %v6098_v45 = vrot.slane %v6097_v36, 4  ;;  %v6716_v30 = vrot.slane %v6715_v49, 4  ;;  %v6118_v49 = vshll.u32 %v5912_v59, 16 }
 0x549   : > { %v14820_v57 = vadd.f32 %v5199_v33, %v5111_v31  ;;  %9045 = vmatmul.bf16.gmra.mxu3 %v7840_v47  ;;  %9134 = vmatmul.bf16.gmra.mxu0 %v7904_v43  ;;  %v6103_v33 = vsel %vm12210_vm5, %v6098_v45, %v14798_v53  ;;  %v6705_v47 = vor.u32 %v6704_v58, %v6701_v17  ;;  %v6720_v43 = vrot.slane %v6718_v61, 5  ;;  %v6520_v61 = vld [vmem:[#allocation2 + $0x60] sm:$0xf] }
 0x54a   : > { %9223 = vmatmul.bf16.gmra.mxu1 %v11680_v24  ;;  %v6439_v31 = vsel %vm12202_vm4, %v10940_v5, %v6438_v8  ;;  %v6124_v53 = vshll.u32 %v14822_v25, 16  ;;  %v7815_v8 = vunpack.c.l.b16 %v6103_v33  ;;  %v7816_v58 = vunpack.c.l.b16 %v6113_v10 }
 0x54b   : > { %16141 = vst [vmem:[#allocation53_spill] sm:$0xff] %v14820_v57  ;;  %9312 = vmatmul.bf16.gmra.mxu2 %v8048_v11  ;;  %v6115_v11 = vshrl.u32 %v5912_v59, 16  ;;  %v6721_v1 = vsel %vm12210_vm5, %v6716_v30, %v6720_v43  ;;  %v6706_v45 = vrot.slane %v6705_v47, 4  ;;  %v7879_v34 = vunpack.c.l.b16 %v6439_v31 }
 0x54c   : > { %v5024_v50 = vpop.f32.mrf.mxu3  ;;  %v6130_v5 = vrot.slane %v6128_v9, 4  ;;  %v8024_v59 = vunpack.c.l.b16 %v6721_v1  ;;  %v6120_v30 = vrot.slane %v6118_v49, 5  ;;  %v6726_v43 = vshll.u32 %v6520_v61, 16 }
 0x54d   : > { %v5025_v3 = vadd.f32 %v5024_v50, %v14392_v19  ;;  %v6442_v19 = vsel %vm12202_vm4, %v6440_v51, %v6441_v40  ;;  %v6711_v51 = vsel %vm12210_vm5, %v6706_v45, %v14812_v62  ;;  %v14847_v33 = vrot.slane %v6732_v37, 5  ;;  %v11681_v37 = vld [vmem:[#allocation2 + $0x54] sm:$0xff] }
 0x54e   : > { %v14828_v35 = vpop.f32.mrf.mxu2  ;;  %v5115_v36 = vpop.f32.mrf.mxu0  ;;  %v7880_v50 = vunpack.c.l.b16 %v6442_v19  ;;  %v6738_v10 = vrot.slane %v6736_v16, 4  ;;  %v7841_v9 = vpack.c.b16 %v7816_v58, %v7815_v8  ;;  %v8023_v19 = vunpack.c.l.b16 %v6711_v51 }
 0x54f   : > { %v5114_v28 = vadd.f32 %v5113_v6, %v5025_v3  ;;  %v5204_v24 = vpop.f32.mrf.mxu1  ;;  %v14842_v6 = vrot.slane %v6124_v53, 5  ;;  %v6117_v3 = vrot.slane %v6115_v11, 4  ;;  %v6134_v45 = vshll.u32 %v5937_v42, 16 }
 0x550   : > { %v8049_v57 = vpack.c.b16 %v8024_v59, %v8023_v19  ;;  %v6728_v44 = vrot.slane %v6726_v43, 5  ;;  %v6448_v43 = vrot.slane %v5937_v42, 5  ;;  %v6523_v19 = vld [vmem:[#allocation2 + $0x70] sm:$0xf] }
 0x551   : > { %v14840_v17 = vadd.f32 %v5202_v41, %v5114_v28  ;;  %v6723_v41 = vshrl.u32 %v6520_v61, 16  ;;  %v7905_v28 = vpack.c.b16 %v7880_v50, %v7879_v34  ;;  %v6131_v62 = vor.u32 %v6130_v5, %v14842_v6  ;;  %v6545_v61 = vld [vmem:[#allocation2 + $0x68] sm:$0x1] }
 0x552   : > { %v6121_v49 = vor.u32 %v6120_v30, %v6117_v3  ;;  %v6742_v58 = vshll.u32 %v6545_v61, 16  ;;  %v6136_v51 = vrot.slane %v6134_v45, 5  ;;  %v5914_v30 = vld [vmem:[#allocation2 + $0x60] sm:$0xf] }
 0x553   : > { %16142 = vst [vmem:[#allocation23_spill] sm:$0xff] %v14840_v17  ;;  %v6445_v17 = vrot.slane %v14822_v25, 5  ;;  %v6725_v16 = vrot.slane %v6723_v41, 4  ;;  %v6132_v8 = vrot.slane %v6131_v62, 4  ;;  %v11750_v25 = vld [vmem:[%s15790_s2 + $0x158] sm:$0xff] }
 0x554   : > { %v5026_v40 = vpop.f32.mrf.mxu3  ;;  %v6122_v5 = vrot.slane %v6121_v49, 4  ;;  %9372 = vmatpush.bf16.msra.mxu3 %v11750_v25  ;;  %v6139_v49 = vshrl.u32 %v5914_v30, 16 }
 0x555   : > { %v5027_v47 = vadd.f32 %v5026_v40, %v14398_v0  ;;  %v6739_v0 = vor.u32 %v6738_v10, %v14847_v33  ;;  %v6447_v34 = vrot.slane %v6445_v17, 4  ;;  %v6729_v59 = vor.u32 %v6728_v44, %v6725_v16  ;;  %v14863_v10 = vld [vmem:[#allocation2 + $0x64] sm:$0xf] }
 0x556   : > { %v14850_v31 = vpop.f32.mrf.mxu2  ;;  %v5118_v53 = vpop.f32.mrf.mxu0  ;;  %v6744_v44 = vrot.slane %v6742_v58, 5 }
 0x557   : > { %v5116_v1 = vadd.f32 %v5115_v36, %v5027_v47  ;;  %v5207_v11 = vpop.f32.mrf.mxu1  ;;  %v6337_v36 = vld [vmem:[#allocation2 + $0x54] sm:$0xe]  ;;  %v6740_v3 = vrot.slane %v6739_v0, 4  ;;  %v6449_v42 = vsel %vm12202_vm4, %v6447_v34, %v6448_v43  ;;  %v6730_v45 = vrot.slane %v6729_v59, 4  ;;  %v11774_v59 = vld [vmem:[%s15790_s2 + $0x218] sm:$0xff] }
 0x558   : > { %v6142_v0 = vshll.u32 %v5914_v30, 16  ;;  %9639 = vmatpush.bf16.msra.mxu2 %v11774_v59  ;;  %v6338_v59 = vld [vmem:[#allocation2 + $0x60] sm:$0xe] }
 0x559   : > { %v14855_v40 = vadd.f32 %v5204_v24, %v5116_v1  ;;  %9050 = vmatmul.bf16.gmra.mxu3 %v7841_v9  ;;  %9139 = vmatmul.bf16.gmra.mxu0 %v7905_v28  ;;  %v6127_v9 = vsel %vm12210_vm5, %v6122_v5, %v14842_v6  ;;  %v6137_v28 = vsel %vm12210_vm5, %v6132_v8, %v6136_v51  ;;  %v6148_v6 = vshll.u32 %v14863_v10, 16 }
 0x55a   : > { %9228 = vmatmul.bf16.gmra.mxu1 %v11681_v37  ;;  %v6745_v61 = vsel %vm12210_vm5, %v6740_v3, %v6744_v44  ;;  %v6152_v37 = vshrl.u32 %v14863_v10, 16  ;;  %v6756_v8 = vshll.u32 %v6523_v19, 16  ;;  %v7817_v58 = vunpack.c.l.b16 %v6127_v9  ;;  %v11766_v3 = vld [vmem:[%s15790_s2 + $0x1d8] sm:$0xff] }
 0x55b   : > { %16143 = vst [vmem:[#allocation25_spill] sm:$0xff] %v14855_v40  ;;  %9317 = vmatmul.bf16.gmra.mxu2 %v8049_v57  ;;  %v10941_v57 = vrot.slane %v6337_v36, 9  ;;  %v6760_v36 = vshrl.u32 %v6523_v19, 16  ;;  %v6735_v34 = vsel %vm12210_vm5, %v6730_v45, %v14847_v33  ;;  %v8026_v5 = vunpack.c.l.b16 %v6745_v61  ;;  %9550 = vmatpush.bf16.msra.mxu1 %v11766_v3 }
 0x55c   : > { %v5029_v50 = vpop.f32.mrf.mxu3  ;;  %v6141_v51 = vrot.slane %v6139_v49, 4  ;;  %v6144_v44 = vrot.slane %v6142_v0, 5  ;;  %v14897_v19 = vrot.slane %v6756_v8, 5  ;;  %v6546_v0 = vld [vmem:[#allocation2 + $0x74] sm:$0x1] }
 0x55d   : > { %v5030_v24 = vadd.f32 %v5029_v50, %v14413_v18  ;;  %v6446_v18 = vsel %vm12202_vm4, %v10941_v57, %v6445_v17  ;;  %v7818_v17 = vunpack.c.l.b16 %v6137_v28  ;;  %v7882_v50 = vunpack.c.l.b16 %v6449_v42 }
 0x55e   : > { %v14861_v41 = vpop.f32.mrf.mxu2  ;;  %v5120_v47 = vpop.f32.mrf.mxu0  ;;  %v7881_v25 = vunpack.c.l.b16 %v6446_v18  ;;  %v6154_v57 = vrot.slane %v6152_v37, 4  ;;  %v8025_v42 = vunpack.c.l.b16 %v6735_v34  ;;  %v5938_v37 = vld [vmem:[#allocation2 + $0x68] sm:$0x1]  ;;  %v6145_v34 = vor.u32 %v6144_v44, %v6141_v51 }
 0x55f   : > { %v5119_v62 = vadd.f32 %v5118_v53, %v5030_v24  ;;  %v5209_v1 = vpop.f32.mrf.mxu1  ;;  %v6522_v53 = vld [vmem:[#allocation2 + $0x6c] sm:$0xf]  ;;  %v14892_v24 = vrot.slane %v6148_v6, 5  ;;  %v7842_v61 = vpack.c.b16 %v7818_v17, %v7817_v58  ;;  %v6158_v58 = vshll.u32 %v5938_v37, 16 }
 0x560   : > { %v6747_v43 = vshrl.u32 %v6522_v53, 16  ;;  %v6750_v33 = vshll.u32 %v6522_v53, 16  ;;  %v7906_v6 = vpack.c.b16 %v7882_v50, %v7881_v25  ;;  %v6452_v53 = vrot.slane %v14863_v10, 5  ;;  %v14904_v25 = vld [vmem:[#allocation2 + $0x70] sm:$0xf] }
 0x561   : > { %v14878_v16 = vadd.f32 %v5207_v11, %v5119_v62  ;;  %v11758_v11 = vld [vmem:[%s15790_s2 + $0x198] sm:$0xff]  ;;  %v6762_v62 = vrot.slane %v6760_v36, 4  ;;  %v6766_v10 = vshll.u32 %v6546_v0, 16  ;;  %v6455_v51 = vrot.slane %v5938_v37, 5 }
 0x562   : > { %9461 = vmatpush.bf16.msra.mxu0 %v11758_v11  ;;  %v6749_v8 = vrot.slane %v6747_v43, 4  ;;  %v6752_v40 = vrot.slane %v6750_v33, 5  ;;  %v6454_v17 = vrot.slane %v6452_v53, 4  ;;  %v10942_v11 = vrot.slane %v6338_v59, 9  ;;  %v6524_v59 = vld [vmem:[#allocation2 + $0x78] sm:$0xf] }
 0x563   : > { %16144 = vst [vmem:[#allocation26_spill] sm:$0xff] %v14878_v16  ;;  %v11682_v16 = vld [vmem:[#allocation2 + $0x60] sm:$0xff]  ;;  %v6146_v43 = vrot.slane %v6145_v34, 4 }
 0x564   : > { %v5031_v30 = vpop.f32.mrf.mxu3  ;;  %v6753_v3 = vor.u32 %v6752_v40, %v6749_v8  ;;  %v6456_v37 = vsel %vm12202_vm4, %v6454_v17, %v6455_v51  ;;  %v6771_v51 = vshrl.u32 %v6524_v59, 16 }
 0x565   : > { %v5032_v9 = vadd.f32 %v5031_v30, %v14419_v60  ;;  %v8050_v60 = vpack.c.b16 %v8026_v5, %v8025_v42  ;;  %v6155_v30 = vor.u32 %v6154_v57, %v14892_v24  ;;  %v6172_v42 = vshll.u32 %v14904_v25, 16 }
 0x566   : > { %v14895_v28 = vpop.f32.mrf.mxu2  ;;  %v5123_v18 = vpop.f32.mrf.mxu0  ;;  %v6754_v0 = vrot.slane %v6753_v3, 4 }
 0x567   : > { %v5121_v49 = vadd.f32 %v5120_v47, %v5032_v9  ;;  %v5212_v45 = vpop.f32.mrf.mxu1  ;;  %v6763_v47 = vor.u32 %v6762_v62, %v14897_v19  ;;  %v6156_v5 = vrot.slane %v6155_v30, 4  ;;  %v5916_v9 = vld [vmem:[#allocation2 + $0x6c] sm:$0xf]  ;;  %v6453_v62 = vsel %vm12202_vm4, %v10942_v11, %v6452_v53 }
 0x568   : > { %v6163_v53 = vshrl.u32 %v5916_v9, 16  ;;  %v6166_v8 = vshll.u32 %v5916_v9, 16  ;;  %v6774_v9 = vshll.u32 %v6524_v59, 16 }
 0x569   : > { %v14901_v36 = vadd.f32 %v5209_v1, %v5121_v49  ;;  %9055 = vmatmul.bf16.gmra.mxu3 %v7842_v61  ;;  %9144 = vmatmul.bf16.gmra.mxu0 %v7906_v6  ;;  %v6764_v33 = vrot.slane %v6763_v47, 4  ;;  %v6176_v49 = vshrl.u32 %v14904_v25, 16  ;;  %v6525_v61 = vld [vmem:[#allocation2 + $0x7c] sm:$0xf] }
 0x56a   : > { %9233 = vmatmul.bf16.gmra.mxu1 %v11682_v16  ;;  %v6160_v16 = vrot.slane %v6158_v58, 5  ;;  %v6780_v47 = vshll.u32 %v6525_v61, 16  ;;  %v6784_v58 = vshrl.u32 %v6525_v61, 16 }
 0x56b   : > { %16145 = vst [vmem:[#allocation58_spill] sm:$0xff] %v14901_v36  ;;  %9322 = vmatmul.bf16.gmra.mxu2 %v8050_v60  ;;  %v6768_v60 = vrot.slane %v6766_v10, 5  ;;  %v6178_v11 = vrot.slane %v6176_v49, 4  ;;  %v6776_v36 = vrot.slane %v6774_v9, 5 }
 0x56c   : > { %v5034_v50 = vpop.f32.mrf.mxu3  ;;  %v6161_v30 = vsel %vm12210_vm5, %v6156_v5, %v6160_v16  ;;  %v6759_v5 = vsel %vm12210_vm5, %v6754_v0, %v14897_v19  ;;  %v14932_v61 = vrot.slane %v6780_v47, 5  ;;  %v6786_v49 = vrot.slane %v6784_v58, 4 }
 0x56d   : > { %v5035_v1 = vadd.f32 %v5034_v50, %v14422_v2  ;;  %v6151_v2 = vsel %vm12210_vm5, %v6146_v43, %v14892_v24  ;;  %v7883_v50 = vunpack.c.l.b16 %v6453_v62  ;;  %v14924_v24 = vrot.slane %v6172_v42, 5  ;;  %v5939_v62 = vld [vmem:[#allocation2 + $0x74] sm:$0x1] }
 0x56e   : > { %v14907_v57 = vpop.f32.mrf.mxu2  ;;  %v5125_v44 = vpop.f32.mrf.mxu0  ;;  %v7819_v17 = vunpack.c.l.b16 %v6151_v2  ;;  %v7820_v10 = vunpack.c.l.b16 %v6161_v30  ;;  %v6165_v43 = vrot.slane %v6163_v53, 4  ;;  %v6168_v42 = vrot.slane %v6166_v8, 5 }
 0x56f   : > { %v5124_v6 = vadd.f32 %v5123_v18, %v5035_v1  ;;  %v5214_v40 = vpop.f32.mrf.mxu1  ;;  %v6769_v18 = vsel %vm12210_vm5, %v6764_v33, %v6768_v60  ;;  %v7884_v1 = vunpack.c.l.b16 %v6456_v37  ;;  %v8027_v2 = vunpack.c.l.b16 %v6759_v5 }
 0x570   : > { %v6179_v37 = vor.u32 %v6178_v11, %v14924_v24  ;;  %v6459_v19 = vrot.slane %v14904_v25, 5  ;;  %v7843_v0 = vpack.c.b16 %v7820_v10, %v7819_v17  ;;  %v6169_v47 = vor.u32 %v6168_v42, %v6165_v43  ;;  %v11749_v10 = vld [vmem:[%s15790_s2 + $0x150] sm:$0xff] }
 0x571   : > { %v14920_v34 = vadd.f32 %v5212_v45, %v5124_v6  ;;  %v8028_v45 = vunpack.c.l.b16 %v6769_v18  ;;  %v7907_v53 = vpack.c.b16 %v7884_v1, %v7883_v50  ;;  %v11683_v18 = vld [vmem:[#allocation2 + $0x6c] sm:$0xff]  ;;  %v6787_v58 = vor.u32 %v6786_v49, %v14932_v61  ;;  %v14939_v50 = vld [vmem:[#allocation2 + $0x7c] sm:$0xf]  ;;  %9373 = vmatpush.bf16.msra.mxu3 %v11749_v10 }
 0x572   : > { %v6180_v25 = vrot.slane %v6179_v37, 4  ;;  %v6461_v11 = vrot.slane %v6459_v19, 4  ;;  %v6462_v5 = vrot.slane %v5939_v62, 5 }
 0x573   : > { %16146 = vst [vmem:[#allocation59_spill] sm:$0xff] %v14920_v34  ;;  %v8051_v59 = vpack.c.b16 %v8028_v45, %v8027_v2  ;;  %v6773_v34 = vrot.slane %v6771_v51, 4  ;;  %v5918_v51 = vld [vmem:[#allocation2 + $0x78] sm:$0xf]  ;;  %v6788_v49 = vrot.slane %v6787_v58, 4 }
 0x574   : > { %v5036_v3 = vpop.f32.mrf.mxu3 }
 0x575   : > { %v5037_v33 = vadd.f32 %v5036_v3, %v14431_v52  ;;  %v6182_v52 = vshll.u32 %v5939_v62, 16  ;;  %v6547_v3 = vld [vmem:[#allocation2 + $0x80] sm:$0x1]  ;;  %v6777_v45 = vor.u32 %v6776_v36, %v6773_v34  ;;  %v6200_v62 = vshrl.u32 %v14939_v50, 16  ;;  %v6527_v36 = vld [vmem:[#allocation2 + $0x88] sm:$0xf] }
 0x576   : > { %v14930_v16 = vpop.f32.mrf.mxu2  ;;  %v9110_v6 = vpop.f32.mrf.mxu0  ;;  %v6790_v17 = vshll.u32 %v6547_v3, 16  ;;  %v6808_v10 = vshrl.u32 %v6527_v36, 16 }
 0x577   : > { %v5126_v60 = vadd.f32 %v5125_v44, %v5037_v33  ;;  %v9199_v30 = vpop.f32.mrf.mxu1  ;;  %v6339_v44 = vld [vmem:[#allocation2 + $0x6c] sm:$0xe]  ;;  %v6170_v33 = vrot.slane %v6169_v47, 4  ;;  %v6778_v47 = vrot.slane %v6777_v45, 4 }
 0x578   : > { %v10943_v42 = vrot.slane %v6339_v44, 9  ;;  %v6526_v44 = vld [vmem:[#allocation2 + $0x84] sm:$0xf] }
 0x579   : > { %v14936_v8 = vadd.f32 %v5214_v40, %v5126_v60  ;;  %9060 = vmatmul.bf16.gmra.mxu3 %v7843_v0  ;;  %9149 = vmatmul.bf16.gmra.mxu0 %v7907_v53  ;;  %v6184_v40 = vrot.slane %v6182_v52, 5  ;;  %v6463_v60 = vsel %vm12202_vm4, %v6461_v11, %v6462_v5  ;;  %v6196_v0 = vshll.u32 %v14939_v50, 16 }
 0x57a   : > { %9238 = vmatmul.bf16.gmra.mxu1 %v11683_v18  ;;  %v6187_v18 = vshrl.u32 %v5918_v51, 16  ;;  %v6175_v52 = vsel %vm12210_vm5, %v6170_v33, %v14924_v24  ;;  %v6460_v3 = vsel %vm12202_vm4, %v10943_v42, %v6459_v19  ;;  %v6804_v11 = vshll.u32 %v6527_v36, 16 }
 0x57b   : > { %16147 = vst [vmem:[#allocation91_spill] sm:$0xff] %v14936_v8  ;;  %9327 = vmatmul.bf16.gmra.mxu2 %v8051_v59  ;;  %v6185_v37 = vsel %vm12210_vm5, %v6180_v25, %v6184_v40  ;;  %v6190_v59 = vshll.u32 %v5918_v51, 16  ;;  %v6202_v40 = vrot.slane %v6200_v62, 4  ;;  %v6783_v24 = vsel %vm12210_vm5, %v6778_v47, %v14932_v61  ;;  %v11757_v51 = vld [vmem:[%s15790_s2 + $0x190] sm:$0xff]  ;;  %v5940_v62 = vld [vmem:[#allocation2 + $0x80] sm:$0x1] }
 0x57c   : > { %v9021_v1 = vpop.f32.mrf.mxu3  ;;  %v6189_v19 = vrot.slane %v6187_v18, 4  ;;  %v7885_v33 = vunpack.c.l.b16 %v6460_v3  ;;  %v14975_v36 = vrot.slane %v6804_v11, 5  ;;  %9462 = vmatpush.bf16.msra.mxu0 %v11757_v51  ;;  %v8029_v18 = vunpack.c.l.b16 %v6783_v24  ;;  %v6548_v11 = vld [vmem:[#allocation2 + $0x8c] sm:$0x1] }
 0x57d   : > { %v9022_v43 = vadd.f32 %v9021_v1, %v14434_v48  ;;  %v6792_v48 = vrot.slane %v6790_v17, 5  ;;  %v7886_v1 = vunpack.c.l.b16 %v6463_v60  ;;  %v14958_v17 = vrot.slane %v6196_v0, 5 }
 0x57e   : > { %v9288_v9 = vpop.f32.mrf.mxu2  ;;  %v9112_v2 = vpop.f32.mrf.mxu0  ;;  %v6192_v45 = vrot.slane %v6190_v59, 5  ;;  %v7821_v0 = vunpack.c.l.b16 %v6175_v52  ;;  %v6466_v47 = vrot.slane %v14939_v50, 5  ;;  %v6206_v8 = vshll.u32 %v5940_v62, 16 }
 0x57f   : > { %v9111_v34 = vadd.f32 %v9110_v6, %v9022_v43  ;;  %v9201_v53 = vpop.f32.mrf.mxu1  ;;  %v6793_v25 = vsel %vm12210_vm5, %v6788_v49, %v6792_v48  ;;  %v7822_v6 = vunpack.c.l.b16 %v6185_v37  ;;  %v11765_v43 = vld [vmem:[%s15790_s2 + $0x1d0] sm:$0xff]  ;;  %v6795_v49 = vshrl.u32 %v6526_v44, 16 }
 0x580   : > { %v8030_v42 = vunpack.c.l.b16 %v6793_v25  ;;  %v6798_v37 = vshll.u32 %v6526_v44, 16  ;;  %v6203_v59 = vor.u32 %v6202_v40, %v14958_v17  ;;  %9551 = vmatpush.bf16.msra.mxu1 %v11765_v43  ;;  %v7908_v44 = vpack.c.b16 %v7886_v1, %v7885_v33 }
 0x581   : > { %v9200_v58 = vadd.f32 %v9199_v30, %v9111_v34  ;;  %v11773_v30 = vld [vmem:[%s15790_s2 + $0x210] sm:$0xff]  ;;  %v6810_v34 = vrot.slane %v6808_v10, 4  ;;  %v7844_v25 = vpack.c.b16 %v7822_v6, %v7821_v0  ;;  %v6797_v12 = vrot.slane %v6795_v49, 4 }
 0x582   : > { %9640 = vmatpush.bf16.msra.mxu2 %v11773_v30  ;;  %v8052_v52 = vpack.c.b16 %v8030_v42, %v8029_v18  ;;  %v6800_v10 = vrot.slane %v6798_v37, 5  ;;  %v6204_v50 = vrot.slane %v6203_v59, 4  ;;  %v6468_v40 = vrot.slane %v6466_v47, 4  ;;  %v14982_v42 = vld [vmem:[#allocation2 + $0x88] sm:$0xf] }
 0x583   : > { %v14960_v5 = vadd.f32 %v9288_v9, %v9200_v58  ;;  %v6811_v24 = vor.u32 %v6810_v34, %v14975_v36  ;;  %v6814_v1 = vshll.u32 %v6548_v11, 16  ;;  %v6208_v51 = vrot.slane %v6206_v8, 5 }
 0x584   : > { %v9023_v9 = vpop.f32.mrf.mxu3  ;;  %v6469_v43 = vrot.slane %v5940_v62, 5  ;;  %v6801_v33 = vor.u32 %v6800_v10, %v6797_v12  ;;  %v6529_v12 = vld [vmem:[#allocation2 + $0x94] sm:$0xf]  ;;  %v6528_v10 = vld [vmem:[#allocation2 + $0x90] sm:$0xf] }
 0x585   : > { %v9024_v61 = vadd.f32 %v9023_v9, %v14448_v15  ;;  %v6193_v15 = vor.u32 %v6192_v45, %v6189_v19  ;;  %v11684_v9 = vld [vmem:[#allocation2 + $0x78] sm:$0xff]  ;;  %v5920_v19 = vld [vmem:[#allocation2 + $0x84] sm:$0xf]  ;;  %v6812_v0 = vrot.slane %v6811_v24, 4  ;;  %v6209_v34 = vsel %vm12210_vm5, %v6204_v50, %v6208_v51 }
 0x586   : > { %v9290_v60 = vpop.f32.mrf.mxu2  ;;  %v9115_v48 = vpop.f32.mrf.mxu0  ;;  %v6470_v8 = vsel %vm12202_vm4, %v6468_v40, %v6469_v43  ;;  %v6211_v62 = vshrl.u32 %v5920_v19, 16  ;;  %v6832_v24 = vshrl.u32 %v6529_v12, 16  ;;  %v7824_v50 = vunpack.c.l.b16 %v6209_v34 }
 0x587   : > { %v9113_v3 = vadd.f32 %v9112_v2, %v9024_v61  ;;  %v9204_v58 = vpop.f32.mrf.mxu1  ;;  %v6194_v6 = vrot.slane %v6193_v15, 4  ;;  %v6340_v61 = vld [vmem:[#allocation2 + $0x78] sm:$0xe]  ;;  %v7888_v40 = vunpack.c.l.b16 %v6470_v8 }
 0x588   : > { %v10944_v15 = vrot.slane %v6340_v61, 9  ;;  %v6834_v8 = vrot.slane %v6832_v24, 4  ;;  %v6341_v24 = vld [vmem:[#allocation2 + $0x84] sm:$0xe] }
 0x589   : > { %v9202_v30 = vadd.f32 %v9201_v53, %v9113_v3  ;;  %9065 = vmatmul.bf16.gmra.mxu3 %v7844_v25  ;;  %9154 = vmatmul.bf16.gmra.mxu0 %v7908_v44  ;;  %v6199_v37 = vsel %vm12210_vm5, %v6194_v6, %v14958_v17  ;;  %v6816_v3 = vrot.slane %v6814_v1, 5  ;;  %v6220_v25 = vshll.u32 %v14982_v42, 16 }
 0x58a   : > { %9243 = vmatmul.bf16.gmra.mxu1 %v11684_v9  ;;  %v7823_v44 = vunpack.c.l.b16 %v6199_v37  ;;  %v6802_v17 = vrot.slane %v6801_v33, 4  ;;  %v6224_v9 = vshrl.u32 %v14982_v42, 16  ;;  %v6822_v37 = vshll.u32 %v6528_v10, 16 }
 0x58b   : > { %9332 = vmatmul.bf16.gmra.mxu2 %v8052_v52  ;;  %v14980_v2 = vadd.f32 %v9290_v60, %v9202_v30  ;;  %v6817_v11 = vsel %vm12210_vm5, %v6812_v0, %v6816_v3  ;;  %v6828_v30 = vshll.u32 %v6529_v12, 16 }
 0x58c   : > { %v9026_v45 = vpop.f32.mrf.mxu3  ;;  %v6807_v6 = vsel %vm12210_vm5, %v6802_v17, %v14975_v36  ;;  %v8032_v43 = vunpack.c.l.b16 %v6817_v11  ;;  %v6226_v33 = vrot.slane %v6224_v9, 4  ;;  %v7845_v36 = vpack.c.b16 %v7824_v50, %v7823_v44  ;;  %v11685_v17 = vld [vmem:[#allocation2 + $0x84] sm:$0xff] }
 0x58d   : > { %v9027_v53 = vadd.f32 %v9026_v45, %v14456_v55  ;;  %v6214_v55 = vshll.u32 %v5920_v19, 16  ;;  %v6213_v19 = vrot.slane %v6211_v62, 4  ;;  %v15006_v34 = vrot.slane %v6828_v30, 5 }
 0x58e   : > { %v9293_v49 = vpop.f32.mrf.mxu2  ;;  %v9117_v60 = vpop.f32.mrf.mxu0 }
 0x58f   : > { %v9116_v18 = vadd.f32 %v9115_v48, %v9027_v53  ;;  %v9206_v59 = vpop.f32.mrf.mxu1  ;;  %v6467_v48 = vsel %vm12202_vm4, %v10944_v15, %v6466_v47  ;;  %v6216_v45 = vrot.slane %v6214_v55, 5  ;;  %v6819_v53 = vshrl.u32 %v6528_v10, 16  ;;  %v5941_v55 = vld [vmem:[#allocation2 + $0x8c] sm:$0x1] }
 0x590   : > { %v7887_v47 = vunpack.c.l.b16 %v6467_v48  ;;  %v6473_v15 = vrot.slane %v14982_v42, 5  ;;  %v6824_v10 = vrot.slane %v6822_v37, 5  ;;  %v6835_v44 = vor.u32 %v6834_v8, %v15006_v34 }
 0x591   : > { %v9205_v52 = vadd.f32 %v9204_v58, %v9116_v18  ;;  %v15003_v58 = vrot.slane %v6220_v25, 5  ;;  %v6217_v25 = vor.u32 %v6216_v45, %v6213_v19  ;;  %v6821_v11 = vrot.slane %v6819_v53, 4 }
 0x592   : > { %v7909_v3 = vpack.c.b16 %v7888_v40, %v7887_v47  ;;  %v6475_v48 = vrot.slane %v6473_v15, 4  ;;  %v15013_v40 = vld [vmem:[#allocation2 + $0x94] sm:$0xf]  ;;  %v10945_v37 = vrot.slane %v6341_v24, 9 }
 0x593   : > { %v15001_v1 = vadd.f32 %v9293_v49, %v9205_v52  ;;  %v8031_v49 = vunpack.c.l.b16 %v6807_v6  ;;  %v6227_v52 = vor.u32 %v6226_v33, %v15003_v58  ;;  %v11748_v6 = vld [vmem:[%s15790_s2 + $0x148] sm:$0xff] }
 0x594   : > { %v9028_v51 = vpop.f32.mrf.mxu3  ;;  %9374 = vmatpush.bf16.msra.mxu3 %v11748_v6 }
 0x595   : > { %v9029_v61 = vadd.f32 %v9028_v51, %v14461_v39  ;;  %v8053_v9 = vpack.c.b16 %v8032_v43, %v8031_v49  ;;  %v6549_v39 = vld [vmem:[#allocation2 + $0x98] sm:$0x1]  ;;  %v6228_v45 = vrot.slane %v6227_v52, 4  ;;  %v6825_v51 = vor.u32 %v6824_v10, %v6821_v11  ;;  %v5922_v43 = vld [vmem:[#allocation2 + $0x90] sm:$0xf] }
 0x596   : > { %v9295_v0 = vpop.f32.mrf.mxu2  ;;  %v9120_v12 = vpop.f32.mrf.mxu0  ;;  %v6838_v42 = vshll.u32 %v6549_v39, 16  ;;  %v6244_v49 = vshll.u32 %v15013_v40, 16  ;;  %v6474_v39 = vsel %vm12202_vm4, %v10945_v37, %v6473_v15  ;;  %v6238_v11 = vshll.u32 %v5922_v43, 16  ;;  %v5942_v37 = vld [vmem:[#allocation2 + $0x98] sm:$0x1] }
 0x597   : > { %v9118_v18 = vadd.f32 %v9117_v60, %v9029_v61  ;;  %v9209_v62 = vpop.f32.mrf.mxu1  ;;  %v6230_v60 = vshll.u32 %v5941_v55, 16  ;;  %v6476_v61 = vrot.slane %v5941_v55, 5  ;;  %v6235_v55 = vshrl.u32 %v5922_v43, 16  ;;  %v11764_v43 = vld [vmem:[%s15790_s2 + $0x1c8] sm:$0xff] }
 0x598   : > { %9552 = vmatpush.bf16.msra.mxu1 %v11764_v43 }
 0x599   : > { %v9207_v30 = vadd.f32 %v9206_v59, %v9118_v18  ;;  %9070 = vmatmul.bf16.gmra.mxu3 %v7845_v36  ;;  %9159 = vmatmul.bf16.gmra.mxu0 %v7909_v3  ;;  %v6218_v59 = vrot.slane %v6217_v25, 4  ;;  %v6232_v36 = vrot.slane %v6230_v60, 5  ;;  %v6248_v18 = vshrl.u32 %v15013_v40, 16  ;;  %v6531_v3 = vld [vmem:[#allocation2 + $0xa0] sm:$0xf] }
 0x59a   : > { %9248 = vmatmul.bf16.gmra.mxu1 %v11685_v17  ;;  %v6856_v60 = vshrl.u32 %v6531_v3, 16 }
 0x59b   : > { %9337 = vmatmul.bf16.gmra.mxu2 %v8053_v9  ;;  %v15011_v50 = vadd.f32 %v9295_v0, %v9207_v30  ;;  %v6836_v0 = vrot.slane %v6835_v44, 4  ;;  %v6223_v8 = vsel %vm12210_vm5, %v6218_v59, %v15003_v58  ;;  %v6840_v9 = vrot.slane %v6838_v42, 5  ;;  %v6530_v44 = vld [vmem:[#allocation2 + $0x9c] sm:$0xf] }
 0x59c   : > { %v9031_v19 = vpop.f32.mrf.mxu3  ;;  %v6233_v52 = vsel %vm12210_vm5, %v6228_v45, %v6232_v36  ;;  %v6826_v58 = vrot.slane %v6825_v51, 4  ;;  %v7825_v24 = vunpack.c.l.b16 %v6223_v8  ;;  %v6250_v42 = vrot.slane %v6248_v18, 4  ;;  %v11756_v51 = vld [vmem:[%s15790_s2 + $0x188] sm:$0xff] }
 0x59d   : > { %v9032_v33 = vadd.f32 %v9031_v19, %v14472_v46  ;;  %v6477_v46 = vsel %vm12202_vm4, %v6475_v48, %v6476_v61  ;;  %v6841_v30 = vsel %vm12210_vm5, %v6836_v0, %v6840_v9  ;;  %v15032_v48 = vrot.slane %v6244_v49, 5  ;;  %9463 = vmatpush.bf16.msra.mxu0 %v11756_v51 }
 0x59e   : > { %v9298_v53 = vpop.f32.mrf.mxu2  ;;  %v9122_v47 = vpop.f32.mrf.mxu0  ;;  %v7890_v6 = vunpack.c.l.b16 %v6477_v46  ;;  %v7826_v59 = vunpack.c.l.b16 %v6233_v52  ;;  %v6831_v15 = vsel %vm12210_vm5, %v6826_v58, %v15006_v34  ;;  %v6237_v45 = vrot.slane %v6235_v55, 4 }
 0x59f   : > { %v9121_v25 = vadd.f32 %v9120_v12, %v9032_v33  ;;  %v9211_v17 = vpop.f32.mrf.mxu1  ;;  %v6852_v12 = vshll.u32 %v6531_v3, 16  ;;  %v6240_v61 = vrot.slane %v6238_v11, 5  ;;  %v6843_v0 = vshrl.u32 %v6530_v44, 16 }
 0x5a0   : > { %v6846_v8 = vshll.u32 %v6530_v44, 16  ;;  %v7889_v49 = vunpack.c.l.b16 %v6474_v39  ;;  %v6858_v3 = vrot.slane %v6856_v60, 4  ;;  %v8033_v46 = vunpack.c.l.b16 %v6831_v15 }
 0x5a1   : > { %v9210_v10 = vadd.f32 %v9209_v62, %v9121_v25  ;;  %v11772_v62 = vld [vmem:[%s15790_s2 + $0x208] sm:$0xff]  ;;  %v15049_v18 = vrot.slane %v6852_v12, 5  ;;  %v6251_v9 = vor.u32 %v6250_v42, %v15032_v48  ;;  %v6480_v55 = vrot.slane %v15013_v40, 5  ;;  %v6550_v12 = vld [vmem:[#allocation2 + $0xa4] sm:$0x1] }
 0x5a2   : > { %9641 = vmatpush.bf16.msra.mxu2 %v11772_v62  ;;  %v7846_v11 = vpack.c.b16 %v7826_v59, %v7825_v24  ;;  %v6241_v39 = vor.u32 %v6240_v61, %v6237_v45  ;;  %v6848_v60 = vrot.slane %v6846_v8, 5  ;;  %v6342_v42 = vld [vmem:[#allocation2 + $0x90] sm:$0xe]  ;;  %v6862_v24 = vshll.u32 %v6550_v12, 16 }
 0x5a3   : > { %v15034_v19 = vadd.f32 %v9298_v53, %v9210_v10  ;;  %v8034_v53 = vunpack.c.l.b16 %v6841_v30  ;;  %v7910_v10 = vpack.c.b16 %v7890_v6, %v7889_v49  ;;  %v6254_v30 = vshll.u32 %v5942_v37, 16  ;;  %v5924_v6 = vld [vmem:[#allocation2 + $0x9c] sm:$0xf] }
 0x5a4   : > { %v9033_v33 = vpop.f32.mrf.mxu3  ;;  %v6859_v15 = vor.u32 %v6858_v3, %v15049_v18  ;;  %v6252_v40 = vrot.slane %v6251_v9, 4  ;;  %v6242_v43 = vrot.slane %v6241_v39, 4 }
 0x5a5   : > { %v9034_v34 = vadd.f32 %v9033_v33, %v14486_v29  ;;  %v11686_v29 = vld [vmem:[#allocation2 + $0x90] sm:$0xff]  ;;  %v8054_v44 = vpack.c.b16 %v8034_v53, %v8033_v46  ;;  %v6845_v33 = vrot.slane %v6843_v0, 4  ;;  %v6256_v45 = vrot.slane %v6254_v30, 5  ;;  %v15056_v0 = vld [vmem:[#allocation2 + $0xa0] sm:$0xf] }
 0x5a6   : > { %v9300_v36 = vpop.f32.mrf.mxu2  ;;  %v9125_v25 = vpop.f32.mrf.mxu0  ;;  %v6483_v53 = vrot.slane %v5942_v37, 5  ;;  %v6860_v49 = vrot.slane %v6859_v15, 4  ;;  %v6259_v37 = vshrl.u32 %v5924_v6, 16  ;;  %v6864_v30 = vrot.slane %v6862_v24, 5 }
 0x5a7   : > { %v9123_v52 = vadd.f32 %v9122_v47, %v9034_v34  ;;  %v9214_v58 = vpop.f32.mrf.mxu1  ;;  %v6482_v47 = vrot.slane %v6480_v55, 4  ;;  %v6849_v61 = vor.u32 %v6848_v60, %v6845_v33  ;;  %v10946_v34 = vrot.slane %v6342_v42, 9  ;;  %v6532_v60 = vld [vmem:[#allocation2 + $0xa8] sm:$0xf] }
 0x5a8   : > { %v6257_v46 = vsel %vm12210_vm5, %v6252_v40, %v6256_v45  ;;  %v6865_v33 = vsel %vm12210_vm5, %v6860_v49, %v6864_v30 }
 0x5a9   : > { %v9212_v62 = vadd.f32 %v9211_v17, %v9123_v52  ;;  %9075 = vmatmul.bf16.gmra.mxu3 %v7846_v11  ;;  %9164 = vmatmul.bf16.gmra.mxu0 %v7910_v10  ;;  %v6484_v9 = vsel %vm12202_vm4, %v6482_v47, %v6483_v53  ;;  %v6533_v52 = vld [vmem:[#allocation2 + $0xac] sm:$0xf]  ;;  %v6850_v39 = vrot.slane %v6849_v61, 4  ;;  %v6261_v47 = vrot.slane %v6259_v37, 4 }
 0x5aa   : > { %9253 = vmatmul.bf16.gmra.mxu1 %v11686_v29  ;;  %v6272_v29 = vshrl.u32 %v15056_v0, 16  ;;  %v6880_v15 = vshrl.u32 %v6533_v52, 16  ;;  %v7892_v42 = vunpack.c.l.b16 %v6484_v9  ;;  %v6867_v53 = vshrl.u32 %v6532_v60, 16 }
 0x5ab   : > { %9342 = vmatmul.bf16.gmra.mxu2 %v8054_v44  ;;  %v15054_v51 = vadd.f32 %v9300_v36, %v9212_v62  ;;  %v6247_v36 = vsel %vm12210_vm5, %v6242_v43, %v15032_v48  ;;  %v6481_v44 = vsel %vm12202_vm4, %v10946_v34, %v6480_v55  ;;  %v6262_v48 = vshll.u32 %v5924_v6, 16 }
 0x5ac   : > { %v9036_v59 = vpop.f32.mrf.mxu3  ;;  %v6876_v62 = vshll.u32 %v6533_v52, 16  ;;  %v7827_v40 = vunpack.c.l.b16 %v6247_v36  ;;  %v6274_v6 = vrot.slane %v6272_v29, 4  ;;  %v8036_v43 = vunpack.c.l.b16 %v6865_v33  ;;  %v5943_v52 = vld [vmem:[#allocation2 + $0xa4] sm:$0x1] }
 0x5ad   : > { %v9037_v17 = vadd.f32 %v9036_v59, %v14494_v32  ;;  %v6268_v32 = vshll.u32 %v15056_v0, 16  ;;  %v6855_v59 = vsel %vm12210_vm5, %v6850_v39, %v15049_v18  ;;  %v6264_v45 = vrot.slane %v6262_v48, 5  ;;  %v11687_v39 = vld [vmem:[#allocation2 + $0x9c] sm:$0xff] }
 0x5ae   : > { %v9303_v8 = vpop.f32.mrf.mxu2  ;;  %v9127_v3 = vpop.f32.mrf.mxu0  ;;  %v6870_v61 = vshll.u32 %v6532_v60, 16  ;;  %v7891_v49 = vunpack.c.l.b16 %v6481_v44  ;;  %v15080_v36 = vrot.slane %v6876_v62, 5  ;;  %v8035_v37 = vunpack.c.l.b16 %v6855_v59 }
 0x5af   : > { %v9126_v11 = vadd.f32 %v9125_v25, %v9037_v17  ;;  %v9216_v10 = vpop.f32.mrf.mxu1  ;;  %v7828_v25 = vunpack.c.l.b16 %v6257_v46  ;;  %v15077_v55 = vrot.slane %v6268_v32, 5  ;;  %v6487_v29 = vrot.slane %v15056_v0, 5  ;;  %v15087_v0 = vld [vmem:[#allocation2 + $0xac] sm:$0xf] }
 0x5b0   : > { %v7911_v30 = vpack.c.b16 %v7892_v42, %v7891_v49  ;;  %v8055_v48 = vpack.c.b16 %v8036_v43, %v8035_v37  ;;  %v6869_v33 = vrot.slane %v6867_v53, 4  ;;  %v6872_v44 = vrot.slane %v6870_v61, 5  ;;  %v5926_v43 = vld [vmem:[#allocation2 + $0xa8] sm:$0xf] }
 0x5b1   : > { %v9215_v12 = vadd.f32 %v9214_v58, %v9126_v11  ;;  %v7847_v9 = vpack.c.b16 %v7828_v25, %v7827_v40  ;;  %v6275_v32 = vor.u32 %v6274_v6, %v15077_v55  ;;  %v6278_v62 = vshll.u32 %v5943_v52, 16 }
 0x5b2   : > { %v6489_v6 = vrot.slane %v6487_v29, 4  ;;  %v6292_v37 = vshll.u32 %v15087_v0, 16 }
 0x5b3   : > { %v15072_v24 = vadd.f32 %v9303_v8, %v9215_v12  ;;  %v6882_v8 = vrot.slane %v6880_v15, 4  ;;  %v6265_v12 = vor.u32 %v6264_v45, %v6261_v47  ;;  %v6276_v25 = vrot.slane %v6275_v32, 4  ;;  %v11747_v47 = vld [vmem:[%s15790_s2 + $0x140] sm:$0xff] }
 0x5b4   : > { %v9038_v58 = vpop.f32.mrf.mxu3  ;;  %v6280_v61 = vrot.slane %v6278_v62, 5  ;;  %9375 = vmatpush.bf16.msra.mxu3 %v11747_v47  ;;  %v6534_v62 = vld [vmem:[#allocation2 + $0xb4] sm:$0xf] }
 0x5b5   : > { %v9039_v17 = vadd.f32 %v9038_v58, %v14499_v22  ;;  %v6551_v22 = vld [vmem:[#allocation2 + $0xb0] sm:$0x1]  ;;  %v6883_v15 = vor.u32 %v6882_v8, %v15080_v36  ;;  %v6873_v58 = vor.u32 %v6872_v44, %v6869_v33 }
 0x5b6   : > { %v9305_v34 = vpop.f32.mrf.mxu2  ;;  %v9130_v46 = vpop.f32.mrf.mxu0  ;;  %v6886_v42 = vshll.u32 %v6551_v22, 16 }
 0x5b7   : > { %v9128_v18 = vadd.f32 %v9127_v3, %v9039_v17  ;;  %v9219_v11 = vpop.f32.mrf.mxu1  ;;  %v6343_v3 = vld [vmem:[#allocation2 + $0x9c] sm:$0xe] }
 0x5b8   : > { %v10947_v17 = vrot.slane %v6343_v3, 9 }
 0x5b9   : > { %v9217_v60 = vadd.f32 %v9216_v10, %v9128_v18  ;;  %9080 = vmatmul.bf16.gmra.mxu3 %v7847_v9  ;;  %9169 = vmatmul.bf16.gmra.mxu0 %v7911_v30  ;;  %v6266_v10 = vrot.slane %v6265_v12, 4  ;;  %v6490_v9 = vrot.slane %v5943_v52, 5  ;;  %v6296_v18 = vshrl.u32 %v15087_v0, 16  ;;  %v6535_v30 = vld [vmem:[#allocation2 + $0xb8] sm:$0xf] }
 0x5ba   : > { %9258 = vmatmul.bf16.gmra.mxu1 %v11687_v39  ;;  %v6283_v12 = vshrl.u32 %v5926_v43, 16  ;;  %v6488_v22 = vsel %vm12202_vm4, %v10947_v17, %v6487_v29  ;;  %v6286_v52 = vshll.u32 %v5926_v43, 16  ;;  %v11763_v43 = vld [vmem:[%s15790_s2 + $0x1c0] sm:$0xff] }
 0x5bb   : > { %9347 = vmatmul.bf16.gmra.mxu2 %v8055_v48  ;;  %v15085_v40 = vadd.f32 %v9305_v34, %v9217_v60  ;;  %v6884_v34 = vrot.slane %v6883_v15, 4  ;;  %v6271_v8 = vsel %vm12210_vm5, %v6266_v10, %v15077_v55  ;;  %v6888_v48 = vrot.slane %v6886_v42, 5  ;;  %9553 = vmatpush.bf16.msra.mxu1 %v11763_v43 }
 0x5bc   : > { %v9041_v59 = vpop.f32.mrf.mxu3  ;;  %v6491_v33 = vsel %vm12202_vm4, %v6489_v6, %v6490_v9  ;;  %v6874_v55 = vrot.slane %v6873_v58, 4  ;;  %v6904_v15 = vshrl.u32 %v6535_v30, 16  ;;  %v7829_v3 = vunpack.c.l.b16 %v6271_v8  ;;  %v11755_v58 = vld [vmem:[%s15790_s2 + $0x180] sm:$0xff] }
 0x5bd   : > { %v9042_v45 = vadd.f32 %v9041_v59, %v14510_v13  ;;  %v6281_v13 = vsel %vm12210_vm5, %v6276_v25, %v6280_v61  ;;  %v6889_v60 = vsel %vm12210_vm5, %v6884_v34, %v6888_v48  ;;  %v15106_v25 = vrot.slane %v6292_v37, 5  ;;  %v5944_v61 = vld [vmem:[#allocation2 + $0xb0] sm:$0x1]  ;;  %9464 = vmatpush.bf16.msra.mxu0 %v11755_v58 }
 0x5be   : > { %v9308_v53 = vpop.f32.mrf.mxu2  ;;  %v9132_v49 = vpop.f32.mrf.mxu0  ;;  %v7830_v47 = vunpack.c.l.b16 %v6281_v13  ;;  %v6298_v42 = vrot.slane %v6296_v18, 4  ;;  %v7894_v29 = vunpack.c.l.b16 %v6491_v33  ;;  %v6879_v10 = vsel %vm12210_vm5, %v6874_v55, %v15080_v36 }
 0x5bf   : > { %v9131_v32 = vadd.f32 %v9130_v46, %v9042_v45  ;;  %v9221_v39 = vpop.f32.mrf.mxu1  ;;  %v6900_v46 = vshll.u32 %v6535_v30, 16  ;;  %v6285_v6 = vrot.slane %v6283_v12, 4  ;;  %v6288_v17 = vrot.slane %v6286_v52, 5 }
 0x5c0   : > { %v6891_v34 = vshrl.u32 %v6534_v62, 16  ;;  %v6894_v8 = vshll.u32 %v6534_v62, 16  ;;  %v7893_v37 = vunpack.c.l.b16 %v6488_v22  ;;  %v6906_v30 = vrot.slane %v6904_v15, 4  ;;  %v11688_v62 = vld [vmem:[#allocation2 + $0xa8] sm:$0xff] }
 0x5c1   : > { %v9220_v44 = vadd.f32 %v9219_v11, %v9131_v32  ;;  %v11771_v11 = vld [vmem:[%s15790_s2 + $0x200] sm:$0xff]  ;;  %v15123_v18 = vrot.slane %v6900_v46, 5  ;;  %v7848_v13 = vpack.c.b16 %v7830_v47, %v7829_v3  ;;  %v8037_v48 = vunpack.c.l.b16 %v6879_v10 }
 0x5c2   : > { %9642 = vmatpush.bf16.msra.mxu2 %v11771_v11  ;;  %v6299_v12 = vor.u32 %v6298_v42, %v15106_v25  ;;  %v7912_v52 = vpack.c.b16 %v7894_v29, %v7893_v37  ;;  %v6289_v46 = vor.u32 %v6288_v17, %v6285_v6  ;;  %v6893_v15 = vrot.slane %v6891_v34, 4  ;;  %v15130_v17 = vld [vmem:[#allocation2 + $0xb8] sm:$0xf]  ;;  %v16148_v34 = vld [vmem:[#allocation40_spill] sm:$0xff] }
 0x5c3   : > { %v15108_v59 = vadd.f32 %v9308_v53, %v9220_v44  ;;  %v8038_v53 = vunpack.c.l.b16 %v6889_v60  ;;  %v6302_v44 = vshll.u32 %v5944_v61, 16  ;;  %v6344_v60 = vld [vmem:[#allocation2 + $0xa8] sm:$0xe]  ;;  %v6896_v11 = vrot.slane %v6894_v8, 5 }
 0x5c4   : > { %v9043_v45 = vpop.f32.mrf.mxu3  ;;  %v6907_v3 = vor.u32 %v6906_v30, %v15123_v18  ;;  %v10948_v42 = vrot.slane %v6344_v60, 9  ;;  %v6290_v43 = vrot.slane %v6289_v46, 4  ;;  %v6497_v37 = vrot.slane %v5944_v61, 5 }
 0x5c5   : > { %v9044_v36 = vadd.f32 %v9043_v45, %v14524_v38  ;;  %v6494_v38 = vrot.slane %v15087_v0, 5  ;;  %v8056_v22 = vpack.c.b16 %v8038_v53, %v8037_v48  ;;  %v6552_v45 = vld [vmem:[#allocation2 + $0xbc] sm:$0x1]  ;;  %v6304_v53 = vrot.slane %v6302_v44, 5 }
 0x5c6   : > { %v9310_v9 = vpop.f32.mrf.mxu2  ;;  %v9135_v32 = vpop.f32.mrf.mxu0  ;;  %v6910_v10 = vshll.u32 %v6552_v45, 16  ;;  %v6897_v6 = vor.u32 %v6896_v11, %v6893_v15  ;;  %v6908_v30 = vrot.slane %v6907_v3, 4  ;;  %v6320_v46 = vshrl.u32 %v15130_v17, 16  ;;  %v6536_v15 = vld [vmem:[#allocation2 + $0xc0] sm:$0xf] }
 0x5c7   : > { %v9133_v33 = vadd.f32 %v9132_v49, %v9044_v36  ;;  %v9224_v55 = vpop.f32.mrf.mxu1  ;;  %v6300_v49 = vrot.slane %v6299_v12, 4  ;;  %v6496_v29 = vrot.slane %v6494_v38, 4  ;;  %v6495_v36 = vsel %vm12202_vm4, %v10948_v42, %v6494_v38  ;;  %v6537_v12 = vld [vmem:[#allocation2 + $0xc4] sm:$0xf] }
 0x5c8   : > { %v6912_v60 = vrot.slane %v6910_v10, 5  ;;  %v6316_v38 = vshll.u32 %v15130_v17, 16  ;;  %v7895_v61 = vunpack.c.l.b16 %v6495_v36  ;;  %v6924_v11 = vshll.u32 %v6537_v12, 16  ;;  %v16150_v36 = vld [vmem:[#allocation12_spill] sm:$0xff] }
 0x5c9   : > { %v9222_v58 = vadd.f32 %v9221_v39, %v9133_v33  ;;  %9085 = vmatmul.bf16.gmra.mxu3 %v7848_v13  ;;  %9174 = vmatmul.bf16.gmra.mxu0 %v7912_v52  ;;  %v6305_v48 = vsel %vm12210_vm5, %v6300_v49, %v6304_v53  ;;  %v6498_v44 = vsel %vm12202_vm4, %v6496_v29, %v6497_v37 }
 0x5ca   : > { %9263 = vmatmul.bf16.gmra.mxu1 %v11688_v62  ;;  %v5928_v62 = vld [vmem:[#allocation2 + $0xb4] sm:$0xf]  ;;  %v7832_v3 = vunpack.c.l.b16 %v6305_v48  ;;  %v7896_v49 = vunpack.c.l.b16 %v6498_v44 }
 0x5cb   : > { %9352 = vmatmul.bf16.gmra.mxu2 %v8056_v22  ;;  %v15128_v47 = vadd.f32 %v9310_v9, %v9222_v58  ;;  %v6295_v9 = vsel %vm12210_vm5, %v6290_v43, %v15106_v25  ;;  %v6898_v22 = vrot.slane %v6897_v6, 4  ;;  %v6913_v25 = vsel %vm12210_vm5, %v6908_v30, %v6912_v60 }
 0x5cc   : > { %v9046_v0 = vpop.f32.mrf.mxu3  ;;  %v6928_v58 = vshrl.u32 %v6537_v12, 16  ;;  %v6307_v42 = vshrl.u32 %v5928_v62, 16  ;;  %v15151_v43 = vrot.slane %v6316_v38, 5  ;;  %v8040_v53 = vunpack.c.l.b16 %v6913_v25 }
 0x5cd   : > { %v9047_v39 = vadd.f32 %v9046_v0, %v16148_v34  ;;  %v6903_v10 = vsel %vm12210_vm5, %v6898_v22, %v15123_v18  ;;  %v6310_v0 = vshll.u32 %v5928_v62, 16  ;;  %v6322_v6 = vrot.slane %v6320_v46, 4  ;;  %v5945_v62 = vld [vmem:[#allocation2 + $0xbc] sm:$0x1]  ;;  %v11689_v46 = vld [vmem:[#allocation2 + $0xb4] sm:$0xff] }
 0x5ce   : > { %v9313_v8 = vpop.f32.mrf.mxu2  ;;  %v9137_v13 = vpop.f32.mrf.mxu0  ;;  %v6915_v34 = vshrl.u32 %v6536_v15, 16  ;;  %v6930_v48 = vrot.slane %v6928_v58, 4  ;;  %v8039_v44 = vunpack.c.l.b16 %v6903_v10  ;;  %v6309_v38 = vrot.slane %v6307_v42, 4 }
 0x5cf   : > { %v9136_v33 = vadd.f32 %v9135_v32, %v9047_v39  ;;  %v9226_v52 = vpop.f32.mrf.mxu1  ;;  %v7831_v32 = vunpack.c.l.b16 %v6295_v9  ;;  %v6918_v39 = vshll.u32 %v6536_v15, 16  ;;  %v15154_v9 = vrot.slane %v6924_v11, 5 }
 0x5d0   : > { %v6312_v22 = vrot.slane %v6310_v0, 5  ;;  %v8057_v25 = vpack.c.b16 %v8040_v53, %v8039_v44  ;;  %v6323_v15 = vor.u32 %v6322_v6, %v15151_v43  ;;  %v16151_v53 = vld [vmem:[#allocation43_spill] sm:$0xff] }
 0x5d1   : > { %v9225_v45 = vadd.f32 %v9224_v55, %v9136_v33  ;;  %v7849_v12 = vpack.c.b16 %v7832_v3, %v7831_v32  ;;  %v7913_v33 = vpack.c.b16 %v7896_v49, %v7895_v61  ;;  %v6920_v11 = vrot.slane %v6918_v39, 5  ;;  %v6345_v3 = vld [vmem:[#allocation2 + $0xb4] sm:$0xe] }
 0x5d2   : > { %v6931_v61 = vor.u32 %v6930_v48, %v15154_v9  ;;  %v6313_v32 = vor.u32 %v6312_v22, %v6309_v38  ;;  %v6324_v42 = vrot.slane %v6323_v15, 4  ;;  %v6504_v48 = vrot.slane %v5945_v62, 5 }
 0x5d3   : > { %v15146_v29 = vadd.f32 %v9313_v8, %v9225_v45  ;;  %v6501_v45 = vrot.slane %v15130_v17, 5 }
 0x5d4   : > { %v9048_v55 = vpop.f32.mrf.mxu3 }
 0x5d5   : > { %16149 = vst [vmem:[#allocation94_spill] sm:$0xff] %v15146_v29  ;;  %v9049_v37 = vadd.f32 %v9048_v55, %v16150_v36  ;;  %v6553_v55 = vld [vmem:[#allocation2 + $0xc8] sm:$0x1]  ;;  %v6917_v36 = vrot.slane %v6915_v34, 4  ;;  %v6503_v10 = vrot.slane %v6501_v45, 4 }
 0x5d6   : > { %v9315_v30 = vpop.f32.mrf.mxu2  ;;  %v9140_v8 = vpop.f32.mrf.mxu0  ;;  %v6934_v17 = vshll.u32 %v6553_v55, 16  ;;  %v7115_v55 = vld [vmem:[#allocation2 + $0x18] sm:$0xf] }
 0x5d7   : > { %v9138_v60 = vadd.f32 %v9137_v13, %v9049_v37  ;;  %v9229_v18 = vpop.f32.mrf.mxu1  ;;  %v6326_v13 = vshll.u32 %v5945_v62, 16  ;;  %v6921_v0 = vor.u32 %v6920_v11, %v6917_v36 }
 0x5d9   : > { %v9227_v29 = vadd.f32 %v9226_v52, %v9138_v60  ;;  %9090 = vmatmul.bf16.gmra.mxu3 %v7849_v12  ;;  %9179 = vmatmul.bf16.gmra.mxu0 %v7913_v33  ;;  %v6932_v52 = vrot.slane %v6931_v61, 4  ;;  %v6328_v37 = vrot.slane %v6326_v13, 5  ;;  %v10949_v12 = vrot.slane %v6345_v3, 9  ;;  %v15162_v33 = vld [vmem:[#allocation2 + $0x1c] sm:$0xf] }
 0x5da   : > { %9268 = vmatmul.bf16.gmra.mxu1 %v11689_v46  ;;  %v6936_v60 = vrot.slane %v6934_v17, 5  ;;  %v6505_v46 = vsel %vm12202_vm4, %v6503_v10, %v6504_v48  ;;  %v7177_v36 = vshrl.u32 %v15162_v33, 16  ;;  %v16152_v10 = vld [vmem:[#allocation44_spill] sm:$0xff] }
 0x5db   : > { %9357 = vmatmul.bf16.gmra.mxu2 %v8057_v25  ;;  %v15159_v58 = vadd.f32 %v9315_v30, %v9227_v29  ;;  %v6314_v30 = vrot.slane %v6313_v32, 4  ;;  %v6329_v38 = vsel %vm12210_vm5, %v6324_v42, %v6328_v37  ;;  %v6502_v22 = vsel %vm12202_vm4, %v10949_v12, %v6501_v45 }
 0x5dc   : > { %v9051_v49 = vpop.f32.mrf.mxu3  ;;  %v6922_v25 = vrot.slane %v6921_v0, 4  ;;  %v6937_v62 = vsel %vm12210_vm5, %v6932_v52, %v6936_v60  ;;  %v7834_v45 = vunpack.c.l.b16 %v6329_v38  ;;  %v7898_v13 = vunpack.c.l.b16 %v6505_v46  ;;  %v11916_v60 = vld [vmem:[#allocation2 + $0x10] sm:$0xf]  ;;  %v11690_v38 = vld [vmem:[#allocation2 + $0xc0] sm:$0xff] }
 0x5dd   : > { %v9052_v6 = vadd.f32 %v9051_v49, %v16151_v53  ;;  %v6319_v11 = vsel %vm12210_vm5, %v6314_v30, %v15151_v43  ;;  %v7897_v3 = vunpack.c.l.b16 %v6502_v22  ;;  %v8042_v17 = vunpack.c.l.b16 %v6937_v62  ;;  %v7147_v46 = vld [vmem:[#allocation2 + $0x20] sm:$0x1] }
 0x5de   : > { %v9318_v34 = vpop.f32.mrf.mxu2  ;;  %v9142_v39 = vpop.f32.mrf.mxu0  ;;  %v7164_v49 = vshrl.u32 %v7115_v55, 16  ;;  %v7167_v42 = vshll.u32 %v7115_v55, 16  ;;  %v7179_v43 = vrot.slane %v7177_v36, 4  ;;  %v7613_v62 = vrot.slane %v15162_v33, 5 }
 0x5df   : > { %v9141_v44 = vadd.f32 %v9140_v8, %v9052_v6  ;;  %v9231_v29 = vpop.f32.mrf.mxu1  ;;  %v7173_v8 = vshll.u32 %v15162_v33, 16  ;;  %v7833_v6 = vunpack.c.l.b16 %v6319_v11  ;;  %v7914_v30 = vpack.c.b16 %v7898_v13, %v7897_v3  ;;  %v16153_v3 = vld [vmem:[#allocation85_spill] sm:$0xff] }
 0x5e0   : > { %v7183_v11 = vshll.u32 %v7147_v46, 16 }
 0x5e1   : > { %v9230_v15 = vadd.f32 %v9229_v18, %v9141_v44  ;;  %v6927_v18 = vsel %vm12210_vm5, %v6922_v25, %v15154_v9  ;;  %v15183_v52 = vrot.slane %v7173_v8, 5  ;;  %v7850_v44 = vpack.c.b16 %v7834_v45, %v7833_v6 }
 0x5e2   : > { %v8041_v37 = vunpack.c.l.b16 %v6927_v18  ;;  %v7004_v9 = vrot.slane %v11916_v60, 5  ;;  %v7166_v25 = vrot.slane %v7164_v49, 4 }
 0x5e3   : > { %v15177_v61 = vadd.f32 %v9318_v34, %v9230_v15  ;;  %v7169_v15 = vrot.slane %v7167_v42, 5  ;;  %v7180_v8 = vor.u32 %v7179_v43, %v15183_v52  ;;  %v7616_v43 = vrot.slane %v7147_v46, 5 }
 0x5e4   : > { %v9053_v32 = vpop.f32.mrf.mxu3  ;;  %v8058_v22 = vpack.c.b16 %v8042_v17, %v8041_v37  ;;  %v7006_v13 = vrot.slane %v7004_v9, 4  ;;  %v15190_v37 = vld [vmem:[#allocation2 + $0x28] sm:$0xf] }
 0x5e5   : > { %v9054_v0 = vadd.f32 %v9053_v32, %v16152_v10  ;;  %v7170_v18 = vor.u32 %v7169_v15, %v7166_v25  ;;  %v7615_v32 = vrot.slane %v7613_v62, 4  ;;  %v7181_v33 = vrot.slane %v7180_v8, 4 }
 0x5e6   : > { %v9320_v53 = vpop.f32.mrf.mxu2  ;;  %v9145_v34 = vpop.f32.mrf.mxu0  ;;  %v7201_v8 = vshrl.u32 %v15190_v37, 16 }
 0x5e7   : > { %v9143_v12 = vadd.f32 %v9142_v39, %v9054_v0  ;;  %v9234_v48 = vpop.f32.mrf.mxu1  ;;  %v6938_v39 = vld [vmem:[#allocation2 + $0xc] sm:$0xe]  ;;  %v11917_v0 = vld [vmem:[#allocation2 + $0x14] sm:$0x1]  ;;  %v7617_v25 = vsel %vm12202_vm4, %v7615_v32, %v7616_v43 }
 0x5e8   : > { %v10950_v42 = vrot.slane %v6938_v39, 9  ;;  %v7007_v6 = vrot.slane %v11917_v0, 5 }
 0x5e9   : > { %v9232_v55 = vadd.f32 %v9231_v29, %v9143_v12  ;;  %9095 = vmatmul.bf16.gmra.mxu3 %v7850_v44  ;;  %9184 = vmatmul.bf16.gmra.mxu0 %v7914_v30  ;;  %v7547_v29 = vld [vmem:[#allocation2 + $0x18] sm:$0xe]  ;;  %v7185_v30 = vrot.slane %v7183_v11, 5 }
 0x5ea   : > { %9273 = vmatmul.bf16.gmra.mxu1 %v11690_v38  ;;  %v7005_v44 = vsel %vm12202_vm4, %v10950_v42, %v7004_v9  ;;  %v7008_v60 = vsel %vm12202_vm4, %v7006_v13, %v7007_v6  ;;  %v7171_v38 = vrot.slane %v7170_v18, 4  ;;  %v8284_v13 = vunpack.c.l.b16 %v7617_v25  ;;  %v7148_v25 = vld [vmem:[#allocation2 + $0x2c] sm:$0x1] }
 0x5eb   : > { %9362 = vmatmul.bf16.gmra.mxu2 %v8058_v22  ;;  %v15187_v36 = vadd.f32 %v9320_v53, %v9232_v55  ;;  %v10966_v22 = vrot.slane %v7547_v29, 9  ;;  %v7186_v46 = vsel %vm12210_vm5, %v7181_v33, %v7185_v30  ;;  %v7117_v55 = vld [vmem:[#allocation2 + $0x24] sm:$0xf]  ;;  %v8076_v11 = vunpack.c.l.b16 %v7008_v60  ;;  %v11691_v60 = vld [vmem:[#allocation2 + $0x18] sm:$0xff] }
 0x5ec   : > { %v9056_v45 = vpop.f32.mrf.mxu3  ;;  %v8075_v18 = vunpack.c.l.b16 %v7005_v44  ;;  %v8220_v32 = vunpack.c.l.b16 %v7186_v46 }
 0x5ed   : > { %v9057_v17 = vadd.f32 %v9056_v45, %v16153_v3  ;;  %v7614_v9 = vsel %vm12202_vm4, %v10966_v22, %v7613_v62  ;;  %v7176_v45 = vsel %vm12210_vm5, %v7171_v38, %v15183_v52  ;;  %v7188_v3 = vshrl.u32 %v7117_v55, 16  ;;  %v11918_v38 = vld [vmem:[#allocation2 + $0x1c] sm:$0xf] }
 0x5ee   : > { %v9323_v49 = vpop.f32.mrf.mxu2  ;;  %v9147_v10 = vpop.f32.mrf.mxu0  ;;  %v8283_v29 = vunpack.c.l.b16 %v7614_v9  ;;  %v7203_v62 = vrot.slane %v7201_v8, 4  ;;  %v8219_v6 = vunpack.c.l.b16 %v7176_v45  ;;  %v8107_v30 = vpack.c.b16 %v8076_v11, %v8075_v18  ;;  %v16154_v18 = vld [vmem:[#allocation46_spill] sm:$0xff] }
 0x5ef   : > { %v9146_v12 = vadd.f32 %v9145_v34, %v9057_v17  ;;  %v9236_v53 = vpop.f32.mrf.mxu1  ;;  %v7197_v34 = vshll.u32 %v15190_v37, 16  ;;  %v7191_v17 = vshll.u32 %v7117_v55, 16  ;;  %v7011_v22 = vrot.slane %v11918_v38, 5 }
 0x5f0   : > { %v8315_v52 = vpack.c.b16 %v8284_v13, %v8283_v29  ;;  %v8251_v44 = vpack.c.b16 %v8220_v32, %v8219_v6  ;;  %v7207_v9 = vshll.u32 %v7148_v25, 16  ;;  %v11919_v29 = vld [vmem:[#allocation2 + $0x20] sm:$0x1] }
 0x5f1   : > { %v9235_v15 = vadd.f32 %v9234_v48, %v9146_v12  ;;  %v15210_v0 = vrot.slane %v7197_v34, 5  ;;  %v7193_v46 = vrot.slane %v7191_v17, 5  ;;  %v7013_v45 = vrot.slane %v7011_v22, 4 }
 0x5f2   : > { %v7014_v6 = vrot.slane %v11919_v29, 5 }
 0x5f3   : > { %v15204_v39 = vadd.f32 %v9323_v49, %v9235_v15  ;;  %v7190_v15 = vrot.slane %v7188_v3, 4  ;;  %v7204_v34 = vor.u32 %v7203_v62, %v15210_v0  ;;  %v7623_v62 = vrot.slane %v7148_v25, 5 }
 0x5f4   : > { %v9058_v48 = vpop.f32.mrf.mxu3  ;;  %v7015_v38 = vsel %vm12202_vm4, %v7013_v45, %v7014_v6 }
 0x5f5   : > { %v9059_v42 = vadd.f32 %v9058_v48, %v14604_v21  ;;  %v7620_v21 = vrot.slane %v15190_v37, 5  ;;  %v7194_v13 = vor.u32 %v7193_v46, %v7190_v15  ;;  %v7205_v37 = vrot.slane %v7204_v34, 4  ;;  %v7119_v34 = vld [vmem:[#allocation2 + $0x30] sm:$0xf] }
 0x5f6   : > { %v9325_v33 = vpop.f32.mrf.mxu2  ;;  %v9150_v49 = vpop.f32.mrf.mxu0 }
 0x5f7   : > { %v9148_v43 = vadd.f32 %v9147_v10, %v9059_v42  ;;  %v9239_v12 = vpop.f32.mrf.mxu1  ;;  %v6939_v10 = vld [vmem:[#allocation2 + $0x18] sm:$0xe]  ;;  %v7622_v48 = vrot.slane %v7620_v21, 4 }
 0x5f8   : > { %v10951_v17 = vrot.slane %v6939_v10, 9 }
 0x5f9   : > { %v9237_v55 = vadd.f32 %v9236_v53, %v9148_v43  ;;  %9376 = vmatmul.bf16.vlgmr.msra.gmra.mxu3 %v8107_v30  ;;  %9465 = vmatmul.bf16.vlgmr.msra.gmra.mxu0 %v11691_v60  ;;  %v7548_v53 = vld [vmem:[#allocation2 + $0x24] sm:$0xe]  ;;  %v15217_v43 = vld [vmem:[#allocation2 + $0x34] sm:$0xf]  ;;  %v7624_v46 = vsel %vm12202_vm4, %v7622_v48, %v7623_v62 }
 0x5fa   : > { %9554 = vmatmul.bf16.vlgmr.msra.gmra.mxu1 %v8251_v44  ;;  %v7012_v60 = vsel %vm12202_vm4, %v10951_v17, %v7011_v22  ;;  %v7195_v44 = vrot.slane %v7194_v13, 4  ;;  %v10967_v15 = vrot.slane %v7548_v53, 9  ;;  %v7225_v10 = vshrl.u32 %v15217_v43, 16 }
 0x5fb   : > { %9643 = vmatmul.bf16.vlgmr.msra.gmra.mxu2 %v8315_v52  ;;  %v15214_v8 = vadd.f32 %v9325_v33, %v9237_v55  ;;  %v7209_v52 = vrot.slane %v7207_v9, 5  ;;  %v8286_v13 = vunpack.c.l.b16 %v7624_v46  ;;  %v8077_v48 = vunpack.c.l.b16 %v7012_v60 }
 0x5fc   : > { %v9061_v11 = vpop.f32.mrf.mxu3  ;;  %v7621_v22 = vsel %vm12202_vm4, %v10967_v15, %v7620_v21  ;;  %v7200_v45 = vsel %vm12210_vm5, %v7195_v44, %v15210_v0  ;;  %v7215_v17 = vshll.u32 %v7119_v34, 16  ;;  %v7227_v21 = vrot.slane %v7225_v10, 4  ;;  %v11692_v15 = vld [vmem:[#allocation2 + $0x24] sm:$0xff] }
 0x5fd   : > { %v9062_v32 = vadd.f32 %v9061_v11, %v16154_v18  ;;  %v7210_v25 = vsel %vm12210_vm5, %v7205_v37, %v7209_v52  ;;  %v8078_v11 = vunpack.c.l.b16 %v7015_v38  ;;  %v8285_v29 = vunpack.c.l.b16 %v7621_v22  ;;  %v11920_v44 = vld [vmem:[#allocation2 + $0x28] sm:$0xf] }
 0x5fe   : > { %v9328_v3 = vpop.f32.mrf.mxu2  ;;  %v9152_v42 = vpop.f32.mrf.mxu0  ;;  %v8222_v18 = vunpack.c.l.b16 %v7210_v25  ;;  %v8221_v62 = vunpack.c.l.b16 %v7200_v45  ;;  %v7018_v46 = vrot.slane %v11920_v44, 5 }
 0x5ff   : > { %v9151_v30 = vadd.f32 %v9150_v49, %v9062_v32  ;;  %v9241_v33 = vpop.f32.mrf.mxu1  ;;  %v7221_v49 = vshll.u32 %v15217_v43, 16  ;;  %v7212_v32 = vshrl.u32 %v7119_v34, 16  ;;  %v8108_v38 = vpack.c.b16 %v8078_v11, %v8077_v48 }
 0x600   : > { %v8316_v0 = vpack.c.b16 %v8286_v13, %v8285_v29  ;;  %v8252_v60 = vpack.c.b16 %v8222_v18, %v8221_v62  ;;  %v7217_v34 = vrot.slane %v7215_v17, 5  ;;  %v7020_v45 = vrot.slane %v7018_v46, 4  ;;  %v11921_v29 = vld [vmem:[#allocation2 + $0x2c] sm:$0x1] }
 0x601   : > { %v9240_v55 = vadd.f32 %v9239_v12, %v9151_v30  ;;  %v15237_v6 = vrot.slane %v7221_v49, 5  ;;  %v7214_v25 = vrot.slane %v7212_v32, 4  ;;  %v7021_v62 = vrot.slane %v11921_v29, 5 }
 0x603   : > { %v15231_v9 = vadd.f32 %v9328_v3, %v9240_v55  ;;  %v7149_v55 = vld [vmem:[#allocation2 + $0x38] sm:$0x1]  ;;  %v7228_v49 = vor.u32 %v7227_v21, %v15237_v6  ;;  %v7218_v13 = vor.u32 %v7217_v34, %v7214_v25  ;;  %v7022_v44 = vsel %vm12202_vm4, %v7020_v45, %v7021_v62 }
 0x604   : > { %v9063_v12 = vpop.f32.mrf.mxu3  ;;  %v7231_v22 = vshll.u32 %v7149_v55, 16  ;;  %v7630_v21 = vrot.slane %v7149_v55, 5 }
 0x605   : > { %v9064_v37 = vadd.f32 %v9063_v12, %v14651_v4  ;;  %v7627_v4 = vrot.slane %v15217_v43, 5  ;;  %v7229_v43 = vrot.slane %v7228_v49, 4 }
 0x606   : > { %v9330_v53 = vpop.f32.mrf.mxu2  ;;  %v9155_v3 = vpop.f32.mrf.mxu0 }
 0x607   : > { %v9153_v30 = vadd.f32 %v9152_v42, %v9064_v37  ;;  %v9244_v52 = vpop.f32.mrf.mxu1  ;;  %v6940_v42 = vld [vmem:[#allocation2 + $0x24] sm:$0xe]  ;;  %v7629_v48 = vrot.slane %v7627_v4, 4 }
 0x608   : > { %v10952_v17 = vrot.slane %v6940_v42, 9 }
 0x609   : > { %v9242_v12 = vadd.f32 %v9241_v33, %v9153_v30  ;;  %9381 = vmatmul.bf16.gmra.mxu3 %v8108_v38  ;;  %9470 = vmatmul.bf16.gmra.mxu0 %v11692_v15  ;;  %v7549_v33 = vld [vmem:[#allocation2 + $0x30] sm:$0xe]  ;;  %v15244_v30 = vld [vmem:[#allocation2 + $0x40] sm:$0xf]  ;;  %v7631_v25 = vsel %vm12202_vm4, %v7629_v48, %v7630_v21 }
 0x60a   : > { %9559 = vmatmul.bf16.gmra.mxu1 %v8252_v60  ;;  %v7019_v15 = vsel %vm12202_vm4, %v10952_v17, %v7018_v46  ;;  %v10968_v60 = vrot.slane %v7549_v33, 9  ;;  %v7249_v49 = vshrl.u32 %v15244_v30, 16  ;;  %v8288_v45 = vunpack.c.l.b16 %v7631_v25 }
 0x60b   : > { %9648 = vmatmul.bf16.gmra.mxu2 %v8316_v0  ;;  %v15241_v10 = vadd.f32 %v9330_v53, %v9242_v12  ;;  %v7233_v0 = vrot.slane %v7231_v22, 5  ;;  %v7121_v12 = vld [vmem:[#allocation2 + $0x3c] sm:$0xf]  ;;  %v8080_v22 = vunpack.c.l.b16 %v7022_v44 }
 0x60c   : > { %v9066_v11 = vpop.f32.mrf.mxu3  ;;  %v7628_v46 = vsel %vm12202_vm4, %v10968_v60, %v7627_v4  ;;  %v7239_v17 = vshll.u32 %v7121_v12, 16  ;;  %v7251_v4 = vrot.slane %v7249_v49, 4  ;;  %v11693_v60 = vld [vmem:[#allocation2 + $0x30] sm:$0xff] }
 0x60d   : > { %v9067_v18 = vadd.f32 %v9066_v11, %v14661_v7  ;;  %v7219_v7 = vrot.slane %v7218_v13, 4  ;;  %v7234_v55 = vsel %vm12210_vm5, %v7229_v43, %v7233_v0  ;;  %v8079_v13 = vunpack.c.l.b16 %v7019_v15 }
 0x60e   : > { %v9333_v32 = vpop.f32.mrf.mxu2  ;;  %v9157_v37 = vpop.f32.mrf.mxu0  ;;  %v8224_v48 = vunpack.c.l.b16 %v7234_v55  ;;  %v8287_v29 = vunpack.c.l.b16 %v7628_v46 }
 0x60f   : > { %v9156_v38 = vadd.f32 %v9155_v3, %v9067_v18  ;;  %v9246_v53 = vpop.f32.mrf.mxu1  ;;  %v7245_v3 = vshll.u32 %v15244_v30, 16  ;;  %v7224_v11 = vsel %vm12210_vm5, %v7219_v7, %v15237_v6  ;;  %v7236_v18 = vshrl.u32 %v7121_v12, 16  ;;  %v11922_v7 = vld [vmem:[#allocation2 + $0x34] sm:$0xf] }
 0x610   : > { %v8223_v21 = vunpack.c.l.b16 %v7224_v11  ;;  %v8109_v44 = vpack.c.b16 %v8080_v22, %v8079_v13  ;;  %v8317_v6 = vpack.c.b16 %v8288_v45, %v8287_v29  ;;  %v7025_v25 = vrot.slane %v11922_v7, 5  ;;  %v11923_v29 = vld [vmem:[#allocation2 + $0x38] sm:$0x1] }
 0x611   : > { %v9245_v34 = vadd.f32 %v9244_v52, %v9156_v38  ;;  %v15264_v62 = vrot.slane %v7245_v3, 5  ;;  %v7238_v55 = vrot.slane %v7236_v18, 4  ;;  %v7241_v12 = vrot.slane %v7239_v17, 5 }
 0x612   : > { %v8253_v15 = vpack.c.b16 %v8224_v48, %v8223_v21  ;;  %v7027_v11 = vrot.slane %v7025_v25, 4  ;;  %v7028_v21 = vrot.slane %v11923_v29, 5 }
 0x613   : > { %v15258_v42 = vadd.f32 %v9333_v32, %v9245_v34  ;;  %v7150_v34 = vld [vmem:[#allocation2 + $0x44] sm:$0x1]  ;;  %v7252_v3 = vor.u32 %v7251_v4, %v15264_v62  ;;  %v7242_v45 = vor.u32 %v7241_v12, %v7238_v55 }
 0x614   : > { %v9068_v52 = vpop.f32.mrf.mxu3  ;;  %v7255_v46 = vshll.u32 %v7150_v34, 16  ;;  %v7637_v4 = vrot.slane %v7150_v34, 5  ;;  %v7029_v7 = vsel %vm12202_vm4, %v7027_v11, %v7028_v21 }
 0x615   : > { %v9069_v43 = vadd.f32 %v9068_v52, %v14684_v56  ;;  %v7634_v56 = vrot.slane %v15244_v30, 5  ;;  %v7253_v30 = vrot.slane %v7252_v3, 4 }
 0x616   : > { %v9335_v33 = vpop.f32.mrf.mxu2  ;;  %v9160_v32 = vpop.f32.mrf.mxu0 }
 0x617   : > { %v9158_v38 = vadd.f32 %v9157_v37, %v9069_v43  ;;  %v9249_v0 = vpop.f32.mrf.mxu1  ;;  %v6941_v37 = vld [vmem:[#allocation2 + $0x30] sm:$0xe]  ;;  %v7636_v13 = vrot.slane %v7634_v56, 4 }
 0x618   : > { %v10953_v17 = vrot.slane %v6941_v37, 9 }
 0x619   : > { %v9247_v52 = vadd.f32 %v9246_v53, %v9158_v38  ;;  %9386 = vmatmul.bf16.gmra.mxu3 %v8109_v44  ;;  %9475 = vmatmul.bf16.gmra.mxu0 %v11693_v60  ;;  %v7550_v53 = vld [vmem:[#allocation2 + $0x3c] sm:$0xe]  ;;  %v15271_v38 = vld [vmem:[#allocation2 + $0x4c] sm:$0xf]  ;;  %v7638_v55 = vsel %vm12202_vm4, %v7636_v13, %v7637_v4 }
 0x61a   : > { %9564 = vmatmul.bf16.gmra.mxu1 %v8253_v15  ;;  %v7026_v60 = vsel %vm12202_vm4, %v10953_v17, %v7025_v25  ;;  %v10969_v15 = vrot.slane %v7550_v53, 9  ;;  %v7273_v3 = vshrl.u32 %v15271_v38, 16  ;;  %v8290_v11 = vunpack.c.l.b16 %v7638_v55 }
 0x61b   : > { %9653 = vmatmul.bf16.gmra.mxu2 %v8317_v6  ;;  %v15268_v49 = vadd.f32 %v9335_v33, %v9247_v52  ;;  %v7257_v6 = vrot.slane %v7255_v46, 5  ;;  %v7123_v52 = vld [vmem:[#allocation2 + $0x48] sm:$0xf]  ;;  %v8082_v46 = vunpack.c.l.b16 %v7029_v7 }
 0x61c   : > { %v9071_v22 = vpop.f32.mrf.mxu3  ;;  %v7635_v25 = vsel %vm12202_vm4, %v10969_v15, %v7634_v56  ;;  %v7263_v17 = vshll.u32 %v7123_v52, 16  ;;  %v7275_v56 = vrot.slane %v7273_v3, 4  ;;  %v11694_v15 = vld [vmem:[#allocation2 + $0x3c] sm:$0xff] }
 0x61d   : > { %v9072_v48 = vadd.f32 %v9071_v22, %v14699_v20  ;;  %v7243_v20 = vrot.slane %v7242_v45, 4  ;;  %v7258_v34 = vsel %vm12210_vm5, %v7253_v30, %v7257_v6  ;;  %v8081_v45 = vunpack.c.l.b16 %v7026_v60 }
 0x61e   : > { %v9338_v18 = vpop.f32.mrf.mxu2  ;;  %v9162_v43 = vpop.f32.mrf.mxu0  ;;  %v8226_v13 = vunpack.c.l.b16 %v7258_v34  ;;  %v8289_v29 = vunpack.c.l.b16 %v7635_v25 }
 0x61f   : > { %v9161_v44 = vadd.f32 %v9160_v32, %v9072_v48  ;;  %v9251_v33 = vpop.f32.mrf.mxu1  ;;  %v7269_v32 = vshll.u32 %v15271_v38, 16  ;;  %v7248_v22 = vsel %vm12210_vm5, %v7243_v20, %v15264_v62  ;;  %v7260_v48 = vshrl.u32 %v7123_v52, 16  ;;  %v11924_v20 = vld [vmem:[#allocation2 + $0x40] sm:$0xf] }
 0x620   : > { %v8225_v4 = vunpack.c.l.b16 %v7248_v22  ;;  %v8110_v7 = vpack.c.b16 %v8082_v46, %v8081_v45  ;;  %v8318_v62 = vpack.c.b16 %v8290_v11, %v8289_v29  ;;  %v7032_v55 = vrot.slane %v11924_v20, 5  ;;  %v11925_v29 = vld [vmem:[#allocation2 + $0x44] sm:$0x1] }
 0x621   : > { %v9250_v12 = vadd.f32 %v9249_v0, %v9161_v44  ;;  %v15291_v21 = vrot.slane %v7269_v32, 5  ;;  %v7262_v34 = vrot.slane %v7260_v48, 4  ;;  %v7265_v52 = vrot.slane %v7263_v17, 5 }
 0x622   : > { %v8254_v60 = vpack.c.b16 %v8226_v13, %v8225_v4  ;;  %v7034_v22 = vrot.slane %v7032_v55, 4  ;;  %v7035_v4 = vrot.slane %v11925_v29, 5 }
 0x623   : > { %v15285_v37 = vadd.f32 %v9338_v18, %v9250_v12  ;;  %v7151_v12 = vld [vmem:[#allocation2 + $0x50] sm:$0x1]  ;;  %v7276_v32 = vor.u32 %v7275_v56, %v15291_v21  ;;  %v7266_v11 = vor.u32 %v7265_v52, %v7262_v34 }
 0x624   : > { %v9073_v0 = vpop.f32.mrf.mxu3  ;;  %v7279_v25 = vshll.u32 %v7151_v12, 16  ;;  %v7644_v56 = vrot.slane %v7151_v12, 5  ;;  %v7036_v20 = vsel %vm12202_vm4, %v7034_v22, %v7035_v4 }
 0x625   : > { %v9074_v30 = vadd.f32 %v9073_v0, %v14731_v63  ;;  %v7641_v63 = vrot.slane %v15271_v38, 5  ;;  %v7277_v38 = vrot.slane %v7276_v32, 4 }
 0x626   : > { %v9340_v53 = vpop.f32.mrf.mxu2  ;;  %v9165_v18 = vpop.f32.mrf.mxu0 }
 0x627   : > { %v9163_v44 = vadd.f32 %v9162_v43, %v9074_v30  ;;  %v9254_v6 = vpop.f32.mrf.mxu1  ;;  %v6942_v43 = vld [vmem:[#allocation2 + $0x3c] sm:$0xe]  ;;  %v7643_v45 = vrot.slane %v7641_v63, 4 }
 0x628   : > { %v10954_v17 = vrot.slane %v6942_v43, 9 }
 0x629   : > { %v9252_v0 = vadd.f32 %v9251_v33, %v9163_v44  ;;  %9391 = vmatmul.bf16.gmra.mxu3 %v8110_v7  ;;  %9480 = vmatmul.bf16.gmra.mxu0 %v11694_v15  ;;  %v7551_v33 = vld [vmem:[#allocation2 + $0x48] sm:$0xe]  ;;  %v15298_v44 = vld [vmem:[#allocation2 + $0x58] sm:$0xf]  ;;  %v7645_v34 = vsel %vm12202_vm4, %v7643_v45, %v7644_v56 }
 0x62a   : > { %9569 = vmatmul.bf16.gmra.mxu1 %v8254_v60  ;;  %v7033_v15 = vsel %vm12202_vm4, %v10954_v17, %v7032_v55  ;;  %v10970_v60 = vrot.slane %v7551_v33, 9  ;;  %v7297_v32 = vshrl.u32 %v15298_v44, 16  ;;  %v8292_v22 = vunpack.c.l.b16 %v7645_v34 }
 0x62b   : > { %9658 = vmatmul.bf16.gmra.mxu2 %v8318_v62  ;;  %v15295_v3 = vadd.f32 %v9340_v53, %v9252_v0  ;;  %v7281_v62 = vrot.slane %v7279_v25, 5  ;;  %v7125_v0 = vld [vmem:[#allocation2 + $0x54] sm:$0xf]  ;;  %v8084_v25 = vunpack.c.l.b16 %v7036_v20 }
 0x62c   : > { %v9076_v46 = vpop.f32.mrf.mxu3  ;;  %v7642_v55 = vsel %vm12202_vm4, %v10970_v60, %v7641_v63  ;;  %v7287_v17 = vshll.u32 %v7125_v0, 16  ;;  %v7299_v63 = vrot.slane %v7297_v32, 4 }
 0x62d   : > { %v9077_v13 = vadd.f32 %v9076_v46, %v14743_v26  ;;  %v7267_v26 = vrot.slane %v7266_v11, 4  ;;  %v7282_v12 = vsel %vm12210_vm5, %v7277_v38, %v7281_v62  ;;  %v8083_v11 = vunpack.c.l.b16 %v7033_v15  ;;  %v16156_v38 = vld [vmem:[#allocation54_spill] sm:$0xff] }
 0x62e   : > { %v9343_v48 = vpop.f32.mrf.mxu2  ;;  %v9167_v30 = vpop.f32.mrf.mxu0  ;;  %v8228_v45 = vunpack.c.l.b16 %v7282_v12  ;;  %v8291_v4 = vunpack.c.l.b16 %v7642_v55  ;;  %v7152_v12 = vld [vmem:[#allocation2 + $0x5c] sm:$0x1] }
 0x62f   : > { %v9166_v7 = vadd.f32 %v9165_v18, %v9077_v13  ;;  %v9256_v53 = vpop.f32.mrf.mxu1  ;;  %v7293_v18 = vshll.u32 %v15298_v44, 16  ;;  %v7272_v46 = vsel %vm12210_vm5, %v7267_v26, %v15291_v21  ;;  %v7284_v13 = vshrl.u32 %v7125_v0, 16  ;;  %v11926_v26 = vld [vmem:[#allocation2 + $0x4c] sm:$0xf] }
 0x630   : > { %v8111_v60 = vpack.c.b16 %v8084_v25, %v8083_v11  ;;  %v8319_v21 = vpack.c.b16 %v8292_v22, %v8291_v4  ;;  %v7039_v34 = vrot.slane %v11926_v26, 5  ;;  %v7289_v0 = vrot.slane %v7287_v17, 5  ;;  %v11927_v4 = vld [vmem:[#allocation2 + $0x50] sm:$0x1] }
 0x631   : > { %v9255_v52 = vadd.f32 %v9254_v6, %v9166_v7  ;;  %v15318_v56 = vrot.slane %v7293_v18, 5  ;;  %v8227_v7 = vunpack.c.l.b16 %v7272_v46  ;;  %v7303_v55 = vshll.u32 %v7152_v12, 16 }
 0x632   : > { %v7041_v46 = vrot.slane %v7039_v34, 4 }
 0x633   : > { %v15312_v43 = vadd.f32 %v9343_v48, %v9255_v52  ;;  %v11695_v52 = vld [vmem:[#allocation2 + $0x48] sm:$0xff]  ;;  %v8255_v15 = vpack.c.b16 %v8228_v45, %v8227_v7  ;;  %v7300_v18 = vor.u32 %v7299_v63, %v15318_v56  ;;  %v7042_v7 = vrot.slane %v11927_v4, 5 }
 0x634   : > { %v9078_v6 = vpop.f32.mrf.mxu3  ;;  %v7651_v63 = vrot.slane %v7152_v12, 5 }
 0x635   : > { %16155 = vst [vmem:[#allocation29_spill] sm:$0xff] %v15312_v43  ;;  %v9079_v33 = vadd.f32 %v9078_v6, %v16156_v38  ;;  %v7286_v43 = vrot.slane %v7284_v13, 4  ;;  %v7648_v6 = vrot.slane %v15298_v44, 5  ;;  %v7301_v44 = vrot.slane %v7300_v18, 4 }
 0x636   : > { %v9345_v29 = vpop.f32.mrf.mxu2  ;;  %v9170_v48 = vpop.f32.mrf.mxu0 }
 0x637   : > { %v9168_v62 = vadd.f32 %v9167_v30, %v9079_v33  ;;  %v9259_v20 = vpop.f32.mrf.mxu1  ;;  %v6943_v30 = vld [vmem:[#allocation2 + $0x48] sm:$0xe]  ;;  %v7290_v22 = vor.u32 %v7289_v0, %v7286_v43  ;;  %v7650_v11 = vrot.slane %v7648_v6, 4  ;;  %v7043_v43 = vsel %vm12202_vm4, %v7041_v46, %v7042_v7 }
 0x638   : > { %v10955_v17 = vrot.slane %v6943_v30, 9 }
 0x639   : > { %v9257_v38 = vadd.f32 %v9256_v53, %v9168_v62  ;;  %9396 = vmatmul.bf16.gmra.mxu3 %v8111_v60  ;;  %9485 = vmatmul.bf16.gmra.mxu0 %v11695_v52  ;;  %v7552_v53 = vld [vmem:[#allocation2 + $0x54] sm:$0xe]  ;;  %v15325_v62 = vld [vmem:[#allocation2 + $0x64] sm:$0xf] }
 0x63a   : > { %9574 = vmatmul.bf16.gmra.mxu1 %v8255_v15  ;;  %v7040_v52 = vsel %vm12202_vm4, %v10955_v17, %v7039_v34  ;;  %v10971_v26 = vrot.slane %v7552_v53, 9  ;;  %v7652_v15 = vsel %vm12202_vm4, %v7650_v11, %v7651_v63  ;;  %v7321_v18 = vshrl.u32 %v15325_v62, 16 }
 0x63b   : > { %9663 = vmatmul.bf16.gmra.mxu2 %v8319_v21  ;;  %v15322_v32 = vadd.f32 %v9345_v29, %v9257_v38  ;;  %v7305_v21 = vrot.slane %v7303_v55, 5  ;;  %v7127_v38 = vld [vmem:[#allocation2 + $0x60] sm:$0xf]  ;;  %v8086_v55 = vunpack.c.l.b16 %v7043_v43  ;;  %v8294_v46 = vunpack.c.l.b16 %v7652_v15 }
 0x63c   : > { %v9081_v25 = vpop.f32.mrf.mxu3  ;;  %v7649_v34 = vsel %vm12202_vm4, %v10971_v26, %v7648_v6  ;;  %v7311_v17 = vshll.u32 %v7127_v38, 16  ;;  %v7323_v6 = vrot.slane %v7321_v18, 4  ;;  %v11696_v26 = vld [vmem:[#allocation2 + $0x54] sm:$0xff] }
 0x63d   : > { %v9082_v45 = vadd.f32 %v9081_v25, %v14781_v54  ;;  %v7291_v54 = vrot.slane %v7290_v22, 4  ;;  %v7306_v12 = vsel %vm12210_vm5, %v7301_v44, %v7305_v21  ;;  %v8085_v22 = vunpack.c.l.b16 %v7040_v52 }
 0x63e   : > { %v9348_v13 = vpop.f32.mrf.mxu2  ;;  %v9172_v33 = vpop.f32.mrf.mxu0  ;;  %v8230_v11 = vunpack.c.l.b16 %v7306_v12  ;;  %v8293_v4 = vunpack.c.l.b16 %v7649_v34 }
 0x63f   : > { %v9171_v60 = vadd.f32 %v9170_v48, %v9082_v45  ;;  %v9261_v29 = vpop.f32.mrf.mxu1  ;;  %v7317_v48 = vshll.u32 %v15325_v62, 16  ;;  %v7296_v25 = vsel %vm12210_vm5, %v7291_v54, %v15318_v56  ;;  %v7308_v45 = vshrl.u32 %v7127_v38, 16  ;;  %v11928_v54 = vld [vmem:[#allocation2 + $0x58] sm:$0xf] }
 0x640   : > { %v8229_v63 = vunpack.c.l.b16 %v7296_v25  ;;  %v8112_v43 = vpack.c.b16 %v8086_v55, %v8085_v22  ;;  %v8320_v56 = vpack.c.b16 %v8294_v46, %v8293_v4  ;;  %v7046_v15 = vrot.slane %v11928_v54, 5  ;;  %v11929_v4 = vld [vmem:[#allocation2 + $0x5c] sm:$0x1] }
 0x641   : > { %v9260_v0 = vadd.f32 %v9259_v20, %v9171_v60  ;;  %v15345_v7 = vrot.slane %v7317_v48, 5  ;;  %v7310_v12 = vrot.slane %v7308_v45, 4  ;;  %v7313_v38 = vrot.slane %v7311_v17, 5 }
 0x642   : > { %v8256_v52 = vpack.c.b16 %v8230_v11, %v8229_v63  ;;  %v7048_v25 = vrot.slane %v7046_v15, 4  ;;  %v7049_v63 = vrot.slane %v11929_v4, 5 }
 0x643   : > { %v15339_v30 = vadd.f32 %v9348_v13, %v9260_v0  ;;  %v7153_v0 = vld [vmem:[#allocation2 + $0x68] sm:$0x1]  ;;  %v7324_v48 = vor.u32 %v7323_v6, %v15345_v7  ;;  %v7314_v46 = vor.u32 %v7313_v38, %v7310_v12 }
 0x644   : > { %v9083_v20 = vpop.f32.mrf.mxu3  ;;  %v7327_v34 = vshll.u32 %v7153_v0, 16  ;;  %v7658_v6 = vrot.slane %v7153_v0, 5  ;;  %v7050_v54 = vsel %vm12202_vm4, %v7048_v25, %v7049_v63 }
 0x645   : > { %v9084_v44 = vadd.f32 %v9083_v20, %v14815_v27  ;;  %v7655_v27 = vrot.slane %v15325_v62, 5  ;;  %v7325_v62 = vrot.slane %v7324_v48, 4 }
 0x646   : > { %v9350_v53 = vpop.f32.mrf.mxu2  ;;  %v9175_v13 = vpop.f32.mrf.mxu0 }
 0x647   : > { %v9173_v60 = vadd.f32 %v9172_v33, %v9084_v44  ;;  %v9264_v21 = vpop.f32.mrf.mxu1  ;;  %v6944_v33 = vld [vmem:[#allocation2 + $0x54] sm:$0xe]  ;;  %v7657_v22 = vrot.slane %v7655_v27, 4 }
 0x648   : > { %v10956_v17 = vrot.slane %v6944_v33, 9 }
 0x649   : > { %v9262_v20 = vadd.f32 %v9261_v29, %v9173_v60  ;;  %9401 = vmatmul.bf16.gmra.mxu3 %v8112_v43  ;;  %9490 = vmatmul.bf16.gmra.mxu0 %v11696_v26  ;;  %v7553_v29 = vld [vmem:[#allocation2 + $0x60] sm:$0xe]  ;;  %v15352_v60 = vld [vmem:[#allocation2 + $0x70] sm:$0xf]  ;;  %v7659_v12 = vsel %vm12202_vm4, %v7657_v22, %v7658_v6 }
 0x64a   : > { %9579 = vmatmul.bf16.gmra.mxu1 %v8256_v52  ;;  %v7047_v26 = vsel %vm12202_vm4, %v10956_v17, %v7046_v15  ;;  %v10972_v52 = vrot.slane %v7553_v29, 9  ;;  %v7345_v48 = vshrl.u32 %v15352_v60, 16  ;;  %v8296_v25 = vunpack.c.l.b16 %v7659_v12 }
 0x64b   : > { %9668 = vmatmul.bf16.gmra.mxu2 %v8320_v56  ;;  %v15349_v18 = vadd.f32 %v9350_v53, %v9262_v20  ;;  %v7329_v56 = vrot.slane %v7327_v34, 5  ;;  %v7129_v20 = vld [vmem:[#allocation2 + $0x6c] sm:$0xf]  ;;  %v8088_v34 = vunpack.c.l.b16 %v7050_v54 }
 0x64c   : > { %v9086_v55 = vpop.f32.mrf.mxu3  ;;  %v7656_v15 = vsel %vm12202_vm4, %v10972_v52, %v7655_v27  ;;  %v7335_v17 = vshll.u32 %v7129_v20, 16  ;;  %v7347_v27 = vrot.slane %v7345_v48, 4  ;;  %v11697_v52 = vld [vmem:[#allocation2 + $0x60] sm:$0xff] }
 0x64d   : > { %v9087_v11 = vadd.f32 %v9086_v55, %v14828_v35  ;;  %v7315_v35 = vrot.slane %v7314_v46, 4  ;;  %v7330_v0 = vsel %vm12210_vm5, %v7325_v62, %v7329_v56  ;;  %v8087_v46 = vunpack.c.l.b16 %v7047_v26 }
 0x64e   : > { %v9353_v45 = vpop.f32.mrf.mxu2  ;;  %v9177_v44 = vpop.f32.mrf.mxu0  ;;  %v8232_v22 = vunpack.c.l.b16 %v7330_v0  ;;  %v8295_v4 = vunpack.c.l.b16 %v7656_v15 }
 0x64f   : > { %v9176_v43 = vadd.f32 %v9175_v13, %v9087_v11  ;;  %v9266_v53 = vpop.f32.mrf.mxu1  ;;  %v7341_v13 = vshll.u32 %v15352_v60, 16  ;;  %v7320_v55 = vsel %vm12210_vm5, %v7315_v35, %v15345_v7  ;;  %v7332_v11 = vshrl.u32 %v7129_v20, 16  ;;  %v11930_v35 = vld [vmem:[#allocation2 + $0x64] sm:$0xf] }
 0x650   : > { %v8231_v6 = vunpack.c.l.b16 %v7320_v55  ;;  %v8113_v54 = vpack.c.b16 %v8088_v34, %v8087_v46  ;;  %v8321_v7 = vpack.c.b16 %v8296_v25, %v8295_v4  ;;  %v7053_v12 = vrot.slane %v11930_v35, 5  ;;  %v11931_v4 = vld [vmem:[#allocation2 + $0x68] sm:$0x1] }
 0x651   : > { %v9265_v38 = vadd.f32 %v9264_v21, %v9176_v43  ;;  %v15372_v63 = vrot.slane %v7341_v13, 5  ;;  %v7334_v0 = vrot.slane %v7332_v11, 4  ;;  %v7337_v20 = vrot.slane %v7335_v17, 5 }
 0x652   : > { %v8257_v26 = vpack.c.b16 %v8232_v22, %v8231_v6  ;;  %v7055_v55 = vrot.slane %v7053_v12, 4  ;;  %v7056_v6 = vrot.slane %v11931_v4, 5 }
 0x653   : > { %v15366_v33 = vadd.f32 %v9353_v45, %v9265_v38  ;;  %v7154_v38 = vld [vmem:[#allocation2 + $0x74] sm:$0x1]  ;;  %v7348_v13 = vor.u32 %v7347_v27, %v15372_v63  ;;  %v7338_v25 = vor.u32 %v7337_v20, %v7334_v0 }
 0x654   : > { %v9088_v21 = vpop.f32.mrf.mxu3  ;;  %v7351_v15 = vshll.u32 %v7154_v38, 16  ;;  %v7665_v27 = vrot.slane %v7154_v38, 5  ;;  %v7057_v35 = vsel %vm12202_vm4, %v7055_v55, %v7056_v6 }
 0x655   : > { %v9089_v62 = vadd.f32 %v9088_v21, %v14850_v31  ;;  %v7662_v31 = vrot.slane %v15352_v60, 5  ;;  %v7349_v60 = vrot.slane %v7348_v13, 4 }
 0x656   : > { %v9355_v29 = vpop.f32.mrf.mxu2  ;;  %v9180_v45 = vpop.f32.mrf.mxu0 }
 0x657   : > { %v9178_v43 = vadd.f32 %v9177_v44, %v9089_v62  ;;  %v9269_v56 = vpop.f32.mrf.mxu1  ;;  %v6945_v44 = vld [vmem:[#allocation2 + $0x60] sm:$0xe]  ;;  %v7664_v46 = vrot.slane %v7662_v31, 4 }
 0x658   : > { %v10957_v17 = vrot.slane %v6945_v44, 9 }
 0x659   : > { %v9267_v21 = vadd.f32 %v9266_v53, %v9178_v43  ;;  %9406 = vmatmul.bf16.gmra.mxu3 %v8113_v54  ;;  %9495 = vmatmul.bf16.gmra.mxu0 %v11697_v52  ;;  %v7554_v53 = vld [vmem:[#allocation2 + $0x6c] sm:$0xe]  ;;  %v15379_v43 = vld [vmem:[#allocation2 + $0x7c] sm:$0xf]  ;;  %v7666_v0 = vsel %vm12202_vm4, %v7664_v46, %v7665_v27 }
 0x65a   : > { %9584 = vmatmul.bf16.gmra.mxu1 %v8257_v26  ;;  %v7054_v52 = vsel %vm12202_vm4, %v10957_v17, %v7053_v12  ;;  %v10973_v26 = vrot.slane %v7554_v53, 9  ;;  %v7369_v13 = vshrl.u32 %v15379_v43, 16  ;;  %v8298_v55 = vunpack.c.l.b16 %v7666_v0 }
 0x65b   : > { %9673 = vmatmul.bf16.gmra.mxu2 %v8321_v7  ;;  %v15376_v48 = vadd.f32 %v9355_v29, %v9267_v21  ;;  %v7353_v7 = vrot.slane %v7351_v15, 5  ;;  %v7131_v21 = vld [vmem:[#allocation2 + $0x78] sm:$0xf]  ;;  %v8090_v15 = vunpack.c.l.b16 %v7057_v35 }
 0x65c   : > { %v9091_v34 = vpop.f32.mrf.mxu3  ;;  %v7663_v12 = vsel %vm12202_vm4, %v10973_v26, %v7662_v31  ;;  %v7359_v17 = vshll.u32 %v7131_v21, 16  ;;  %v7371_v31 = vrot.slane %v7369_v13, 4  ;;  %v11698_v26 = vld [vmem:[#allocation2 + $0x6c] sm:$0xff] }
 0x65d   : > { %v9092_v22 = vadd.f32 %v9091_v34, %v14861_v41  ;;  %v7339_v41 = vrot.slane %v7338_v25, 4  ;;  %v7354_v38 = vsel %vm12210_vm5, %v7349_v60, %v7353_v7  ;;  %v8089_v25 = vunpack.c.l.b16 %v7054_v52 }
 0x65e   : > { %v9358_v11 = vpop.f32.mrf.mxu2  ;;  %v9182_v62 = vpop.f32.mrf.mxu0  ;;  %v8234_v46 = vunpack.c.l.b16 %v7354_v38  ;;  %v8297_v4 = vunpack.c.l.b16 %v7663_v12 }
 0x65f   : > { %v9181_v54 = vadd.f32 %v9180_v45, %v9092_v22  ;;  %v9271_v29 = vpop.f32.mrf.mxu1  ;;  %v7365_v45 = vshll.u32 %v15379_v43, 16  ;;  %v7344_v34 = vsel %vm12210_vm5, %v7339_v41, %v15372_v63  ;;  %v7356_v22 = vshrl.u32 %v7131_v21, 16  ;;  %v11932_v41 = vld [vmem:[#allocation2 + $0x70] sm:$0xf] }
 0x660   : > { %v8233_v27 = vunpack.c.l.b16 %v7344_v34  ;;  %v8114_v35 = vpack.c.b16 %v8090_v15, %v8089_v25  ;;  %v8322_v63 = vpack.c.b16 %v8298_v55, %v8297_v4  ;;  %v7060_v0 = vrot.slane %v11932_v41, 5  ;;  %v11933_v4 = vld [vmem:[#allocation2 + $0x74] sm:$0x1] }
 0x661   : > { %v9270_v20 = vadd.f32 %v9269_v56, %v9181_v54  ;;  %v15399_v6 = vrot.slane %v7365_v45, 5  ;;  %v7358_v38 = vrot.slane %v7356_v22, 4  ;;  %v7361_v21 = vrot.slane %v7359_v17, 5 }
 0x662   : > { %v8258_v52 = vpack.c.b16 %v8234_v46, %v8233_v27  ;;  %v7062_v34 = vrot.slane %v7060_v0, 4  ;;  %v7063_v27 = vrot.slane %v11933_v4, 5 }
 0x663   : > { %v15393_v44 = vadd.f32 %v9358_v11, %v9270_v20  ;;  %v7155_v20 = vld [vmem:[#allocation2 + $0x80] sm:$0x1]  ;;  %v7372_v45 = vor.u32 %v7371_v31, %v15399_v6  ;;  %v7362_v55 = vor.u32 %v7361_v21, %v7358_v38 }
 0x664   : > { %v9093_v56 = vpop.f32.mrf.mxu3  ;;  %v7375_v12 = vshll.u32 %v7155_v20, 16  ;;  %v7672_v31 = vrot.slane %v7155_v20, 5  ;;  %v7064_v41 = vsel %vm12202_vm4, %v7062_v34, %v7063_v27 }
 0x665   : > { %v9094_v60 = vadd.f32 %v9093_v56, %v14895_v28  ;;  %v7669_v28 = vrot.slane %v15379_v43, 5  ;;  %v7373_v43 = vrot.slane %v7372_v45, 4 }
 0x666   : > { %v9360_v53 = vpop.f32.mrf.mxu2  ;;  %v9185_v11 = vpop.f32.mrf.mxu0 }
 0x667   : > { %v9183_v54 = vadd.f32 %v9182_v62, %v9094_v60  ;;  %v9274_v7 = vpop.f32.mrf.mxu1  ;;  %v6946_v62 = vld [vmem:[#allocation2 + $0x6c] sm:$0xe]  ;;  %v7671_v25 = vrot.slane %v7669_v28, 4 }
 0x668   : > { %v10958_v17 = vrot.slane %v6946_v62, 9 }
 0x669   : > { %v9272_v56 = vadd.f32 %v9271_v29, %v9183_v54  ;;  %9411 = vmatmul.bf16.gmra.mxu3 %v8114_v35  ;;  %9500 = vmatmul.bf16.gmra.mxu0 %v11698_v26  ;;  %v7555_v29 = vld [vmem:[#allocation2 + $0x78] sm:$0xe]  ;;  %v15406_v54 = vld [vmem:[#allocation2 + $0x88] sm:$0xf]  ;;  %v7673_v38 = vsel %vm12202_vm4, %v7671_v25, %v7672_v31 }
 0x66a   : > { %9589 = vmatmul.bf16.gmra.mxu1 %v8258_v52  ;;  %v7061_v26 = vsel %vm12202_vm4, %v10958_v17, %v7060_v0  ;;  %v10974_v52 = vrot.slane %v7555_v29, 9  ;;  %v7393_v45 = vshrl.u32 %v15406_v54, 16  ;;  %v8300_v34 = vunpack.c.l.b16 %v7673_v38 }
 0x66b   : > { %9678 = vmatmul.bf16.gmra.mxu2 %v8322_v63  ;;  %v15403_v13 = vadd.f32 %v9360_v53, %v9272_v56  ;;  %v7377_v63 = vrot.slane %v7375_v12, 5  ;;  %v7133_v56 = vld [vmem:[#allocation2 + $0x84] sm:$0xf]  ;;  %v8092_v12 = vunpack.c.l.b16 %v7064_v41 }
 0x66c   : > { %v9096_v15 = vpop.f32.mrf.mxu3  ;;  %v7670_v0 = vsel %vm12202_vm4, %v10974_v52, %v7669_v28  ;;  %v7383_v17 = vshll.u32 %v7133_v56, 16  ;;  %v7395_v28 = vrot.slane %v7393_v45, 4  ;;  %v11699_v52 = vld [vmem:[#allocation2 + $0x78] sm:$0xff] }
 0x66d   : > { %v9097_v46 = vadd.f32 %v9096_v15, %v14907_v57  ;;  %v7363_v57 = vrot.slane %v7362_v55, 4  ;;  %v7378_v20 = vsel %vm12210_vm5, %v7373_v43, %v7377_v63  ;;  %v8091_v55 = vunpack.c.l.b16 %v7061_v26 }
 0x66e   : > { %v9363_v22 = vpop.f32.mrf.mxu2  ;;  %v9187_v60 = vpop.f32.mrf.mxu0  ;;  %v8236_v25 = vunpack.c.l.b16 %v7378_v20  ;;  %v8299_v4 = vunpack.c.l.b16 %v7670_v0 }
 0x66f   : > { %v9186_v35 = vadd.f32 %v9185_v11, %v9097_v46  ;;  %v9276_v53 = vpop.f32.mrf.mxu1  ;;  %v7389_v11 = vshll.u32 %v15406_v54, 16  ;;  %v7368_v15 = vsel %vm12210_vm5, %v7363_v57, %v15399_v6  ;;  %v7380_v46 = vshrl.u32 %v7133_v56, 16  ;;  %v11934_v57 = vld [vmem:[#allocation2 + $0x7c] sm:$0xf] }
 0x670   : > { %v8235_v31 = vunpack.c.l.b16 %v7368_v15  ;;  %v8115_v41 = vpack.c.b16 %v8092_v12, %v8091_v55  ;;  %v8323_v6 = vpack.c.b16 %v8300_v34, %v8299_v4  ;;  %v7067_v38 = vrot.slane %v11934_v57, 5  ;;  %v11935_v4 = vld [vmem:[#allocation2 + $0x80] sm:$0x1] }
 0x671   : > { %v9275_v21 = vadd.f32 %v9274_v7, %v9186_v35  ;;  %v15426_v27 = vrot.slane %v7389_v11, 5  ;;  %v7382_v20 = vrot.slane %v7380_v46, 4  ;;  %v7385_v56 = vrot.slane %v7383_v17, 5 }
 0x672   : > { %v8259_v26 = vpack.c.b16 %v8236_v25, %v8235_v31  ;;  %v7069_v15 = vrot.slane %v7067_v38, 4  ;;  %v7070_v31 = vrot.slane %v11935_v4, 5 }
 0x673   : > { %v15420_v62 = vadd.f32 %v9363_v22, %v9275_v21  ;;  %v7156_v21 = vld [vmem:[#allocation2 + $0x8c] sm:$0x1]  ;;  %v7396_v11 = vor.u32 %v7395_v28, %v15426_v27  ;;  %v7386_v34 = vor.u32 %v7385_v56, %v7382_v20 }
 0x674   : > { %v9098_v7 = vpop.f32.mrf.mxu3  ;;  %v7399_v0 = vshll.u32 %v7156_v21, 16  ;;  %v7679_v28 = vrot.slane %v7156_v21, 5  ;;  %v7071_v57 = vsel %vm12202_vm4, %v7069_v15, %v7070_v31  ;;  %v15444_v21 = vld [vmem:[%s15793_s5] ss:$0 sm:$0xff] }
 0x675   : > { %16157 = vst [vmem:[#allocation60_spill] sm:$0xff] %v15420_v62  ;;  %v9099_v43 = vadd.f32 %v9098_v7, %v14930_v16  ;;  %v7676_v16 = vrot.slane %v15406_v54, 5  ;;  %v7397_v54 = vrot.slane %v7396_v11, 4 }
 0x676   : > { %v9365_v29 = vpop.f32.mrf.mxu2  ;;  %v9466_v22 = vpop.f32.mrf.mxu0 }
 0x677   : > { %v9188_v35 = vadd.f32 %v9187_v60, %v9099_v43  ;;  %v9555_v63 = vpop.f32.mrf.mxu1  ;;  %v6947_v60 = vld [vmem:[#allocation2 + $0x78] sm:$0xe]  ;;  %v7678_v55 = vrot.slane %v7676_v16, 4 }
 0x678   : > { %v10959_v17 = vrot.slane %v6947_v60, 9 }
 0x679   : > { %v9277_v7 = vadd.f32 %v9276_v53, %v9188_v35  ;;  %9416 = vmatmul.bf16.gmra.mxu3 %v8115_v41  ;;  %9505 = vmatmul.bf16.gmra.mxu0 %v11699_v52  ;;  %v7556_v53 = vld [vmem:[#allocation2 + $0x84] sm:$0xe]  ;;  %v15433_v35 = vld [vmem:[#allocation2 + $0x94] sm:$0xf]  ;;  %v7680_v20 = vsel %vm12202_vm4, %v7678_v55, %v7679_v28 }
 0x67a   : > { %9594 = vmatmul.bf16.gmra.mxu1 %v8259_v26  ;;  %v7068_v52 = vsel %vm12202_vm4, %v10959_v17, %v7067_v38  ;;  %v10975_v26 = vrot.slane %v7556_v53, 9  ;;  %v7135_v38 = vld [vmem:[#allocation2 + $0x90] sm:$0xf]  ;;  %v7417_v11 = vshrl.u32 %v15433_v35, 16  ;;  %v8302_v17 = vunpack.c.l.b16 %v7680_v20 }
 0x67b   : > { %9683 = vmatmul.bf16.gmra.mxu2 %v8323_v6  ;;  %v15430_v45 = vadd.f32 %v9365_v29, %v9277_v7  ;;  %v7401_v6 = vrot.slane %v7399_v0, 5  ;;  %v7413_v7 = vshll.u32 %v15433_v35, 16  ;;  %v8093_v60 = vunpack.c.l.b16 %v7068_v52 }
 0x67c   : > { %v9377_v12 = vpop.f32.mrf.mxu3 }
 0x67d   : > { %16158 = vst [vmem:[#allocation61_spill] sm:$0xff] %v15430_v45  ;;  %v9378_v25 = vadd.f32 %v9377_v12, %v14960_v5  ;;  %v7387_v5 = vrot.slane %v7386_v34, 4  ;;  %v15453_v12 = vld [vmem:[%s15794_s6] ss:$0 sm:$0xff]  ;;  %v7677_v34 = vsel %vm12202_vm4, %v10975_v26, %v7676_v16  ;;  %v15463_v28 = vrot.slane %v7413_v7, 5  ;;  %v16159_v45 = vld [vmem:[#allocation15_spill] sm:$0xff] }
 0x67e   : > { %v9644_v46 = vpop.f32.mrf.mxu2  ;;  %v9468_v43 = vpop.f32.mrf.mxu0 }
 0x67f   : > { %v9467_v41 = vadd.f32 %v9466_v22, %v9378_v25  ;;  %v9557_v29 = vpop.f32.mrf.mxu1  ;;  %v7402_v22 = vsel %vm12210_vm5, %v7397_v54, %v7401_v6  ;;  %v7392_v15 = vsel %vm12210_vm5, %v7387_v5, %v15426_v27  ;;  %v7404_v54 = vshrl.u32 %v7135_v38, 16 }
 0x680   : > { %v8238_v25 = vunpack.c.l.b16 %v7402_v22  ;;  %v8237_v27 = vunpack.c.l.b16 %v7392_v15  ;;  %v8301_v6 = vunpack.c.l.b16 %v7677_v34  ;;  %v11700_v22 = vld [vmem:[#allocation2 + $0x84] sm:$0xff] }
 0x681   : > { %v9556_v56 = vadd.f32 %v9555_v63, %v9467_v41  ;;  %v8094_v63 = vunpack.c.l.b16 %v7071_v57  ;;  %v7419_v41 = vrot.slane %v7417_v11, 4  ;;  %v11936_v57 = vld [vmem:[#allocation2 + $0x88] sm:$0xf]  ;;  %v6948_v15 = vld [vmem:[#allocation2 + $0x84] sm:$0xe] }
 0x682   : > { %v7074_v16 = vrot.slane %v11936_v57, 5  ;;  %v7683_v57 = vrot.slane %v15433_v35, 5 }
 0x683   : > { %v9645_v0 = vadd.f32 %v9644_v46, %v9556_v56  ;;  %v7407_v46 = vshll.u32 %v7135_v38, 16  ;;  %v8116_v56 = vpack.c.b16 %v8094_v63, %v8093_v60  ;;  %v8260_v38 = vpack.c.b16 %v8238_v25, %v8237_v27  ;;  %v7557_v27 = vld [vmem:[#allocation2 + $0x90] sm:$0xe] }
 0x684   : > { %v9379_v55 = vpop.f32.mrf.mxu3  ;;  %v7420_v34 = vor.u32 %v7419_v41, %v15463_v28 }
 0x685   : > { %v9728_v53 = vmul.f32 %v15444_v21, %v9645_v0  ;;  %v9380_v4 = vadd.f32 %v9379_v55, %v14980_v2  ;;  %v8324_v0 = vpack.c.b16 %v8302_v17, %v8301_v6  ;;  %v7157_v2 = vld [vmem:[#allocation2 + $0x98] sm:$0x1]  ;;  %v7406_v55 = vrot.slane %v7404_v54, 4  ;;  %v11937_v54 = vld [vmem:[#allocation2 + $0x8c] sm:$0x1] }
 0x686   : > { %v9646_v31 = vpop.f32.mrf.mxu2  ;;  %v9471_v52 = vpop.f32.mrf.mxu0  ;;  %v7409_v7 = vrot.slane %v7407_v46, 5  ;;  %v7423_v25 = vshll.u32 %v7157_v2, 16  ;;  %v7077_v46 = vrot.slane %v11937_v54, 5  ;;  %v7421_v41 = vrot.slane %v7420_v34, 4 }
 0x687   : > { %v9764_v5 = vadd.f32 %v15453_v12, %v9728_v53  ;;  %v9469_v26 = vadd.f32 %v9468_v43, %v9380_v4  ;;  %v9560_v20 = vpop.f32.mrf.mxu1  ;;  %v7076_v43 = vrot.slane %v7074_v16, 4  ;;  %v10960_v53 = vrot.slane %v6948_v15, 9 }
 0x688   : > { %v7410_v4 = vor.u32 %v7409_v7, %v7406_v55  ;;  %v7685_v6 = vrot.slane %v7683_v57, 4  ;;  %v7686_v55 = vrot.slane %v7157_v2, 5  ;;  %v10976_v7 = vrot.slane %v7557_v27, 9 }
 0x689   : > { %v9796_v11 = vadd.f32 %v9764_v5, %v16159_v45  ;;  %v9558_v62 = vadd.f32 %v9557_v29, %v9469_v26  ;;  %9421 = vmatmul.bf16.gmra.mxu3 %v8116_v56  ;;  %9510 = vmatmul.bf16.gmra.mxu0 %v11700_v22  ;;  %v15476_v5 = vld [vmem:[#allocation2 + $0xa0] sm:$0xf]  ;;  %v7078_v26 = vsel %vm12202_vm4, %v7076_v43, %v7077_v46 }
 0x68a   : > { %9599 = vmatmul.bf16.gmra.mxu1 %v8260_v38  ;;  %v7437_v15 = vshll.u32 %v15476_v5, 16  ;;  %v7441_v34 = vshrl.u32 %v15476_v5, 16 }
 0x68b   : > { %9688 = vmatmul.bf16.gmra.mxu2 %v8324_v0  ;;  %v9828_v60 = vmax.f32 %v9796_v11, 0.0  ;;  %v9647_v63 = vadd.f32 %v9646_v31, %v9558_v62  ;;  %v7075_v31 = vsel %vm12202_vm4, %v10960_v53, %v7074_v16  ;;  %v7425_v0 = vrot.slane %v7423_v25, 5  ;;  %v7137_v11 = vld [vmem:[#allocation2 + $0x9c] sm:$0xf] }
 0x68c   : > { %v9382_v17 = vpop.f32.mrf.mxu3  ;;  %v8095_v43 = vunpack.c.l.b16 %v7075_v31  ;;  %v8096_v25 = vunpack.c.l.b16 %v7078_v26  ;;  %v7684_v53 = vsel %vm12202_vm4, %v10976_v7, %v7683_v57 }
 0x68d   : > { %9860 = vst [vmem:[%s15471_s9] sm:$0xff] %v9828_v60  ;;  %v9729_v45 = vmul.f32 %v15444_v21, %v9647_v63  ;;  %v9383_v29 = vadd.f32 %v9382_v17, %v15001_v1  ;;  %v7411_v1 = vrot.slane %v7410_v4, 4  ;;  %v16160_v60 = vld [vmem:[#allocation19_spill] sm:$0xff]  ;;  %v7426_v16 = vsel %vm12210_vm5, %v7421_v41, %v7425_v0 }
 0x68e   : > { %v9649_v35 = vpop.f32.mrf.mxu2  ;;  %v9473_v62 = vpop.f32.mrf.mxu0  ;;  %v7428_v4 = vshrl.u32 %v7137_v11, 16  ;;  %v15495_v41 = vrot.slane %v7437_v15, 5  ;;  %v8303_v57 = vunpack.c.l.b16 %v7684_v53  ;;  %v7158_v15 = vld [vmem:[#allocation2 + $0xa4] sm:$0x1] }
 0x68f   : > { %v9765_v56 = vadd.f32 %v15453_v12, %v9729_v45  ;;  %v9472_v22 = vadd.f32 %v9471_v52, %v9383_v29  ;;  %v9562_v38 = vpop.f32.mrf.mxu1  ;;  %v7687_v52 = vsel %vm12202_vm4, %v7685_v6, %v7686_v55  ;;  %v7416_v2 = vsel %vm12210_vm5, %v7411_v1, %v15463_v28  ;;  %v11938_v55 = vld [vmem:[#allocation2 + $0x94] sm:$0xf] }
 0x690   : > { %v8240_v29 = vunpack.c.l.b16 %v7426_v16  ;;  %v8304_v27 = vunpack.c.l.b16 %v7687_v52  ;;  %v8239_v0 = vunpack.c.l.b16 %v7416_v2  ;;  %v6949_v2 = vld [vmem:[#allocation2 + $0x90] sm:$0xe]  ;;  %v7447_v53 = vshll.u32 %v7158_v15, 16 }
 0x691   : > { %v9797_v63 = vadd.f32 %v9765_v56, %v16160_v60  ;;  %v9561_v17 = vadd.f32 %v9560_v20, %v9472_v22  ;;  %v7431_v20 = vshll.u32 %v7137_v11, 16  ;;  %v7443_v56 = vrot.slane %v7441_v34, 4  ;;  %v11701_v60 = vld [vmem:[#allocation2 + $0x90] sm:$0xff] }
 0x692   : > { %v8117_v22 = vpack.c.b16 %v8096_v25, %v8095_v43  ;;  %v8325_v16 = vpack.c.b16 %v8304_v27, %v8303_v57  ;;  %v11939_v27 = vld [vmem:[#allocation2 + $0x98] sm:$0x1]  ;;  %v15507_v57 = vld [vmem:[#allocation2 + $0xac] sm:$0xf] }
 0x693   : > { %v9829_v54 = vmax.f32 %v9797_v63, 0.0  ;;  %v9650_v46 = vadd.f32 %v9649_v35, %v9561_v17  ;;  %v7081_v35 = vrot.slane %v11938_v55, 5  ;;  %v7430_v63 = vrot.slane %v7428_v4, 4 }
 0x694   : > { %v9384_v45 = vpop.f32.mrf.mxu3  ;;  %v7433_v34 = vrot.slane %v7431_v20, 5  ;;  %v8261_v17 = vpack.c.b16 %v8240_v29, %v8239_v0  ;;  %v7444_v52 = vor.u32 %v7443_v56, %v15495_v41  ;;  %v10961_v29 = vrot.slane %v6949_v2, 9 }
 0x695   : > { %9861 = vst [vmem:[%s15471_s9 + $0x8] sm:$0xff] %v9829_v54  ;;  %v9730_v6 = vmul.f32 %v15444_v21, %v9650_v46  ;;  %v9385_v31 = vadd.f32 %v9384_v45, %v15011_v50  ;;  %v7690_v50 = vrot.slane %v15476_v5, 5  ;;  %v16161_v54 = vld [vmem:[#allocation22_spill] sm:$0xff]  ;;  %v7084_v56 = vrot.slane %v11939_v27, 5  ;;  %v7558_v5 = vld [vmem:[#allocation2 + $0x9c] sm:$0xe] }
 0x696   : > { %v9651_v26 = vpop.f32.mrf.mxu2  ;;  %v9476_v28 = vpop.f32.mrf.mxu0  ;;  %v7434_v20 = vor.u32 %v7433_v34, %v7430_v63 }
 0x697   : > { %v9766_v1 = vadd.f32 %v15453_v12, %v9730_v6  ;;  %v9474_v7 = vadd.f32 %v9473_v62, %v9385_v31  ;;  %v9565_v11 = vpop.f32.mrf.mxu1  ;;  %v7083_v62 = vrot.slane %v7081_v35, 4  ;;  %v7445_v6 = vrot.slane %v7444_v52, 4 }
 0x698   : > { %v7692_v31 = vrot.slane %v7690_v50, 4  ;;  %v10977_v52 = vrot.slane %v7558_v5, 9 }
 0x699   : > { %v9798_v43 = vadd.f32 %v9766_v1, %v16161_v54  ;;  %v9563_v25 = vadd.f32 %v9562_v38, %v9474_v7  ;;  %9426 = vmatmul.bf16.gmra.mxu3 %v8117_v22  ;;  %9515 = vmatmul.bf16.gmra.mxu0 %v11701_v60  ;;  %v7085_v1 = vsel %vm12202_vm4, %v7083_v62, %v7084_v56  ;;  %v7449_v7 = vrot.slane %v7447_v53, 5  ;;  %v7139_v62 = vld [vmem:[#allocation2 + $0xa8] sm:$0xf] }
 0x69a   : > { %9604 = vmatmul.bf16.gmra.mxu1 %v8261_v17  ;;  %v7693_v60 = vrot.slane %v7158_v15, 5  ;;  %v7455_v5 = vshll.u32 %v7139_v62, 16 }
 0x69b   : > { %9693 = vmatmul.bf16.gmra.mxu2 %v8325_v16  ;;  %v9830_v46 = vmax.f32 %v9798_v43, 0.0  ;;  %v9652_v4 = vadd.f32 %v9651_v26, %v9563_v25  ;;  %v7082_v26 = vsel %vm12202_vm4, %v10961_v29, %v7081_v35  ;;  %v7435_v16 = vrot.slane %v7434_v20, 4  ;;  %v16162_v25 = vld [vmem:[#allocation9_spill] sm:$0xff] }
 0x69c   : > { %v9387_v45 = vpop.f32.mrf.mxu3  ;;  %v7694_v54 = vsel %vm12202_vm4, %v7692_v31, %v7693_v60  ;;  %v7461_v43 = vshll.u32 %v15507_v57, 16  ;;  %v7465_v35 = vshrl.u32 %v15507_v57, 16  ;;  %v8097_v53 = vunpack.c.l.b16 %v7082_v26  ;;  %v11940_v60 = vld [vmem:[#allocation2 + $0xa0] sm:$0xf] }
 0x69d   : > { %9862 = vst [vmem:[%s15471_s9 + $0x10] sm:$0xff] %v9830_v46  ;;  %v9731_v38 = vmul.f32 %v15444_v21, %v9652_v4  ;;  %v9388_v22 = vadd.f32 %v9387_v45, %v15034_v19  ;;  %v7450_v19 = vsel %vm12210_vm5, %v7445_v6, %v7449_v7  ;;  %v7440_v46 = vsel %vm12210_vm5, %v7435_v16, %v15495_v41 }
 0x69e   : > { %v9654_v0 = vpop.f32.mrf.mxu2  ;;  %v9478_v55 = vpop.f32.mrf.mxu0  ;;  %v7691_v4 = vsel %vm12202_vm4, %v10977_v52, %v7690_v50  ;;  %v8242_v29 = vunpack.c.l.b16 %v7450_v19  ;;  %v8306_v27 = vunpack.c.l.b16 %v7694_v54  ;;  %v7452_v6 = vshrl.u32 %v7139_v62, 16  ;;  %v11702_v52 = vld [vmem:[#allocation2 + $0x9c] sm:$0xff] }
 0x69f   : > { %v9767_v63 = vadd.f32 %v15453_v12, %v9731_v38  ;;  %v9477_v34 = vadd.f32 %v9476_v28, %v9388_v22  ;;  %v9567_v17 = vpop.f32.mrf.mxu1  ;;  %v8098_v28 = vunpack.c.l.b16 %v7085_v1  ;;  %v15526_v31 = vrot.slane %v7461_v43, 5  ;;  %v7159_v43 = vld [vmem:[#allocation2 + $0xb0] sm:$0x1] }
 0x6a0   : > { %v8241_v41 = vunpack.c.l.b16 %v7440_v46  ;;  %v8305_v1 = vunpack.c.l.b16 %v7691_v4 }
 0x6a1   : > { %v9799_v2 = vadd.f32 %v9767_v63, %v16162_v25  ;;  %v9566_v15 = vadd.f32 %v9565_v11, %v9477_v34  ;;  %v7467_v11 = vrot.slane %v7465_v35, 4  ;;  %v8118_v50 = vpack.c.b16 %v8098_v28, %v8097_v53 }
 0x6a2   : > { %v8262_v19 = vpack.c.b16 %v8242_v29, %v8241_v41  ;;  %v8326_v54 = vpack.c.b16 %v8306_v27, %v8305_v1  ;;  %v7454_v35 = vrot.slane %v7452_v6, 4  ;;  %v7457_v25 = vrot.slane %v7455_v5, 5 }
 0x6a3   : > { %v9831_v20 = vmax.f32 %v9799_v2, 0.0  ;;  %v9655_v45 = vadd.f32 %v9654_v0, %v9566_v15  ;;  %v7088_v0 = vrot.slane %v11940_v60, 5  ;;  %v7468_v2 = vor.u32 %v7467_v11, %v15526_v31  ;;  %v16163_v15 = vld [vmem:[#allocation36_spill] sm:$0xff]  ;;  %v11941_v11 = vld [vmem:[#allocation2 + $0xa4] sm:$0x1] }
 0x6a4   : > { %v9389_v56 = vpop.f32.mrf.mxu3  ;;  %v7471_v28 = vshll.u32 %v7159_v43, 16  ;;  %v7458_v29 = vor.u32 %v7457_v25, %v7454_v35  ;;  %v15538_v60 = vld [vmem:[#allocation2 + $0xb8] sm:$0xf] }
 0x6a5   : > { %9863 = vst [vmem:[%s15471_s9 + $0x18] sm:$0xff] %v9831_v20  ;;  %v9732_v38 = vmul.f32 %v15444_v21, %v9655_v45  ;;  %v9390_v22 = vadd.f32 %v9389_v56, %v15054_v51  ;;  %v7697_v51 = vrot.slane %v15507_v57, 5  ;;  %v7090_v20 = vrot.slane %v7088_v0, 4  ;;  %v16164_v25 = vld [vmem:[#allocation37_spill] sm:$0xff] }
 0x6a6   : > { %v9656_v26 = vpop.f32.mrf.mxu2  ;;  %v9481_v7 = vpop.f32.mrf.mxu0  ;;  %v7469_v27 = vrot.slane %v7468_v2, 4  ;;  %v7473_v1 = vrot.slane %v7471_v28, 5  ;;  %v15552_v28 = vld [vmem:[#allocation2 + $0xac] sm:$0xf] }
 0x6a7   : > { %v9768_v63 = vadd.f32 %v15453_v12, %v9732_v38  ;;  %v9479_v34 = vadd.f32 %v9478_v55, %v9390_v22  ;;  %v9570_v16 = vpop.f32.mrf.mxu1  ;;  %v6950_v55 = vld [vmem:[#allocation2 + $0x9c] sm:$0xe]  ;;  %v7699_v56 = vrot.slane %v7697_v51, 4  ;;  %v7091_v38 = vrot.slane %v11941_v11, 5  ;;  %v7559_v22 = vld [vmem:[#allocation2 + $0xa8] sm:$0xe] }
 0x6a8   : > { %v10978_v35 = vrot.slane %v7559_v22, 9 }
 0x6a9   : > { %v9800_v62 = vadd.f32 %v9768_v63, %v16163_v15  ;;  %v9568_v53 = vadd.f32 %v9567_v17, %v9479_v34  ;;  %9431 = vmatmul.bf16.gmra.mxu3 %v8118_v50  ;;  %9520 = vmatmul.bf16.gmra.mxu0 %v11702_v52  ;;  %v10962_v17 = vrot.slane %v6950_v55, 9  ;;  %v7700_v50 = vrot.slane %v7159_v43, 5 }
 0x6aa   : > { %9609 = vmatmul.bf16.gmra.mxu1 %v8262_v19  ;;  %v7459_v19 = vrot.slane %v7458_v29, 4 }
 0x6ab   : > { %9698 = vmatmul.bf16.gmra.mxu2 %v8326_v54  ;;  %v9832_v46 = vmax.f32 %v9800_v62, 0.0  ;;  %v9657_v4 = vadd.f32 %v9656_v26, %v9568_v53  ;;  %v7089_v52 = vsel %vm12202_vm4, %v10962_v17, %v7088_v0  ;;  %v7474_v54 = vsel %vm12210_vm5, %v7469_v27, %v7473_v1  ;;  %v7141_v62 = vld [vmem:[#allocation2 + $0xb4] sm:$0xf] }
 0x6ac   : > { %v9392_v45 = vpop.f32.mrf.mxu3  ;;  %v7701_v43 = vsel %vm12202_vm4, %v7699_v56, %v7700_v50  ;;  %v7489_v0 = vshrl.u32 %v15538_v60, 16  ;;  %v8099_v53 = vunpack.c.l.b16 %v7089_v52  ;;  %v8244_v27 = vunpack.c.l.b16 %v7474_v54  ;;  %v7160_v54 = vld [vmem:[#allocation2 + $0xbc] sm:$0x1] }
 0x6ad   : > { %9864 = vst [vmem:[%s15471_s9 + $0x20] sm:$0xff] %v9832_v46  ;;  %v9733_v57 = vmul.f32 %v15444_v21, %v9657_v4  ;;  %v9393_v6 = vadd.f32 %v9392_v45, %v15072_v24  ;;  %v7092_v24 = vsel %vm12202_vm4, %v7090_v20, %v7091_v38  ;;  %v7095_v46 = vrot.slane %v15552_v28, 5 }
 0x6ae   : > { %v9659_v5 = vpop.f32.mrf.mxu2  ;;  %v9483_v41 = vpop.f32.mrf.mxu0  ;;  %v8100_v55 = vunpack.c.l.b16 %v7092_v24  ;;  %v7464_v45 = vsel %vm12210_vm5, %v7459_v19, %v15526_v31  ;;  %v8308_v56 = vunpack.c.l.b16 %v7701_v43  ;;  %v11703_v24 = vld [vmem:[#allocation2 + $0xa8] sm:$0xff] }
 0x6af   : > { %v9769_v26 = vadd.f32 %v15453_v12, %v9733_v57  ;;  %v9482_v63 = vadd.f32 %v9481_v7, %v9393_v6  ;;  %v9572_v34 = vpop.f32.mrf.mxu1  ;;  %v7485_v7 = vshll.u32 %v15538_v60, 16  ;;  %v7476_v57 = vshrl.u32 %v7141_v62, 16 }
 0x6b0   : > { %v7479_v6 = vshll.u32 %v7141_v62, 16  ;;  %v8243_v50 = vunpack.c.l.b16 %v7464_v45  ;;  %v8119_v52 = vpack.c.b16 %v8100_v55, %v8099_v53  ;;  %v7097_v19 = vrot.slane %v7095_v46, 4  ;;  %v6951_v45 = vld [vmem:[#allocation2 + $0xa8] sm:$0xe] }
 0x6b1   : > { %v9801_v2 = vadd.f32 %v9769_v26, %v16164_v25  ;;  %v9571_v15 = vadd.f32 %v9570_v16, %v9482_v63  ;;  %v7698_v16 = vsel %vm12202_vm4, %v10978_v35, %v7697_v51  ;;  %v15563_v22 = vrot.slane %v7485_v7, 5 }
 0x6b2   : > { %v8307_v31 = vunpack.c.l.b16 %v7698_v16  ;;  %v8263_v35 = vpack.c.b16 %v8244_v27, %v8243_v50  ;;  %v7481_v25 = vrot.slane %v7479_v6, 5  ;;  %v7495_v55 = vshll.u32 %v7160_v54, 16  ;;  %v15573_v27 = vld [vmem:[#allocation2 + $0xc4] sm:$0xf] }
 0x6b3   : > { %v9833_v4 = vmax.f32 %v9801_v2, 0.0  ;;  %v9660_v20 = vadd.f32 %v9659_v5, %v9571_v15  ;;  %v7491_v5 = vrot.slane %v7489_v0, 4  ;;  %v16165_v2 = vld [vmem:[#allocation10_spill] sm:$0xff]  ;;  %v11943_v0 = vld [vmem:[#allocation2 + $0xb0] sm:$0x1]  ;;  %v10963_v50 = vrot.slane %v6951_v45, 9 }
 0x6b4   : > { %v9394_v29 = vpop.f32.mrf.mxu3  ;;  %v8327_v43 = vpack.c.b16 %v8308_v56, %v8307_v31  ;;  %v7098_v53 = vrot.slane %v11943_v0, 5  ;;  %v7707_v31 = vrot.slane %v7160_v54, 5 }
 0x6b5   : > { %9865 = vst [vmem:[%s15471_s9 + $0x28] sm:$0xff] %v9833_v4  ;;  %v9734_v17 = vmul.f32 %v15444_v21, %v9660_v20  ;;  %v9395_v11 = vadd.f32 %v9394_v29, %v15085_v40  ;;  %v7478_v40 = vrot.slane %v7476_v57, 4  ;;  %v7492_v7 = vor.u32 %v7491_v5, %v15563_v22 }
 0x6b6   : > { %v9661_v38 = vpop.f32.mrf.mxu2  ;;  %v9486_v1 = vpop.f32.mrf.mxu0  ;;  %v7099_v29 = vsel %vm12202_vm4, %v7097_v19, %v7098_v53  ;;  %v7509_v19 = vshll.u32 %v15573_v27, 16 }
 0x6b7   : > { %v9770_v26 = vadd.f32 %v15453_v12, %v9734_v17  ;;  %v9484_v51 = vadd.f32 %v9483_v41, %v9395_v11  ;;  %v9575_v63 = vpop.f32.mrf.mxu1  ;;  %v7704_v41 = vrot.slane %v15538_v60, 5  ;;  %v7493_v6 = vrot.slane %v7492_v7, 4  ;;  %v7560_v17 = vld [vmem:[#allocation2 + $0xb4] sm:$0xe] }
 0x6b9   : > { %v9802_v15 = vadd.f32 %v9770_v26, %v16165_v2  ;;  %v9573_v62 = vadd.f32 %v9572_v34, %v9484_v51  ;;  %9436 = vmatmul.bf16.gmra.mxu3 %v8119_v52  ;;  %9525 = vmatmul.bf16.gmra.mxu0 %v11703_v24  ;;  %v7482_v34 = vor.u32 %v7481_v25, %v7478_v40  ;;  %v7706_v11 = vrot.slane %v7704_v41, 4  ;;  %v7143_v24 = vld [vmem:[#allocation2 + $0xc0] sm:$0xf] }
 0x6ba   : > { %9614 = vmatmul.bf16.gmra.mxu1 %v8263_v35  ;;  %v7513_v35 = vshrl.u32 %v15573_v27, 16  ;;  %v10979_v25 = vrot.slane %v7560_v17, 9  ;;  %v16166_v2 = vld [vmem:[#allocation38_spill] sm:$0xff]  ;;  %v7500_v7 = vshrl.u32 %v7143_v24, 16  ;;  %v7503_v0 = vshll.u32 %v7143_v24, 16 }
 0x6bb   : > { %9703 = vmatmul.bf16.gmra.mxu2 %v8327_v43  ;;  %v9834_v4 = vmax.f32 %v9802_v15, 0.0  ;;  %v9662_v20 = vadd.f32 %v9661_v38, %v9573_v62  ;;  %v7497_v38 = vrot.slane %v7495_v55, 5  ;;  %v8102_v43 = vunpack.c.l.b16 %v7099_v29 }
 0x6bc   : > { %v9397_v16 = vpop.f32.mrf.mxu3  ;;  %v7483_v40 = vrot.slane %v7482_v34, 4  ;;  %v7708_v62 = vsel %vm12202_vm4, %v7706_v11, %v7707_v31 }
 0x6bd   : > { %9866 = vst [vmem:[%s15471_s9 + $0x30] sm:$0xff] %v9834_v4  ;;  %v9735_v56 = vmul.f32 %v15444_v21, %v9662_v20  ;;  %v9398_v60 = vadd.f32 %v9397_v16, %v15108_v59  ;;  %v7096_v59 = vsel %vm12202_vm4, %v10963_v50, %v7095_v46  ;;  %v7705_v46 = vsel %vm12202_vm4, %v10979_v25, %v7704_v41  ;;  %v7161_v50 = vld [vmem:[#allocation2 + $0xc8] sm:$0x1] }
 0x6be   : > { %v9664_v57 = vpop.f32.mrf.mxu2  ;;  %v9488_v5 = vpop.f32.mrf.mxu0  ;;  %v7488_v28 = vsel %vm12210_vm5, %v7483_v40, %v15563_v22  ;;  %v15595_v4 = vrot.slane %v7509_v19, 5  ;;  %v8310_v16 = vunpack.c.l.b16 %v7708_v62  ;;  %v8101_v22 = vunpack.c.l.b16 %v7096_v59  ;;  %v11704_v19 = vld [vmem:[#allocation2 + $0xb4] sm:$0xff]  ;;  %v16167_v25 = vld [vmem:[#allocation39_spill] sm:$0xff] }
 0x6bf   : > { %v9771_v26 = vadd.f32 %v15453_v12, %v9735_v56  ;;  %v9487_v51 = vadd.f32 %v9486_v1, %v9398_v60  ;;  %v9577_v52 = vpop.f32.mrf.mxu1  ;;  %v7498_v1 = vsel %vm12210_vm5, %v7493_v6, %v7497_v38  ;;  %v11944_v60 = vld [vmem:[#allocation2 + $0xb8] sm:$0xf]  ;;  %v8245_v17 = vunpack.c.l.b16 %v7488_v28  ;;  %v6952_v28 = vld [vmem:[#allocation2 + $0xb4] sm:$0xe] }
 0x6c0   : > { %v8246_v45 = vunpack.c.l.b16 %v7498_v1  ;;  %v7102_v6 = vrot.slane %v11944_v60, 5  ;;  %v8309_v11 = vunpack.c.l.b16 %v7705_v46  ;;  %v7505_v38 = vrot.slane %v7503_v0, 5  ;;  %v11945_v0 = vld [vmem:[#allocation2 + $0xbc] sm:$0x1] }
 0x6c1   : > { %v9803_v54 = vadd.f32 %v9771_v26, %v16166_v2  ;;  %v9576_v15 = vadd.f32 %v9575_v63, %v9487_v51  ;;  %v7515_v63 = vrot.slane %v7513_v35, 4  ;;  %v8120_v24 = vpack.c.b16 %v8102_v43, %v8101_v22 }
 0x6c2   : > { %v8264_v40 = vpack.c.b16 %v8246_v45, %v8245_v17  ;;  %v7104_v1 = vrot.slane %v7102_v6, 4 }
 0x6c3   : > { %v9835_v53 = vmax.f32 %v9803_v54, 0.0  ;;  %v9665_v55 = vadd.f32 %v9664_v57, %v9576_v15  ;;  %v7502_v57 = vrot.slane %v7500_v7, 4  ;;  %v7516_v35 = vor.u32 %v7515_v63, %v15595_v4 }
 0x6c4   : > { %v9399_v20 = vpop.f32.mrf.mxu3  ;;  %v7519_v54 = vshll.u32 %v7161_v50, 16  ;;  %v7711_v15 = vrot.slane %v15573_v27, 5 }
 0x6c5   : > { %9867 = vst [vmem:[%s15471_s9 + $0x38] sm:$0xff] %v9835_v53  ;;  %v9736_v29 = vmul.f32 %v15444_v21, %v9665_v55  ;;  %v9400_v34 = vadd.f32 %v9399_v20, %v15128_v47  ;;  %v8328_v47 = vpack.c.b16 %v8310_v16, %v8309_v11  ;;  %v7517_v46 = vrot.slane %v7516_v35, 4  ;;  %v16168_v55 = vld [vmem:[#allocation94_spill] sm:$0xff] }
 0x6c6   : > { %v9666_v56 = vpop.f32.mrf.mxu2  ;;  %v9491_v41 = vpop.f32.mrf.mxu0  ;;  %v7105_v53 = vrot.slane %v11945_v0, 5  ;;  %v7521_v45 = vrot.slane %v7519_v54, 5  ;;  %v7561_v16 = vld [vmem:[#allocation2 + $0xc0] sm:$0xe]  ;;  %v7713_v27 = vrot.slane %v7711_v15, 4 }
 0x6c7   : > { %v9772_v31 = vadd.f32 %v15453_v12, %v9736_v29  ;;  %v9489_v26 = vadd.f32 %v9488_v5, %v9400_v34  ;;  %v9580_v51 = vpop.f32.mrf.mxu1  ;;  %v7506_v5 = vor.u32 %v7505_v38, %v7502_v57  ;;  %v10964_v34 = vrot.slane %v6952_v28, 9 }
 0x6c8   : > { %v7106_v22 = vsel %vm12202_vm4, %v7104_v1, %v7105_v53  ;;  %v7522_v57 = vsel %vm12210_vm5, %v7517_v46, %v7521_v45  ;;  %v7714_v38 = vrot.slane %v7161_v50, 5 }
 0x6c9   : > { %v9804_v59 = vadd.f32 %v9772_v31, %v16167_v25  ;;  %v9578_v2 = vadd.f32 %v9577_v52, %v9489_v26  ;;  %9441 = vmatmul.bf16.gmra.mxu3 %v8120_v24  ;;  %9530 = vmatmul.bf16.gmra.mxu0 %v11704_v19  ;;  %v7103_v31 = vsel %vm12202_vm4, %v10964_v34, %v7102_v6  ;;  %v10980_v26 = vrot.slane %v7561_v16, 9  ;;  %v16169_v24 = vld [vmem:[#allocation11_spill] sm:$0xff]  ;;  %v7162_v16 = vld [vmem:[#allocation2 + $0xd4] sm:$0x1] }
 0x6ca   : > { %9619 = vmatmul.bf16.gmra.mxu1 %v8264_v40  ;;  %v8248_v25 = vunpack.c.l.b16 %v7522_v57  ;;  %v8103_v6 = vunpack.c.l.b16 %v7103_v31  ;;  %v16170_v57 = vld [vmem:[#allocation41_spill] sm:$0xff] }
 0x6cb   : > { %9708 = vmatmul.bf16.gmra.mxu2 %v8328_v47  ;;  %v9836_v62 = vmax.f32 %v9804_v59, 0.0  ;;  %v9667_v43 = vadd.f32 %v9666_v56, %v9578_v2  ;;  %v7507_v56 = vrot.slane %v7506_v5, 4  ;;  %v8104_v47 = vunpack.c.l.b16 %v7106_v22 }
 0x6cc   : > { %v9402_v7 = vpop.f32.mrf.mxu3  ;;  %v7712_v50 = vsel %vm12202_vm4, %v10980_v26, %v7711_v15 }
 0x6cd   : > { %9868 = vst [vmem:[%s15471_s9 + $0x40] sm:$0xff] %v9836_v62  ;;  %v9737_v52 = vmul.f32 %v15444_v21, %v9667_v43  ;;  %v9403_v63 = vadd.f32 %v9402_v7, %v16168_v55  ;;  %v7512_v40 = vsel %vm12210_vm5, %v7507_v56, %v15595_v4  ;;  %v7146_v43 = vld [vmem:[#allocation2 + $0xd0] sm:$0xf]  ;;  %v8121_v46 = vpack.c.b16 %v8104_v47, %v8103_v6  ;;  %v11705_v7 = vld [vmem:[#allocation2 + $0xc0] sm:$0xff] }
 0x6ce   : > { %v9669_v20 = vpop.f32.mrf.mxu2  ;;  %v9493_v29 = vpop.f32.mrf.mxu0  ;;  %v8247_v1 = vunpack.c.l.b16 %v7512_v40  ;;  %v8311_v53 = vunpack.c.l.b16 %v7712_v50  ;;  %v7718_v34 = vrot.slane %v7146_v43, 5  ;;  %v7543_v6 = vshll.u32 %v7162_v16, 16 }
 0x6cf   : > { %v9773_v60 = vadd.f32 %v15453_v12, %v9737_v52  ;;  %v9492_v17 = vadd.f32 %v9491_v41, %v9403_v63  ;;  %v9582_v11 = vpop.f32.mrf.mxu1  ;;  %v7715_v41 = vsel %vm12202_vm4, %v7713_v27, %v7714_v38  ;;  %v11946_v52 = vld [vmem:[#allocation2 + $0xc4] sm:$0xf]  ;;  %v7145_v63 = vld [vmem:[#allocation2 + $0xcc] sm:$0xf] }
 0x6d0   : > { %v8312_v5 = vunpack.c.l.b16 %v7715_v41  ;;  %v8265_v0 = vpack.c.b16 %v8248_v25, %v8247_v1  ;;  %v7109_v55 = vrot.slane %v11946_v52, 5  ;;  %v7562_v27 = vld [vmem:[#allocation2 + $0xcc] sm:$0xe]  ;;  %v7524_v22 = vshrl.u32 %v7145_v63, 16 }
 0x6d1   : > { %v9805_v19 = vadd.f32 %v9773_v60, %v16169_v24  ;;  %v9581_v35 = vadd.f32 %v9580_v51, %v9492_v17  ;;  %v7533_v60 = vshll.u32 %v7146_v43, 16  ;;  %v7537_v17 = vshrl.u32 %v7146_v43, 16  ;;  %v6953_v24 = vld [vmem:[#allocation2 + $0xc0] sm:$0xe] }
 0x6d2   : > { %v8329_v56 = vpack.c.b16 %v8312_v5, %v8311_v53  ;;  %v7526_v26 = vrot.slane %v7524_v22, 4  ;;  %v7720_v25 = vrot.slane %v7718_v34, 4  ;;  %v7111_v50 = vrot.slane %v7109_v55, 4  ;;  %v16171_v22 = vld [vmem:[#allocation42_spill] sm:$0xff] }
 0x6d3   : > { %v9837_v59 = vmax.f32 %v9805_v19, 0.0  ;;  %v9670_v2 = vadd.f32 %v9669_v20, %v9581_v35  ;;  %v7721_v19 = vrot.slane %v7162_v16, 5  ;;  %v7535_v40 = vrot.slane %v7533_v60, 5 }
 0x6d4   : > { %v9404_v54 = vpop.f32.mrf.mxu3  ;;  %v7545_v53 = vrot.slane %v7543_v6, 5 }
 0x6d5   : > { %9869 = vst [vmem:[%s15471_s9 + $0x48] sm:$0xff] %v9837_v59  ;;  %v9738_v51 = vmul.f32 %v15444_v21, %v9670_v2  ;;  %v9405_v62 = vadd.f32 %v9404_v54, %v15159_v58  ;;  %v7527_v58 = vshll.u32 %v7145_v63, 16  ;;  %v7539_v59 = vrot.slane %v7537_v17, 4 }
 0x6d6   : > { %v9671_v4 = vpop.f32.mrf.mxu2  ;;  %v9496_v28 = vpop.f32.mrf.mxu0 }
 0x6d7   : > { %v9774_v15 = vadd.f32 %v15453_v12, %v9738_v51  ;;  %v9494_v20 = vadd.f32 %v9493_v29, %v9405_v62  ;;  %v9585_v45 = vpop.f32.mrf.mxu1  ;;  %v10981_v29 = vrot.slane %v7562_v27, 9  ;;  %v7529_v35 = vrot.slane %v7527_v58, 5 }
 0x6d8   : > { %v10965_v51 = vrot.slane %v6953_v24, 9  ;;  %v7540_v62 = vor.u32 %v7539_v59, %v7535_v40 }
 0x6d9   : > { %v9806_v38 = vadd.f32 %v9774_v15, %v16170_v57  ;;  %v9583_v31 = vadd.f32 %v9582_v11, %v9494_v20  ;;  %9446 = vmatmul.bf16.gmra.mxu3 %v8121_v46  ;;  %9535 = vmatmul.bf16.gmra.mxu0 %v11705_v7  ;;  %v7530_v54 = vor.u32 %v7529_v35, %v7526_v26  ;;  %v11947_v46 = vld [vmem:[#allocation2 + $0xc8] sm:$0x1] }
 0x6da   : > { %9624 = vmatmul.bf16.gmra.mxu1 %v8265_v0  ;;  %v7112_v7 = vrot.slane %v11947_v46, 5  ;;  %v7722_v20 = vsel %vm12202_vm4, %v7720_v25, %v7721_v19  ;;  %v7110_v58 = vsel %vm12202_vm4, %v10965_v51, %v7109_v55 }
 0x6db   : > { %9713 = vmatmul.bf16.gmra.mxu2 %v8329_v56  ;;  %v9838_v41 = vmax.f32 %v9806_v38, 0.0  ;;  %v9672_v47 = vadd.f32 %v9671_v4, %v9583_v31  ;;  %v7719_v4 = vsel %vm12202_vm4, %v10981_v29, %v7718_v34  ;;  %v7531_v0 = vrot.slane %v7530_v54, 4 }
 0x6dc   : > { %v9407_v2 = vpop.f32.mrf.mxu3  ;;  %v7113_v16 = vsel %vm12202_vm4, %v7111_v50, %v7112_v7  ;;  %v8313_v60 = vunpack.c.l.b16 %v7719_v4  ;;  %v8314_v17 = vunpack.c.l.b16 %v7722_v20  ;;  %v16172_v50 = vld [vmem:[#allocation14_spill] sm:$0xff] }
 0x6dd   : > { %9870 = vst [vmem:[%s15471_s9 + $0x50] sm:$0xff] %v9838_v41  ;;  %v9739_v11 = vmul.f32 %v15444_v21, %v9672_v47  ;;  %v9408_v1 = vadd.f32 %v9407_v2, %v15177_v61  ;;  %v7541_v61 = vrot.slane %v7540_v62, 4  ;;  %v7536_v27 = vsel %vm12210_vm5, %v7531_v0, %v7535_v40  ;;  %v16173_v0 = vld [vmem:[#allocation45_spill] sm:$0xff] }
 0x6de   : > { %v9674_v5 = vpop.f32.mrf.mxu2  ;;  %v9498_v43 = vpop.f32.mrf.mxu0  ;;  %v8249_v57 = vunpack.c.l.b16 %v7536_v27  ;;  %v8106_v24 = vunpack.c.l.b16 %v7113_v16  ;;  %v8105_v40 = vunpack.c.l.b16 %v7110_v58  ;;  %v8330_v23 = vpack.c.b16 %v8314_v17, %v8313_v60  ;;  %v16174_v58 = vld [vmem:[#allocation16_spill] sm:$0xff] }
 0x6df   : > { %v9775_v52 = vadd.f32 %v15453_v12, %v9739_v11  ;;  %v9497_v63 = vadd.f32 %v9496_v28, %v9408_v1  ;;  %v9587_v15 = vpop.f32.mrf.mxu1  ;;  %v7546_v28 = vsel %vm12210_vm5, %v7541_v61, %v7545_v53 }
 0x6e0   : > { %v8250_v38 = vunpack.c.l.b16 %v7546_v28  ;;  %v8122_v2 = vpack.c.b16 %v8106_v24, %v8105_v40 }
 0x6e1   : > { %v9807_v56 = vadd.f32 %v9775_v52, %v16171_v22  ;;  %v9586_v34 = vadd.f32 %v9585_v45, %v9497_v63 }
 0x6e2   : > { %v8266_v41 = vpack.c.b16 %v8250_v38, %v8249_v57 }
 0x6e3   : > { %v9839_v31 = vmax.f32 %v9807_v56, 0.0  ;;  %v9675_v26 = vadd.f32 %v9674_v5, %v9586_v34 }
 0x6e4   : > { %v9409_v29 = vpop.f32.mrf.mxu3 }
 0x6e5   : > { %9871 = vst [vmem:[%s15471_s9 + $0x58] sm:$0xff] %v9839_v31  ;;  %v9740_v19 = vmul.f32 %v15444_v21, %v9675_v26  ;;  %v9410_v35 = vadd.f32 %v9409_v29, %v15187_v36 }
 0x6e6   : > { %v9676_v45 = vpop.f32.mrf.mxu2  ;;  %v9501_v55 = vpop.f32.mrf.mxu0 }
 0x6e7   : > { %v9776_v47 = vadd.f32 %v15453_v12, %v9740_v19  ;;  %v9499_v25 = vadd.f32 %v9498_v43, %v9410_v35  ;;  %v9590_v59 = vpop.f32.mrf.mxu1 }
 0x6e9   : > { %v9808_v54 = vadd.f32 %v9776_v47, %v16172_v50  ;;  %v9588_v6 = vadd.f32 %v9587_v15, %v9499_v25  ;;  %9451 = vmatmul.bf16.gmra.mxu3 %v8122_v2  ;;  %9540 = vmatmul.bf16.gmra.mxu0 %v11706_v14 }
 0x6ea   : > { %9629 = vmatmul.bf16.gmra.mxu1 %v8266_v41 }
 0x6eb   : > { %9718 = vmatmul.bf16.gmra.mxu2 %v8330_v23  ;;  %v9840_v36 = vmax.f32 %v9808_v54, 0.0  ;;  %v9677_v11 = vadd.f32 %v9676_v45, %v9588_v6  ;;  %v16175_v45 = vld [vmem:[#allocation17_spill] sm:$0xff]  ;;  %v16176_v6 = vld [vmem:[#allocation47_spill] sm:$0xff] }
 0x6ec   : > { %v9412_v1 = vpop.f32.mrf.mxu3 }
 0x6ed   : > { %9872 = vst [vmem:[%s15471_s9 + $0x60] sm:$0xff] %v9840_v36  ;;  %v9741_v5 = vmul.f32 %v15444_v21, %v9677_v11  ;;  %v9413_v51 = vadd.f32 %v9412_v1, %v15204_v39 }
 0x6ee   : > { %v9679_v62 = vpop.f32.mrf.mxu2  ;;  %v9503_v43 = vpop.f32.mrf.mxu0 }
 0x6ef   : > { %v9777_v46 = vadd.f32 %v15453_v12, %v9741_v5  ;;  %v9502_v7 = vadd.f32 %v9501_v55, %v9413_v51  ;;  %v9592_v4 = vpop.f32.mrf.mxu1 }
 0x6f1   : > { %v9809_v53 = vadd.f32 %v9777_v46, %v16173_v0  ;;  %v9591_v52 = vadd.f32 %v9590_v59, %v9502_v7 }
 0x6f3   : > { %v9841_v63 = vmax.f32 %v9809_v53, 0.0  ;;  %v9680_v15 = vadd.f32 %v9679_v62, %v9591_v52  ;;  %v16177_v53 = vld [vmem:[#allocation48_spill] sm:$0xff] }
 0x6f4   : > { %v9414_v20 = vpop.f32.mrf.mxu3 }
 0x6f5   : > { %9873 = vst [vmem:[%s15471_s9 + $0x68] sm:$0xff] %v9841_v63  ;;  %v9742_v61 = vmul.f32 %v15444_v21, %v9680_v15  ;;  %v9415_v16 = vadd.f32 %v9414_v20, %v15214_v8 }
 0x6f6   : > { %v9681_v27 = vpop.f32.mrf.mxu2  ;;  %v9506_v39 = vpop.f32.mrf.mxu0 }
 0x6f7   : > { %v9778_v22 = vadd.f32 %v15453_v12, %v9742_v61  ;;  %v9504_v56 = vadd.f32 %v9503_v43, %v9415_v16  ;;  %v9595_v34 = vpop.f32.mrf.mxu1 }
 0x6f9   : > { %v9810_v28 = vadd.f32 %v9778_v22, %v16174_v58  ;;  %v9593_v60 = vadd.f32 %v9592_v4, %v9504_v56  ;;  %v16178_v58 = vld [vmem:[#allocation18_spill] sm:$0xff] }
 0x6fb   : > { %v9842_v17 = vmax.f32 %v9810_v28, 0.0  ;;  %v9682_v57 = vadd.f32 %v9681_v27, %v9593_v60 }
 0x6fc   : > { %v9417_v38 = vpop.f32.mrf.mxu3 }
 0x6fd   : > { %9874 = vst [vmem:[%s15471_s9 + $0x70] sm:$0xff] %v9842_v17  ;;  %v9743_v31 = vmul.f32 %v15444_v21, %v9682_v57  ;;  %v9418_v26 = vadd.f32 %v9417_v38, %v15231_v9  ;;  %v15668_v21 = vld [vmem:[%s15793_s5] ss:$0 sm:$0xff] }
 0x6fe   : > { %v9684_v24 = vpop.f32.mrf.mxu2  ;;  %v9508_v8 = vpop.f32.mrf.mxu0 }
 0x6ff   : > { %v9779_v29 = vadd.f32 %v15453_v12, %v9743_v31  ;;  %v9507_v19 = vadd.f32 %v9506_v39, %v9418_v26  ;;  %v9597_v35 = vpop.f32.mrf.mxu1 }
 0x701   : > { %v9811_v40 = vadd.f32 %v9779_v29, %v16175_v45  ;;  %v9596_v14 = vadd.f32 %v9595_v34, %v9507_v19 }
 0x703   : > { %v9843_v55 = vmax.f32 %v9811_v40, 0.0  ;;  %v9685_v23 = vadd.f32 %v9684_v24, %v9596_v14 }
 0x704   : > { %v9419_v41 = vpop.f32.mrf.mxu3 }
 0x705   : > { %9875 = vst [vmem:[%s15471_s9 + $0x78] sm:$0xff] %v9843_v55  ;;  %v9744_v9 = vmul.f32 %v15668_v21, %v9685_v23  ;;  %v9420_v47 = vadd.f32 %v9419_v41, %v15241_v10 }
 0x706   : > { %v9686_v25 = vpop.f32.mrf.mxu2  ;;  %v9511_v59 = vpop.f32.mrf.mxu0 }
 0x707   : > { %v9780_v2 = vadd.f32 %v15453_v12, %v9744_v9  ;;  %v9509_v50 = vadd.f32 %v9508_v8, %v9420_v47  ;;  %v9600_v54 = vpop.f32.mrf.mxu1  ;;  %v15680_v12 = vld [vmem:[%s15794_s6] ss:$0 sm:$0xff] }
 0x709   : > { %v9812_v36 = vadd.f32 %v9780_v2, %v16176_v6  ;;  %v9598_v11 = vadd.f32 %v9597_v35, %v9509_v50  ;;  %v16179_v35 = vld [vmem:[#allocation20_spill] sm:$0xff]  ;;  %v16180_v50 = vld [vmem:[#allocation49_spill] sm:$0xff] }
 0x70b   : > { %v9844_v1 = vmax.f32 %v9812_v36, 0.0  ;;  %v9687_v5 = vadd.f32 %v9686_v25, %v9598_v11 }
 0x70c   : > { %v9422_v51 = vpop.f32.mrf.mxu3 }
 0x70d   : > { %9876 = vst [vmem:[%s15471_s9 + $0x80] sm:$0xff] %v9844_v1  ;;  %v9745_v62 = vmul.f32 %v15668_v21, %v9687_v5  ;;  %v9423_v43 = vadd.f32 %v9422_v51, %v15258_v42  ;;  %v16181_v51 = vld [vmem:[#allocation29_spill] sm:$0xff] }
 0x70e   : > { %v9689_v46 = vpop.f32.mrf.mxu2  ;;  %v9513_v10 = vpop.f32.mrf.mxu0 }
 0x70f   : > { %v9781_v7 = vadd.f32 %v15680_v12, %v9745_v62  ;;  %v9512_v4 = vadd.f32 %v9511_v59, %v9423_v43  ;;  %v9602_v0 = vpop.f32.mrf.mxu1 }
 0x711   : > { %v9813_v52 = vadd.f32 %v9781_v7, %v16177_v53  ;;  %v9601_v63 = vadd.f32 %v9600_v54, %v9512_v4  ;;  %v16182_v4 = vld [vmem:[#allocation51_spill] sm:$0xff] }
 0x713   : > { %v9845_v15 = vmax.f32 %v9813_v52, 0.0  ;;  %v9690_v20 = vadd.f32 %v9689_v46, %v9601_v63 }
 0x714   : > { %v9424_v61 = vpop.f32.mrf.mxu3 }
 0x715   : > { %9877 = vst [vmem:[%s15471_s9 + $0x88] sm:$0xff] %v9845_v15  ;;  %v9746_v42 = vmul.f32 %v15668_v21, %v9690_v20  ;;  %v9425_v16 = vadd.f32 %v9424_v61, %v15268_v49 }
 0x716   : > { %v9691_v27 = vpop.f32.mrf.mxu2  ;;  %v9516_v39 = vpop.f32.mrf.mxu0 }
 0x717   : > { %v9782_v22 = vadd.f32 %v15680_v12, %v9746_v42  ;;  %v9514_v56 = vadd.f32 %v9513_v10, %v9425_v16  ;;  %v9605_v34 = vpop.f32.mrf.mxu1 }
 0x719   : > { %v9814_v28 = vadd.f32 %v9782_v22, %v16178_v58  ;;  %v9603_v60 = vadd.f32 %v9602_v0, %v9514_v56  ;;  %v16183_v56 = vld [vmem:[#allocation52_spill] sm:$0xff] }
 0x71b   : > { %v9846_v17 = vmax.f32 %v9814_v28, 0.0  ;;  %v9692_v57 = vadd.f32 %v9691_v27, %v9603_v60 }
 0x71c   : > { %v9427_v38 = vpop.f32.mrf.mxu3 }
 0x71d   : > { %9878 = vst [vmem:[%s15471_s9 + $0x90] sm:$0xff] %v9846_v17  ;;  %v9747_v31 = vmul.f32 %v15668_v21, %v9692_v57  ;;  %v9428_v26 = vadd.f32 %v9427_v38, %v15285_v37 }
 0x71e   : > { %v9694_v24 = vpop.f32.mrf.mxu2  ;;  %v9518_v49 = vpop.f32.mrf.mxu0 }
 0x71f   : > { %v9783_v8 = vadd.f32 %v15680_v12, %v9747_v31  ;;  %v9517_v29 = vadd.f32 %v9516_v39, %v9428_v26  ;;  %v9607_v19 = vpop.f32.mrf.mxu1 }
 0x721   : > { %v9815_v45 = vadd.f32 %v9783_v8, %v16179_v35  ;;  %v9606_v40 = vadd.f32 %v9605_v34, %v9517_v29  ;;  %v16184_v8 = vld [vmem:[#allocation24_spill] sm:$0xff] }
 0x723   : > { %v9847_v14 = vmax.f32 %v9815_v45, 0.0  ;;  %v9695_v55 = vadd.f32 %v9694_v24, %v9606_v40 }
 0x724   : > { %v9429_v23 = vpop.f32.mrf.mxu3 }
 0x725   : > { %9879 = vst [vmem:[%s15471_s9 + $0x98] sm:$0xff] %v9847_v14  ;;  %v9748_v41 = vmul.f32 %v15668_v21, %v9695_v55  ;;  %v9430_v9 = vadd.f32 %v9429_v23, %v15295_v3 }
 0x726   : > { %v9696_v47 = vpop.f32.mrf.mxu2  ;;  %v9521_v37 = vpop.f32.mrf.mxu0 }
 0x727   : > { %v9784_v25 = vadd.f32 %v15680_v12, %v9748_v41  ;;  %v9519_v59 = vadd.f32 %v9518_v49, %v9430_v9  ;;  %v9610_v2 = vpop.f32.mrf.mxu1 }
 0x729   : > { %v9816_v54 = vadd.f32 %v9784_v25, %v16180_v50  ;;  %v9608_v6 = vadd.f32 %v9607_v19, %v9519_v59 }
 0x72b   : > { %v9848_v36 = vmax.f32 %v9816_v54, 0.0  ;;  %v9697_v11 = vadd.f32 %v9696_v47, %v9608_v6 }
 0x72c   : > { %v9432_v1 = vpop.f32.mrf.mxu3 }
 0x72d   : > { %9880 = vst [vmem:[%s15471_s9 + $0xa0] sm:$0xff] %v9848_v36  ;;  %v9749_v5 = vmul.f32 %v15668_v21, %v9697_v11  ;;  %v9433_v62 = vadd.f32 %v9432_v1, %v16181_v51  ;;  %v16186_v51 = vld [vmem:[#allocation53_spill] sm:$0xff] }
 0x72e   : > { %v9699_v43 = vpop.f32.mrf.mxu2  ;;  %v9523_v3 = vpop.f32.mrf.mxu0 }
 0x72f   : > { %v9785_v46 = vadd.f32 %v15680_v12, %v9749_v5  ;;  %v9522_v10 = vadd.f32 %v9521_v37, %v9433_v62  ;;  %v9612_v7 = vpop.f32.mrf.mxu1  ;;  %v16185_v37 = vld [vmem:[#allocation55_spill] sm:$0xff] }
 0x731   : > { %v9817_v0 = vadd.f32 %v9785_v46, %v16182_v4  ;;  %v9611_v53 = vadd.f32 %v9610_v2, %v9522_v10 }
 0x733   : > { %v9849_v52 = vmax.f32 %v9817_v0, 0.0  ;;  %v9700_v63 = vadd.f32 %v9699_v43, %v9611_v53 }
 0x734   : > { %v9434_v15 = vpop.f32.mrf.mxu3 }
 0x735   : > { %9881 = vst [vmem:[%s15471_s9 + $0xa8] sm:$0xff] %v9849_v52  ;;  %v9750_v20 = vmul.f32 %v15668_v21, %v9700_v63  ;;  %v9435_v61 = vadd.f32 %v9434_v15, %v15322_v32  ;;  %v16187_v15 = vld [vmem:[#allocation23_spill] sm:$0xff] }
 0x736   : > { %v9701_v42 = vpop.f32.mrf.mxu2  ;;  %v9526_v16 = vpop.f32.mrf.mxu0 }
 0x737   : > { %v9786_v27 = vadd.f32 %v15680_v12, %v9750_v20  ;;  %v9524_v39 = vadd.f32 %v9523_v3, %v9435_v61  ;;  %v9615_v22 = vpop.f32.mrf.mxu1 }
 0x739   : > { %v9818_v34 = vadd.f32 %v9786_v27, %v16183_v56  ;;  %v9613_v58 = vadd.f32 %v9612_v7, %v9524_v39 }
 0x73b   : > { %v9850_v28 = vmax.f32 %v9818_v34, 0.0  ;;  %v9702_v60 = vadd.f32 %v9701_v42, %v9613_v58 }
 0x73c   : > { %v9437_v17 = vpop.f32.mrf.mxu3 }
 0x73d   : > { %9882 = vst [vmem:[%s15471_s9 + $0xb0] sm:$0xff] %v9850_v28  ;;  %v9751_v57 = vmul.f32 %v15668_v21, %v9702_v60  ;;  %v9438_v38 = vadd.f32 %v9437_v17, %v15339_v30  ;;  %v16188_v28 = vld [vmem:[#allocation25_spill] sm:$0xff] }
 0x73e   : > { %v9704_v31 = vpop.f32.mrf.mxu2  ;;  %v9528_v32 = vpop.f32.mrf.mxu0 }
 0x73f   : > { %v9787_v26 = vadd.f32 %v15680_v12, %v9751_v57  ;;  %v9527_v24 = vadd.f32 %v9526_v16, %v9438_v38  ;;  %v9617_v49 = vpop.f32.mrf.mxu1 }
 0x741   : > { %v9819_v29 = vadd.f32 %v9787_v26, %v16184_v8  ;;  %v9616_v19 = vadd.f32 %v9615_v22, %v9527_v24 }
 0x743   : > { %v9851_v35 = vmax.f32 %v9819_v29, 0.0  ;;  %v9705_v45 = vadd.f32 %v9704_v31, %v9616_v19  ;;  %v16189_v19 = vld [vmem:[#allocation26_spill] sm:$0xff] }
 0x744   : > { %v9439_v40 = vpop.f32.mrf.mxu3 }
 0x745   : > { %9883 = vst [vmem:[%s15471_s9 + $0xb8] sm:$0xff] %v9851_v35  ;;  %v9752_v14 = vmul.f32 %v15668_v21, %v9705_v45  ;;  %v9440_v55 = vadd.f32 %v9439_v40, %v15349_v18 }
 0x746   : > { %v9706_v23 = vpop.f32.mrf.mxu2  ;;  %v9531_v30 = vpop.f32.mrf.mxu0 }
 0x747   : > { %v9788_v41 = vadd.f32 %v15680_v12, %v9752_v14  ;;  %v9529_v9 = vadd.f32 %v9528_v32, %v9440_v55  ;;  %v9620_v47 = vpop.f32.mrf.mxu1 }
 0x749   : > { %v9820_v25 = vadd.f32 %v9788_v41, %v16185_v37  ;;  %v9618_v59 = vadd.f32 %v9617_v49, %v9529_v9  ;;  %v16190_v41 = vld [vmem:[#allocation60_spill] sm:$0xff] }
 0x74b   : > { %v9852_v2 = vmax.f32 %v9820_v25, 0.0  ;;  %v9707_v50 = vadd.f32 %v9706_v23, %v9618_v59  ;;  %v16191_v59 = vld [vmem:[#allocation58_spill] sm:$0xff] }
 0x74c   : > { %v9442_v54 = vpop.f32.mrf.mxu3 }
 0x74d   : > { %9884 = vst [vmem:[%s15471_s9 + $0xc0] sm:$0xff] %v9852_v2  ;;  %v9753_v6 = vmul.f32 %v15668_v21, %v9707_v50  ;;  %v9443_v36 = vadd.f32 %v9442_v54, %v15366_v33 }
 0x74e   : > { %v9709_v11 = vpop.f32.mrf.mxu2  ;;  %v9533_v18 = vpop.f32.mrf.mxu0 }
 0x74f   : > { %v9789_v1 = vadd.f32 %v15680_v12, %v9753_v6  ;;  %v9532_v5 = vadd.f32 %v9531_v30, %v9443_v36  ;;  %v9622_v3 = vpop.f32.mrf.mxu1 }
 0x751   : > { %v9821_v62 = vadd.f32 %v9789_v1, %v16186_v51  ;;  %v9621_v43 = vadd.f32 %v9620_v47, %v9532_v5 }
 0x753   : > { %v9853_v46 = vmax.f32 %v9821_v62, 0.0  ;;  %v9710_v10 = vadd.f32 %v9709_v11, %v9621_v43 }
 0x754   : > { %v9444_v7 = vpop.f32.mrf.mxu3 }
 0x755   : > { %9885 = vst [vmem:[%s15471_s9 + $0xc8] sm:$0xff] %v9853_v46  ;;  %v9754_v4 = vmul.f32 %v15668_v21, %v9710_v10  ;;  %v9445_v0 = vadd.f32 %v9444_v7, %v15376_v48 }
 0x756   : > { %v9711_v53 = vpop.f32.mrf.mxu2  ;;  %v9536_v63 = vpop.f32.mrf.mxu0 }
 0x757   : > { %v9790_v33 = vadd.f32 %v15680_v12, %v9754_v4  ;;  %v9534_v52 = vadd.f32 %v9533_v18, %v9445_v0  ;;  %v9625_v27 = vpop.f32.mrf.mxu1  ;;  %v16192_v18 = vld [vmem:[#allocation61_spill] sm:$0xff] }
 0x759   : > { %v9822_v20 = vadd.f32 %v9790_v33, %v16187_v15  ;;  %v9623_v61 = vadd.f32 %v9622_v3, %v9534_v52  ;;  %v16193_v3 = vld [vmem:[#allocation59_spill] sm:$0xff] }
 0x75a   : > { %v16194_v52 = vld [vmem:[#allocation91_spill] sm:$0xff] }
 0x75b   : > { %v9854_v42 = vmax.f32 %v9822_v20, 0.0  ;;  %v9712_v16 = vadd.f32 %v9711_v53, %v9623_v61 }
 0x75c   : > { %v9447_v39 = vpop.f32.mrf.mxu3 }
 0x75d   : > { %9886 = vst [vmem:[%s15471_s9 + $0xd0] sm:$0xff] %v9854_v42  ;;  %v9755_v22 = vmul.f32 %v15668_v21, %v9712_v16  ;;  %v9448_v56 = vadd.f32 %v9447_v39, %v15393_v44 }
 0x75e   : > { %v9714_v34 = vpop.f32.mrf.mxu2  ;;  %v9538_v57 = vpop.f32.mrf.mxu0 }
 0x75f   : > { %v9791_v48 = vadd.f32 %v15680_v12, %v9755_v22  ;;  %v9537_v58 = vadd.f32 %v9536_v63, %v9448_v56  ;;  %v9627_v49 = vpop.f32.mrf.mxu1 }
 0x761   : > { %v9823_v60 = vadd.f32 %v9791_v48, %v16188_v28  ;;  %v9626_v17 = vadd.f32 %v9625_v27, %v9537_v58 }
 0x763   : > { %v9855_v38 = vmax.f32 %v9823_v60, 0.0  ;;  %v9715_v31 = vadd.f32 %v9714_v34, %v9626_v17 }
 0x764   : > { %v9449_v32 = vpop.f32.mrf.mxu3 }
 0x765   : > { %9887 = vst [vmem:[%s15471_s9 + $0xd8] sm:$0xff] %v9855_v38  ;;  %v9756_v26 = vmul.f32 %v15668_v21, %v9715_v31  ;;  %v9450_v24 = vadd.f32 %v9449_v32, %v15403_v13 }
 0x766   : > { %v9716_v8 = vpop.f32.mrf.mxu2  ;;  %v9541_v55 = vpop.f32.mrf.mxu0 }
 0x767   : > { %v9792_v44 = vadd.f32 %v15680_v12, %v9756_v26  ;;  %v9539_v29 = vadd.f32 %v9538_v57, %v9450_v24  ;;  %v9630_v47 = vpop.f32.mrf.mxu1 }
 0x769   : > { %v9824_v35 = vadd.f32 %v9792_v44, %v16189_v19  ;;  %v9628_v45 = vadd.f32 %v9627_v49, %v9539_v29 }
 0x76b   : > { %v9856_v40 = vmax.f32 %v9824_v35, 0.0  ;;  %v9717_v14 = vadd.f32 %v9716_v8, %v9628_v45 }
 0x76c   : > { %v9452_v23 = vpop.f32.mrf.mxu3 }
 0x76d   : > { %9888 = vst [vmem:[%s15471_s9 + $0xe0] sm:$0xff] %v9856_v40  ;;  %v9757_v30 = vmul.f32 %v15668_v21, %v9717_v14  ;;  %v9453_v9 = vadd.f32 %v9452_v23, %v16190_v41 }
 0x76e   : > { %v9719_v25 = vpop.f32.mrf.mxu2  ;;  %v9543_v5 = vpop.f32.mrf.mxu0 }
 0x76f   : > { %v9793_v13 = vadd.f32 %v15680_v12, %v9757_v30  ;;  %v9542_v37 = vadd.f32 %v9541_v55, %v9453_v9  ;;  %v9632_v43 = vpop.f32.mrf.mxu1 }
 0x771   : > { %v9825_v2 = vadd.f32 %v9793_v13, %v16191_v59  ;;  %v9631_v50 = vadd.f32 %v9630_v47, %v9542_v37 }
 0x773   : > { %v9857_v54 = vmax.f32 %v9825_v2, 0.0  ;;  %v9720_v6 = vadd.f32 %v9719_v25, %v9631_v50 }
 0x774   : > { %v9454_v36 = vpop.f32.mrf.mxu3 }
 0x775   : > { %9889 = vst [vmem:[%s15471_s9 + $0xe8] sm:$0xff] %v9857_v54  ;;  %v9758_v11 = vmul.f32 %v15668_v21, %v9720_v6  ;;  %v9455_v1 = vadd.f32 %v9454_v36, %v16192_v18 }
 0x776   : > { %v9721_v7 = vpop.f32.mrf.mxu2 }
 0x777   : > { %v9794_v51 = vadd.f32 %v15680_v12, %v9758_v11  ;;  %v9544_v62 = vadd.f32 %v9543_v5, %v9455_v1 }
 0x779   : > { %v9826_v46 = vadd.f32 %v9794_v51, %v16193_v3  ;;  %v9633_v10 = vadd.f32 %v9632_v43, %v9544_v62 }
 0x77b   : > { %v9858_v4 = vmax.f32 %v9826_v46, 0.0  ;;  %v9722_v0 = vadd.f32 %v9721_v7, %v9633_v10 }
 0x77d   : > { %9890 = vst [vmem:[%s15471_s9 + $0xf0] sm:$0xff] %v9858_v4  ;;  %v9759_v53 = vmul.f32 %v15668_v21, %v9722_v0 }
 0x77f   : > { %v9795_v33 = vadd.f32 %v15680_v12, %v9759_v53 }
 0x781   : > { %v9827_v63 = vadd.f32 %v9795_v33, %v16194_v52 }
 0x783   : > { %v9859_v15 = vmax.f32 %v9827_v63, 0.0 }
 0x785   : > { %9891 = vst [vmem:[%s15471_s9 + $0xf8] sm:$0xff] %v9859_v15 }
 0x786   : > { %12007 = shalt.err (!%p12004_p8)
}
 0x787   : > { %s12052_s23 = smov 128   ;;  %s12053_s9 = smov 8  }
 0x788   : > { %11809 = dma.vmem_to_hbm [thread:$0]  (%p12132_p5), %s9906_s20, 4096, %s9908_s21, %s9893_s28, %s12052_s23, %s12052_s23, %s12053_s9  }
 0x789 PF: > { %p11821_p9 = scmp.ge.s32.totalorder %s12046_s27, 2  ;;  %s9922_s18 = sand.u32 1, %s12034_s24  }
 0x78a   : > { %s9923_s19 = scalar_lea.sflag [#allocation5], %s9922_s18 }
 0x78b   : > { %p11816_p10 = pnand %p11821_p9, %p12136_p6 }
 0x78d   : > { %p11817_p11 = pneg %p11816_p10 }
 0x78f   : > { %12029 = dma.done.wait (%p11817_p11), %s9923_s19, 4096  }
 0x790   : > { %12031 = vsyncadd (%p11817_p11), %s9923_s19, 4294963200  ;;  %p18_p12 = scmp.ge.s32.totalorder %s12119_s30, 4   ;;  %s16195_s24 = smov %s12038_s25 }
 0x791   : > { %s16196_s25 = smov %s12042_s26  ;;  %s16197_s26 = smov %s12130_s10 }
 0x792   : > { %s16198_s27 = smov %s12119_s30  ;;  %20 = sbr.rel (!%p18_p12) target bundleno = 4 (0x4), region = 93 }
 0x797   :  { %9929 = vsyncpa [#allocation4], 1 }
 0x798   :  { %9931 = vsyncpa [#allocation4 + $0x1], 1 }
 0x799   :  { %9932 = vsyncpa [#allocation5], 1 }
 0x79a   :  { %9934 = vsyncpa [#allocation5 + $0x1], 1 }

</bundles_post_ra>
